<compile_context>
chip_gen: v7x
topology: tpu7x:2x2x1
jax: 0.10.0
libtpu: 0.0.40
codegen_flags: <defaults>
</compile_context>

<pallas_src>
import math

import jax
import jax.numpy as jnp
from jax.experimental import pallas as pl
from jax.experimental.pallas import tpu as pltpu


_C_IN = 2048    # input channels expected by dense_1
_C_HID = 512    # hidden width of dense_1
_LANES = 128
_SUB = 8


def _round_up(x, m):
    return ((x + m - 1) // m) * m


def _target_block_bytes():
    """Generation-aware x-block budget: 8 MiB is safe on v7x (64 MiB physical
    VMEM / 32 MiB scoped default); raise to 16 MiB on 128 MiB parts."""
    try:
        info = pltpu.get_tpu_info()
        vmem = getattr(info, "vmem_capacity_bytes", 0) or 0
        if vmem >= (100 << 20):
            return 16 << 20      # v5e / v6e
    except Exception:
        pass
    return 8 << 20               # v7x-safe default


def _pick_tiles(n, hw, itemsize, target_bytes):
    """Choose (batch_tile, channel_tile).

    tb <= 8 and tb <= ceil(n/2) so the parallel batch axis has >= 2 steps
    whenever n >= 2 (keeps both v7x TensorCores busy).  tc is a power-of-two
    divisor of 2048 chosen so one x block (with lane padding) fits the budget.
    """
    tb = max(1, min(_SUB, -(-n // 2)))
    hw_pad = _round_up(max(hw, 1), _LANES)
    tc = _C_IN
    while tc > 8 and tb * tc * hw_pad * itemsize > target_bytes:
        tc //= 2
    return tb, tc


def discriminator_forward(x_nchw, w1, b1, w2, b2):
    """x_nchw: (N, 2048, H, W) f32 or bf16.  Weights in (in, out) layout.
    Returns (N, 1) float32."""
    n, c, sp_h, sp_w = x_nchw.shape
    assert c == _C_IN, "Discriminator expects 2048 input channels"
    hw = sp_h * sp_w

    # Free reshape only -- no HBM transpose pass; the kernel reads NCHW natively.
    x3 = x_nchw.reshape(n, c, hw)

    w1_f = w1.astype(jnp.float32)                         # (2048, 512)
    b1_2d = b1.astype(jnp.float32).reshape(1, _C_HID)     # (1, 512)
    w2_row = w2.astype(jnp.float32).reshape(1, _C_HID)    # (1, 512) row vector
    b2_2d = b2.astype(jnp.float32).reshape(1, 1)          # (1, 1)

    itemsize = x3.dtype.itemsize
    tb, tc = _pick_tiles(n, hw, itemsize, _target_block_bytes())
    nb = pl.cdiv(n, tb)
    nc = _C_IN // tc
    inv_hw = 1.0 / float(hw)

    def _lane_fold_sum(x_ref):
        """Sum a (tb, tc, hw) block over its last (lane) axis -> (tb, tc) f32.

        Whole-vreg 128-lane chunks are combined with VPU adds; only a single
        cross-lane reduce per block remains (+ one small one for a ragged
        tail, if any).  Upcasting happens per chunk so bf16 inputs never
        materialize a full-block f32 temporary.
        """
        hw_blk = x_ref.shape[-1]
        n_full = hw_blk // _LANES
        if hw_blk <= _LANES or n_full > 64:
            return jnp.sum(x_ref[...].astype(jnp.float32), axis=-1)
        acc = x_ref[:, :, 0:_LANES].astype(jnp.float32)
        for q in range(1, n_full):
            acc = acc + x_ref[:, :, q * _LANES:(q + 1) * _LANES].astype(jnp.float32)
        total = jnp.sum(acc, axis=-1)
        rem = hw_blk - n_full * _LANES
        if rem:
            total = total + jnp.sum(
                x_ref[:, :, n_full * _LANES:hw_blk].astype(jnp.float32), axis=-1)
        return total

    def kernel(x_ref, w1_ref, b1_ref, w2_ref, b2_ref, o_ref, hid_ref):
        j = pl.program_id(1)

        @pl.when(j == 0)
        def _init():
            hid_ref[...] = jnp.zeros_like(hid_ref)

        # Pooled mean for this channel tile: (tb, tc), exact 1/HW scale.
        pooled_c = _lane_fold_sum(x_ref) * jnp.float32(inv_hw)

        # Contract against the matching rows of the resident W1 on the MXU.
        c0 = pl.multiple_of(j * tc, tc)
        w1_c = w1_ref[pl.ds(c0, tc), :]                      # (tc, 512)
        hid_ref[...] += jnp.dot(pooled_c, w1_c,
                                preferred_element_type=jnp.float32)

        @pl.when(j == pl.num_programs(1) - 1)
        def _epilogue():
            hid = jnp.maximum(hid_ref[...] + b1_ref[...], 0.0)    # (tb, 512)
            # Linear(512 -> 1): VPU multiply + lane reduce (skip a 1-lane MXU op).
            logit = jnp.sum(hid * w2_ref[...], axis=-1, keepdims=True) + b2_ref[...]
            # Note: out-of-range batch rows of a ragged last tile hold garbage
            # inputs; their outputs land past row n-1 and are sliced off below.
            o_ref[0, 0:tb, 0:1] = jax.nn.sigmoid(logit).astype(o_ref.dtype)

    # VMEM budget from the actual working set (lane/sublane padded blocks,
    # double-buffered x, resident W1 conservatively counted twice, headroom).
    hw_vmem = _round_up(max(hw, 1), _LANES)
    tc_vmem = _round_up(tc, 32)
    x_blk_bytes = tb * tc_vmem * hw_vmem * itemsize
    w1_bytes = _C_IN * _C_HID * 4
    vmem_limit = int(2 * x_blk_bytes + 2 * w1_bytes + (6 << 20))
    vmem_limit = max(24 << 20, min(vmem_limit, 112 << 20))

    cost = pl.CostEstimate(
        flops=int(n * hw * _C_IN + 2 * n * _C_IN * _C_HID + 2 * n * _C_HID),
        transcendentals=int(n),
        bytes_accessed=int(x3.size * itemsize
                           + (w1_f.size + b1.size + w2.size + b2.size) * 4
                           + nb * _SUB * _LANES * 4),
    )

    out3 = pl.pallas_call(
        kernel,
        out_shape=jax.ShapeDtypeStruct((nb, _SUB, _LANES), jnp.float32),
        grid=(nb, nc),
        in_specs=[
            pl.BlockSpec((tb, tc, hw), lambda i, j: (i, j, 0)),      # x (pipelined)
            pl.BlockSpec((_C_IN, _C_HID), lambda i, j: (0, 0)),      # W1 resident
            pl.BlockSpec((1, _C_HID), lambda i, j: (0, 0)),          # b1 resident
            pl.BlockSpec((1, _C_HID), lambda i, j: (0, 0)),          # w2 row resident
            pl.BlockSpec((1, 1), lambda i, j: (0, 0)),               # b2 resident
        ],
        out_specs=pl.BlockSpec((1, _SUB, _LANES), lambda i, j: (i, 0, 0)),
        scratch_shapes=[pltpu.VMEM((tb, _C_HID), jnp.float32)],      # hidden accumulator
        compiler_params=pltpu.CompilerParams(
            dimension_semantics=("parallel", "arbitrary"),
            vmem_limit_bytes=vmem_limit),
        cost_estimate=cost,
    )(x3, w1_f, b1_2d, w2_row, b2_2d)

    # Gather the valid logits out of the lane-aligned staging slab.
    out = out3[:, :tb, 0].reshape(nb * tb, 1)[:n]
    return out


def _xavier_normal(key, fan_in, fan_out):
    # Matches torch.nn.init.xavier_normal_: std = sqrt(2 / (fan_in + fan_out)).
    std = math.sqrt(2.0 / (fan_in + fan_out))
    # Stored as (fan_in, fan_out) == transpose of PyTorch's (out, in) layout.
    return std * jax.random.normal(key, (fan_in, fan_out), dtype=jnp.float32)


def _reference_forward(x_nchw, w1, b1, w2, b2):
    pooled = jnp.mean(x_nchw, axis=(2, 3))
    h = jnp.maximum(pooled @ w1 + b1, 0.0)
    return jax.nn.sigmoid(h @ w2 + b2)


if __name__ == "__main__":
    key = jax.random.PRNGKey(0)
    k_x, k_w1, k_w2 = jax.random.split(key, 3)

    # Small but shape-consistent input: batch=2, C=2048 (required by Linear), H=W=4.
    N, C, H, W = 2, 2048, 4, 4
    x = jax.random.normal(k_x, (N, C, H, W), dtype=jnp.float32)

    w1 = _xavier_normal(k_w1, _C_IN, _C_HID)
    b1 = jnp.zeros((_C_HID,), dtype=jnp.float32)
    w2 = _xavier_normal(k_w2, _C_HID, 1)
    b2 = jnp.zeros((1,), dtype=jnp.float32)

    out = jax.block_until_ready(discriminator_forward(x, w1, b1, w2, b2))
    ref = jax.block_until_ready(_reference_forward(x, w1, b1, w2, b2))

    assert out.shape == (N, 1)
    assert jnp.allclose(out, ref, atol=1e-5, rtol=1e-5), (out, ref)

    print("KERNEL_OK")
</pallas_src>

<mosaic_0001>
module attributes {stable_mosaic.version = 11 : i64} {
  func.func @kernel(%arg0: i32, %arg1: i32, %arg2: memref<1x2048x16xf32, #tpu.memory_space<vmem>>, %arg3: memref<2048x512xf32, #tpu.memory_space<vmem>>, %arg4: memref<1x512xf32, #tpu.memory_space<vmem>>, %arg5: memref<1x512xf32, #tpu.memory_space<vmem>>, %arg6: memref<1x1xf32, #tpu.memory_space<vmem>>, %arg7: memref<1x8x128xf32, #tpu.memory_space<vmem>>, %arg8: memref<1x512xf32, #tpu.memory_space<vmem>>) attributes {dimension_semantics = [#tpu.dimension_semantics<parallel>, #tpu.dimension_semantics<arbitrary>], iteration_bounds = array<i64: 2, 1>, scalar_prefetch = 0 : i64, scratch_operands = 1 : i64, tpu.core_type = #tpu.core_type<tc>, window_params = [{transform_indices = @transform_0, window_bounds = array<i64: 1, 2048, 16>}, {pipeline_mode = #tpu.pipeline_mode<synchronous>, transform_indices = @transform_1, window_bounds = array<i64: 2048, 512>}, {pipeline_mode = #tpu.pipeline_mode<synchronous>, transform_indices = @transform_2, window_bounds = array<i64: 1, 512>}, {pipeline_mode = #tpu.pipeline_mode<synchronous>, transform_indices = @transform_3, window_bounds = array<i64: 1, 512>}, {pipeline_mode = #tpu.pipeline_mode<synchronous>, transform_indices = @transform_4, window_bounds = array<i64: 1, 1>}, {transform_indices = @transform_5, window_bounds = array<i64: 1, 8, 128>}]} {
    %c0_i32 = arith.constant 0 : i32
    %0 = arith.cmpi eq, %arg1, %c0_i32 : i32
    %1 = arith.extui %0 : i1 to i32
    %c0_i32_0 = arith.constant 0 : i32
    %2 = arith.cmpi ne, %1, %c0_i32_0 : i32
    scf.if %2 {
      %cst_12 = arith.constant 0.000000e+00 : f32
      %18 = vector.broadcast %cst_12 : f32 to vector<1x512xf32>
      %c0_13 = arith.constant 0 : index
      %c0_14 = arith.constant 0 : index
      %19 = vector.load %arg8[%c0_13, %c0_14] : memref<1x512xf32, #tpu.memory_space<vmem>>, vector<1x512xf32>
      tpu.vector_store %arg8[%c0_13, %c0_14], %18 {strides = array<i32>} : memref<1x512xf32, #tpu.memory_space<vmem>>, vector<1x512xf32>,
    } else {
    }
    %c0 = arith.constant 0 : index
    %c0_1 = arith.constant 0 : index
    %c0_2 = arith.constant 0 : index
    %3 = vector.load %arg2[%c0, %c0_1, %c0_2] : memref<1x2048x16xf32, #tpu.memory_space<vmem>>, vector<1x2048x16xf32>
    %cst = arith.constant dense<0.000000e+00> : vector<1x2048xf32>
    %4 = vector.multi_reduction <add>, %3, %cst [2] : vector<1x2048x16xf32> to vector<1x2048xf32>
    %cst_3 = arith.constant 6.250000e-02 : f32
    %5 = vector.broadcast %cst_3 : f32 to vector<1x2048xf32>
    %6 = arith.mulf %4, %5 : vector<1x2048xf32>
    %c2048_i32 = arith.constant 2048 : i32
    %7 = arith.muli %arg1, %c2048_i32 : i32
    %8 = tpu.assume_multiple %7, 2048 : i32
    %9 = arith.index_cast %8 : i32 to index
    %c0_4 = arith.constant 0 : index
    %10 = vector.load %arg3[%9, %c0_4] : memref<2048x512xf32, #tpu.memory_space<vmem>>, vector<2048x512xf32>
    %c0_5 = arith.constant 0 : index
    %c0_6 = arith.constant 0 : index
    %11 = vector.load %arg8[%c0_5, %c0_6] : memref<1x512xf32, #tpu.memory_space<vmem>>, vector<1x512xf32>
    %cst_7 = arith.constant dense<0.000000e+00> : vector<1x512xf32>
    %12 = tpu.matmul %6, %10, %cst_7 {dimension_numbers = #tpu.dot_dimension_numbers<[1], [0], [0], [1], [0, 0, 1, 1], [], []>} : vector<1x2048xf32>, vector<2048x512xf32>, vector<1x512xf32> -> vector<1x512xf32>
    %13 = arith.addf %11, %12 : vector<1x512xf32>
    %c0_8 = arith.constant 0 : index
    %c0_9 = arith.constant 0 : index
    %14 = vector.load %arg8[%c0_8, %c0_9] : memref<1x512xf32, #tpu.memory_space<vmem>>, vector<1x512xf32>
    tpu.vector_store %arg8[%c0_8, %c0_9], %13 {strides = array<i32>} : memref<1x512xf32, #tpu.memory_space<vmem>>, vector<1x512xf32>,
    %c0_i32_10 = arith.constant 0 : i32
    %15 = arith.cmpi eq, %arg1, %c0_i32_10 : i32
    %16 = arith.extui %15 : i1 to i32
    %c0_i32_11 = arith.constant 0 : i32
    %17 = arith.cmpi ne, %16, %c0_i32_11 : i32
    scf.if %17 {
      %c0_12 = arith.constant 0 : index
      %c0_13 = arith.constant 0 : index
      %18 = vector.load %arg8[%c0_12, %c0_13] : memref<1x512xf32, #tpu.memory_space<vmem>>, vector<1x512xf32>
      %c0_14 = arith.constant 0 : index
      %c0_15 = arith.constant 0 : index
      %19 = vector.load %arg4[%c0_14, %c0_15] : memref<1x512xf32, #tpu.memory_space<vmem>>, vector<1x512xf32>
      %20 = arith.addf %18, %19 : vector<1x512xf32>
      %cst_16 = arith.constant 0.000000e+00 : f32
      %21 = vector.broadcast %cst_16 : f32 to vector<1x512xf32>
      %22 = arith.maximumf %20, %21 : vector<1x512xf32>
      %c0_17 = arith.constant 0 : index
      %c0_18 = arith.constant 0 : index
      %23 = vector.load %arg5[%c0_17, %c0_18] : memref<1x512xf32, #tpu.memory_space<vmem>>, vector<1x512xf32>
      %24 = arith.mulf %22, %23 : vector<1x512xf32>
      %cst_19 = arith.constant dense<0.000000e+00> : vector<1xf32>
      %25 = vector.multi_reduction <add>, %24, %cst_19 [1] : vector<1x512xf32> to vector<1xf32>
      %26 = vector.shape_cast %25 : vector<1xf32> to vector<1x1xf32>
      %c0_20 = arith.constant 0 : index
      %c0_21 = arith.constant 0 : index
      %27 = vector.load %arg6[%c0_20, %c0_21] : memref<1x1xf32, #tpu.memory_space<vmem>>, vector<1x1xf32>
      %28 = arith.addf %26, %27 : vector<1x1xf32>
      %29 = arith.negf %28 : vector<1x1xf32>
      %30 = math.exp %29 : vector<1x1xf32>
      %cst_22 = arith.constant 1.000000e+00 : f32
      %31 = vector.broadcast %cst_22 : f32 to vector<1x1xf32>
      %32 = arith.addf %31, %30 : vector<1x1xf32>
      %33 = arith.divf %31, %32 : vector<1x1xf32>
      %c0_23 = arith.constant 0 : index
      %c0_24 = arith.constant 0 : index
      %c0_25 = arith.constant 0 : index
      %34 = vector.load %arg7[%c0_23, %c0_24, %c0_25] : memref<1x8x128xf32, #tpu.memory_space<vmem>>, vector<1x1x1xf32>
      %35 = vector.shape_cast %34 : vector<1x1x1xf32> to vector<1x1xf32>
      %36 = vector.shape_cast %33 : vector<1x1xf32> to vector<1x1x1xf32>
      tpu.vector_store %arg7[%c0_23, %c0_24, %c0_25], %36 {strides = array<i32>} : memref<1x8x128xf32, #tpu.memory_space<vmem>>, vector<1x1x1xf32>,
    } else {
    }
    return
  }
  func.func @transform_0(%arg0: i32, %arg1: i32) -> (i32, i32, i32) {
    %c0_i32 = arith.constant 0 : i32
    %c0_i32_0 = arith.constant 0 : i32
    return %arg0, %arg1, %c0_i32 : i32, i32, i32
  }
  func.func @transform_1(%arg0: i32, %arg1: i32) -> (i32, i32) {
    %c0_i32 = arith.constant 0 : i32
    %c0_i32_0 = arith.constant 0 : i32
    %c0_i32_1 = arith.constant 0 : i32
    return %c0_i32, %c0_i32_0 : i32, i32
  }
  func.func @transform_2(%arg0: i32, %arg1: i32) -> (i32, i32) {
    %c0_i32 = arith.constant 0 : i32
    %c0_i32_0 = arith.constant 0 : i32
    %c0_i32_1 = arith.constant 0 : i32
    return %c0_i32, %c0_i32_0 : i32, i32
  }
  func.func @transform_3(%arg0: i32, %arg1: i32) -> (i32, i32) {
    %c0_i32 = arith.constant 0 : i32
    %c0_i32_0 = arith.constant 0 : i32
    %c0_i32_1 = arith.constant 0 : i32
    return %c0_i32, %c0_i32_0 : i32, i32
  }
  func.func @transform_4(%arg0: i32, %arg1: i32) -> (i32, i32) {
    %c0_i32 = arith.constant 0 : i32
    %c0_i32_0 = arith.constant 0 : i32
    %c0_i32_1 = arith.constant 0 : i32
    return %c0_i32, %c0_i32_0 : i32, i32
  }
  func.func @transform_5(%arg0: i32, %arg1: i32) -> (i32, i32, i32) {
    %c0_i32 = arith.constant 0 : i32
    %c0_i32_0 = arith.constant 0 : i32
    %c0_i32_1 = arith.constant 0 : i32
    return %arg0, %c0_i32, %c0_i32_0 : i32, i32, i32
  }
}

</mosaic_0001>

<bundles_post_ra>
// kernel: tpu_custom_call.1
= control target key start
LH: loop header
LB: loop body
LE: loop exit
PB: predicated region body
PF: predicated region fallthrough
CT: control target
= control target key end

     0   :  { %s11063_s0 = inlined_call_operand.vmem [shape: f32[2,2048,16], index: 0, kind: input, shape index: {}]   ;;  %s11064_s1 = inlined_call_operand.hbm [shape: f32[2048,512], index: 1, kind: input, shape index: {}]   ;;  %s11065_s2 = inlined_call_operand.hbm [shape: f32[1,512], index: 2, kind: input, shape index: {}]   ;;  %s11066_s3 = inlined_call_operand.hbm [shape: f32[1,512], index: 3, kind: input, shape index: {}]   ;;  %s11067_s4 = inlined_call_operand.<no memory space> [shape: f32[1,1], index: 4, kind: input, shape index: {}]   ;;  %s11068_s5 = inlined_call_operand.hbm [shape: f32[2,8,128], index: 5, kind: output, shape index: {}]  }
   0x1   :  { %11326 = sst [smem:[#allocation76_spill]] %s11065_s2  ;;  %v10_v0 = vstv %s11067_s4 }
   0x2   :  { %11 = vst [vmem:[#allocation3] sm:$0x1] %v10_v0 }
   0x3   :  { %12 = vsyncpa [#allocation5], 0 }
   0x4   :  { %13 = vsyncpa [#allocation8], 0 }
   0x5   :  { %14 = vsyncpa [#allocation6], 0 }
   0x6   :  { %16 = vsyncpa [#allocation6 + $0x1], 0  ;;  %s6902_s20 = smov 0   ;;  %s6904_s21 = smov 0  }
   0x7   :  { %s6906_s22 = smov 0   ;;  %s6908_s23 = smov 0  }
   0x8   :  { %s6910_s24 = smov 0   ;;  %s6912_s25 = smov 0  }
   0x9 LB: > { %s5523_s4 = sadd.s32 4294967295, %s6859_s25   ;;  %s5524_s26 = sadd.s32 4294967294, %s6859_s25   ;;  %s6859_s25 = sphi %s6912_s25, %s22_s25   ;;  %s6855_s24 = sphi %s6910_s24, %s12093_s24   ;;  %s6851_s23 = sphi %s6908_s23, %s12092_s23   ;;  %s6847_s22 = sphi %s6906_s22, %s12091_s22   ;;  %s6843_s21 = sphi %s6904_s21, %s12090_s21   ;;  %s6839_s20 = sphi %s6902_s20, %s12089_s20  }
   0xa   : > { %s34_s27 = sadd.s32 1, %s6855_s24  ;;  %s153_s28 = sadd.s32 1, %s6847_s22 }
   0xb   : > { %p36_p0 = scmp.ge.s32.totalorder %s34_s27, 2  ;;  %p163_p1 = scmp.ne.s32.totalorder %s6847_s22, %s6843_s21 }
   0xc   : > { %p164_p2 = scmp.eq.s32.totalorder %s5523_s4, 1  ;;  %p169_p3 = scmp.ne.s32.totalorder %s6843_s21, %s6839_s20 }
   0xd   : > { %s12095_s27 = smov (%p36_p0, %s34_s27), 0  ;;  %p170_p5 = scmp.eq.s32.totalorder %s5524_s26, 1 }
   0xe   : > { %11327 = sst [smem:[#allocation14_spill]] %s12095_s27  ;;  %p6942_p4 = por %p164_p2, %p163_p1 }
   0xf   : > { %s150_s30 = ssub.s32 %s6855_s24, %s12095_s27  ;;  %p5525_p6 = scmp.ge.s32.totalorder %s6859_s25, 1 }
  0x10   : > { %s11328_s29 = scalar_select %p6942_p4, 1, 0 }
  0x11   : > { %p151_p7 = scmp.eq.s32.totalorder %s150_s30, 0  ;;  %p6949_p8 = por %p170_p5, %p169_p3 }
  0x12   : > { %p177_p9 = scmp.lt.s32.totalorder %s6859_s25, 3  ;;  %p6961_p11 = scmp.eq.s32.totalorder %s5523_s4, 0 }
  0x13   : > { %s11329_s6 = scalar_select %p6949_p8, 1, 0 }
  0x14   : > { %s6955_s7 = scalar_select %p151_p7, %s6847_s22, %s153_s28  }
  0x15   : > { %p6957_p10 = pnand %p5525_p6, %p177_p9  ;;  %s6861_s10 = smov [#allocation7]  }
  0x16   : > { %s11331_s9 = scalar_select %p6961_p11, 1, 0 }
  0x17   : > { %s11330_s8 = scalar_select %p6957_p10, 1, 0 }
  0x18   : > { %p6609_p12 = pneg %p6957_p10  ;;  %s203_s11 = sshll.u32 %s6861_s10, 4  ;;  %s204_s11 = int_to_ptr.vmem [resolvable:$true] %s203_s11 }
  0x19   : > { %s6862_s13 = smov [#allocation4]   ;;  %s11333_s2 = sld [smem:[#allocation76_spill]] }
  0x1a   : > { %p6969_p13 = pnand %p6961_p11, %p6609_p12  ;;  %s189_s14 = sshll.u32 %s6862_s13, 4  ;;  %s6973_s14 = int_to_ptr.vmem [resolvable:$true] %s189_s14 }
  0x1c   : > { %p6983_p1 = pneg %p6969_p13 }
  0x1f   : > { %s6689_s17 = scalar_lea.hbm %s11333_s2, 64 }
  0x20   : > { %p6690_p0 = scmp.ne.s32.totalorder %s11333_s2, %s6689_s17  ;;  %p6696_p5 = scmp.lt.u32.totalorder %s6689_s17, %s11333_s2 }
  0x22   : > { %p6692_p2 = pnand %p6983_p1, %p6690_p0 }
  0x24   : > { %p6693_p3 = pneg %p6692_p2 }
  0x26   : > { %p6698_p6 = pnand %p6696_p5, %p6693_p3 }
  0x28   : > { %6701 = shalt.err (!%p6698_p6)
}
  0x29   : > { %s6702_s30 = scalar_lea.vmem %s204_s11, 64  ;;  %p6710_p8 = scmp.lt.s32.totalorder %s204_s11, %s204_s11 }
  0x2a   : > { %p6703_p7 = scmp.ne.s32.totalorder %s204_s11, %s6702_s30  ;;  %p6711_p4 = scmp.lt.s32.totalorder %s6702_s30, %s6702_s30 }
  0x2c   : > { %p6705_p9 = pnand %p6703_p7, %p6983_p1  ;;  %p6712_p11 = por %p6711_p4, %p6710_p8 }
  0x2e   : > { %p6706_p12 = pneg %p6705_p9 }
  0x30   : > { %p6713_p10 = pnand %p6712_p11, %p6706_p12 }
  0x32   : > { %6716 = shalt.err (!%p6713_p10)
}
  0x33   : > { %6615 = dma.hbm_to_vmem [thread:$0]  (!%p6969_p13), %s11333_s2, 64, %s204_s11, [#allocation8]  }
  0x34   : > { %s6717_s17 = scalar_lea.hbm %s11064_s1, 131072 }
  0x35   : > { %p6718_p0 = scmp.ne.s32.totalorder %s11064_s1, %s6717_s17  ;;  %p6724_p8 = scmp.lt.u32.totalorder %s6717_s17, %s11064_s1 }
  0x37   : > { %p6720_p2 = pnand %p6718_p0, %p6983_p1 }
  0x39   : > { %p6721_p4 = pneg %p6720_p2 }
  0x3b   : > { %p6726_p10 = pnand %p6724_p8, %p6721_p4 }
  0x3d   : > { %6729 = shalt.err (!%p6726_p10)
}
  0x3e   : > { %s6730_s11 = scalar_lea.vmem %s6973_s14, 131072  ;;  %p6738_p6 = scmp.lt.s32.totalorder %s6973_s14, %s6973_s14 }
  0x3f   : > { %p6731_p11 = scmp.ne.s32.totalorder %s6973_s14, %s6730_s11  ;;  %p6739_p7 = scmp.lt.s32.totalorder %s6730_s11, %s6730_s11 }
  0x41   : > { %p6733_p3 = pnand %p6731_p11, %p6983_p1  ;;  %p6740_p9 = por %p6739_p7, %p6738_p6 }
  0x43   : > { %p6734_p5 = pneg %p6733_p3 }
  0x45   : > { %p6741_p12 = pnand %p6740_p9, %p6734_p5 }
  0x47   : > { %6744 = shalt.err (!%p6741_p12)
}
  0x48   : > { %s6863_s30 = smov 512   ;;  %s6864_s10 = smov 32  }
  0x49   : > { %6612 = dma.hbm_to_vmem [thread:$0]  (!%p6969_p13), %s11064_s1, 131072, %s6973_s14, [#allocation5], %s6863_s30, %s6863_s30, %s6864_s10  }
  0x4a   : > { %s6865_s16 = smov [#allocation9]   ;;  %s6745_s26 = scalar_lea.hbm %s11066_s3, 64 }
  0x4b   : > { %s214_s17 = sshll.u32 %s6865_s16, 4  ;;  %p6746_p0 = scmp.ne.s32.totalorder %s11066_s3, %s6745_s26  ;;  %s215_s17 = int_to_ptr.vmem [resolvable:$true] %s214_s17 }
  0x4c   : > { %p6752_p8 = scmp.lt.u32.totalorder %s6745_s26, %s11066_s3 }
  0x4d   : > { %p6748_p2 = pnand %p6746_p0, %p6983_p1 }
  0x4f   : > { %p6749_p4 = pneg %p6748_p2 }
  0x51   : > { %p6754_p10 = pnand %p6752_p8, %p6749_p4 }
  0x53   : > { %6757 = shalt.err (!%p6754_p10)
}
  0x54   : > { %s6758_s14 = scalar_lea.vmem %s215_s17, 64  ;;  %p6766_p6 = scmp.lt.s32.totalorder %s215_s17, %s215_s17 }
  0x55   : > { %p6759_p11 = scmp.ne.s32.totalorder %s215_s17, %s6758_s14  ;;  %p6767_p7 = scmp.lt.s32.totalorder %s6758_s14, %s6758_s14 }
  0x57   : > { %p6761_p3 = pnand %p6759_p11, %p6983_p1  ;;  %p6768_p9 = por %p6767_p7, %p6766_p6 }
  0x59   : > { %p6762_p5 = pneg %p6761_p3 }
  0x5b   : > { %p6769_p12 = pnand %p6768_p9, %p6762_p5 }
  0x5d   : > { %6772 = shalt.err (!%p6769_p12)
}
  0x5e   : > { %6618 = dma.hbm_to_vmem [thread:$0]  (!%p6969_p13), %s11066_s3, 64, %s215_s17, [#allocation8]  }
  0x5f   : > { %p11335_p0 = scmp.ne.s32.totalorder %s11330_s8, 0 }
  0x61   : > { %243 = sbr.rel (%p11335_p0) target bundleno = 1267 (0x4f3), region = 40 }
  0x68   : > { %p11336_p2 = scmp.ne.s32.totalorder %s11331_s9, 0 }
  0x6a   : > { %6826 = dma.done.wait (%p11336_p2), [#allocation5], 131072  }
  0x6b   : > { %6828 = vsyncadd (%p11336_p2), [#allocation5], 4294836224 }
  0x6c   : > { %6830 = dma.done.wait (%p11336_p2), [#allocation8], 128  }
  0x6d   : > { %6832 = vsyncadd (%p11336_p2), [#allocation8], 4294967168  ;;  %p284_p1 = scmp.lt.s32.totalorder %s6851_s23, 1  ;;  %vm558_vm0 = vcmask 130048   ;;  %v1590_v31 = vld [vmem:[#allocation4 + $0x8] sm:$0xff]  ;;  %v1592_v34 = vld [vmem:[#allocation4 + $0x18] sm:$0xff] }
  0x6e   : > { %v1594_v32 = vld [vmem:[#allocation4 + $0x28] sm:$0xff]  ;;  %v1596_v35 = vld [vmem:[#allocation4 + $0x38] sm:$0xff]  ;;  %v1589_v39 = vld [vmem:[#allocation4] sm:$0xff]  ;;  %vm2881_vm1 = vcmask 130112   ;;  %vm2888_vm2 = vcmask 195712   ;;  %vm2895_vm3 = vcmask 261312  }
  0x6f   : > { %s285_s2 = scalar_select %p284_p1, %s6851_s23, 1  ;;  %v5543_v33 = vpack.c.bf16 %v1594_v32, %v1590_v31  ;;  %v6055_v38 = vpack.c.bf16 %v1596_v35, %v1592_v34  ;;  %v1593_v40 = vld [vmem:[#allocation4 + $0x20] sm:$0xff]  ;;  %v1591_v44 = vld [vmem:[#allocation4 + $0x10] sm:$0xff]  ;;  %v1598_v46 = vld [vmem:[#allocation4 + $0x48] sm:$0xff]  ;;  %vm2902_vm4 = vcmask 326912   ;;  %vm2909_vm5 = vcmask 392512  }
  0x70   : > { %v5545_v43 = vpack.c.bf16 %v1593_v40, %v1589_v39  ;;  %v1595_v45 = vld [vmem:[#allocation4 + $0x30] sm:$0xff]  ;;  %v1602_v48 = vld [vmem:[#allocation4 + $0x68] sm:$0xff]  ;;  %v1600_v49 = vld [vmem:[#allocation4 + $0x58] sm:$0xff]  ;;  %vm2916_vm6 = vcmask 458112   ;;  %vm2923_vm7 = vcmask 523712   ;;  %vm2930_vm8 = vcmask 589312  }
  0x71   : > { %s5542_s27 = sshll.u32 %s285_s2, 11  ;;  %5544 = vmatprep.subr.bf16.mxu0 %v5543_v33  ;;  %6056 = vmatprep.subr.bf16.mxu1 %v6055_v38  ;;  %v6057_v47 = vpack.c.bf16 %v1595_v45, %v1591_v44  ;;  %v1604_v50 = vld [vmem:[#allocation4 + $0x78] sm:$0xff]  ;;  %v5547_v51 = vpack.c.bf16 %v1602_v48, %v1598_v46  ;;  %v1597_v53 = vld [vmem:[#allocation4 + $0x40] sm:$0xff]  ;;  %v1599_v55 = vld [vmem:[#allocation4 + $0x50] sm:$0xff]  ;;  %vm2937_vm9 = vcmask 654912   ;;  %vm2944_vm10 = vcmask 720512  }
  0x72   : > { %s7055_s4 = scalar_lea.vmem %s11063_s0, %s5542_s27  ;;  %5546 = vmatpush1.bf16.msra.mxu0 %v5545_v43  ;;  %v6059_v52 = vpack.c.bf16 %v1604_v50, %v1600_v49  ;;  %v1601_v54 = vld [vmem:[#allocation4 + $0x60] sm:$0xff]  ;;  %v1603_v56 = vld [vmem:[#allocation4 + $0x70] sm:$0xff]  ;;  %v1606_v61 = vld [vmem:[#allocation4 + $0x88] sm:$0xff]  ;;  %vm2951_vm11 = vcmask 786112   ;;  %vm2958_vm12 = vcmask 851712   ;;  %vm2965_vm13 = vcmask 917312  }
  0x73   : > { %v318_v1 = vld [vmem:[%s7055_s4 + $0x80] sm:$0xff]  ;;  %v319_v3 = vld [vmem:[%s7055_s4 + $0x88] sm:$0xff]  ;;  %v320_v9 = vld [vmem:[%s7055_s4 + $0x90] sm:$0xff]  ;;  %6058 = vmatpush1.bf16.msra.mxu1 %v6057_v47  ;;  %5548 = vmatprep.subr.bf16.mxu0 %v5547_v51  ;;  %v5549_v59 = vpack.c.bf16 %v1601_v54, %v1597_v53  ;;  %v6061_v60 = vpack.c.bf16 %v1603_v56, %v1599_v55  ;;  %vm2972_vm14 = vcmask 982912   ;;  %vm2979_vm15 = vcmask 1048512   ;;  %s280_s9 = sand.u32 1, %s6843_s21  }
  0x74   : > { %v302_v2 = vld [vmem:[%s7055_s4] sm:$0xff]  ;;  %v607_v4 = vsel %vm558_vm0, %v318_v1, 0.0  ;;  %v303_v6 = vld [vmem:[%s7055_s4 + $0x8] sm:$0xff]  ;;  %v610_v7 = vsel %vm558_vm0, %v319_v3, 0.0  ;;  %v304_v10 = vld [vmem:[%s7055_s4 + $0x10] sm:$0xff]  ;;  %v613_v11 = vsel %vm558_vm0, %v320_v9, 0.0  ;;  %6060 = vmatprep.subr.bf16.mxu1 %v6059_v52 }
  0x75   : > { %v559_v5 = vsel %vm558_vm0, %v302_v2, 0.0  ;;  %608 = vadd.xlane.f32.xlu0 %v607_v4  ;;  %v562_v8 = vsel %vm558_vm0, %v303_v6, 0.0  ;;  %v565_v12 = vsel %vm558_vm0, %v304_v10, 0.0  ;;  %v321_v13 = vld [vmem:[%s7055_s4 + $0x98] sm:$0xff]  ;;  %v322_v17 = vld [vmem:[%s7055_s4 + $0xa0] sm:$0xff]  ;;  %v323_v21 = vld [vmem:[%s7055_s4 + $0xa8] sm:$0xff] }
  0x76   : > { %560 = vadd.xlane.f32.xlu1 %v559_v5  ;;  %v305_v14 = vld [vmem:[%s7055_s4 + $0x18] sm:$0xff]  ;;  %v616_v15 = vsel %vm558_vm0, %v321_v13, 0.0  ;;  %v306_v18 = vld [vmem:[%s7055_s4 + $0x20] sm:$0xff]  ;;  %v619_v19 = vsel %vm558_vm0, %v322_v17, 0.0  ;;  %v307_v22 = vld [vmem:[%s7055_s4 + $0x28] sm:$0xff]  ;;  %v622_v23 = vsel %vm558_vm0, %v323_v21, 0.0  ;;  %5550 = vmatpush1.bf16.msra.mxu0 %v5549_v59 }
  0x77   : > { %v568_v16 = vsel %vm558_vm0, %v305_v14, 0.0  ;;  %v571_v20 = vsel %vm558_vm0, %v306_v18, 0.0  ;;  %v574_v24 = vsel %vm558_vm0, %v307_v22, 0.0  ;;  %v324_v25 = vld [vmem:[%s7055_s4 + $0xb0] sm:$0xff]  ;;  %v325_v29 = vld [vmem:[%s7055_s4 + $0xb8] sm:$0xff]  ;;  %v326_v36 = vld [vmem:[%s7055_s4 + $0xc0] sm:$0xff]  ;;  %6062 = vmatpush1.bf16.msra.mxu1 %v6061_v60 }
  0x78   : > { %v308_v26 = vld [vmem:[%s7055_s4 + $0x30] sm:$0xff]  ;;  %v625_v27 = vsel %vm558_vm0, %v324_v25, 0.0  ;;  %v309_v30 = vld [vmem:[%s7055_s4 + $0x38] sm:$0xff]  ;;  %v310_v37 = vld [vmem:[%s7055_s4 + $0x40] sm:$0xff]  ;;  %v628_v41 = vsel %vm558_vm0, %v325_v29, 0.0  ;;  %v631_v57 = vsel %vm558_vm0, %v326_v36, 0.0 }
  0x79   : > { %611 = vadd.xlane.f32.xlu0 %v610_v7  ;;  %v577_v28 = vsel %vm558_vm0, %v308_v26, 0.0  ;;  %v580_v42 = vsel %vm558_vm0, %v309_v30, 0.0  ;;  %v583_v58 = vsel %vm558_vm0, %v310_v37, 0.0  ;;  %v1610_v62 = vld [vmem:[#allocation4 + $0xa8] sm:$0xff]  ;;  %v1608_v63 = vld [vmem:[#allocation4 + $0x98] sm:$0xff]  ;;  %v1605_v5 = vld [vmem:[#allocation4 + $0x80] sm:$0xff] }
  0x7a   : > { %563 = vadd.xlane.f32.xlu1 %v562_v8  ;;  %v327_v0 = vld [vmem:[%s7055_s4 + $0xc8] sm:$0xff]  ;;  %v5551_v2 = vpack.c.bf16 %v1610_v62, %v1606_v61  ;;  %v1612_v3 = vld [vmem:[#allocation4 + $0xb8] sm:$0xff]  ;;  %v1607_v7 = vld [vmem:[#allocation4 + $0x90] sm:$0xff]  ;;  %s5534_s13 = sshll.u32 %s280_s9, 3  ;;  %s5539_s15 = sshll.u32 %s6851_s23, 7 }
  0x7b   : > { %v311_v1 = vld [vmem:[%s7055_s4 + $0x48] sm:$0xff]  ;;  %v6063_v4 = vpack.c.bf16 %v1612_v3, %v1608_v63  ;;  %v1611_v9 = vld [vmem:[#allocation4 + $0xb0] sm:$0xff]  ;;  %v1616_v17 = vld [vmem:[#allocation4 + $0xd8] sm:$0xff]  ;;  %s282_s16 = scalar_lea.vmem [#allocation10], %s5534_s13  ;;  %s11016_s26 = scalar_lea.hbm %s11068_s5, %s5539_s15 }
  0x7c   : > { %v1609_v6 = vld [vmem:[#allocation4 + $0xa0] sm:$0xff]  ;;  %v1614_v10 = vld [vmem:[#allocation4 + $0xc8] sm:$0xff]  ;;  %v586_v13 = vsel %vm558_vm0, %v311_v1, 0.0  ;;  %5552 = vmatprep.subr.bf16.mxu0 %v5551_v2  ;;  %v1620_v18 = vld [vmem:[#allocation4 + $0xf8] sm:$0xff]  ;;  %s5417_s17 = sshll.u32 %s282_s16, 4  ;;  %s5404_s28 = scalar_lea.sflag [#allocation6], %s280_s9  ;;  %s11018_s17 = int_to_ptr.vmem [resolvable:$true] %s5417_s17 }
  0x7d   : > { %614 = vadd.xlane.f32.xlu0 %v613_v11  ;;  %v5553_v8 = vpack.c.bf16 %v1609_v6, %v1605_v5  ;;  %v1618_v11 = vld [vmem:[#allocation4 + $0xe8] sm:$0xff]  ;;  %6064 = vmatprep.subr.bf16.mxu1 %v6063_v4  ;;  %v1613_v21 = vld [vmem:[#allocation4 + $0xc0] sm:$0xff]  ;;  %v1619_v25 = vld [vmem:[#allocation4 + $0xf0] sm:$0xff]  ;;  %s6773_s11 = scalar_lea.vmem %s11018_s17, 128  ;;  %p12086_p4 = scmp.ne.s32.totalorder %s11328_s29, 0 }
  0x7e   : > { %566 = vadd.xlane.f32.xlu1 %v565_v12  ;;  %v634_v12 = vsel %vm558_vm0, %v327_v0, 0.0  ;;  %v328_v14 = vld [vmem:[%s7055_s4 + $0xd0] sm:$0xff]  ;;  %v1617_v22 = vld [vmem:[#allocation4 + $0xe0] sm:$0xff]  ;;  %v1628_v29 = vld [vmem:[#allocation4 + $0x138] sm:$0xff]  ;;  %p6774_p13 = scmp.ne.s32.totalorder %s11018_s17, %s6773_s11  ;;  %s6868_s23 = smov [#allocation10]  }
  0x7f   : > { %5554 = vmatpush1.bf16.msra.mxu0 %v5553_v8  ;;  %v1622_v26 = vld [vmem:[#allocation4 + $0x108] sm:$0xff]  ;;  %v637_v30 = vsel %vm558_vm0, %v328_v14, 0.0  ;;  %v329_v32 = vld [vmem:[%s7055_s4 + $0xd8] sm:$0xff]  ;;  %v1621_v36 = vld [vmem:[#allocation4 + $0x100] sm:$0xff]  ;;  %s6777_s14 = sshll.u32 %s6868_s23, 4  ;;  %s6778_s14 = int_to_ptr.vmem [resolvable:$false] %s6777_s14 }
  0x80   : > { %v313_v33 = vld [vmem:[%s7055_s4 + $0x58] sm:$0xff]  ;;  %v1625_v38 = vld [vmem:[#allocation4 + $0x120] sm:$0xff]  ;;  %v1634_v43 = vld [vmem:[#allocation4 + $0x168] sm:$0xff]  ;;  %v640_v48 = vsel %vm558_vm0, %v329_v32, 0.0  ;;  %p6775_p8 = pnand %p6774_p13, %p12086_p4  ;;  %s6779_s30 = scalar_lea.vmem %s6778_s14, 256 }
  0x81   : > { %617 = vadd.xlane.f32.xlu0 %v616_v15  ;;  %v6065_v15 = vpack.c.bf16 %v1611_v9, %v1607_v7  ;;  %v1623_v39 = vld [vmem:[#allocation4 + $0x110] sm:$0xff]  ;;  %v1632_v44 = vld [vmem:[#allocation4 + $0x158] sm:$0xff]  ;;  %v592_v49 = vsel %vm558_vm0, %v313_v33, 0.0  ;;  %v1629_v52 = vld [vmem:[#allocation4 + $0x140] sm:$0xff]  ;;  %p6780_p11 = scmp.lt.s32.totalorder %s11018_s17, %s6778_s14  ;;  %p6781_p3 = scmp.lt.s32.totalorder %s6779_s30, %s6773_s11 }
  0x82   : > { %569 = vadd.xlane.f32.xlu1 %v568_v16  ;;  %v5555_v16 = vpack.c.bf16 %v1618_v11, %v1614_v10  ;;  %v1627_v40 = vld [vmem:[#allocation4 + $0x130] sm:$0xff]  ;;  %v330_v45 = vld [vmem:[%s7055_s4 + $0xe0] sm:$0xff]  ;;  %v331_v2 = vld [vmem:[%s7055_s4 + $0xe8] sm:$0xff]  ;;  %p6776_p10 = pneg %p6775_p8 }
  0x83   : > { %6066 = vmatpush1.bf16.msra.mxu1 %v6065_v15  ;;  %v314_v46 = vld [vmem:[%s7055_s4 + $0x60] sm:$0xff]  ;;  %v6073_v50 = vpack.c.bf16 %v1627_v40, %v1623_v39  ;;  %v1631_v54 = vld [vmem:[#allocation4 + $0x150] sm:$0xff]  ;;  %v643_v0 = vsel %vm558_vm0, %v330_v45, 0.0  ;;  %v315_v3 = vld [vmem:[%s7055_s4 + $0x68] sm:$0xff]  ;;  %p6782_p5 = por %p6781_p3, %p6780_p11 }
  0x84   : > { %5556 = vmatprep.subr.bf16.mxu0 %v5555_v16  ;;  %v1636_v47 = vld [vmem:[#allocation4 + $0x178] sm:$0xff]  ;;  %v1633_v53 = vld [vmem:[#allocation4 + $0x160] sm:$0xff]  ;;  %v1635_v56 = vld [vmem:[#allocation4 + $0x170] sm:$0xff]  ;;  %v595_v1 = vsel %vm558_vm0, %v314_v46, 0.0  ;;  %v646_v16 = vsel %vm558_vm0, %v331_v2, 0.0 }
  0x85   : > { %620 = vadd.xlane.f32.xlu0 %v619_v19  ;;  %v312_v19 = vld [vmem:[%s7055_s4 + $0x50] sm:$0xff]  ;;  %v6075_v55 = vpack.c.bf16 %v1636_v47, %v1632_v44  ;;  %v5565_v59 = vpack.c.bf16 %v1633_v53, %v1629_v52  ;;  %v1640_v60 = vld [vmem:[#allocation4 + $0x198] sm:$0xff]  ;;  %v1637_v62 = vld [vmem:[#allocation4 + $0x180] sm:$0xff]  ;;  %v6077_v4 = vpack.c.bf16 %v1635_v56, %v1631_v54  ;;  %p6783_p6 = pnand %p6782_p5, %p6776_p10 }
  0x86   : > { %572 = vadd.xlane.f32.xlu1 %v571_v20  ;;  %v6067_v20 = vpack.c.bf16 %v1620_v18, %v1616_v17  ;;  %v589_v31 = vsel %vm558_vm0, %v312_v19, 0.0  ;;  %v1644_v61 = vld [vmem:[#allocation4 + $0x1b8] sm:$0xff]  ;;  %v1641_v63 = vld [vmem:[#allocation4 + $0x1a0] sm:$0xff]  ;;  %v1639_v6 = vld [vmem:[#allocation4 + $0x190] sm:$0xff]  ;;  %v598_v17 = vsel %vm558_vm0, %v315_v3, 0.0 }
  0x87   : > { %v6079_v7 = vpack.c.bf16 %v1644_v61, %v1640_v60  ;;  %v1643_v8 = vld [vmem:[#allocation4 + $0x1b0] sm:$0xff]  ;;  %v1646_v9 = vld [vmem:[#allocation4 + $0x1c8] sm:$0xff]  ;;  %v5569_v11 = vpack.c.bf16 %v1641_v63, %v1637_v62  ;;  %v1645_v14 = vld [vmem:[#allocation4 + $0x1c0] sm:$0xff] }
  0x88   : > { %6068 = vmatprep.subr.bf16.mxu1 %v6067_v20  ;;  %v1650_v10 = vld [vmem:[#allocation4 + $0x1e8] sm:$0xff]  ;;  %v1649_v15 = vld [vmem:[#allocation4 + $0x1e0] sm:$0xff]  ;;  %v6081_v20 = vpack.c.bf16 %v1643_v8, %v1639_v6  ;;  %v1659_v40 = vld [vmem:[#allocation4 + $0x230] sm:$0xff] }
  0x89   : > { %623 = vadd.xlane.f32.xlu0 %v622_v23  ;;  %v5557_v23 = vpack.c.bf16 %v1617_v22, %v1613_v21  ;;  %v332_v18 = vld [vmem:[%s7055_s4 + $0xf0] sm:$0xff]  ;;  %v5571_v21 = vpack.c.bf16 %v1650_v10, %v1646_v9  ;;  %v1664_v44 = vld [vmem:[#allocation4 + $0x258] sm:$0xff]  ;;  %v1661_v46 = vld [vmem:[#allocation4 + $0x240] sm:$0xff] }
  0x8a   : > { %575 = vadd.xlane.f32.xlu1 %v574_v24  ;;  %v1615_v24 = vld [vmem:[#allocation4 + $0xd0] sm:$0xff]  ;;  %v649_v32 = vsel %vm558_vm0, %v332_v18, 0.0  ;;  %v1668_v45 = vld [vmem:[#allocation4 + $0x278] sm:$0xff]  ;;  %v1665_v47 = vld [vmem:[#allocation4 + $0x260] sm:$0xff] }
  0x8b   : > { %v6069_v34 = vpack.c.bf16 %v1619_v25, %v1615_v24  ;;  %5558 = vmatpush1.bf16.msra.mxu0 %v5557_v23  ;;  %v316_v19 = vld [vmem:[%s7055_s4 + $0x70] sm:$0xff]  ;;  %v1672_v60 = vld [vmem:[#allocation4 + $0x298] sm:$0xff]  ;;  %v1669_v62 = vld [vmem:[#allocation4 + $0x280] sm:$0xff] }
  0x8c   : > { %v1647_v22 = vld [vmem:[#allocation4 + $0x1d0] sm:$0xff]  ;;  %v1654_v25 = vld [vmem:[#allocation4 + $0x208] sm:$0xff]  ;;  %v601_v33 = vsel %vm558_vm0, %v316_v19, 0.0  ;;  %v1676_v61 = vld [vmem:[#allocation4 + $0x2b8] sm:$0xff] }
  0x8d   : > { %626 = vadd.xlane.f32.xlu0 %v625_v27  ;;  %v1626_v27 = vld [vmem:[#allocation4 + $0x128] sm:$0xff]  ;;  %6070 = vmatpush1.bf16.msra.mxu1 %v6069_v34  ;;  %v1651_v24 = vld [vmem:[#allocation4 + $0x1f0] sm:$0xff]  ;;  %v1673_v63 = vld [vmem:[#allocation4 + $0x2a0] sm:$0xff] }
  0x8e   : > { %578 = vadd.xlane.f32.xlu1 %v577_v28  ;;  %v1624_v28 = vld [vmem:[#allocation4 + $0x118] sm:$0xff]  ;;  %v5559_v35 = vpack.c.bf16 %v1626_v27, %v1622_v26  ;;  %v1658_v26 = vld [vmem:[#allocation4 + $0x228] sm:$0xff]  ;;  %v5573_v27 = vpack.c.bf16 %v1649_v15, %v1645_v14  ;;  %v1663_v54 = vld [vmem:[#allocation4 + $0x250] sm:$0xff] }
  0x8f   : > { %v6071_v37 = vpack.c.bf16 %v1628_v29, %v1624_v28  ;;  %v1656_v28 = vld [vmem:[#allocation4 + $0x218] sm:$0xff]  ;;  %v1667_v56 = vld [vmem:[#allocation4 + $0x270] sm:$0xff]  ;;  %v335_v3 = vld [vmem:[%s7055_s4 + $0x108] sm:$0xff] }
  0x90   : > { %5560 = vmatprep.subr.bf16.mxu0 %v5559_v35  ;;  %v1660_v29 = vld [vmem:[#allocation4 + $0x238] sm:$0xff]  ;;  %v1671_v6 = vld [vmem:[#allocation4 + $0x290] sm:$0xff]  ;;  %v1678_v9 = vld [vmem:[#allocation4 + $0x2c8] sm:$0xff] }
  0x91   : > { %629 = vadd.xlane.f32.xlu0 %v628_v41  ;;  %v5561_v41 = vpack.c.bf16 %v1625_v38, %v1621_v36  ;;  %6072 = vmatprep.subr.bf16.mxu1 %v6071_v37  ;;  %v333_v34 = vld [vmem:[%s7055_s4 + $0xf8] sm:$0xff]  ;;  %v6085_v36 = vpack.c.bf16 %v1651_v24, %v1647_v22  ;;  %v5575_v37 = vpack.c.bf16 %v1658_v26, %v1654_v25  ;;  %v334_v2 = vld [vmem:[%s7055_s4 + $0x100] sm:$0xff]  ;;  %v1682_v10 = vld [vmem:[#allocation4 + $0x2e8] sm:$0xff] }
  0x92   : > { %581 = vadd.xlane.f32.xlu1 %v580_v42  ;;  %v1630_v42 = vld [vmem:[#allocation4 + $0x148] sm:$0xff]  ;;  %6074 = vmatpush1.bf16.msra.mxu1 %v6073_v50  ;;  %v317_v35 = vld [vmem:[%s7055_s4 + $0x78] sm:$0xff]  ;;  %v6087_v39 = vpack.c.bf16 %v1660_v29, %v1656_v28  ;;  %v350_v50 = vld [vmem:[%s7055_s4 + $0x180] sm:$0xff] }
  0x93   : > { %v5563_v51 = vpack.c.bf16 %v1634_v43, %v1630_v42  ;;  %5562 = vmatpush1.bf16.msra.mxu0 %v5561_v41  ;;  %6076 = vmatprep.subr.bf16.mxu1 %v6075_v55  ;;  %v1655_v38 = vld [vmem:[#allocation4 + $0x210] sm:$0xff]  ;;  %v1662_v41 = vld [vmem:[#allocation4 + $0x248] sm:$0xff]  ;;  %v6091_v55 = vpack.c.bf16 %v1668_v45, %v1664_v44  ;;  %v1677_v14 = vld [vmem:[#allocation4 + $0x2c0] sm:$0xff] }
  0x94   : > { %v1666_v42 = vld [vmem:[#allocation4 + $0x268] sm:$0xff]  ;;  %v6089_v52 = vpack.c.bf16 %v1659_v40, %v1655_v38  ;;  %v1675_v8 = vld [vmem:[#allocation4 + $0x2b0] sm:$0xff]  ;;  %v1681_v15 = vld [vmem:[#allocation4 + $0x2e0] sm:$0xff] }
  0x95   : > { %632 = vadd.xlane.f32.xlu0 %v631_v57  ;;  %v1638_v57 = vld [vmem:[#allocation4 + $0x188] sm:$0xff]  ;;  %5564 = vmatprep.subr.bf16.mxu0 %v5563_v51  ;;  %v5579_v53 = vpack.c.bf16 %v1666_v42, %v1662_v41  ;;  %v1679_v22 = vld [vmem:[#allocation4 + $0x2d0] sm:$0xff]  ;;  %v1688_v28 = vld [vmem:[#allocation4 + $0x318] sm:$0xff] }
  0x96   : > { %584 = vadd.xlane.f32.xlu1 %v583_v58  ;;  %v1642_v58 = vld [vmem:[#allocation4 + $0x1a8] sm:$0xff]  ;;  %6078 = vmatpush1.bf16.msra.mxu1 %v6077_v4  ;;  %v6093_v4 = vpack.c.bf16 %v1667_v56, %v1663_v54  ;;  %v1683_v24 = vld [vmem:[#allocation4 + $0x2f0] sm:$0xff]  ;;  %v1692_v29 = vld [vmem:[#allocation4 + $0x338] sm:$0xff] }
  0x97   : > { %v5567_v5 = vpack.c.bf16 %v1642_v58, %v1638_v57  ;;  %5566 = vmatpush1.bf16.msra.mxu0 %v5565_v59  ;;  %6080 = vmatprep.subr.bf16.mxu1 %v6079_v7  ;;  %v351_v51 = vld [vmem:[%s7055_s4 + $0x188] sm:$0xff]  ;;  %v5581_v59 = vpack.c.bf16 %v1665_v47, %v1661_v46  ;;  %v6095_v7 = vpack.c.bf16 %v1676_v61, %v1672_v60  ;;  %v352_v18 = vld [vmem:[%s7055_s4 + $0x190] sm:$0xff]  ;;  %v1696_v44 = vld [vmem:[#allocation4 + $0x358] sm:$0xff] }
  0x98   : > { %v1670_v57 = vld [vmem:[#allocation4 + $0x288] sm:$0xff]  ;;  %v1687_v38 = vld [vmem:[#allocation4 + $0x310] sm:$0xff]  ;;  %v1700_v45 = vld [vmem:[#allocation4 + $0x378] sm:$0xff] }
  0x99   : > { %635 = vadd.xlane.f32.xlu0 %v634_v12  ;;  %v1648_v12 = vld [vmem:[#allocation4 + $0x1d8] sm:$0xff]  ;;  %5568 = vmatprep.subr.bf16.mxu0 %v5567_v5  ;;  %v1674_v58 = vld [vmem:[#allocation4 + $0x2a8] sm:$0xff]  ;;  %v1691_v40 = vld [vmem:[#allocation4 + $0x330] sm:$0xff] }
  0x9a   : > { %587 = vadd.xlane.f32.xlu1 %v586_v13  ;;  %v1652_v13 = vld [vmem:[#allocation4 + $0x1f8] sm:$0xff]  ;;  %6082 = vmatpush1.bf16.msra.mxu1 %v6081_v20  ;;  %v5583_v5 = vpack.c.bf16 %v1674_v58, %v1670_v57  ;;  %v336_v19 = vld [vmem:[%s7055_s4 + $0x110] sm:$0xff]  ;;  %v6097_v20 = vpack.c.bf16 %v1675_v8, %v1671_v6  ;;  %v1693_v46 = vld [vmem:[#allocation4 + $0x340] sm:$0xff] }
  0x9b   : > { %v6083_v23 = vpack.c.bf16 %v1652_v13, %v1648_v12  ;;  %5570 = vmatpush1.bf16.msra.mxu0 %v5569_v11  ;;  %v5585_v11 = vpack.c.bf16 %v1673_v63, %v1669_v62  ;;  %v1680_v12 = vld [vmem:[#allocation4 + $0x2d8] sm:$0xff]  ;;  %v1686_v25 = vld [vmem:[#allocation4 + $0x308] sm:$0xff]  ;;  %v1697_v47 = vld [vmem:[#allocation4 + $0x360] sm:$0xff] }
  0x9c   : > { %5572 = vmatprep.subr.bf16.mxu0 %v5571_v21  ;;  %v1684_v13 = vld [vmem:[#allocation4 + $0x2f8] sm:$0xff]  ;;  %v5587_v21 = vpack.c.bf16 %v1682_v10, %v1678_v9  ;;  %v1690_v26 = vld [vmem:[#allocation4 + $0x328] sm:$0xff]  ;;  %v1695_v54 = vld [vmem:[#allocation4 + $0x350] sm:$0xff] }
  0x9d   : > { %638 = vadd.xlane.f32.xlu0 %v637_v30  ;;  %v1653_v30 = vld [vmem:[#allocation4 + $0x200] sm:$0xff]  ;;  %6084 = vmatprep.subr.bf16.mxu1 %v6083_v23  ;;  %v6099_v23 = vpack.c.bf16 %v1684_v13, %v1680_v12  ;;  %v1694_v41 = vld [vmem:[#allocation4 + $0x348] sm:$0xff]  ;;  %v1699_v56 = vld [vmem:[#allocation4 + $0x370] sm:$0xff] }
  0x9e   : > { %590 = vadd.xlane.f32.xlu1 %v589_v31  ;;  %v1657_v31 = vld [vmem:[#allocation4 + $0x220] sm:$0xff]  ;;  %6086 = vmatpush1.bf16.msra.mxu1 %v6085_v36  ;;  %v6101_v36 = vpack.c.bf16 %v1683_v24, %v1679_v22  ;;  %v1698_v42 = vld [vmem:[#allocation4 + $0x368] sm:$0xff]  ;;  %v1704_v60 = vld [vmem:[#allocation4 + $0x398] sm:$0xff] }
  0x9f   : > { %5574 = vmatpush1.bf16.msra.mxu0 %v5573_v27  ;;  %v5577_v43 = vpack.c.bf16 %v1657_v31, %v1653_v30  ;;  %6088 = vmatprep.subr.bf16.mxu1 %v6087_v39  ;;  %v5589_v27 = vpack.c.bf16 %v1681_v15, %v1677_v14  ;;  %v1685_v30 = vld [vmem:[#allocation4 + $0x300] sm:$0xff]  ;;  %v6103_v39 = vpack.c.bf16 %v1692_v29, %v1688_v28  ;;  %v1702_v57 = vld [vmem:[#allocation4 + $0x388] sm:$0xff]  ;;  %v1708_v61 = vld [vmem:[#allocation4 + $0x3b8] sm:$0xff] }
  0xa0   : > { %5576 = vmatprep.subr.bf16.mxu0 %v5575_v37  ;;  %v1689_v31 = vld [vmem:[#allocation4 + $0x320] sm:$0xff]  ;;  %v5591_v37 = vpack.c.bf16 %v1690_v26, %v1686_v25  ;;  %v1706_v58 = vld [vmem:[#allocation4 + $0x3a8] sm:$0xff]  ;;  %v1703_v6 = vld [vmem:[#allocation4 + $0x390] sm:$0xff] }
  0xa1   : > { %641 = vadd.xlane.f32.xlu0 %v640_v48  ;;  %v652_v48 = vsel %vm558_vm0, %v333_v34, 0.0  ;;  %v353_v34 = vld [vmem:[%s7055_s4 + $0x198] sm:$0xff]  ;;  %v1701_v62 = vld [vmem:[#allocation4 + $0x380] sm:$0xff]  ;;  %v1710_v9 = vld [vmem:[#allocation4 + $0x3c8] sm:$0xff] }
  0xa2   : > { %593 = vadd.xlane.f32.xlu1 %v592_v49  ;;  %v604_v49 = vsel %vm558_vm0, %v317_v35, 0.0  ;;  %6090 = vmatpush1.bf16.msra.mxu1 %v6089_v52  ;;  %v337_v35 = vld [vmem:[%s7055_s4 + $0x118] sm:$0xff]  ;;  %v6105_v52 = vpack.c.bf16 %v1691_v40, %v1687_v38  ;;  %v1705_v63 = vld [vmem:[#allocation4 + $0x3a0] sm:$0xff]  ;;  %v1714_v10 = vld [vmem:[#allocation4 + $0x3e8] sm:$0xff] }
  0xa3   : > { %5578 = vmatpush1.bf16.msra.mxu0 %v5577_v43  ;;  %6092 = vmatprep.subr.bf16.mxu1 %v6091_v55  ;;  %v5593_v43 = vpack.c.bf16 %v1689_v31, %v1685_v30  ;;  %v6107_v55 = vpack.c.bf16 %v1700_v45, %v1696_v44  ;;  %v1707_v8 = vld [vmem:[#allocation4 + $0x3b0] sm:$0xff]  ;;  %v1712_v12 = vld [vmem:[#allocation4 + $0x3d8] sm:$0xff]  ;;  %v1709_v14 = vld [vmem:[#allocation4 + $0x3c0] sm:$0xff] }
  0xa4   : > { %5580 = vmatprep.subr.bf16.mxu0 %v5579_v53  ;;  %v5595_v53 = vpack.c.bf16 %v1698_v42, %v1694_v41  ;;  %v1716_v13 = vld [vmem:[#allocation4 + $0x3f8] sm:$0xff]  ;;  %v1713_v15 = vld [vmem:[#allocation4 + $0x3e0] sm:$0xff]  ;;  %v1711_v22 = vld [vmem:[#allocation4 + $0x3d0] sm:$0xff] }
  0xa5   : > { %644 = vadd.xlane.f32.xlu0 %v643_v0  ;;  %v703_v0 = vsel %vm558_vm0, %v350_v50, 0.0  ;;  %v354_v50 = vld [vmem:[%s7055_s4 + $0x1a0] sm:$0xff]  ;;  %v1715_v24 = vld [vmem:[#allocation4 + $0x3f0] sm:$0xff]  ;;  %v1718_v25 = vld [vmem:[#allocation4 + $0x408] sm:$0xff] }
  0xa6   : > { %596 = vadd.xlane.f32.xlu1 %v595_v1  ;;  %v706_v1 = vsel %vm558_vm0, %v351_v51, 0.0  ;;  %6094 = vmatpush1.bf16.msra.mxu1 %v6093_v4  ;;  %v338_v51 = vld [vmem:[%s7055_s4 + $0x120] sm:$0xff]  ;;  %v6109_v4 = vpack.c.bf16 %v1699_v56, %v1695_v54  ;;  %v1722_v26 = vld [vmem:[#allocation4 + $0x428] sm:$0xff] }
  0xa7   : > { %5582 = vmatpush1.bf16.msra.mxu0 %v5581_v59  ;;  %6096 = vmatprep.subr.bf16.mxu1 %v6095_v7  ;;  %v5597_v59 = vpack.c.bf16 %v1697_v47, %v1693_v46  ;;  %v6111_v7 = vpack.c.bf16 %v1708_v61, %v1704_v60  ;;  %v1720_v28 = vld [vmem:[#allocation4 + $0x418] sm:$0xff]  ;;  %v343_v44 = vld [vmem:[%s7055_s4 + $0x148] sm:$0xff]  ;;  %v360_v47 = vld [vmem:[%s7055_s4 + $0x1d0] sm:$0xff] }
  0xa8   : > { %5584 = vmatprep.subr.bf16.mxu0 %v5583_v5  ;;  %v5599_v5 = vpack.c.bf16 %v1706_v58, %v1702_v57  ;;  %v1724_v29 = vld [vmem:[#allocation4 + $0x438] sm:$0xff]  ;;  %v682_v46 = vsel %vm558_vm0, %v343_v44, 0.0  ;;  %v347_v60 = vld [vmem:[%s7055_s4 + $0x168] sm:$0xff] }
  0xa9   : > { %647 = vadd.xlane.f32.xlu0 %v646_v16  ;;  %v655_v16 = vsel %vm558_vm0, %v334_v2, 0.0  ;;  %v355_v2 = vld [vmem:[%s7055_s4 + $0x1a8] sm:$0xff]  ;;  %v342_v40 = vld [vmem:[%s7055_s4 + $0x140] sm:$0xff] }
  0xaa   : > { %599 = vadd.xlane.f32.xlu1 %v598_v17  ;;  %v658_v17 = vsel %vm558_vm0, %v335_v3, 0.0  ;;  %6098 = vmatpush1.bf16.msra.mxu1 %v6097_v20  ;;  %v339_v3 = vld [vmem:[%s7055_s4 + $0x128] sm:$0xff]  ;;  %v6113_v20 = vpack.c.bf16 %v1707_v8, %v1703_v6  ;;  %v679_v42 = vsel %vm558_vm0, %v342_v40, 0.0  ;;  %v346_v56 = vld [vmem:[%s7055_s4 + $0x160] sm:$0xff] }
  0xab   : > { %5586 = vmatpush1.bf16.msra.mxu0 %v5585_v11  ;;  %6100 = vmatprep.subr.bf16.mxu1 %v6099_v23  ;;  %v5601_v11 = vpack.c.bf16 %v1705_v63, %v1701_v62  ;;  %v6115_v23 = vpack.c.bf16 %v1716_v13, %v1712_v12  ;;  %v691_v58 = vsel %vm558_vm0, %v346_v56, 0.0  ;;  %v694_v62 = vsel %vm558_vm0, %v347_v60, 0.0  ;;  %v364_v63 = vld [vmem:[%s7055_s4 + $0x1f0] sm:$0xff]  ;;  %v383_v8 = vld [vmem:[%s7055_s4 + $0x288] sm:$0xff] }
  0xac   : > { %5588 = vmatprep.subr.bf16.mxu0 %v5587_v21  ;;  %v5603_v21 = vpack.c.bf16 %v1714_v10, %v1710_v9  ;;  %v802_v10 = vsel %vm558_vm0, %v383_v8, 0.0  ;;  %v367_v12 = vld [vmem:[%s7055_s4 + $0x208] sm:$0xff]  ;;  %v392_v60 = vld [vmem:[%s7055_s4 + $0x2d0] sm:$0xff] }
  0xad   : > { %650 = vadd.xlane.f32.xlu0 %v649_v32  ;;  %v709_v32 = vsel %vm558_vm0, %v352_v18, 0.0  ;;  %v356_v18 = vld [vmem:[%s7055_s4 + $0x1b0] sm:$0xff] }
  0xae   : > { %602 = vadd.xlane.f32.xlu1 %v601_v33  ;;  %v661_v33 = vsel %vm558_vm0, %v336_v19, 0.0  ;;  %6102 = vmatpush1.bf16.msra.mxu1 %v6101_v36  ;;  %v340_v19 = vld [vmem:[%s7055_s4 + $0x130] sm:$0xff]  ;;  %v721_v30 = vsel %vm558_vm0, %v356_v18, 0.0  ;;  %v6119_v36 = vpack.c.bf16 %v1724_v29, %v1720_v28  ;;  %v387_v29 = vld [vmem:[%s7055_s4 + $0x2a8] sm:$0xff] }
  0xaf   : > { %5590 = vmatpush1.bf16.msra.mxu0 %v5589_v27  ;;  %6104 = vmatprep.subr.bf16.mxu1 %v6103_v39  ;;  %v5605_v27 = vpack.c.bf16 %v1713_v15, %v1709_v14  ;;  %v673_v31 = vsel %vm558_vm0, %v340_v19, 0.0  ;;  %v358_v39 = vld [vmem:[%s7055_s4 + $0x1c0] sm:$0xff]  ;;  %v754_v14 = vsel %vm558_vm0, %v367_v12, 0.0  ;;  %v384_v15 = vld [vmem:[%s7055_s4 + $0x290] sm:$0xff]  ;;  %v385_v19 = vld [vmem:[%s7055_s4 + $0x298] sm:$0xff] }
  0xb0   : > { %5592 = vmatprep.subr.bf16.mxu0 %v5591_v37  ;;  %v727_v41 = vsel %vm558_vm0, %v358_v39, 0.0 }
  0xb1   : > { %653 = vadd.xlane.f32.xlu0 %v652_v48  ;;  %v712_v48 = vsel %vm558_vm0, %v353_v34, 0.0  ;;  %v357_v34 = vld [vmem:[%s7055_s4 + $0x1b8] sm:$0xff] }
  0xb2   : > { %605 = vadd.xlane.f32.xlu1 %v604_v49  ;;  %v664_v49 = vsel %vm558_vm0, %v337_v35, 0.0  ;;  %6106 = vmatpush1.bf16.msra.mxu1 %v6105_v52  ;;  %v341_v35 = vld [vmem:[%s7055_s4 + $0x138] sm:$0xff]  ;;  %v724_v37 = vsel %vm558_vm0, %v357_v34, 0.0 }
  0xb3   : > { %5594 = vmatpush1.bf16.msra.mxu0 %v5593_v43  ;;  %6108 = vmatprep.subr.bf16.mxu1 %v6107_v55  ;;  %v676_v38 = vsel %vm558_vm0, %v341_v35, 0.0  ;;  %v359_v43 = vld [vmem:[%s7055_s4 + $0x1c8] sm:$0xff]  ;;  %v345_v52 = vld [vmem:[%s7055_s4 + $0x158] sm:$0xff]  ;;  %v362_v55 = vld [vmem:[%s7055_s4 + $0x1e0] sm:$0xff] }
  0xb4   : > { %5596 = vmatprep.subr.bf16.mxu0 %v5595_v53  ;;  %v730_v45 = vsel %vm558_vm0, %v359_v43, 0.0  ;;  %v688_v54 = vsel %vm558_vm0, %v345_v52, 0.0  ;;  %v739_v57 = vsel %vm558_vm0, %v362_v55, 0.0  ;;  %v388_v35 = vld [vmem:[%s7055_s4 + $0x2b0] sm:$0xff] }
  0xb5   : > { %704 = vadd.xlane.f32.xlu0 %v703_v0  ;;  %v715_v0 = vsel %vm558_vm0, %v354_v50, 0.0  ;;  %v817_v39 = vsel %vm558_vm0, %v388_v35, 0.0 }
  0xb6   : > { %707 = vadd.xlane.f32.xlu1 %v706_v1  ;;  %v667_v1 = vsel %vm558_vm0, %v338_v51, 0.0  ;;  %6110 = vmatpush1.bf16.msra.mxu1 %v6109_v4  ;;  %v361_v51 = vld [vmem:[%s7055_s4 + $0x1d8] sm:$0xff] }
  0xb7   : > { %5598 = vmatpush1.bf16.msra.mxu0 %v5597_v59  ;;  %6112 = vmatprep.subr.bf16.mxu1 %v6111_v7  ;;  %v736_v53 = vsel %vm558_vm0, %v361_v51, 0.0  ;;  %v363_v59 = vld [vmem:[%s7055_s4 + $0x1e8] sm:$0xff]  ;;  %v349_v4 = vld [vmem:[%s7055_s4 + $0x178] sm:$0xff]  ;;  %v382_v7 = vld [vmem:[%s7055_s4 + $0x280] sm:$0xff] }
  0xb8   : > { %5600 = vmatprep.subr.bf16.mxu0 %v5599_v5  ;;  %v742_v61 = vsel %vm558_vm0, %v363_v59, 0.0  ;;  %v700_v6 = vsel %vm558_vm0, %v349_v4, 0.0  ;;  %v799_v9 = vsel %vm558_vm0, %v382_v7, 0.0  ;;  %v11074_v59 = vlaneseq  ;;  %v377_v4 = vld [vmem:[%s7055_s4 + $0x258] sm:$0xff] }
  0xb9   : > { %656 = vadd.xlane.f32.xlu0 %v655_v16  ;;  %v718_v16 = vsel %vm558_vm0, %v355_v2, 0.0 }
  0xba   : > { %659 = vadd.xlane.f32.xlu1 %v658_v17  ;;  %v670_v17 = vsel %vm558_vm0, %v339_v3, 0.0  ;;  %6114 = vmatpush1.bf16.msra.mxu1 %v6113_v20  ;;  %v365_v3 = vld [vmem:[%s7055_s4 + $0x1f8] sm:$0xff] }
  0xbb   : > { %5602 = vmatpush1.bf16.msra.mxu0 %v5601_v11  ;;  %6116 = vmatprep.subr.bf16.mxu1 %v6115_v23  ;;  %v748_v5 = vsel %vm558_vm0, %v365_v3, 0.0  ;;  %v366_v11 = vld [vmem:[%s7055_s4 + $0x200] sm:$0xff]  ;;  %v369_v20 = vld [vmem:[%s7055_s4 + $0x218] sm:$0xff] }
  0xbc   : > { %5604 = vmatprep.subr.bf16.mxu0 %v5603_v21  ;;  %v751_v13 = vsel %vm558_vm0, %v366_v11, 0.0  ;;  %v808_v21 = vsel %vm558_vm0, %v385_v19, 0.0  ;;  %v386_v23 = vld [vmem:[%s7055_s4 + $0x2a0] sm:$0xff]  ;;  %v393_v3 = vld [vmem:[%s7055_s4 + $0x2d8] sm:$0xff]  ;;  %v784_v11 = vsel %vm558_vm0, %v377_v4, 0.0 }
  0xbd   : > { %710 = vadd.xlane.f32.xlu0 %v709_v32  ;;  %v6117_v32 = vpack.c.bf16 %v1715_v24, %v1711_v22  ;;  %v760_v22 = vsel %vm558_vm0, %v369_v20, 0.0  ;;  %v370_v24 = vld [vmem:[%s7055_s4 + $0x220] sm:$0xff] }
  0xbe   : > { %662 = vadd.xlane.f32.xlu1 %v661_v33  ;;  %v5607_v33 = vpack.c.bf16 %v1722_v26, %v1718_v25  ;;  %v763_v28 = vsel %vm558_vm0, %v370_v24, 0.0 }
  0xbf   : > { %5606 = vmatpush1.bf16.msra.mxu0 %v5605_v27  ;;  %6118 = vmatpush1.bf16.msra.mxu1 %v6117_v32  ;;  %v811_v27 = vsel %vm558_vm0, %v386_v23, 0.0 }
  0xc0   : > { %5608 = vmatprep.subr.bf16.mxu0 %v5607_v33  ;;  %6120 = vmatprep.subr.bf16.mxu1 %v6119_v36  ;;  %v814_v33 = vsel %vm558_vm0, %v387_v29, 0.0  ;;  %v372_v36 = vld [vmem:[%s7055_s4 + $0x230] sm:$0xff] }
  0xc1   : > { %713 = vadd.xlane.f32.xlu0 %v712_v48  ;;  %v344_v48 = vld [vmem:[%s7055_s4 + $0x150] sm:$0xff]  ;;  %v769_v40 = vsel %vm558_vm0, %v372_v36, 0.0 }
  0xc2   : > { %665 = vadd.xlane.f32.xlu1 %v664_v49  ;;  %v733_v49 = vsel %vm558_vm0, %v360_v47, 0.0  ;;  %v685_v50 = vsel %vm558_vm0, %v344_v48, 0.0  ;;  %v390_v47 = vld [vmem:[%s7055_s4 + $0x2c0] sm:$0xff] }
  0xc3   : > { %v374_v48 = vld [vmem:[%s7055_s4 + $0x240] sm:$0xff]  ;;  %v823_v51 = vsel %vm558_vm0, %v390_v47, 0.0 }
  0xc4   : > { %v775_v52 = vsel %vm558_vm0, %v374_v48, 0.0 }
  0xc5   : > { %716 = vadd.xlane.f32.xlu0 %v715_v0  ;;  %v348_v0 = vld [vmem:[%s7055_s4 + $0x170] sm:$0xff] }
  0xc6   : > { %668 = vadd.xlane.f32.xlu1 %v667_v1  ;;  %v745_v1 = vsel %vm558_vm0, %v364_v63, 0.0  ;;  %v697_v2 = vsel %vm558_vm0, %v348_v0, 0.0  ;;  %v829_v0 = vsel %vm558_vm0, %v392_v60, 0.0 }
  0xc9   : > { %719 = vadd.xlane.f32.xlu0 %v718_v16  ;;  %v368_v16 = vld [vmem:[%s7055_s4 + $0x210] sm:$0xff] }
  0xca   : > { %671 = vadd.xlane.f32.xlu1 %v670_v17  ;;  %v805_v17 = vsel %vm558_vm0, %v384_v15, 0.0  ;;  %v757_v18 = vsel %vm558_vm0, %v368_v16, 0.0  ;;  %v394_v15 = vld [vmem:[%s7055_s4 + $0x2e0] sm:$0xff] }
  0xcb   : > { %v378_v16 = vld [vmem:[%s7055_s4 + $0x260] sm:$0xff]  ;;  %v835_v29 = vsel %vm558_vm0, %v394_v15, 0.0 }
  0xcd   : > { %722 = vadd.xlane.f32.xlu0 %v721_v30  ;;  %v371_v30 = vld [vmem:[%s7055_s4 + $0x228] sm:$0xff] }
  0xce   : > { %674 = vadd.xlane.f32.xlu1 %v673_v31  ;;  %v766_v34 = vsel %vm558_vm0, %v371_v30, 0.0  ;;  %v787_v30 = vsel %vm558_vm0, %v378_v16, 0.0 }
  0xd1   : > { %725 = vadd.xlane.f32.xlu0 %v724_v37 }
  0xd2   : > { %677 = vadd.xlane.f32.xlu1 %v676_v38 }
  0xd5   : > { %728 = vadd.xlane.f32.xlu0 %v727_v41  ;;  %v389_v41 = vld [vmem:[%s7055_s4 + $0x2b8] sm:$0xff] }
  0xd6   : > { %680 = vadd.xlane.f32.xlu1 %v679_v42  ;;  %v373_v42 = vld [vmem:[%s7055_s4 + $0x238] sm:$0xff] }
  0xd9   : > { %731 = vadd.xlane.f32.xlu0 %v730_v45  ;;  %v820_v45 = vsel %vm558_vm0, %v389_v41, 0.0  ;;  %v396_v41 = vld [vmem:[%s7055_s4 + $0x2f0] sm:$0xff] }
  0xda   : > { %683 = vadd.xlane.f32.xlu1 %v682_v46  ;;  %v772_v46 = vsel %vm558_vm0, %v373_v42, 0.0  ;;  %v380_v42 = vld [vmem:[%s7055_s4 + $0x270] sm:$0xff] }
  0xdd   : > { %734 = vadd.xlane.f32.xlu0 %v733_v49 }
  0xde   : > { %686 = vadd.xlane.f32.xlu1 %v685_v50 }
  0xe1   : > { %737 = vadd.xlane.f32.xlu0 %v736_v53  ;;  %v391_v53 = vld [vmem:[%s7055_s4 + $0x2c8] sm:$0xff] }
  0xe2   : > { %689 = vadd.xlane.f32.xlu1 %v688_v54  ;;  %v375_v54 = vld [vmem:[%s7055_s4 + $0x248] sm:$0xff] }
  0xe5   : > { %740 = vadd.xlane.f32.xlu0 %v739_v57  ;;  %v826_v57 = vsel %vm558_vm0, %v391_v53, 0.0  ;;  %v414_v53 = vld [vmem:[%s7055_s4 + $0x380] sm:$0xff] }
  0xe6   : > { %692 = vadd.xlane.f32.xlu1 %v691_v58  ;;  %v778_v58 = vsel %vm558_vm0, %v375_v54, 0.0  ;;  %v7355_v15 = vsel %vm558_vm0, %v414_v53, 0.0 }
  0xe9   : > { %743 = vadd.xlane.f32.xlu0 %v742_v61  ;;  %v376_v61 = vld [vmem:[%s7055_s4 + $0x250] sm:$0xff] }
  0xea   : > { %695 = vadd.xlane.f32.xlu1 %v694_v62 }
  0xed   : > { %746 = vadd.xlane.f32.xlu0 %v745_v1  ;;  %v781_v1 = vsel %vm558_vm0, %v376_v61, 0.0 }
  0xee   : > { %698 = vadd.xlane.f32.xlu1 %v697_v2  ;;  %v7258_v2 = vand.u32 127, %v11074_v59 }
  0xf0   : > { %v2883_v7 = vadd.s32 4294967280, %v7258_v2  ;;  %v2890_v12 = vadd.s32 4294967272, %v7258_v2  ;;  %v2925_v19 = vadd.s32 4294967232, %v7258_v2  ;;  %v2939_v23 = vadd.s32 4294967216, %v7258_v2 }
  0xf1   : > { %749 = vadd.xlane.f32.xlu0 %v748_v5  ;;  %v7263_v5 = vshrl.u32 %v11074_v59, 7  ;;  %v2946_v35 = vadd.s32 4294967208, %v7258_v2  ;;  %v2960_v54 = vadd.s32 4294967192, %v7258_v2  ;;  %v2967_v16 = vadd.s32 4294967184, %v7258_v2  ;;  %v427_v59 = vld [vmem:[%s7055_s4 + $0x3e8] sm:$0xff] }
  0xf2   : > { %701 = vadd.xlane.f32.xlu1 %v700_v6  ;;  %v2876_v6 = vadd.s32 4294967288, %v7258_v2 }
  0xf3   : > { %11337 = vst [vmem:[#allocation15_spill] sm:$0xff] %v7263_v5  ;;  %v7283_v20 = vsub.s32 %v7258_v2, %v7263_v5  ;;  %v7291_v24 = vsub.s32 %v2883_v7, %v7263_v5  ;;  %v7303_v36 = vsub.s32 %v2890_v12, %v7263_v5  ;;  %v7333_v61 = vsub.s32 %v2939_v23, %v7263_v5  ;;  %v399_v12 = vld [vmem:[%s7055_s4 + $0x308] sm:$0xff]  ;;  %v416_v23 = vld [vmem:[%s7055_s4 + $0x390] sm:$0xff] }
  0xf4   : > { %v793_v7 = vsel %vm558_vm0, %v380_v42, 0.0  ;;  %v7385_v53 = vsub.s32 %v2967_v16, %v7263_v5 }
  0xf5   : > { %800 = vadd.xlane.f32.xlu0 %v799_v9  ;;  %11338 = vst [vmem:[#allocation16_spill] sm:$0xff] %v7283_v20  ;;  %11340 = vst [vmem:[#allocation18_spill] sm:$0xff] %v7291_v24 }
  0xf6   : > { %803 = vadd.xlane.f32.xlu1 %v802_v10  ;;  %v832_v10 = vsel %vm558_vm0, %v393_v3, 0.0  ;;  %11341 = vst [vmem:[#allocation19_spill] sm:$0xff] %v7303_v36  ;;  %11348 = vst [vmem:[#allocation26_spill] sm:$0xff] %v7333_v61 }
  0xf7   : > { %11352 = vst [vmem:[#allocation30_spill] sm:$0xff] %v7385_v53 }
  0xf9   : > { %752 = vadd.xlane.f32.xlu0 %v751_v13  ;;  %v2897_v13 = vadd.s32 4294967264, %v7258_v2 }
  0xfa   : > { %755 = vadd.xlane.f32.xlu1 %v754_v14  ;;  %v2904_v14 = vadd.s32 4294967256, %v7258_v2 }
  0xfd   : > { %806 = vadd.xlane.f32.xlu0 %v805_v17  ;;  %v2911_v17 = vadd.s32 4294967248, %v7258_v2 }
  0xfe   : > { %758 = vadd.xlane.f32.xlu1 %v757_v18  ;;  %v2918_v18 = vadd.s32 4294967240, %v7258_v2 }
  0xff   : > { %v7316_v47 = vsub.s32 %v2911_v17, %v7263_v5 }
 0x100   : > { %v7319_v48 = vsub.s32 %v2918_v18, %v7263_v5 }
 0x101   : > { %809 = vadd.xlane.f32.xlu0 %v808_v21  ;;  %v7286_v21 = vsub.s32 %v2876_v6, %v7263_v5  ;;  %11344 = vst [vmem:[#allocation22_spill] sm:$0xff] %v7316_v47  ;;  %v841_v6 = vsel %vm558_vm0, %v396_v41, 0.0 }
 0x102   : > { %761 = vadd.xlane.f32.xlu1 %v760_v22  ;;  %v7203_v25 = vpop.xlane.xlu0 %608  ;;  %v2932_v22 = vadd.s32 4294967224, %v7258_v2  ;;  %11345 = vst [vmem:[#allocation23_spill] sm:$0xff] %v7319_v48 }
 0x103   : > { %v7205_v26 = vpop.xlane.xlu1 %560  ;;  %11339 = vst [vmem:[#allocation17_spill] sm:$0xff] %v7286_v21 }
 0x104   : > { %v1327_v41 = vmul.f32 0.0625, %v7205_v26 }
 0x105   : > { %812 = vadd.xlane.f32.xlu0 %v811_v27 }
 0x106   : > { %764 = vadd.xlane.f32.xlu1 %v763_v28  ;;  %v7211_v31 = vpop.xlane.xlu0 %611 }
 0x107   : > { %v7213_v32 = vpop.xlane.xlu1 %563  ;;  %v1344_v17 = vmul.f32 0.0625, %v7211_v31  ;;  %v7372_v31 = vsel %vm558_vm0, %v399_v12, 0.0 }
 0x109   : > { %815 = vadd.xlane.f32.xlu0 %v814_v33  ;;  %v395_v33 = vld [vmem:[%s7055_s4 + $0x2e8] sm:$0xff] }
 0x10a   : > { %767 = vadd.xlane.f32.xlu1 %v766_v34  ;;  %v7219_v37 = vpop.xlane.xlu0 %614  ;;  %v379_v34 = vld [vmem:[%s7055_s4 + $0x268] sm:$0xff] }
 0x10b   : > { %v7221_v38 = vpop.xlane.xlu1 %566  ;;  %v790_v60 = vsel %vm558_vm0, %v379_v34, 0.0  ;;  %v2974_v34 = vadd.s32 4294967176, %v7258_v2 }
 0x10c   : > { %v1329_v42 = vmul.f32 0.0625, %v7221_v38 }
 0x10d   : > { %818 = vadd.xlane.f32.xlu0 %v817_v39  ;;  %v7306_v39 = vsub.s32 %v2897_v13, %v7263_v5 }
 0x10e   : > { %770 = vadd.xlane.f32.xlu1 %v769_v40  ;;  %v7227_v43 = vpop.xlane.xlu0 %617  ;;  %v7309_v40 = vsub.s32 %v2904_v14, %v7263_v5 }
 0x10f   : > { %v7229_v44 = vpop.xlane.xlu1 %569  ;;  %11342 = vst [vmem:[#allocation20_spill] sm:$0xff] %v7306_v39 }
 0x110   : > { %11343 = vst [vmem:[#allocation21_spill] sm:$0xff] %v7309_v40 }
 0x111   : > { %821 = vadd.xlane.f32.xlu0 %v820_v45  ;;  %v397_v45 = vld [vmem:[%s7055_s4 + $0x2f8] sm:$0xff] }
 0x112   : > { %773 = vadd.xlane.f32.xlu1 %v772_v46  ;;  %v7235_v49 = vpop.xlane.xlu0 %620  ;;  %v2953_v46 = vadd.s32 4294967200, %v7258_v2  ;;  %v7388_v2 = vsel %vm558_vm0, %v416_v23, 0.0 }
 0x113   : > { %v7237_v50 = vpop.xlane.xlu1 %572 }
 0x114   : > { %v7352_v14 = vsub.s32 %v2953_v46, %v7263_v5  ;;  %v1331_v26 = vmul.f32 0.0625, %v7237_v50 }
 0x115   : > { %824 = vadd.xlane.f32.xlu0 %v823_v51  ;;  %v7322_v51 = vsub.s32 %v2925_v19, %v7263_v5  ;;  %v7363_v19 = vsub.s32 %v2960_v54, %v7263_v5 }
 0x116   : > { %776 = vadd.xlane.f32.xlu1 %v775_v52  ;;  %v7243_v55 = vpop.xlane.xlu0 %623  ;;  %v381_v52 = vld [vmem:[%s7055_s4 + $0x278] sm:$0xff]  ;;  %11350 = vst [vmem:[#allocation28_spill] sm:$0xff] %v7352_v14 }
 0x117   : > { %v7245_v56 = vpop.xlane.xlu1 %575  ;;  %11346 = vst [vmem:[#allocation24_spill] sm:$0xff] %v7322_v51  ;;  %v796_v13 = vsel %vm558_vm0, %v381_v52, 0.0  ;;  %11351 = vst [vmem:[#allocation29_spill] sm:$0xff] %v7363_v19  ;;  %v1347_v52 = vmul.f32 0.0625, %v7235_v49  ;;  %v1348_v38 = vmul.f32 0.0625, %v7243_v55  ;;  %v2875_v55 = vrot.slane %v1327_v41, %v7283_v20 }
 0x118   : > { %v1332_v54 = vmul.f32 0.0625, %v7245_v56 }
 0x119   : > { %827 = vadd.xlane.f32.xlu0 %v826_v57  ;;  %v7328_v57 = vsub.s32 %v2932_v22, %v7263_v5  ;;  %v3003_v56 = vrot.slane %v1347_v52, %v7306_v39 }
 0x11a   : > { %779 = vadd.xlane.f32.xlu1 %v778_v58  ;;  %v7251_v62 = vpop.xlane.xlu0 %626  ;;  %v838_v58 = vsel %vm558_vm0, %v395_v33, 0.0  ;;  %v400_v33 = vld [vmem:[%s7055_s4 + $0x310] sm:$0xff]  ;;  %v2908_v41 = vrot.slane %v1332_v54, %v7309_v40 }
 0x11b   : > { %v7253_v63 = vpop.xlane.xlu1 %578  ;;  %11347 = vst [vmem:[#allocation25_spill] sm:$0xff] %v7328_v57 }
 0x11d   : > { %830 = vadd.xlane.f32.xlu0 %v829_v0  ;;  %v415_v0 = vld [vmem:[%s7055_s4 + $0x388] sm:$0xff] }
 0x11e   : > { %782 = vadd.xlane.f32.xlu1 %v781_v1  ;;  %v7267_v8 = vpop.xlane.xlu0 %629  ;;  %v398_v1 = vld [vmem:[%s7055_s4 + $0x300] sm:$0xff]  ;;  %v7360_v18 = vsel %vm558_vm0, %v415_v0, 0.0  ;;  %v2887_v0 = vrot.slane %v1329_v42, %v7291_v24 }
 0x11f   : > { %v7269_v9 = vpop.xlane.xlu1 %581  ;;  %v7366_v22 = vsel %vm558_vm0, %v398_v1, 0.0 }
 0x121   : > { %833 = vadd.xlane.f32.xlu0 %v832_v10  ;;  %v7344_v10 = vsub.s32 %v2946_v35, %v7263_v5  ;;  %v1343_v35 = vmul.f32 0.0625, %v7203_v25  ;;  %v2988_v25 = vrot.slane %v1344_v17, %v7286_v21 }
 0x122   : > { %785 = vadd.xlane.f32.xlu1 %v784_v11  ;;  %v7293_v27 = vpop.xlane.xlu0 %632  ;;  %v7347_v11 = vsel %vm558_vm0, %v397_v45, 0.0  ;;  %v1346_v45 = vmul.f32 0.0625, %v7227_v43  ;;  %v7394_v43 = vsel %vm558_vm0, %v400_v33, 0.0 }
 0x123   : > { %v7295_v28 = vpop.xlane.xlu1 %584  ;;  %11349 = vst [vmem:[#allocation27_spill] sm:$0xff] %v7344_v10  ;;  %v2984_v50 = vrot.slane %v1343_v35, %v7283_v20 }
 0x124   : > { %v2998_v1 = vrot.slane %v1346_v45, %v7303_v36  ;;  %v1334_v45 = vmul.f32 0.0625, %v7269_v9  ;;  %v1335_v9 = vmul.f32 0.0625, %v7295_v28 }
 0x125   : > { %836 = vadd.xlane.f32.xlu0 %v835_v29  ;;  %v1328_v29 = vmul.f32 0.0625, %v7213_v32  ;;  %v2989_v23 = vsel %vm2881_vm1, %v2988_v25, %v2984_v50 }
 0x126   : > { %788 = vadd.xlane.f32.xlu1 %v787_v30  ;;  %v7337_v3 = vpop.xlane.xlu0 %635  ;;  %v1345_v30 = vmul.f32 0.0625, %v7219_v37  ;;  %v1330_v37 = vmul.f32 0.0625, %v7229_v44 }
 0x127   : > { %v7339_v4 = vpop.xlane.xlu1 %587  ;;  %v2880_v44 = vrot.slane %v1328_v29, %v7286_v21  ;;  %v2901_v29 = vrot.slane %v1331_v26, %v7306_v39  ;;  %v7639_v39 = vld [vmem:[#allocation4 + $0x6c8] sm:$0xff] }
 0x128   : > { %v2993_v49 = vrot.slane %v1345_v30, %v7291_v24  ;;  %v2894_v17 = vrot.slane %v1330_v37, %v7303_v36  ;;  %v3008_v30 = vrot.slane %v1348_v38, %v7309_v40  ;;  %v1351_v37 = vmul.f32 0.0625, %v7293_v27  ;;  %v7634_v40 = vld [vmem:[#allocation4 + $0x690] sm:$0xff]  ;;  %v7672_v36 = vld [vmem:[#allocation4 + $0x708] sm:$0xff]  ;;  %v7676_v24 = vld [vmem:[#allocation4 + $0x718] sm:$0xff] }
 0x129   : > { %839 = vadd.xlane.f32.xlu0 %v838_v58  ;;  %v7400_v58 = vsub.s32 %v2974_v34, %v7263_v5  ;;  %v2882_v34 = vsel %vm2881_vm1, %v2880_v44, %v2875_v55  ;;  %v1352_v27 = vmul.f32 0.0625, %v7337_v3  ;;  %v2922_v55 = vrot.slane %v1334_v45, %v7319_v48  ;;  %v7589_v5 = vld [vmem:[#allocation4 + $0x648] sm:$0xff] }
 0x12a   : > { %791 = vadd.xlane.f32.xlu1 %v790_v60  ;;  %v639_v32 = vpop.xlane.xlu0 %638  ;;  %v417_v60 = vld [vmem:[%s7055_s4 + $0x398] sm:$0xff]  ;;  %v2994_v35 = vsel %vm2888_vm2, %v2993_v49, %v2989_v23  ;;  %v7700_v21 = vld [vmem:[#allocation4 + $0x768] sm:$0xff] }
 0x12b   : > { %v7380_v46 = vpop.xlane.xlu1 %590  ;;  %11353 = vst [vmem:[#allocation31_spill] sm:$0xff] %v7400_v58  ;;  %v7415_v33 = vsel %vm558_vm0, %v417_v60, 0.0  ;;  %v2999_v42 = vsel %vm2895_vm3, %v2998_v1, %v2994_v35  ;;  %v1336_v60 = vmul.f32 0.0625, %v7339_v4  ;;  %v1353_v50 = vmul.f32 0.0625, %v639_v32 }
 0x12c   : > { %v3004_v38 = vsel %vm2902_vm4, %v3003_v56, %v2999_v42  ;;  %v1337_v28 = vmul.f32 0.0625, %v7380_v46  ;;  %v401_v42 = vld [vmem:[%s7055_s4 + $0x318] sm:$0xff] }
 0x12d   : > { %842 = vadd.xlane.f32.xlu0 %v841_v6  ;;  %v1349_v6 = vmul.f32 0.0625, %v7251_v62  ;;  %v1350_v62 = vmul.f32 0.0625, %v7267_v8  ;;  %v3009_v44 = vsel %vm2909_vm5, %v3008_v30, %v3004_v38  ;;  %v2936_v46 = vrot.slane %v1336_v60, %v7328_v57 }
 0x12e   : > { %794 = vadd.xlane.f32.xlu1 %v793_v7  ;;  %v642_v12 = vpop.xlane.xlu0 %641  ;;  %v1333_v7 = vmul.f32 0.0625, %v7253_v63  ;;  %v2889_v63 = vsel %vm2888_vm2, %v2887_v0, %v2882_v34  ;;  %v3023_v0 = vrot.slane %v1351_v37, %v7322_v51  ;;  %v2943_v35 = vrot.slane %v1337_v28, %v7333_v61 }
 0x12f   : > { %v594_v16 = vpop.xlane.xlu1 %593  ;;  %v2896_v26 = vsel %vm2895_vm3, %v2894_v17, %v2889_v63  ;;  %v3013_v8 = vrot.slane %v1349_v6, %v7316_v47  ;;  %v3018_v54 = vrot.slane %v1350_v62, %v7319_v48  ;;  %v1354_v3 = vmul.f32 0.0625, %v642_v12  ;;  %v7630_v48 = vld [vmem:[#allocation4 + $0x680] sm:$0xff] }
 0x130   : > { %v1338_v4 = vmul.f32 0.0625, %v594_v16  ;;  %v3033_v12 = vrot.slane %v1353_v50, %v7333_v61 }
 0x131   : > { %845 = vadd.xlane.f32.xlu0 %v7347_v11  ;;  %v2915_v11 = vrot.slane %v1333_v7, %v7316_v47  ;;  %v3014_v56 = vsel %vm2916_vm6, %v3013_v8, %v3009_v44  ;;  %v856_v44 = vsel %vm558_vm0, %v401_v42, 0.0  ;;  %v7632_v47 = vld [vmem:[#allocation4 + $0x6a0] sm:$0xff] }
 0x132   : > { %797 = vadd.xlane.f32.xlu1 %v796_v13  ;;  %v645_v52 = vpop.xlane.xlu0 %644  ;;  %v2903_v13 = vsel %vm2902_vm4, %v2901_v29, %v2896_v26  ;;  %v3019_v29 = vsel %vm2923_vm7, %v3018_v54, %v3014_v56  ;;  %v2950_v45 = vrot.slane %v1338_v4, %v7344_v10  ;;  %v1719_v4 = vld [vmem:[#allocation4 + $0x410] sm:$0xff] }
 0x133   : > { %v597_v25 = vpop.xlane.xlu1 %596  ;;  %v2910_v49 = vsel %vm2909_vm5, %v2908_v41, %v2903_v13  ;;  %v1355_v32 = vmul.f32 0.0625, %v645_v52  ;;  %v3024_v34 = vsel %vm2930_vm8, %v3023_v0, %v3019_v29  ;;  %v3038_v41 = vrot.slane %v1354_v3, %v7344_v10  ;;  %v1730_v29 = vld [vmem:[#allocation4 + $0x468] sm:$0xff] }
 0x134   : > { %v2917_v6 = vsel %vm2916_vm6, %v2915_v11, %v2910_v49  ;;  %v1339_v7 = vmul.f32 0.0625, %v597_v25 }
 0x135   : > { %896 = vadd.xlane.f32.xlu0 %v7355_v15  ;;  %v2929_v15 = vrot.slane %v1335_v9, %v7322_v51  ;;  %v2924_v16 = vsel %vm2923_vm7, %v2922_v55, %v2917_v6  ;;  %v3043_v37 = vrot.slane %v1355_v32, %v7352_v14  ;;  %v418_v55 = vld [vmem:[%s7055_s4 + $0x3a0] sm:$0xff]  ;;  %v1723_v32 = vld [vmem:[#allocation4 + $0x430] sm:$0xff] }
 0x136   : > { %899 = vadd.xlane.f32.xlu1 %v7360_v18  ;;  %v648_v1 = vpop.xlane.xlu0 %647  ;;  %v3028_v18 = vrot.slane %v1352_v27, %v7328_v57  ;;  %v2957_v26 = vrot.slane %v1339_v7, %v7352_v14  ;;  %v7608_v14 = vld [vmem:[#allocation4 + $0x670] sm:$0xff] }
 0x137   : > { %v600_v17 = vpop.xlane.xlu1 %599  ;;  %v1356_v23 = vmul.f32 0.0625, %v648_v1  ;;  %v1717_v1 = vld [vmem:[#allocation4 + $0x400] sm:$0xff]  ;;  %11364 = vst [vmem:[#allocation42_spill] sm:$0xff] %v7608_v14 }
 0x138   : > { %v1340_v30 = vmul.f32 0.0625, %v600_v17  ;;  %v1721_v17 = vld [vmem:[#allocation4 + $0x420] sm:$0xff] }
 0x139   : > { %848 = vadd.xlane.f32.xlu0 %v7366_v22  ;;  %v2931_v22 = vsel %vm2930_vm8, %v2929_v15, %v2924_v16  ;;  %v3048_v38 = vrot.slane %v1356_v23, %v7363_v19  ;;  %v1726_v15 = vld [vmem:[#allocation4 + $0x448] sm:$0xff] }
 0x13a   : > { %851 = vadd.xlane.f32.xlu1 %v7372_v31  ;;  %v651_v62 = vpop.xlane.xlu0 %650  ;;  %v3029_v31 = vsel %vm2937_vm9, %v3028_v18, %v3024_v34  ;;  %v2938_v8 = vsel %vm2937_vm9, %v2936_v46, %v2931_v22  ;;  %v2964_v13 = vrot.slane %v1340_v30, %v7363_v19  ;;  %v1728_v46 = vld [vmem:[#allocation4 + $0x458] sm:$0xff]  ;;  %v1729_v22 = vld [vmem:[#allocation4 + $0x460] sm:$0xff]  ;;  %v7606_v19 = vld [vmem:[#allocation4 + $0x650] sm:$0xff] }
 0x13b   : > { %v603_v63 = vpop.xlane.xlu1 %602  ;;  %v1357_v52 = vmul.f32 0.0625, %v651_v62  ;;  %v3034_v11 = vsel %vm2944_vm10, %v3033_v12, %v3029_v31  ;;  %v2945_v9 = vsel %vm2944_vm10, %v2943_v35, %v2938_v8  ;;  %v1732_v12 = vld [vmem:[#allocation4 + $0x478] sm:$0xff]  ;;  %v907_v35 = vsel %vm558_vm0, %v418_v55, 0.0  ;;  %v1731_v8 = vld [vmem:[#allocation4 + $0x470] sm:$0xff]  ;;  %11363 = vst [vmem:[#allocation41_spill] sm:$0xff] %v7606_v19  ;;  %v7731_v19 = vld [vmem:[#allocation4 + $0x740] sm:$0xff] }
 0x13c   : > { %v1341_v25 = vmul.f32 0.0625, %v603_v63  ;;  %v3039_v27 = vsel %vm2951_vm11, %v3038_v41, %v3034_v11  ;;  %v2952_v0 = vsel %vm2951_vm11, %v2950_v45, %v2945_v9  ;;  %v5609_v45 = vpack.c.bf16 %v1721_v17, %v1717_v1  ;;  %v1734_v11 = vld [vmem:[#allocation4 + $0x488] sm:$0xff]  ;;  %v1740_v9 = vld [vmem:[#allocation4 + $0x4b8] sm:$0xff]  ;;  %v1735_v17 = vld [vmem:[#allocation4 + $0x490] sm:$0xff] }
 0x13d   : > { %902 = vadd.xlane.f32.xlu0 %v7388_v2  ;;  %v3053_v49 = vrot.slane %v1357_v52, %v7385_v53  ;;  %v3044_v2 = vsel %vm2958_vm12, %v3043_v37, %v3039_v27  ;;  %v2959_v56 = vsel %vm2958_vm12, %v2957_v26, %v2952_v0  ;;  %v6121_v37 = vpack.c.bf16 %v1723_v32, %v1719_v4  ;;  %v403_v52 = vld [vmem:[%s7055_s4 + $0x328] sm:$0xff]  ;;  %v1744_v32 = vld [vmem:[#allocation4 + $0x4d8] sm:$0xff] }
 0x13e   : > { %854 = vadd.xlane.f32.xlu1 %v7394_v43  ;;  %v2971_v54 = vrot.slane %v1341_v25, %v7385_v53  ;;  %v654_v60 = vpop.xlane.xlu0 %653  ;;  %v402_v43 = vld [vmem:[%s7055_s4 + $0x320] sm:$0xff]  ;;  %v3049_v6 = vsel %vm2965_vm13, %v3048_v38, %v3044_v2  ;;  %v2966_v23 = vsel %vm2965_vm13, %v2964_v13, %v2959_v56  ;;  %v5611_v31 = vpack.c.bf16 %v1730_v29, %v1726_v15  ;;  %v1727_v38 = vld [vmem:[#allocation4 + $0x450] sm:$0xff]  ;;  %v1738_v13 = vld [vmem:[#allocation4 + $0x4a8] sm:$0xff] }
 0x13f   : > { %v606_v50 = vpop.xlane.xlu1 %605  ;;  %v1358_v28 = vmul.f32 0.0625, %v654_v60  ;;  %v3054_v34 = vsel %vm2972_vm14, %v3053_v49, %v3049_v6  ;;  %v859_v41 = vsel %vm558_vm0, %v402_v43, 0.0  ;;  %v1725_v25 = vld [vmem:[#allocation4 + $0x440] sm:$0xff]  ;;  %v6123_v26 = vpack.c.bf16 %v1732_v12, %v1728_v46  ;;  %v1739_v56 = vld [vmem:[#allocation4 + $0x4b0] sm:$0xff]  ;;  %v1742_v6 = vld [vmem:[#allocation4 + $0x4c8] sm:$0xff] }
 0x140   : > { %v1342_v3 = vmul.f32 0.0625, %v606_v50  ;;  %v2973_v62 = vsel %vm2972_vm14, %v2971_v54, %v2966_v23  ;;  %v862_v60 = vsel %vm558_vm0, %v403_v52, 0.0  ;;  %v420_v50 = vld [vmem:[%s7055_s4 + $0x3b0] sm:$0xff]  ;;  %v5613_v55 = vpack.c.bf16 %v1729_v22, %v1725_v25  ;;  %v1737_v2 = vld [vmem:[#allocation4 + $0x4a0] sm:$0xff]  ;;  %v1748_v15 = vld [vmem:[#allocation4 + $0x4f8] sm:$0xff] }
 0x141   : > { %v3058_v18 = vrot.slane %v1358_v28, %v7400_v58  ;;  %905 = vadd.xlane.f32.xlu0 %v7415_v33  ;;  %v419_v33 = vld [vmem:[%s7055_s4 + $0x3a8] sm:$0xff]  ;;  %v6125_v0 = vpack.c.bf16 %v1731_v8, %v1727_v38  ;;  %v404_v28 = vld [vmem:[%s7055_s4 + $0x330] sm:$0xff]  ;;  %v5615_v43 = vpack.c.bf16 %v1738_v13, %v1734_v11  ;;  %v913_v23 = vsel %vm558_vm0, %v420_v50, 0.0  ;;  %v421_v46 = vld [vmem:[%s7055_s4 + $0x3b8] sm:$0xff] }
 0x142   : > { %v2978_v7 = vrot.slane %v1342_v3, %v7400_v58  ;;  %857 = vadd.xlane.f32.xlu1 %v856_v44  ;;  %v7482_v30 = vpop.xlane.xlu0 %704  ;;  %v1736_v44 = vld [vmem:[#allocation4 + $0x498] sm:$0xff]  ;;  %v910_v54 = vsel %vm558_vm0, %v419_v33, 0.0  ;;  %v1733_v3 = vld [vmem:[#allocation4 + $0x480] sm:$0xff]  ;;  %v1746_v4 = vld [vmem:[#allocation4 + $0x4e8] sm:$0xff]  ;;  %v865_v29 = vsel %vm558_vm0, %v404_v28, 0.0  ;;  %v916_v38 = vsel %vm558_vm0, %v421_v46, 0.0 }
 0x143   : > { %v7484_v16 = vpop.xlane.xlu1 %707  ;;  %v3059_v63 = vsel %vm2979_vm15, %v3058_v18, %v3054_v34  ;;  %v6127_v1 = vpack.c.bf16 %v1740_v9, %v1736_v44  ;;  %v5617_v12 = vpack.c.bf16 %v1737_v2, %v1733_v3  ;;  %v6129_v34 = vpack.c.bf16 %v1739_v56, %v1735_v17  ;;  %v1754_v52 = vld [vmem:[#allocation4 + $0x528] sm:$0xff]  ;;  %v1752_v25 = vld [vmem:[#allocation4 + $0x518] sm:$0xff]  ;;  %v1755_v28 = vld [vmem:[#allocation4 + $0x530] sm:$0xff] }
 0x144   : > { %v2980_v42 = vsel %vm2979_vm15, %v2978_v7, %v2973_v62  ;;  %4246 = vmatprep.mubr.f32.mxu0 %v3059_v63  ;;  %4814 = vmatprep.mubr.f32.mxu1 %v3059_v63  ;;  %v1745_v62 = vld [vmem:[#allocation4 + $0x4e0] sm:$0xff]  ;;  %v5619_v33 = vpack.c.bf16 %v1746_v4, %v1742_v6  ;;  %v6131_v63 = vpack.c.bf16 %v1748_v15, %v1744_v32  ;;  %v1756_v22 = vld [vmem:[#allocation4 + $0x538] sm:$0xff]  ;;  %v1758_v3 = vld [vmem:[#allocation4 + $0x548] sm:$0xff] }
 0x145   : > { %908 = vadd.xlane.f32.xlu0 %v907_v35  ;;  %4247 = vmatmul.mubr.f32.vlgmr.msra.gmra.mrb[0].mxu0 %v2980_v42  ;;  %v405_v35 = vld [vmem:[%s7055_s4 + $0x338] sm:$0xff]  ;;  %v422_v11 = vld [vmem:[%s7055_s4 + $0x3c0] sm:$0xff]  ;;  %v1762_v2 = vld [vmem:[#allocation4 + $0x568] sm:$0xff] }
 0x146   : > { %860 = vadd.xlane.f32.xlu1 %v859_v41  ;;  %4815 = vmatmul.mubr.f32.vlgmr.msra.gmra.mrb[0].mxu1 %v2980_v42  ;;  %v7494_v27 = vpop.xlane.xlu0 %656  ;;  %v1741_v41 = vld [vmem:[#allocation4 + $0x4c0] sm:$0xff]  ;;  %v1743_v42 = vld [vmem:[#allocation4 + $0x4d0] sm:$0xff]  ;;  %v868_v8 = vsel %vm558_vm0, %v405_v35, 0.0  ;;  %v919_v6 = vsel %vm558_vm0, %v422_v11, 0.0  ;;  %v5627_v35 = vpack.c.bf16 %v1762_v2, %v1758_v3  ;;  %v7546_v3 = vld [vmem:[#allocation4 + $0x5d8] sm:$0xff] }
 0x147   : > { %v7496_v49 = vpop.xlane.xlu1 %659  ;;  %5610 = vmatpush1.bf16.msra.mxu0 %v5609_v45  ;;  %6122 = vmatpush1.bf16.msra.mxu1 %v6121_v37  ;;  %v1747_v45 = vld [vmem:[#allocation4 + $0x4f0] sm:$0xff]  ;;  %v1750_v37 = vld [vmem:[#allocation4 + $0x508] sm:$0xff]  ;;  %v5621_v13 = vpack.c.bf16 %v1745_v62, %v1741_v41  ;;  %v406_v9 = vld [vmem:[%s7055_s4 + $0x340] sm:$0xff] }
 0x148   : > { %5612 = vmatprep.subr.bf16.mxu0 %v5611_v31  ;;  %6124 = vmatprep.subr.bf16.mxu1 %v6123_v26  ;;  %v6133_v44 = vpack.c.bf16 %v1747_v45, %v1743_v42  ;;  %v5623_v50 = vpack.c.bf16 %v1754_v52, %v1750_v37  ;;  %v871_v4 = vsel %vm558_vm0, %v406_v9, 0.0  ;;  %v423_v32 = vld [vmem:[%s7055_s4 + $0x3c8] sm:$0xff]  ;;  %v1763_v62 = vld [vmem:[#allocation4 + $0x570] sm:$0xff]  ;;  %v1768_v45 = vld [vmem:[#allocation4 + $0x598] sm:$0xff] }
 0x149   : > { %911 = vadd.xlane.f32.xlu0 %v910_v54  ;;  %v1749_v54 = vld [vmem:[#allocation4 + $0x500] sm:$0xff]  ;;  %v424_v42 = vld [vmem:[%s7055_s4 + $0x3d0] sm:$0xff]  ;;  %v1772_v37 = vld [vmem:[#allocation4 + $0x5b8] sm:$0xff] }
 0x14a   : > { %863 = vadd.xlane.f32.xlu1 %v862_v60  ;;  %v7502_v18 = vpop.xlane.xlu0 %710  ;;  %v1753_v60 = vld [vmem:[#allocation4 + $0x520] sm:$0xff]  ;;  %v7548_v2 = vld [vmem:[#allocation4 + $0x5f8] sm:$0xff] }
 0x14b   : > { %v7504_v7 = vpop.xlane.xlu1 %662  ;;  %5614 = vmatpush1.bf16.msra.mxu0 %v5613_v55  ;;  %6126 = vmatpush1.bf16.msra.mxu1 %v6125_v0  ;;  %v6135_v55 = vpack.c.bf16 %v1756_v22, %v1752_v25  ;;  %v1751_v0 = vld [vmem:[#allocation4 + $0x510] sm:$0xff]  ;;  %v407_v15 = vld [vmem:[%s7055_s4 + $0x348] sm:$0xff]  ;;  %v922_v22 = vsel %vm558_vm0, %v423_v32, 0.0 }
 0x14c   : > { %5616 = vmatprep.subr.bf16.mxu0 %v5615_v43  ;;  %6128 = vmatprep.subr.bf16.mxu1 %v6127_v1  ;;  %v1760_v43 = vld [vmem:[#allocation4 + $0x558] sm:$0xff]  ;;  %v1757_v46 = vld [vmem:[#allocation4 + $0x540] sm:$0xff]  ;;  %v7556_v32 = vld [vmem:[#allocation4 + $0x5d0] sm:$0xff] }
 0x14d   : > { %914 = vadd.xlane.f32.xlu0 %v913_v23  ;;  %v1764_v1 = vld [vmem:[#allocation4 + $0x578] sm:$0xff]  ;;  %v5625_v23 = vpack.c.bf16 %v1753_v60, %v1749_v54  ;;  %v7534_v11 = vld [vmem:[#allocation4 + $0x580] sm:$0xff]  ;;  %v7538_v54 = vld [vmem:[#allocation4 + $0x590] sm:$0xff] }
 0x14e   : > { %866 = vadd.xlane.f32.xlu1 %v865_v29  ;;  %v7510_v31 = vpop.xlane.xlu0 %713  ;;  %v6137_v29 = vpack.c.bf16 %v1755_v28, %v1751_v0  ;;  %v6139_v41 = vpack.c.bf16 %v1764_v1, %v1760_v43  ;;  %v7540_v60 = vld [vmem:[#allocation4 + $0x5b0] sm:$0xff]  ;;  %v6143_v0 = vpack.c.bf16 %v1772_v37, %v1768_v45  ;;  %v7544_v28 = vld [vmem:[#allocation4 + $0x5e8] sm:$0xff]  ;;  %v7580_v37 = vld [vmem:[#allocation4 + $0x600] sm:$0xff] }
 0x14f   : > { %v7512_v26 = vpop.xlane.xlu1 %665  ;;  %5618 = vmatpush1.bf16.msra.mxu0 %v5617_v12  ;;  %6130 = vmatpush1.bf16.msra.mxu1 %v6129_v34  ;;  %v1761_v12 = vld [vmem:[#allocation4 + $0x560] sm:$0xff]  ;;  %v1759_v34 = vld [vmem:[#allocation4 + $0x550] sm:$0xff] }
 0x150   : > { %11354 = vst [vmem:[#allocation32_spill] sm:$0xff] %v7512_v26  ;;  %5620 = vmatprep.subr.bf16.mxu0 %v5619_v33  ;;  %6132 = vmatprep.subr.bf16.mxu1 %v6131_v63  ;;  %v1766_v33 = vld [vmem:[#allocation4 + $0x588] sm:$0xff]  ;;  %v6141_v9 = vpack.c.bf16 %v1763_v62, %v1759_v34  ;;  %v425_v43 = vld [vmem:[%s7055_s4 + $0x3d8] sm:$0xff]  ;;  %v426_v34 = vld [vmem:[%s7055_s4 + $0x3e0] sm:$0xff] }
 0x151   : > { %917 = vadd.xlane.f32.xlu0 %v916_v38  ;;  %v1770_v63 = vld [vmem:[#allocation4 + $0x5a8] sm:$0xff]  ;;  %v874_v38 = vsel %vm558_vm0, %v407_v15, 0.0  ;;  %v409_v1 = vld [vmem:[%s7055_s4 + $0x358] sm:$0xff]  ;;  %v7602_v58 = vld [vmem:[#allocation4 + $0x640] sm:$0xff]  ;;  %v928_v57 = vsel %vm558_vm0, %v425_v43, 0.0 }
 0x152   : > { %869 = vadd.xlane.f32.xlu1 %v868_v8  ;;  %v7518_v17 = vpop.xlane.xlu0 %716  ;;  %v408_v8 = vld [vmem:[%s7055_s4 + $0x350] sm:$0xff]  ;;  %11361 = vst [vmem:[#allocation39_spill] sm:$0xff] %v7602_v58  ;;  %v7604_v53 = vld [vmem:[#allocation4 + $0x660] sm:$0xff]  ;;  %v7719_v26 = vld [vmem:[#allocation4 + $0x778] sm:$0xff] }
 0x153   : > { %11355 = vst [vmem:[#allocation33_spill] sm:$0xff] %v7518_v17  ;;  %v7520_v56 = vpop.xlane.xlu1 %668  ;;  %5622 = vmatpush1.bf16.msra.mxu0 %v5621_v13  ;;  %6134 = vmatpush1.bf16.msra.mxu1 %v6133_v44  ;;  %v7536_v13 = vld [vmem:[#allocation4 + $0x5a0] sm:$0xff]  ;;  %v5629_v44 = vpack.c.bf16 %v1761_v12, %v1757_v46  ;;  %v7558_v15 = vld [vmem:[#allocation4 + $0x5f0] sm:$0xff]  ;;  %v925_v46 = vsel %vm558_vm0, %v424_v42, 0.0  ;;  %v877_v12 = vsel %vm558_vm0, %v408_v8, 0.0  ;;  %v7570_v62 = vld [vmem:[#allocation4 + $0x628] sm:$0xff]  ;;  %v6145_v42 = vpack.c.bf16 %v7540_v60, %v7538_v54 }
 0x154   : > { %11356 = vst [vmem:[#allocation34_spill] sm:$0xff] %v7520_v56  ;;  %5624 = vmatprep.subr.bf16.mxu0 %v5623_v50  ;;  %6136 = vmatprep.subr.bf16.mxu1 %v6135_v55  ;;  %v7542_v50 = vld [vmem:[#allocation4 + $0x5c8] sm:$0xff]  ;;  %v5631_v55 = vpack.c.bf16 %v1770_v63, %v1766_v33  ;;  %v7572_v33 = vld [vmem:[#allocation4 + $0x618] sm:$0xff]  ;;  %v5633_v45 = vpack.c.bf16 %v7536_v13, %v7534_v11  ;;  %v7586_v8 = vld [vmem:[#allocation4 + $0x630] sm:$0xff] }
 0x155   : > { %920 = vadd.xlane.f32.xlu0 %v919_v6  ;;  %v7552_v6 = vld [vmem:[#allocation4 + $0x5c0] sm:$0xff]  ;;  %v7574_v63 = vld [vmem:[#allocation4 + $0x638] sm:$0xff]  ;;  %v5635_v11 = vpack.c.bf16 %v7544_v28, %v7542_v50  ;;  %v6147_v13 = vpack.c.bf16 %v7548_v2, %v7546_v3  ;;  %11362 = vst [vmem:[#allocation40_spill] sm:$0xff] %v7604_v53  ;;  %v412_v50 = vld [vmem:[%s7055_s4 + $0x370] sm:$0xff]  ;;  %v6149_v51 = vpack.c.bf16 %v7558_v15, %v7556_v32 }
 0x156   : > { %872 = vadd.xlane.f32.xlu1 %v871_v4  ;;  %v7527_v52 = vpop.xlane.xlu0 %719  ;;  %v7554_v4 = vld [vmem:[#allocation4 + $0x5e0] sm:$0xff]  ;;  %v7598_v54 = vld [vmem:[#allocation4 + $0x658] sm:$0xff]  ;;  %v7614_v28 = vld [vmem:[#allocation4 + $0x6a8] sm:$0xff]  ;;  %v6151_v32 = vpack.c.bf16 %v7574_v63, %v7572_v33  ;;  %v7667_v33 = vsel %vm558_vm0, %v427_v59, 0.0 }
 0x157   : > { %11357 = vst [vmem:[#allocation35_spill] sm:$0xff] %v7527_v52  ;;  %v7529_v25 = vpop.xlane.xlu1 %671  ;;  %5626 = vmatpush1.bf16.msra.mxu0 %v5625_v23  ;;  %6138 = vmatpush1.bf16.msra.mxu1 %v6137_v29  ;;  %v7600_v60 = vld [vmem:[#allocation4 + $0x678] sm:$0xff]  ;;  %v7641_v43 = vld [vmem:[#allocation4 + $0x6e8] sm:$0xff]  ;;  %v7690_v56 = vld [vmem:[#allocation4 + $0x700] sm:$0xff] }
 0x158   : > { %11358 = vst [vmem:[#allocation36_spill] sm:$0xff] %v7529_v25  ;;  %5628 = vmatprep.subr.bf16.mxu0 %v5627_v35  ;;  %6140 = vmatprep.subr.bf16.mxu1 %v6139_v41  ;;  %v410_v35 = vld [vmem:[%s7055_s4 + $0x360] sm:$0xff]  ;;  %v7568_v41 = vld [vmem:[#allocation4 + $0x608] sm:$0xff]  ;;  %v413_v15 = vld [vmem:[%s7055_s4 + $0x378] sm:$0xff] }
 0x159   : > { %923 = vadd.xlane.f32.xlu0 %v922_v22  ;;  %v7582_v22 = vld [vmem:[#allocation4 + $0x620] sm:$0xff]  ;;  %v7616_v3 = vld [vmem:[#allocation4 + $0x698] sm:$0xff]  ;;  %v7674_v52 = vld [vmem:[#allocation4 + $0x728] sm:$0xff] }
 0x15a   : > { %875 = vadd.xlane.f32.xlu1 %v874_v38  ;;  %v7560_v23 = vpop.xlane.xlu0 %722  ;;  %v7584_v38 = vld [vmem:[#allocation4 + $0x610] sm:$0xff]  ;;  %v7618_v2 = vld [vmem:[#allocation4 + $0x6b8] sm:$0xff]  ;;  %v7654_v25 = vld [vmem:[#allocation4 + $0x6c0] sm:$0xff] }
 0x15b   : > { %11359 = vst [vmem:[#allocation37_spill] sm:$0xff] %v7560_v23  ;;  %v7562_v29 = vpop.xlane.xlu1 %674  ;;  %5630 = vmatpush1.bf16.msra.mxu0 %v5629_v44  ;;  %6142 = vmatpush1.bf16.msra.mxu1 %v6141_v9  ;;  %v7591_v44 = vld [vmem:[#allocation4 + $0x668] sm:$0xff]  ;;  %v7652_v23 = vld [vmem:[#allocation4 + $0x6f8] sm:$0xff]  ;;  %v7692_v17 = vld [vmem:[#allocation4 + $0x720] sm:$0xff] }
 0x15c   : > { %11360 = vst [vmem:[#allocation38_spill] sm:$0xff] %v7562_v29  ;;  %5632 = vmatprep.subr.bf16.mxu0 %v5631_v55  ;;  %6144 = vmatprep.subr.bf16.mxu1 %v6143_v0  ;;  %v411_v9 = vld [vmem:[%s7055_s4 + $0x368] sm:$0xff]  ;;  %v428_v55 = vld [vmem:[%s7055_s4 + $0x3f0] sm:$0xff]  ;;  %v7650_v29 = vld [vmem:[#allocation4 + $0x6d8] sm:$0xff] }
 0x15d   : > { %926 = vadd.xlane.f32.xlu0 %v925_v46  ;;  %v7612_v0 = vld [vmem:[#allocation4 + $0x688] sm:$0xff]  ;;  %v880_v46 = vsel %vm558_vm0, %v409_v1, 0.0  ;;  %v931_v1 = vsel %vm558_vm0, %v426_v34, 0.0  ;;  %v7658_v34 = vld [vmem:[#allocation4 + $0x6d0] sm:$0xff]  ;;  %v7707_v63 = vsel %vm558_vm0, %v428_v55, 0.0  ;;  %v430_v58 = vld [vmem:[%s7055_s4 + $0x400] sm:$0xff] }
 0x15e   : > { %878 = vadd.xlane.f32.xlu1 %v877_v12  ;;  %v7620_v10 = vpop.xlane.xlu0 %725  ;;  %v5637_v12 = vpack.c.bf16 %v7554_v4, %v7552_v6  ;;  %v883_v6 = vsel %vm558_vm0, %v410_v35, 0.0  ;;  %v5639_v4 = vpack.c.bf16 %v7570_v62, %v7568_v41  ;;  %11367 = vst [vmem:[#allocation45_spill] sm:$0xff] %v7658_v34  ;;  %v7660_v35 = vld [vmem:[#allocation4 + $0x6f0] sm:$0xff]  ;;  %v7682_v62 = vsel %vm558_vm0, %v411_v9, 0.0  ;;  %v7698_v9 = vld [vmem:[#allocation4 + $0x748] sm:$0xff]  ;;  %11372 = vst [vmem:[#allocation50_spill] sm:$0xff] %v7707_v63 }
 0x15f   : > { %11365 = vst [vmem:[#allocation43_spill] sm:$0xff] %v7620_v10  ;;  %v7622_v61 = vpop.xlane.xlu1 %677  ;;  %v7636_v10 = vld [vmem:[#allocation4 + $0x6b0] sm:$0xff]  ;;  %5634 = vmatpush1.bf16.msra.mxu0 %v5633_v45  ;;  %6146 = vmatpush1.bf16.msra.mxu1 %v6145_v42  ;;  %v7656_v45 = vld [vmem:[#allocation4 + $0x6e0] sm:$0xff]  ;;  %11368 = vst [vmem:[#allocation46_spill] sm:$0xff] %v7660_v35  ;;  %v7710_v41 = vsel %vm558_vm0, %v412_v50, 0.0 }
 0x160   : > { %11366 = vst [vmem:[#allocation44_spill] sm:$0xff] %v7622_v61  ;;  %v429_v61 = vld [vmem:[%s7055_s4 + $0x3f8] sm:$0xff]  ;;  %5636 = vmatprep.subr.bf16.mxu0 %v5635_v11  ;;  %6148 = vmatprep.subr.bf16.mxu1 %v6147_v13  ;;  %v446_v42 = vld [vmem:[%s7055_s4 + $0x480] sm:$0xff]  ;;  %v447_v13 = vld [vmem:[%s7055_s4 + $0x488] sm:$0xff] }
 0x161   : > { %v7678_v11 = vld [vmem:[#allocation4 + $0x738] sm:$0xff]  ;;  %929 = vadd.xlane.f32.xlu0 %v928_v57  ;;  %v7694_v57 = vld [vmem:[#allocation4 + $0x710] sm:$0xff]  ;;  %11369 = vst [vmem:[#allocation47_spill] sm:$0xff] %v7698_v9  ;;  %11373 = vst [vmem:[#allocation51_spill] sm:$0xff] %v7710_v41  ;;  %v7760_v14 = vsel %vm558_vm0, %v447_v13, 0.0 }
 0x162   : > { %881 = vadd.xlane.f32.xlu1 %v880_v46  ;;  %v7696_v46 = vld [vmem:[#allocation4 + $0x730] sm:$0xff]  ;;  %v7702_v59 = vpop.xlane.xlu0 %728  ;;  %v7717_v53 = vld [vmem:[#allocation4 + $0x758] sm:$0xff]  ;;  %v7733_v41 = vld [vmem:[#allocation4 + $0x760] sm:$0xff]  ;;  %11376 = vst [vmem:[#allocation54_spill] sm:$0xff] %v7760_v14 }
 0x163   : > { %11370 = vst [vmem:[#allocation48_spill] sm:$0xff] %v7702_v59  ;;  %v7704_v20 = vpop.xlane.xlu1 %680  ;;  %v431_v59 = vld [vmem:[%s7055_s4 + $0x408] sm:$0xff]  ;;  %5638 = vmatpush1.bf16.msra.mxu0 %v5637_v12  ;;  %6150 = vmatpush1.bf16.msra.mxu1 %v6149_v51  ;;  %v7735_v63 = vld [vmem:[#allocation4 + $0x750] sm:$0xff]  ;;  %v7738_v51 = vsel %vm558_vm0, %v413_v15, 0.0  ;;  %v7763_v12 = vld [vmem:[#allocation4 + $0x798] sm:$0xff]  ;;  %v7776_v15 = vsel %vm558_vm0, %v430_v58, 0.0 }
 0x164   : > { %11371 = vst [vmem:[#allocation49_spill] sm:$0xff] %v7704_v20  ;;  %v7727_v20 = vsel %vm558_vm0, %v429_v61, 0.0  ;;  %5640 = vmatprep.subr.bf16.mxu0 %v5639_v4  ;;  %6152 = vmatprep.subr.bf16.mxu1 %v6151_v32  ;;  %v7746_v50 = vld [vmem:[#allocation4 + $0x770] sm:$0xff]  ;;  %v7748_v55 = vld [vmem:[#allocation4 + $0x788] sm:$0xff]  ;;  %v7753_v4 = vsel %vm558_vm0, %v446_v42, 0.0  ;;  %11377 = vst [vmem:[#allocation55_spill] sm:$0xff] %v7763_v12 }
 0x165   : > { %11374 = vst [vmem:[#allocation52_spill] sm:$0xff] %v7727_v20  ;;  %v7750_v20 = vld [vmem:[#allocation4 + $0x7a8] sm:$0xff]  ;;  %932 = vadd.xlane.f32.xlu0 %v931_v1  ;;  %11375 = vst [vmem:[#allocation53_spill] sm:$0xff] %v7753_v4  ;;  %v7765_v34 = vld [vmem:[#allocation4 + $0x7b8] sm:$0xff]  ;;  %v7794_v42 = vsel %vm558_vm0, %v431_v59, 0.0  ;;  %v11387_v59 = vpack.c.bf16 %v7591_v44, %v7589_v5  ;;  %v1360_v5 = vmul.f32 0.0625, %v7496_v49 }
 0x166   : > { %884 = vadd.xlane.f32.xlu1 %v883_v6  ;;  %v448_v61 = vld [vmem:[%s7055_s4 + $0x490] sm:$0xff]  ;;  %v7767_v35 = vpop.xlane.xlu0 %731  ;;  %11379 = vst [vmem:[#allocation57_spill] sm:$0xff] %v7776_v15  ;;  %v7781_v14 = vld [vmem:[#allocation4 + $0x780] sm:$0xff]  ;;  %v11383_v6 = vpack.c.bf16 %v7586_v8, %v7584_v38  ;;  %v1375_v38 = vmul.f32 0.0625, %v7482_v30  ;;  %v1376_v8 = vmul.f32 0.0625, %v7484_v16  ;;  %v7821_v58 = vld [vmem:[#allocation4 + $0x7d8] sm:$0xff] }
 0x167   : > { %v7769_v1 = vpop.xlane.xlu1 %683  ;;  %v432_v32 = vld [vmem:[%s7055_s4 + $0x410] sm:$0xff]  ;;  %11380 = vst [vmem:[#allocation58_spill] sm:$0xff] %v7781_v14  ;;  %v7783_v4 = vld [vmem:[#allocation4 + $0x7a0] sm:$0xff]  ;;  %11391 = vst [vmem:[#allocation65_spill] sm:$0xff] %v7821_v58  ;;  %v1359_v16 = vmul.f32 0.0625, %v7494_v27  ;;  %v1377_v44 = vmul.f32 0.0625, %v7502_v18 }
 0x168   : > { %11378 = vst [vmem:[#allocation56_spill] sm:$0xff] %v7769_v1  ;;  %11381 = vst [vmem:[#allocation59_spill] sm:$0xff] %v7783_v4  ;;  %v11382_v1 = vpack.c.bf16 %v7582_v22, %v7580_v37  ;;  %6154 = vmatpush1.bf16.msra.mxu1 %v11383_v6  ;;  %v7800_v9 = vld [vmem:[#allocation4 + $0x790] sm:$0xff]  ;;  %v7804_v22 = vld [vmem:[#allocation4 + $0x7c8] sm:$0xff]  ;;  %v7815_v6 = vsel %vm558_vm0, %v448_v61, 0.0  ;;  %v1378_v61 = vmul.f32 0.0625, %v7510_v31  ;;  %v11405_v31 = vpack.c.bf16 %v7614_v28, %v7612_v0 }
 0x169   : > { %11384 = vst [vmem:[#allocation60_spill] sm:$0xff] %v7800_v9  ;;  %v7802_v37 = vld [vmem:[#allocation4 + $0x7b0] sm:$0xff]  ;;  %11386 = vst [vmem:[#allocation62_spill] sm:$0xff] %v7804_v22  ;;  %v7819_v13 = vld [vmem:[#allocation4 + $0x7e8] sm:$0xff]  ;;  %935 = vadd.xlane.f32.xlu0 %v7667_v33  ;;  %v7839_v27 = vsel %vm558_vm0, %v432_v32, 0.0  ;;  %v11406_v32 = vpack.c.bf16 %v7618_v2, %v7616_v3 }
 0x16a   : > { %5642 = vmatpush1.bf16.msra.mxu0 %v11382_v1  ;;  %11385 = vst [vmem:[#allocation61_spill] sm:$0xff] %v7802_v37  ;;  %v11388_v1 = vpack.c.bf16 %v7600_v60, %v7598_v54  ;;  %11389 = vst [vmem:[#allocation63_spill] sm:$0xff] %v7815_v6  ;;  %v7823_v30 = vld [vmem:[#allocation4 + $0x7f8] sm:$0xff]  ;;  %887 = vadd.xlane.f32.xlu1 %v7682_v62  ;;  %v1361_v60 = vmul.f32 0.0625, %v7504_v7  ;;  %v11394_v18 = vld [vmem:[#allocation32_spill] sm:$0xff] }
 0x16b   : > { %5644 = vmatprep.subr.bf16.mxu0 %v11387_v59  ;;  %11390 = vst [vmem:[#allocation64_spill] sm:$0xff] %v7819_v13  ;;  %11392 = vst [vmem:[#allocation66_spill] sm:$0xff] %v7823_v30  ;;  %v7834_v59 = vpop.xlane.xlu0 %734  ;;  %v1362_v33 = vmul.f32 0.0625, %v11394_v18  ;;  %v11395_v62 = vld [vmem:[#allocation40_spill] sm:$0xff]  ;;  %v11396_v15 = vld [vmem:[#allocation39_spill] sm:$0xff] }
 0x16c   : > { %6156 = vmatprep.subr.bf16.mxu1 %v11388_v1  ;;  %v7836_v1 = vpop.xlane.xlu1 %686  ;;  %11393 = vst [vmem:[#allocation67_spill] sm:$0xff] %v7839_v27  ;;  %v11397_v6 = vpack.c.bf16 %v11395_v62, %v11396_v15  ;;  %v11398_v54 = vld [vmem:[#allocation42_spill] sm:$0xff]  ;;  %v11399_v7 = vld [vmem:[#allocation41_spill] sm:$0xff]  ;;  %v7856_v49 = vld [vmem:[#allocation4 + $0x7c0] sm:$0xff] }
 0x16d   : > { %v11400_v12 = vpack.c.bf16 %v11398_v54, %v11399_v7  ;;  %v7858_v18 = vld [vmem:[#allocation4 + $0x7e0] sm:$0xff]  ;;  %v11403_v4 = vld [vmem:[#allocation33_spill] sm:$0xff]  ;;  %v7870_v27 = vld [vmem:[#allocation4 + $0x7d0] sm:$0xff] }
 0x16e   : > { %5646 = vmatpush1.bf16.msra.mxu0 %v11397_v6  ;;  %v11401_v14 = vld [vmem:[#allocation16_spill] sm:$0xff]  ;;  %v11402_v6 = vld [vmem:[#allocation17_spill] sm:$0xff]  ;;  %v1379_v54 = vmul.f32 0.0625, %v11403_v4  ;;  %v7872_v58 = vld [vmem:[#allocation4 + $0x7f0] sm:$0xff] }
 0x16f   : > { %6158 = vmatpush1.bf16.msra.mxu1 %v11400_v12  ;;  %v3142_v15 = vrot.slane %v1375_v38, %v11401_v14  ;;  %v3146_v62 = vrot.slane %v1376_v8, %v11402_v6  ;;  %v11404_v12 = vld [vmem:[#allocation34_spill] sm:$0xff]  ;;  %5648 = vmatprep.subr.bf16.mxu0 %v11405_v31  ;;  %v3063_v38 = vrot.slane %v1359_v16, %v11401_v14  ;;  %v11408_v22 = vld [vmem:[#allocation35_spill] sm:$0xff]  ;;  %v11412_v31 = vld [vmem:[#allocation36_spill] sm:$0xff]  ;;  %v738_v9 = vpop.xlane.xlu0 %737 }
 0x170   : > { %v1363_v7 = vmul.f32 0.0625, %v11404_v12  ;;  %6160 = vmatprep.subr.bf16.mxu1 %v11406_v32  ;;  %v3067_v8 = vrot.slane %v1360_v5, %v11402_v6  ;;  %v11407_v30 = vld [vmem:[#allocation18_spill] sm:$0xff]  ;;  %v1380_v12 = vmul.f32 0.0625, %v11408_v22  ;;  %v11410_v0 = vld [vmem:[#allocation51_spill] sm:$0xff]  ;;  %v1364_v32 = vmul.f32 0.0625, %v11412_v31  ;;  %v690_v37 = vpop.xlane.xlu1 %689  ;;  %v11417_v31 = vld [vmem:[#allocation20_spill] sm:$0xff] }
 0x171   : > { %v3151_v4 = vrot.slane %v1377_v44, %v11407_v30  ;;  %v11409_v13 = vld [vmem:[#allocation50_spill] sm:$0xff]  ;;  %890 = vadd.xlane.f32.xlu1 %v11410_v0  ;;  %v3072_v28 = vrot.slane %v1361_v60, %v11407_v30  ;;  %v11411_v3 = vld [vmem:[#allocation19_spill] sm:$0xff]  ;;  %v11413_v44 = vld [vmem:[#allocation37_spill] sm:$0xff]  ;;  %v11416_v60 = vpack.c.bf16 %v7636_v10, %v7634_v40  ;;  %v3147_v0 = vsel %vm2881_vm1, %v3146_v62, %v3142_v15 }
 0x172   : > { %938 = vadd.xlane.f32.xlu0 %v11409_v13  ;;  %v3156_v2 = vrot.slane %v1378_v61, %v11411_v3  ;;  %v3077_v5 = vrot.slane %v1362_v33, %v11411_v3  ;;  %v1381_v6 = vmul.f32 0.0625, %v11413_v44  ;;  %v11414_v22 = vld [vmem:[#allocation38_spill] sm:$0xff]  ;;  %v11415_v13 = vpack.c.bf16 %v7632_v47, %v7630_v48  ;;  %v11418_v44 = vld [vmem:[#allocation43_spill] sm:$0xff]  ;;  %v11421_v10 = vld [vmem:[#allocation21_spill] sm:$0xff] }
 0x173   : > { %v1365_v14 = vmul.f32 0.0625, %v11414_v22  ;;  %6162 = vmatpush1.bf16.msra.mxu1 %v11416_v60  ;;  %v6181_v61 = vpack.c.bf16 %v7872_v58, %v7870_v27  ;;  %v3161_v16 = vrot.slane %v1379_v54, %v11417_v31  ;;  %v3082_v33 = vrot.slane %v1363_v7, %v11417_v31  ;;  %v11422_v62 = vld [vmem:[#allocation44_spill] sm:$0xff]  ;;  %v741_v60 = vpop.xlane.xlu0 %740  ;;  %v8198_v31 = vld [vmem:[#allocation4 + $0xaf8] sm:$0xff]  ;;  %v8304_v30 = vld [vmem:[#allocation4 + $0xba8] sm:$0xff] }
 0x174   : > { %5650 = vmatpush1.bf16.msra.mxu0 %v11415_v13  ;;  %v1382_v3 = vmul.f32 0.0625, %v11418_v44  ;;  %v11419_v22 = vpack.c.bf16 %v7641_v43, %v7639_v39  ;;  %v11420_v47 = vpack.c.bf16 %v7652_v23, %v7650_v29  ;;  %v3068_v40 = vsel %vm2881_vm1, %v3067_v8, %v3063_v38  ;;  %v11423_v13 = vld [vmem:[#allocation52_spill] sm:$0xff]  ;;  %v693_v38 = vpop.xlane.xlu1 %692  ;;  %v11426_v44 = vld [vmem:[#allocation49_spill] sm:$0xff] }
 0x175   : > { %v3152_v48 = vsel %vm2888_vm2, %v3151_v4, %v3147_v0  ;;  %v3166_v15 = vrot.slane %v1380_v12, %v11421_v10  ;;  %v1366_v54 = vmul.f32 0.0625, %v11422_v62  ;;  %893 = vadd.xlane.f32.xlu1 %v7738_v51  ;;  %v3073_v7 = vsel %vm2888_vm2, %v3072_v28, %v3068_v40  ;;  %v11424_v23 = vld [vmem:[#allocation48_spill] sm:$0xff]  ;;  %v11425_v4 = vld [vmem:[#allocation22_spill] sm:$0xff] }
 0x176   : > { %5652 = vmatprep.subr.bf16.mxu0 %v11419_v22  ;;  %6164 = vmatprep.subr.bf16.mxu1 %v11420_v47  ;;  %v3157_v39 = vsel %vm2895_vm3, %v3156_v2, %v3152_v48  ;;  %v3087_v43 = vrot.slane %v1364_v32, %v11421_v10  ;;  %v1383_v29 = vmul.f32 0.0625, %v11424_v23  ;;  %v3078_v8 = vsel %vm2895_vm3, %v3077_v5, %v3073_v7  ;;  %v11428_v28 = vld [vmem:[#allocation46_spill] sm:$0xff]  ;;  %v11429_v2 = vld [vmem:[#allocation45_spill] sm:$0xff]  ;;  %v11431_v48 = vld [vmem:[#allocation23_spill] sm:$0xff] }
 0x177   : > { %941 = vadd.xlane.f32.xlu0 %v11423_v13  ;;  %v3171_v12 = vrot.slane %v1381_v6, %v11425_v4  ;;  %v3092_v0 = vrot.slane %v1365_v14, %v11425_v4  ;;  %v1367_v22 = vmul.f32 0.0625, %v11426_v44  ;;  %v11427_v51 = vpack.c.bf16 %v7656_v45, %v7654_v25  ;;  %v11434_v13 = vld [vmem:[#allocation56_spill] sm:$0xff]  ;;  %v11435_v7 = vld [vmem:[#allocation53_spill] sm:$0xff]  ;;  %v461_v4 = vld [vmem:[%s7055_s4 + $0x4f8] sm:$0xff] }
 0x178   : > { %v11430_v47 = vpack.c.bf16 %v11428_v28, %v11429_v2  ;;  %v3162_v32 = vsel %vm2902_vm4, %v3161_v16, %v3157_v39  ;;  %v3083_v40 = vsel %vm2902_vm4, %v3082_v33, %v3078_v8  ;;  %v3176_v5 = vrot.slane %v1382_v3, %v11431_v48  ;;  %v11436_v3 = vld [vmem:[#allocation54_spill] sm:$0xff]  ;;  %v696_v23 = vpop.xlane.xlu1 %695  ;;  %v11445_v2 = vld [vmem:[#allocation57_spill] sm:$0xff]  ;;  %v1857_v27 = vld [vmem:[#allocation4 + $0x860] sm:$0xff] }
 0x179   : > { %5654 = vmatpush1.bf16.msra.mxu0 %v11427_v51  ;;  %v1384_v6 = vmul.f32 0.0625, %v7767_v35  ;;  %v11432_v14 = vpack.c.bf16 %v7674_v52, %v7672_v36  ;;  %v11433_v25 = vpack.c.bf16 %v7678_v11, %v7676_v24  ;;  %v3167_v45 = vsel %vm2909_vm5, %v3166_v15, %v3162_v32  ;;  %995 = vadd.xlane.f32.xlu1 %v11436_v3  ;;  %v11437_v36 = vld [vmem:[#allocation24_spill] sm:$0xff]  ;;  %v744_v11 = vpop.xlane.xlu0 %743  ;;  %v8192_v10 = vld [vmem:[#allocation4 + $0xac8] sm:$0xff] }
 0x17a   : > { %6166 = vmatpush1.bf16.msra.mxu1 %v11430_v47  ;;  %v3097_v62 = vrot.slane %v1366_v54, %v11431_v48  ;;  %v1368_v16 = vmul.f32 0.0625, %v11434_v13  ;;  %v1385_v33 = vmul.f32 0.0625, %v7834_v59  ;;  %v3088_v35 = vsel %vm2909_vm5, %v3087_v43, %v3083_v40  ;;  %v11446_v47 = vld [vmem:[#allocation27_spill] sm:$0xff]  ;;  %v8181_v48 = vld [vmem:[#allocation4 + $0xab0] sm:$0xff] }
 0x17b   : > { %5656 = vmatprep.subr.bf16.mxu0 %v11432_v14  ;;  %6168 = vmatprep.subr.bf16.mxu1 %v11433_v25  ;;  %v3181_v52 = vrot.slane %v1383_v29, %v11437_v36  ;;  %v1369_v39 = vmul.f32 0.0625, %v7836_v1  ;;  %v1386_v24 = vmul.f32 0.0625, %v738_v9  ;;  %v3172_v15 = vsel %vm2916_vm6, %v3171_v12, %v3167_v45  ;;  %v11440_v1 = vld [vmem:[#allocation25_spill] sm:$0xff]  ;;  %11485 = vst [vmem:[#allocation44_spill] sm:$0xff] %v8181_v48  ;;  %v8291_v48 = vld [vmem:[#allocation4 + $0xb70] sm:$0xff] }
 0x17c   : > { %992 = vadd.xlane.f32.xlu0 %v11435_v7  ;;  %v3093_v54 = vsel %vm2916_vm6, %v3092_v0, %v3088_v35  ;;  %v3102_v8 = vrot.slane %v1367_v22, %v11437_v36  ;;  %v1370_v59 = vmul.f32 0.0625, %v690_v37  ;;  %v11438_v44 = vpack.c.bf16 %v7692_v17, %v7690_v56  ;;  %v11441_v0 = vld [vmem:[#allocation47_spill] sm:$0xff]  ;;  %v699_v40 = vpop.xlane.xlu1 %698  ;;  %v8179_v36 = vld [vmem:[#allocation4 + $0xa90] sm:$0xff] }
 0x17d   : > { %v11439_v43 = vpack.c.bf16 %v7696_v46, %v7694_v57  ;;  %v3177_v9 = vsel %vm2923_vm7, %v3176_v5, %v3172_v15  ;;  %v3186_v29 = vrot.slane %v1384_v6, %v11440_v1  ;;  %v1387_v51 = vmul.f32 0.0625, %v741_v60  ;;  %v11444_v57 = vld [vmem:[#allocation26_spill] sm:$0xff]  ;;  %947 = vadd.xlane.f32.xlu1 %v7794_v42  ;;  %v11451_v35 = vld [vmem:[#allocation55_spill] sm:$0xff]  ;;  %11484 = vst [vmem:[#allocation43_spill] sm:$0xff] %v8179_v36 }
 0x17e   : > { %5658 = vmatpush1.bf16.msra.mxu0 %v11438_v44  ;;  %v1371_v12 = vmul.f32 0.0625, %v693_v38  ;;  %v11442_v28 = vpack.c.bf16 %v7700_v21, %v11441_v0  ;;  %v11443_v37 = vpack.c.bf16 %v7719_v26, %v7717_v53  ;;  %v3098_v17 = vsel %vm2923_vm7, %v3097_v62, %v3093_v54  ;;  %v449_v60 = vld [vmem:[%s7055_s4 + $0x498] sm:$0xff]  ;;  %v747_v26 = vpop.xlane.xlu0 %746 }
 0x17f   : > { %6170 = vmatpush1.bf16.msra.mxu1 %v11439_v43  ;;  %v3107_v56 = vrot.slane %v1368_v16, %v11440_v1  ;;  %v3191_v46 = vrot.slane %v1385_v33, %v11444_v57  ;;  %v1388_v22 = vmul.f32 0.0625, %v744_v11  ;;  %v3182_v21 = vsel %vm2930_vm8, %v3181_v52, %v3177_v9  ;;  %v433_v5 = vld [vmem:[%s7055_s4 + $0x418] sm:$0xff]  ;;  %v11449_v16 = vld [vmem:[#allocation28_spill] sm:$0xff] }
 0x180   : > { %5660 = vmatprep.subr.bf16.mxu0 %v11442_v28  ;;  %6172 = vmatprep.subr.bf16.mxu1 %v11443_v37  ;;  %v3112_v38 = vrot.slane %v1369_v39, %v11444_v57  ;;  %v3196_v32 = vrot.slane %v1386_v24, %v11446_v47  ;;  %v1372_v53 = vmul.f32 0.0625, %v696_v23  ;;  %v3103_v6 = vsel %vm2930_vm8, %v3102_v8, %v3098_v17  ;;  %v11454_v24 = vld [vmem:[#allocation63_spill] sm:$0xff]  ;;  %v1850_v23 = vld [vmem:[#allocation4 + $0x828] sm:$0xff]  ;;  %v11456_v8 = vld [vmem:[#allocation30_spill] sm:$0xff]  ;;  %v702_v43 = vpop.xlane.xlu1 %701 }
 0x181   : > { %944 = vadd.xlane.f32.xlu0 %v11445_v2  ;;  %v3117_v14 = vrot.slane %v1370_v59, %v11446_v47  ;;  %v1389_v25 = vmul.f32 0.0625, %v747_v26  ;;  %v11447_v45 = vpack.c.bf16 %v7733_v41, %v7731_v19  ;;  %v11448_v42 = vpack.c.bf16 %v7746_v50, %v7735_v63  ;;  %v11453_v50 = vld [vmem:[#allocation29_spill] sm:$0xff]  ;;  %v11455_v11 = vld [vmem:[#allocation67_spill] sm:$0xff]  ;;  %v11458_v0 = vld [vmem:[#allocation58_spill] sm:$0xff] }
 0x182   : > { %v1373_v62 = vmul.f32 0.0625, %v699_v40  ;;  %v3187_v13 = vsel %vm2937_vm9, %v3186_v29, %v3182_v21  ;;  %v3201_v33 = vrot.slane %v1387_v51, %v11449_v16  ;;  %v3122_v7 = vrot.slane %v1371_v12, %v11449_v16  ;;  %950 = vadd.xlane.f32.xlu1 %v11455_v11  ;;  %v750_v44 = vpop.xlane.xlu0 %749  ;;  %v11457_v12 = vld [vmem:[#allocation59_spill] sm:$0xff]  ;;  %v11460_v37 = vld [vmem:[#allocation61_spill] sm:$0xff]  ;;  %v11461_v17 = vld [vmem:[#allocation60_spill] sm:$0xff] }
 0x183   : > { %5662 = vmatpush1.bf16.msra.mxu0 %v11447_v45  ;;  %6174 = vmatpush1.bf16.msra.mxu1 %v11448_v42  ;;  %v11450_v3 = vpack.c.bf16 %v7750_v20, %v7748_v55  ;;  %v11452_v52 = vpack.c.bf16 %v7765_v34, %v11451_v35  ;;  %v1000_v19 = vsel %vm558_vm0, %v449_v60, 0.0  ;;  %v3108_v41 = vsel %vm2937_vm9, %v3107_v56, %v3103_v6  ;;  %v1846_v55 = vld [vmem:[#allocation4 + $0x808] sm:$0xff]  ;;  %v1848_v2 = vld [vmem:[#allocation4 + $0x818] sm:$0xff]  ;;  %v11466_v40 = vld [vmem:[#allocation66_spill] sm:$0xff] }
 0x184   : > { %v3192_v63 = vsel %vm2944_vm10, %v3191_v46, %v3187_v13  ;;  %v3206_v39 = vrot.slane %v1388_v22, %v11453_v50  ;;  %v952_v20 = vsel %vm558_vm0, %v433_v5, 0.0  ;;  %v3113_v34 = vsel %vm2944_vm10, %v3112_v38, %v3108_v41  ;;  %v450_v22 = vld [vmem:[%s7055_s4 + $0x4a0] sm:$0xff]  ;;  %v11467_v5 = vld [vmem:[#allocation65_spill] sm:$0xff]  ;;  %v1851_v35 = vld [vmem:[#allocation4 + $0x830] sm:$0xff]  ;;  %v8023_v41 = vpop.xlane.xlu1 %803 }
 0x185   : > { %5664 = vmatprep.subr.bf16.mxu0 %v11450_v3  ;;  %6176 = vmatprep.subr.bf16.mxu1 %v11452_v52  ;;  %v3197_v15 = vsel %vm2951_vm11, %v3196_v32, %v3192_v63  ;;  %v3127_v54 = vrot.slane %v1372_v53, %v11453_v50  ;;  %v3211_v59 = vrot.slane %v1389_v25, %v11456_v8  ;;  %v1390_v51 = vmul.f32 0.0625, %v750_v44  ;;  %v1852_v60 = vld [vmem:[#allocation4 + $0x838] sm:$0xff]  ;;  %v11463_v32 = vld [vmem:[#allocation64_spill] sm:$0xff]  ;;  %v11464_v53 = vld [vmem:[#allocation62_spill] sm:$0xff] }
 0x186   : > { %998 = vadd.xlane.f32.xlu0 %v11454_v24  ;;  %v3118_v9 = vsel %vm2951_vm11, %v3117_v14, %v3113_v34  ;;  %v3132_v29 = vrot.slane %v1373_v62, %v11456_v8  ;;  %v11459_v28 = vpack.c.bf16 %v11457_v12, %v11458_v0  ;;  %v11462_v56 = vpack.c.bf16 %v11460_v37, %v11461_v17  ;;  %v434_v25 = vld [vmem:[%s7055_s4 + $0x420] sm:$0xff]  ;;  %v1847_v3 = vld [vmem:[#allocation4 + $0x810] sm:$0xff]  ;;  %v8021_v52 = vpop.xlane.xlu0 %800  ;;  %v1862_v17 = vld [vmem:[#allocation4 + $0x888] sm:$0xff] }
 0x187   : > { %v1374_v46 = vmul.f32 0.0625, %v702_v43  ;;  %v3202_v21 = vsel %vm2958_vm12, %v3201_v33, %v3197_v15  ;;  %v3123_v38 = vsel %vm2958_vm12, %v3122_v7, %v3118_v9  ;;  %v11465_v26 = vpack.c.bf16 %v11463_v32, %v11464_v53  ;;  %v1845_v45 = vld [vmem:[#allocation4 + $0x800] sm:$0xff]  ;;  %v11469_v42 = vld [vmem:[#allocation31_spill] sm:$0xff]  ;;  %953 = vadd.xlane.f32.xlu1 %v952_v20  ;;  %v1858_v20 = vld [vmem:[#allocation4 + $0x868] sm:$0xff] }
 0x188   : > { %5666 = vmatpush1.bf16.msra.mxu0 %v11459_v28  ;;  %6178 = vmatpush1.bf16.msra.mxu1 %v11462_v56  ;;  %v11468_v6 = vpack.c.bf16 %v11466_v40, %v11467_v5  ;;  %v5671_v14 = vpack.c.bf16 %v1850_v23, %v1846_v55  ;;  %v3216_v62 = vrot.slane %v1390_v51, %v11469_v42  ;;  %v1849_v7 = vld [vmem:[#allocation4 + $0x820] sm:$0xff]  ;;  %v1003_v24 = vsel %vm558_vm0, %v450_v22, 0.0  ;;  %v1856_v44 = vld [vmem:[#allocation4 + $0x858] sm:$0xff]  ;;  %v1859_v12 = vld [vmem:[#allocation4 + $0x870] sm:$0xff]  ;;  %v8042_v0 = vpop.xlane.xlu1 %755 }
 0x189   : > { %5668 = vmatprep.subr.bf16.mxu0 %v11465_v26  ;;  %v3137_v13 = vrot.slane %v1374_v46, %v11469_v42  ;;  %v3207_v33 = vsel %vm2965_vm13, %v3206_v39, %v3202_v21  ;;  %v6183_v11 = vpack.c.bf16 %v1852_v60, %v1848_v2  ;;  %v3128_v55 = vsel %vm2965_vm13, %v3127_v54, %v3123_v38  ;;  %v1860_v54 = vld [vmem:[#allocation4 + $0x878] sm:$0xff]  ;;  %v1853_v51 = vld [vmem:[#allocation4 + $0x840] sm:$0xff]  ;;  %v1866_v56 = vld [vmem:[#allocation4 + $0x8a8] sm:$0xff] }
 0x18a   : > { %6180 = vmatprep.subr.bf16.mxu1 %v11468_v6  ;;  %1001 = vadd.xlane.f32.xlu0 %v1000_v19  ;;  %v3212_v63 = vsel %vm2972_vm14, %v3211_v59, %v3207_v33  ;;  %v1854_v19 = vld [vmem:[#allocation4 + $0x848] sm:$0xff]  ;;  %v11470_v39 = vpack.c.bf16 %v7858_v18, %v7856_v49  ;;  %v955_v34 = vsel %vm558_vm0, %v434_v25, 0.0  ;;  %v3133_v15 = vsel %vm2972_vm14, %v3132_v29, %v3128_v55  ;;  %v8040_v29 = vpop.xlane.xlu0 %752  ;;  %v1864_v2 = vld [vmem:[#allocation4 + $0x898] sm:$0xff]  ;;  %v1861_v53 = vld [vmem:[#allocation4 + $0x880] sm:$0xff] }
 0x18b   : > { %v3217_v23 = vsel %vm2979_vm15, %v3216_v62, %v3212_v63  ;;  %v451_v59 = vld [vmem:[%s7055_s4 + $0x4a8] sm:$0xff]  ;;  %v3138_v43 = vsel %vm2979_vm15, %v3137_v13, %v3133_v15  ;;  %v5673_v9 = vpack.c.bf16 %v1849_v7, %v1845_v45  ;;  %v6185_v49 = vpack.c.bf16 %v1851_v35, %v1847_v3  ;;  %956 = vadd.xlane.f32.xlu1 %v955_v34  ;;  %v452_v22 = vld [vmem:[%s7055_s4 + $0x4b0] sm:$0xff]  ;;  %v1868_v60 = vld [vmem:[#allocation4 + $0x8b8] sm:$0xff] }
 0x18c   : > { %5670 = vmatpush1.bf16.msra.mxu0 %v11470_v39  ;;  %6182 = vmatpush1.bf16.msra.mxu1 %v6181_v61  ;;  %v435_v18 = vld [vmem:[%s7055_s4 + $0x428] sm:$0xff]  ;;  %v5675_v58 = vpack.c.bf16 %v1858_v20, %v1854_v19  ;;  %v1855_v61 = vld [vmem:[#allocation4 + $0x850] sm:$0xff]  ;;  %v1006_v28 = vsel %vm558_vm0, %v451_v59, 0.0  ;;  %v6187_v37 = vpack.c.bf16 %v1860_v54, %v1856_v44  ;;  %v5677_v21 = vpack.c.bf16 %v1857_v27, %v1853_v51  ;;  %v8050_v25 = vpop.xlane.xlu1 %758  ;;  %v1872_v35 = vld [vmem:[#allocation4 + $0x8d8] sm:$0xff] }
 0x18d   : > { %4317 = vmatprep.mubr.f32.mxu0 %v3217_v23  ;;  %4885 = vmatprep.mubr.f32.mxu1 %v3217_v23  ;;  %v958_v46 = vsel %vm558_vm0, %v435_v18, 0.0  ;;  %v6189_v38 = vpack.c.bf16 %v1859_v12, %v1855_v61  ;;  %v436_v32 = vld [vmem:[%s7055_s4 + $0x430] sm:$0xff]  ;;  %v5679_v26 = vpack.c.bf16 %v1866_v56, %v1862_v17  ;;  %v1865_v40 = vld [vmem:[#allocation4 + $0x8a0] sm:$0xff]  ;;  %v1009_v45 = vsel %vm558_vm0, %v452_v22, 0.0  ;;  %v453_v3 = vld [vmem:[%s7055_s4 + $0x4b8] sm:$0xff] }
 0x18e   : > { %1004 = vadd.xlane.f32.xlu0 %v1003_v24  ;;  %5672 = vmatprep.subr.bf16.mxu0 %v5671_v14  ;;  %v1863_v5 = vld [vmem:[#allocation4 + $0x890] sm:$0xff]  ;;  %v8048_v14 = vpop.xlane.xlu0 %806  ;;  %v6191_v62 = vpack.c.bf16 %v1868_v60, %v1864_v2  ;;  %v1870_v13 = vld [vmem:[#allocation4 + $0x8c8] sm:$0xff]  ;;  %v961_v7 = vsel %vm558_vm0, %v436_v32, 0.0  ;;  %v1876_v63 = vld [vmem:[#allocation4 + $0x8f8] sm:$0xff]  ;;  %v5681_v24 = vpack.c.bf16 %v1865_v40, %v1861_v53  ;;  %v1012_v44 = vsel %vm558_vm0, %v453_v3, 0.0 }
 0x18f   : > { %6184 = vmatprep.subr.bf16.mxu1 %v6183_v11  ;;  %4318 = vmatmul.mubr.f32.vlgmr.msra.gmra.mrb[0].mxu0 %v3138_v43  ;;  %v1867_v6 = vld [vmem:[#allocation4 + $0x8b0] sm:$0xff]  ;;  %v1874_v33 = vld [vmem:[#allocation4 + $0x8e8] sm:$0xff]  ;;  %v1869_v19 = vld [vmem:[#allocation4 + $0x8c0] sm:$0xff]  ;;  %v6195_v54 = vpack.c.bf16 %v1876_v63, %v1872_v35 }
 0x190   : > { %4886 = vmatmul.mubr.f32.vlgmr.msra.gmra.mrb[0].mxu1 %v3138_v43  ;;  %5674 = vmatpush1.bf16.msra.mxu0 %v5673_v9  ;;  %v6193_v11 = vpack.c.bf16 %v1867_v6, %v1863_v5  ;;  %v437_v55 = vld [vmem:[%s7055_s4 + $0x438] sm:$0xff]  ;;  %v5683_v20 = vpack.c.bf16 %v1874_v33, %v1870_v13  ;;  %v1873_v39 = vld [vmem:[#allocation4 + $0x8e0] sm:$0xff]  ;;  %v8058_v59 = vpop.xlane.xlu1 %761  ;;  %v1878_v43 = vld [vmem:[#allocation4 + $0x908] sm:$0xff] }
 0x191   : > { %6186 = vmatpush1.bf16.msra.mxu1 %v6185_v49  ;;  %5676 = vmatprep.subr.bf16.mxu0 %v5675_v58  ;;  %v1871_v23 = vld [vmem:[#allocation4 + $0x8d0] sm:$0xff]  ;;  %11472 = vst [vmem:[#allocation40_spill] sm:$0xff] %v8058_v59  ;;  %v1882_v9 = vld [vmem:[#allocation4 + $0x928] sm:$0xff]  ;;  %v964_v49 = vsel %vm558_vm0, %v437_v55, 0.0  ;;  %v454_v18 = vld [vmem:[%s7055_s4 + $0x4c0] sm:$0xff]  ;;  %v5685_v27 = vpack.c.bf16 %v1873_v39, %v1869_v19 }
 0x192   : > { %1007 = vadd.xlane.f32.xlu0 %v1006_v28  ;;  %959 = vadd.xlane.f32.xlu1 %v958_v46  ;;  %v1875_v34 = vld [vmem:[#allocation4 + $0x8f0] sm:$0xff]  ;;  %v8056_v15 = vpop.xlane.xlu0 %809  ;;  %v1880_v51 = vld [vmem:[#allocation4 + $0x918] sm:$0xff]  ;;  %v1877_v28 = vld [vmem:[#allocation4 + $0x900] sm:$0xff]  ;;  %v5687_v17 = vpack.c.bf16 %v1882_v9, %v1878_v43 }
 0x193   : > { %6188 = vmatprep.subr.bf16.mxu1 %v6187_v37  ;;  %11471 = vst [vmem:[#allocation32_spill] sm:$0xff] %v8056_v15  ;;  %v1884_v58 = vld [vmem:[#allocation4 + $0x938] sm:$0xff]  ;;  %v6197_v61 = vpack.c.bf16 %v1875_v34, %v1871_v23  ;;  %v1881_v37 = vld [vmem:[#allocation4 + $0x920] sm:$0xff]  ;;  %v1879_v56 = vld [vmem:[#allocation4 + $0x910] sm:$0xff] }
 0x194   : > { %5678 = vmatpush1.bf16.msra.mxu0 %v5677_v21  ;;  %v438_v12 = vld [vmem:[%s7055_s4 + $0x440] sm:$0xff]  ;;  %v1883_v46 = vld [vmem:[#allocation4 + $0x930] sm:$0xff]  ;;  %v1886_v22 = vld [vmem:[#allocation4 + $0x948] sm:$0xff]  ;;  %v8066_v60 = vpop.xlane.xlu1 %764  ;;  %v1015_v21 = vsel %vm558_vm0, %v454_v18, 0.0 }
 0x195   : > { %6190 = vmatpush1.bf16.msra.mxu1 %v6189_v38  ;;  %5680 = vmatprep.subr.bf16.mxu0 %v5679_v26  ;;  %11474 = vst [vmem:[#allocation42_spill] sm:$0xff] %v8066_v60  ;;  %v6199_v38 = vpack.c.bf16 %v1884_v58, %v1880_v51  ;;  %v455_v32 = vld [vmem:[%s7055_s4 + $0x4c8] sm:$0xff]  ;;  %v1888_v26 = vld [vmem:[#allocation4 + $0x958] sm:$0xff]  ;;  %v967_v40 = vsel %vm558_vm0, %v438_v12, 0.0  ;;  %v6201_v13 = vpack.c.bf16 %v1883_v46, %v1879_v56  ;;  %v1891_v3 = vld [vmem:[#allocation4 + $0x970] sm:$0xff] }
 0x196   : > { %1010 = vadd.xlane.f32.xlu0 %v1009_v45  ;;  %962 = vadd.xlane.f32.xlu1 %v961_v7  ;;  %v8064_v2 = vpop.xlane.xlu0 %812  ;;  %v1890_v53 = vld [vmem:[#allocation4 + $0x968] sm:$0xff]  ;;  %v1892_v6 = vld [vmem:[#allocation4 + $0x978] sm:$0xff]  ;;  %v1885_v45 = vld [vmem:[#allocation4 + $0x940] sm:$0xff] }
 0x197   : > { %6192 = vmatprep.subr.bf16.mxu1 %v6191_v62  ;;  %11473 = vst [vmem:[#allocation39_spill] sm:$0xff] %v8064_v2  ;;  %v439_v5 = vld [vmem:[%s7055_s4 + $0x448] sm:$0xff]  ;;  %v5689_v62 = vpack.c.bf16 %v1881_v37, %v1877_v28  ;;  %v1887_v7 = vld [vmem:[#allocation4 + $0x950] sm:$0xff]  ;;  %v5691_v35 = vpack.c.bf16 %v1890_v53, %v1886_v22  ;;  %v6203_v39 = vpack.c.bf16 %v1892_v6, %v1888_v26  ;;  %v8098_v56 = vld [vmem:[#allocation4 + $0x9f8] sm:$0xff] }
 0x198   : > { %5682 = vmatpush1.bf16.msra.mxu0 %v5681_v24  ;;  %v1889_v33 = vld [vmem:[#allocation4 + $0x960] sm:$0xff]  ;;  %v1894_v63 = vld [vmem:[#allocation4 + $0x988] sm:$0xff]  ;;  %v8076_v19 = vpop.xlane.xlu1 %767  ;;  %v6205_v51 = vpack.c.bf16 %v1891_v3, %v1887_v7  ;;  %v8088_v58 = vld [vmem:[#allocation4 + $0x9b0] sm:$0xff] }
 0x199   : > { %6194 = vmatpush1.bf16.msra.mxu1 %v6193_v11  ;;  %5684 = vmatprep.subr.bf16.mxu0 %v5683_v20  ;;  %v1898_v24 = vld [vmem:[#allocation4 + $0x9a8] sm:$0xff]  ;;  %v8072_v11 = vld [vmem:[#allocation4 + $0x998] sm:$0xff]  ;;  %11476 = vst [vmem:[#allocation33_spill] sm:$0xff] %v8076_v19  ;;  %v1018_v20 = vsel %vm558_vm0, %v455_v32, 0.0  ;;  %v8082_v43 = vld [vmem:[#allocation4 + $0x980] sm:$0xff]  ;;  %v5693_v18 = vpack.c.bf16 %v1889_v33, %v1885_v45 }
 0x19a   : > { %1013 = vadd.xlane.f32.xlu0 %v1012_v44  ;;  %965 = vadd.xlane.f32.xlu1 %v964_v49  ;;  %v8074_v55 = vpop.xlane.xlu0 %815  ;;  %v456_v23 = vld [vmem:[%s7055_s4 + $0x4d0] sm:$0xff]  ;;  %v1900_v44 = vld [vmem:[#allocation4 + $0x9b8] sm:$0xff]  ;;  %v8084_v9 = vld [vmem:[#allocation4 + $0x9a0] sm:$0xff]  ;;  %v5695_v12 = vpack.c.bf16 %v1898_v24, %v1894_v63 }
 0x19b   : > { %6196 = vmatprep.subr.bf16.mxu1 %v6195_v54  ;;  %11475 = vst [vmem:[#allocation41_spill] sm:$0xff] %v8074_v55  ;;  %v440_v34 = vld [vmem:[%s7055_s4 + $0x450] sm:$0xff]  ;;  %v970_v54 = vsel %vm558_vm0, %v439_v5, 0.0  ;;  %v457_v28 = vld [vmem:[%s7055_s4 + $0x4d8] sm:$0xff]  ;;  %v8106_v32 = vld [vmem:[#allocation4 + $0x9c0] sm:$0xff] }
 0x19c   : > { %5686 = vmatpush1.bf16.msra.mxu0 %v5685_v27  ;;  %v8086_v49 = vld [vmem:[#allocation4 + $0x990] sm:$0xff]  ;;  %v8090_v27 = vld [vmem:[#allocation4 + $0x9c8] sm:$0xff]  ;;  %v8102_v22 = vpop.xlane.xlu1 %770  ;;  %v8108_v53 = vld [vmem:[#allocation4 + $0x9e0] sm:$0xff] }
 0x19d   : > { %6198 = vmatpush1.bf16.msra.mxu1 %v6197_v61  ;;  %5688 = vmatprep.subr.bf16.mxu0 %v5687_v17  ;;  %v8092_v61 = vld [vmem:[#allocation4 + $0x9e8] sm:$0xff]  ;;  %v441_v37 = vld [vmem:[%s7055_s4 + $0x458] sm:$0xff]  ;;  %11478 = vst [vmem:[#allocation35_spill] sm:$0xff] %v8102_v22  ;;  %v458_v5 = vld [vmem:[%s7055_s4 + $0x4e0] sm:$0xff] }
 0x19e   : > { %1016 = vadd.xlane.f32.xlu0 %v1015_v21  ;;  %968 = vadd.xlane.f32.xlu1 %v967_v40  ;;  %v8096_v17 = vld [vmem:[#allocation4 + $0x9d8] sm:$0xff]  ;;  %v8100_v46 = vpop.xlane.xlu0 %818  ;;  %v1021_v21 = vsel %vm558_vm0, %v456_v23, 0.0  ;;  %v8110_v26 = vld [vmem:[#allocation4 + $0x9d0] sm:$0xff]  ;;  %v8115_v6 = vld [vmem:[#allocation4 + $0xa08] sm:$0xff] }
 0x19f   : > { %6200 = vmatprep.subr.bf16.mxu1 %v6199_v38  ;;  %11477 = vst [vmem:[#allocation34_spill] sm:$0xff] %v8100_v46  ;;  %v6207_v38 = vpack.c.bf16 %v1900_v44, %v8072_v11  ;;  %v8112_v40 = vld [vmem:[#allocation4 + $0x9f0] sm:$0xff]  ;;  %v8117_v45 = vld [vmem:[#allocation4 + $0xa28] sm:$0xff]  ;;  %v8121_v33 = vld [vmem:[#allocation4 + $0xa18] sm:$0xff]  ;;  %v5697_v11 = vpack.c.bf16 %v8084_v9, %v8082_v43  ;;  %v6211_v16 = vpack.c.bf16 %v8098_v56, %v8096_v17  ;;  %v1027_v17 = vsel %vm558_vm0, %v458_v5, 0.0 }
 0x1a0   : > { %5690 = vmatpush1.bf16.msra.mxu0 %v5689_v62  ;;  %v973_v62 = vsel %vm558_vm0, %v440_v34, 0.0  ;;  %v8123_v7 = vld [vmem:[#allocation4 + $0xa38] sm:$0xff]  ;;  %v8125_v3 = vld [vmem:[#allocation4 + $0xa00] sm:$0xff]  ;;  %v8129_v63 = vld [vmem:[#allocation4 + $0xa10] sm:$0xff]  ;;  %v5703_v56 = vpack.c.bf16 %v8117_v45, %v8115_v6 }
 0x1a1   : > { %6202 = vmatpush1.bf16.msra.mxu1 %v6201_v13  ;;  %5692 = vmatprep.subr.bf16.mxu0 %v5691_v35  ;;  %v442_v13 = vld [vmem:[%s7055_s4 + $0x460] sm:$0xff]  ;;  %v8131_v24 = vld [vmem:[#allocation4 + $0xa30] sm:$0xff]  ;;  %v443_v23 = vld [vmem:[%s7055_s4 + $0x468] sm:$0xff] }
 0x1a2   : > { %1019 = vadd.xlane.f32.xlu0 %v1018_v20  ;;  %971 = vadd.xlane.f32.xlu1 %v970_v54  ;;  %v8127_v35 = vld [vmem:[#allocation4 + $0xa20] sm:$0xff]  ;;  %v6209_v20 = vpack.c.bf16 %v8088_v58, %v8086_v49  ;;  %v8139_v34 = vld [vmem:[#allocation4 + $0xa48] sm:$0xff]  ;;  %v8143_v54 = vld [vmem:[#allocation4 + $0xa58] sm:$0xff] }
 0x1a3   : > { %6204 = vmatprep.subr.bf16.mxu1 %v6203_v39  ;;  %v459_v39 = vld [vmem:[%s7055_s4 + $0x4e8] sm:$0xff]  ;;  %11479 = vst [vmem:[#allocation50_spill] sm:$0xff] %v8143_v54  ;;  %v8145_v42 = vld [vmem:[#allocation4 + $0xa78] sm:$0xff]  ;;  %v8153_v49 = vld [vmem:[#allocation4 + $0xa50] sm:$0xff] }
 0x1a4   : > { %5694 = vmatpush1.bf16.msra.mxu0 %v5693_v18  ;;  %v8141_v44 = vld [vmem:[#allocation4 + $0xa68] sm:$0xff]  ;;  %v5699_v18 = vpack.c.bf16 %v8092_v61, %v8090_v27  ;;  %v8149_v43 = vld [vmem:[#allocation4 + $0xa40] sm:$0xff]  ;;  %v1024_v27 = vsel %vm558_vm0, %v457_v28, 0.0  ;;  %v976_v61 = vsel %vm558_vm0, %v441_v37, 0.0  ;;  %v8171_v57 = vld [vmem:[#allocation4 + $0xa98] sm:$0xff]  ;;  %v5701_v28 = vpack.c.bf16 %v8108_v53, %v8106_v32 }
 0x1a5   : > { %6206 = vmatpush1.bf16.msra.mxu1 %v6205_v51  ;;  %5696 = vmatprep.subr.bf16.mxu0 %v5695_v12  ;;  %v8151_v9 = vld [vmem:[#allocation4 + $0xa60] sm:$0xff]  ;;  %v8155_v51 = vld [vmem:[#allocation4 + $0xa70] sm:$0xff]  ;;  %v8158_v8 = vld [vmem:[#allocation4 + $0xa88] sm:$0xff]  ;;  %v8162_v12 = vpop.xlane.xlu0 %821  ;;  %v6213_v37 = vpack.c.bf16 %v8112_v40, %v8110_v26  ;;  %v979_v32 = vsel %vm558_vm0, %v442_v13, 0.0  ;;  %v6215_v53 = vpack.c.bf16 %v8123_v7, %v8121_v33  ;;  %v8221_v33 = vsel %vm558_vm0, %v459_v39, 0.0 }
 0x1a6   : > { %1022 = vadd.xlane.f32.xlu0 %v1021_v21  ;;  %v460_v58 = vld [vmem:[%s7055_s4 + $0x4f0] sm:$0xff]  ;;  %11480 = vst [vmem:[#allocation51_spill] sm:$0xff] %v8158_v8  ;;  %974 = vadd.xlane.f32.xlu1 %v973_v62  ;;  %11482 = vst [vmem:[#allocation37_spill] sm:$0xff] %v8162_v12  ;;  %v8164_v21 = vpop.xlane.xlu1 %773  ;;  %v8173_v1 = vld [vmem:[#allocation4 + $0xab8] sm:$0xff]  ;;  %v8224_v7 = vsel %vm558_vm0, %v443_v23, 0.0 }
 0x1a7   : > { %v8160_v50 = vld [vmem:[#allocation4 + $0xaa8] sm:$0xff]  ;;  %6208 = vmatprep.subr.bf16.mxu1 %v6207_v38  ;;  %11483 = vst [vmem:[#allocation38_spill] sm:$0xff] %v8164_v21  ;;  %v8175_v62 = vld [vmem:[#allocation4 + $0xa80] sm:$0xff]  ;;  %v445_v21 = vld [vmem:[%s7055_s4 + $0x478] sm:$0xff]  ;;  %v8252_v59 = vsel %vm558_vm0, %v460_v58, 0.0 }
 0x1a8   : > { %11481 = vst [vmem:[#allocation36_spill] sm:$0xff] %v8160_v50  ;;  %v444_v47 = vld [vmem:[%s7055_s4 + $0x470] sm:$0xff]  ;;  %v8177_v38 = vld [vmem:[#allocation4 + $0xaa0] sm:$0xff]  ;;  %v8196_v22 = vld [vmem:[#allocation4 + $0xad8] sm:$0xff]  ;;  %5698 = vmatpush1.bf16.msra.mxu0 %v5697_v11 }
 0x1a9   : > { %v8194_v12 = vld [vmem:[#allocation4 + $0xae8] sm:$0xff]  ;;  %6210 = vmatpush1.bf16.msra.mxu1 %v6209_v20  ;;  %v8207_v5 = vld [vmem:[#allocation4 + $0xac0] sm:$0xff]  ;;  %v8211_v45 = vld [vmem:[#allocation4 + $0xad0] sm:$0xff]  ;;  %5700 = vmatprep.subr.bf16.mxu0 %v5699_v18  ;;  %v8243_v40 = vpop.xlane.xlu0 %824  ;;  %11492 = vst [vmem:[#allocation53_spill] sm:$0xff] %v8252_v59  ;;  %v8278_v59 = vsel %vm558_vm0, %v461_v4, 0.0 }
 0x1aa   : > { %v8209_v6 = vld [vmem:[#allocation4 + $0xae0] sm:$0xff]  ;;  %v8213_v11 = vld [vmem:[#allocation4 + $0xaf0] sm:$0xff]  ;;  %v8216_v13 = vld [vmem:[#allocation4 + $0xb08] sm:$0xff]  ;;  %1025 = vadd.xlane.f32.xlu0 %v1024_v27  ;;  %977 = vadd.xlane.f32.xlu1 %v976_v61  ;;  %11490 = vst [vmem:[#allocation45_spill] sm:$0xff] %v8243_v40  ;;  %v8245_v26 = vpop.xlane.xlu1 %776 }
 0x1ab   : > { %v478_v20 = vld [vmem:[%s7055_s4 + $0x580] sm:$0xff]  ;;  %11486 = vst [vmem:[#allocation52_spill] sm:$0xff] %v8216_v13  ;;  %v8218_v46 = vld [vmem:[#allocation4 + $0xb28] sm:$0xff]  ;;  %v8239_v39 = vld [vmem:[#allocation4 + $0xb10] sm:$0xff]  ;;  %6212 = vmatprep.subr.bf16.mxu1 %v6211_v16 }
 0x1ac   : > { %11487 = vst [vmem:[#allocation48_spill] sm:$0xff] %v8218_v46  ;;  %v8230_v19 = vld [vmem:[#allocation4 + $0xb18] sm:$0xff]  ;;  %v479_v60 = vld [vmem:[%s7055_s4 + $0x588] sm:$0xff]  ;;  %11489 = vst [vmem:[#allocation46_spill] sm:$0xff] %v8239_v39  ;;  %5702 = vmatpush1.bf16.msra.mxu0 %v5701_v28  ;;  %v8298_v28 = vsel %vm558_vm0, %v478_v20, 0.0  ;;  %v1407_v39 = vmul.f32 0.0625, %v8021_v52 }
 0x1ad   : > { %v8232_v55 = vld [vmem:[#allocation4 + $0xb38] sm:$0xff]  ;;  %v8235_v27 = vld [vmem:[#allocation4 + $0xb00] sm:$0xff]  ;;  %v8241_v23 = vld [vmem:[#allocation4 + $0xb30] sm:$0xff]  ;;  %11491 = vst [vmem:[#allocation56_spill] sm:$0xff] %v8245_v26  ;;  %v8264_v26 = vsel %vm558_vm0, %v444_v47, 0.0  ;;  %6214 = vmatpush1.bf16.msra.mxu1 %v6213_v37  ;;  %v8281_v47 = vsel %vm558_vm0, %v445_v21, 0.0  ;;  %5704 = vmatprep.subr.bf16.mxu0 %v5703_v56  ;;  %v8308_v56 = vpop.xlane.xlu0 %827 }
 0x1ae   : > { %11488 = vst [vmem:[#allocation49_spill] sm:$0xff] %v8235_v27  ;;  %v8237_v18 = vld [vmem:[#allocation4 + $0xb20] sm:$0xff]  ;;  %v8257_v61 = vld [vmem:[#allocation4 + $0xb48] sm:$0xff]  ;;  %v8261_v40 = vld [vmem:[#allocation4 + $0xb58] sm:$0xff]  ;;  %1028 = vadd.xlane.f32.xlu0 %v1027_v17  ;;  %980 = vadd.xlane.f32.xlu1 %v979_v32  ;;  %v8310_v4 = vpop.xlane.xlu1 %779  ;;  %v8315_v20 = vsel %vm558_vm0, %v479_v60, 0.0  ;;  %v11503_v60 = vpack.c.bf16 %v8131_v24, %v8129_v63  ;;  %v11507_v63 = vpack.c.bf16 %v8141_v44, %v8139_v34 }
 0x1af   : > { %v462_v54 = vld [vmem:[%s7055_s4 + $0x500] sm:$0xff]  ;;  %v8259_v16 = vld [vmem:[#allocation4 + $0xb68] sm:$0xff]  ;;  %11493 = vst [vmem:[#allocation54_spill] sm:$0xff] %v8261_v40  ;;  %v8289_v36 = vld [vmem:[#allocation4 + $0xb50] sm:$0xff]  ;;  %6216 = vmatprep.subr.bf16.mxu1 %v6215_v53 }
 0x1b0   : > { %v8272_v15 = vld [vmem:[#allocation4 + $0xb78] sm:$0xff]  ;;  %v463_v8 = vld [vmem:[%s7055_s4 + $0x508] sm:$0xff]  ;;  %11494 = vst [vmem:[#allocation47_spill] sm:$0xff] %v8298_v28  ;;  %11496 = vst [vmem:[#allocation55_spill] sm:$0xff] %v8310_v4  ;;  %v8326_v53 = vsel %vm558_vm0, %v462_v54, 0.0  ;;  %v1408_v54 = vmul.f32 0.0625, %v8023_v41 }
 0x1b1   : > { %v8275_v50 = vld [vmem:[#allocation4 + $0xb40] sm:$0xff]  ;;  %v8302_v58 = vld [vmem:[#allocation4 + $0xb88] sm:$0xff]  ;;  %v8306_v17 = vld [vmem:[#allocation4 + $0xb98] sm:$0xff]  ;;  %11498 = vst [vmem:[#allocation67_spill] sm:$0xff] %v8326_v53  ;;  %v8333_v21 = vsel %vm558_vm0, %v463_v8, 0.0  ;;  %v11502_v53 = vpack.c.bf16 %v8127_v35, %v8125_v3  ;;  %6218 = vmatpush1.bf16.msra.mxu1 %v11503_v60  ;;  %v1391_v41 = vmul.f32 0.0625, %v8040_v29 }
 0x1b2   : > { %v8287_v2 = vld [vmem:[#allocation4 + $0xb60] sm:$0xff]  ;;  %11495 = vst [vmem:[#allocation57_spill] sm:$0xff] %v8306_v17  ;;  %v480_v46 = vld [vmem:[%s7055_s4 + $0x590] sm:$0xff]  ;;  %v8322_v28 = vld [vmem:[#allocation4 + $0xbb8] sm:$0xff]  ;;  %v1392_v3 = vmul.f32 0.0625, %v8042_v0  ;;  %v1409_v35 = vmul.f32 0.0625, %v8048_v14  ;;  %1031 = vadd.xlane.f32.xlu0 %v8221_v33  ;;  %983 = vadd.xlane.f32.xlu1 %v8224_v7  ;;  %v8373_v0 = vpop.xlane.xlu0 %830  ;;  %v8375_v14 = vpop.xlane.xlu1 %782 }
 0x1b3   : > { %11497 = vst [vmem:[#allocation63_spill] sm:$0xff] %v8322_v28  ;;  %v464_v32 = vld [vmem:[%s7055_s4 + $0x510] sm:$0xff]  ;;  %11499 = vst [vmem:[#allocation59_spill] sm:$0xff] %v8333_v21  ;;  %v8335_v37 = vld [vmem:[#allocation4 + $0xb80] sm:$0xff]  ;;  %5706 = vmatpush1.bf16.msra.mxu0 %v11502_v53  ;;  %v1393_v53 = vmul.f32 0.0625, %v8050_v25  ;;  %v8378_v33 = vsel %vm558_vm0, %v480_v46, 0.0  ;;  %v11518_v46 = vpack.c.bf16 %v8155_v51, %v8153_v49 }
 0x1b4   : > { %11500 = vst [vmem:[#allocation58_spill] sm:$0xff] %v8335_v37  ;;  %v8337_v27 = vld [vmem:[#allocation4 + $0xba0] sm:$0xff]  ;;  %v8339_v13 = vld [vmem:[#allocation4 + $0xb90] sm:$0xff]  ;;  %v8355_v40 = vld [vmem:[#allocation4 + $0xbc8] sm:$0xff]  ;;  %5708 = vmatprep.subr.bf16.mxu0 %v11507_v63  ;;  %v8383_v44 = vsel %vm558_vm0, %v464_v32, 0.0 }
 0x1b5   : > { %11501 = vst [vmem:[#allocation61_spill] sm:$0xff] %v8339_v13  ;;  %v8353_v21 = vld [vmem:[#allocation4 + $0xbb0] sm:$0xff]  ;;  %11505 = vst [vmem:[#allocation64_spill] sm:$0xff] %v8355_v40  ;;  %v8357_v52 = vld [vmem:[#allocation4 + $0xbe8] sm:$0xff] }
 0x1b6   : > { %11504 = vst [vmem:[#allocation60_spill] sm:$0xff] %v8353_v21  ;;  %11506 = vst [vmem:[#allocation62_spill] sm:$0xff] %v8357_v52  ;;  %v11508_v60 = vld [vmem:[#allocation50_spill] sm:$0xff]  ;;  %v8385_v25 = vld [vmem:[#allocation4 + $0xbd8] sm:$0xff]  ;;  %986 = vadd.xlane.f32.xlu1 %v8264_v26 }
 0x1b7   : > { %v11509_v29 = vpack.c.bf16 %v8145_v42, %v11508_v60  ;;  %11510 = vst [vmem:[#allocation66_spill] sm:$0xff] %v8383_v44  ;;  %v11511_v7 = vld [vmem:[#allocation32_spill] sm:$0xff]  ;;  %v11514_v8 = vld [vmem:[#allocation17_spill] sm:$0xff]  ;;  %v11516_v28 = vld [vmem:[#allocation39_spill] sm:$0xff]  ;;  %v11517_v60 = vpack.c.bf16 %v8151_v9, %v8149_v43 }
 0x1b8   : > { %v1410_v63 = vmul.f32 0.0625, %v11511_v7  ;;  %v8396_v24 = vld [vmem:[#allocation4 + $0xbc0] sm:$0xff]  ;;  %v3304_v44 = vrot.slane %v1408_v54, %v11514_v8  ;;  %v1411_v42 = vmul.f32 0.0625, %v11516_v28  ;;  %v8410_v40 = vld [vmem:[#allocation4 + $0xbd0] sm:$0xff]  ;;  %v3225_v54 = vrot.slane %v1392_v3, %v11514_v8  ;;  %v11521_v37 = vld [vmem:[#allocation53_spill] sm:$0xff]  ;;  %v834_v3 = vpop.xlane.xlu0 %833 }
 0x1b9   : > { %6220 = vmatprep.subr.bf16.mxu1 %v11509_v29  ;;  %v8394_v29 = vld [vmem:[#allocation4 + $0xbf8] sm:$0xff]  ;;  %11512 = vst [vmem:[#allocation65_spill] sm:$0xff] %v8396_v24  ;;  %v8398_v34 = vld [vmem:[#allocation4 + $0xbe0] sm:$0xff]  ;;  %5710 = vmatpush1.bf16.msra.mxu0 %v11517_v60  ;;  %v8412_v52 = vld [vmem:[#allocation4 + $0xbf0] sm:$0xff] }
 0x1ba   : > { %v11513_v32 = vld [vmem:[#allocation16_spill] sm:$0xff]  ;;  %6222 = vmatpush1.bf16.msra.mxu1 %v11518_v46  ;;  %v11519_v13 = vld [vmem:[#allocation18_spill] sm:$0xff]  ;;  %1034 = vadd.xlane.f32.xlu0 %v11521_v37  ;;  %v11523_v9 = vld [vmem:[#allocation51_spill] sm:$0xff]  ;;  %v11532_v37 = vpack.c.bf16 %v8177_v38, %v8175_v62 }
 0x1bb   : > { %v3300_v4 = vrot.slane %v1407_v39, %v11513_v32  ;;  %v11515_v7 = vld [vmem:[#allocation40_spill] sm:$0xff]  ;;  %v3221_v39 = vrot.slane %v1391_v41, %v11513_v32  ;;  %v11520_v21 = vld [vmem:[#allocation42_spill] sm:$0xff]  ;;  %v3230_v49 = vrot.slane %v1393_v53, %v11519_v13  ;;  %v11525_v51 = vld [vmem:[#allocation41_spill] sm:$0xff]  ;;  %v11526_v41 = vpack.c.bf16 %v8173_v1, %v8171_v57  ;;  %989 = vadd.xlane.f32.xlu1 %v8281_v47 }
 0x1bc   : > { %v1394_v17 = vmul.f32 0.0625, %v11515_v7  ;;  %v3309_v7 = vrot.slane %v1409_v35, %v11519_v13  ;;  %v1395_v28 = vmul.f32 0.0625, %v11520_v21  ;;  %v11522_v43 = vld [vmem:[#allocation36_spill] sm:$0xff]  ;;  %v1412_v46 = vmul.f32 0.0625, %v11525_v51  ;;  %v786_v35 = vpop.xlane.xlu1 %785  ;;  %v11529_v13 = vld [vmem:[#allocation34_spill] sm:$0xff]  ;;  %v11531_v32 = vld [vmem:[#allocation35_spill] sm:$0xff] }
 0x1bd   : > { %v11524_v60 = vpack.c.bf16 %v11522_v43, %v11523_v9  ;;  %6224 = vmatprep.subr.bf16.mxu1 %v11526_v41  ;;  %v11527_v43 = vld [vmem:[#allocation19_spill] sm:$0xff]  ;;  %v1413_v51 = vmul.f32 0.0625, %v11529_v13  ;;  %v3305_v1 = vsel %vm2881_vm1, %v3304_v44, %v3300_v4  ;;  %v11530_v41 = vld [vmem:[#allocation20_spill] sm:$0xff]  ;;  %v1397_v21 = vmul.f32 0.0625, %v11531_v32  ;;  %v11536_v44 = vld [vmem:[#allocation37_spill] sm:$0xff] }
 0x1be   : > { %v3314_v9 = vrot.slane %v1410_v63, %v11527_v43  ;;  %v3235_v57 = vrot.slane %v1394_v17, %v11527_v43  ;;  %v3319_v8 = vrot.slane %v1411_v42, %v11530_v41  ;;  %v11533_v63 = vld [vmem:[#allocation44_spill] sm:$0xff]  ;;  %v11534_v24 = vld [vmem:[#allocation43_spill] sm:$0xff]  ;;  %v3226_v13 = vsel %vm2881_vm1, %v3225_v54, %v3221_v39  ;;  %1037 = vadd.xlane.f32.xlu0 %v8278_v59  ;;  %v11538_v38 = vld [vmem:[#allocation21_spill] sm:$0xff] }
 0x1bf   : > { %5712 = vmatprep.subr.bf16.mxu0 %v11524_v60  ;;  %v11528_v60 = vld [vmem:[#allocation33_spill] sm:$0xff]  ;;  %v3310_v26 = vsel %vm2888_vm2, %v3309_v7, %v3305_v1  ;;  %v3240_v4 = vrot.slane %v1395_v28, %v11530_v41  ;;  %v1414_v17 = vmul.f32 0.0625, %v11536_v44  ;;  %v11537_v42 = vpack.c.bf16 %v8194_v12, %v8192_v10  ;;  %v837_v7 = vpop.xlane.xlu0 %836  ;;  %v11542_v12 = vld [vmem:[#allocation22_spill] sm:$0xff]  ;;  %v11543_v1 = vld [vmem:[#allocation56_spill] sm:$0xff]  ;;  %1091 = vadd.xlane.f32.xlu1 %v8315_v20 }
 0x1c0   : > { %v1396_v53 = vmul.f32 0.0625, %v11528_v60  ;;  %5714 = vmatpush1.bf16.msra.mxu0 %v11532_v37  ;;  %v11535_v60 = vpack.c.bf16 %v11533_v63, %v11534_v24  ;;  %v3231_v62 = vsel %vm2888_vm2, %v3230_v49, %v3226_v13  ;;  %v3324_v32 = vrot.slane %v1412_v46, %v11538_v38  ;;  %v11539_v24 = vld [vmem:[#allocation38_spill] sm:$0xff]  ;;  %v11540_v63 = vld [vmem:[#allocation45_spill] sm:$0xff]  ;;  %v789_v59 = vpop.xlane.xlu1 %788  ;;  %v8770_v41 = vld [vmem:[#allocation4 + $0xee0] sm:$0xff] }
 0x1c1   : > { %5716 = vmatprep.subr.bf16.mxu0 %v11537_v42  ;;  %v1398_v37 = vmul.f32 0.0625, %v11539_v24  ;;  %v1415_v39 = vmul.f32 0.0625, %v11540_v63  ;;  %v11541_v54 = vpack.c.bf16 %v8198_v31, %v8196_v22  ;;  %v3315_v28 = vsel %vm2895_vm3, %v3314_v9, %v3310_v26  ;;  %v11547_v26 = vld [vmem:[#allocation55_spill] sm:$0xff]  ;;  %v11557_v20 = vld [vmem:[#allocation46_spill] sm:$0xff] }
 0x1c2   : > { %6226 = vmatpush1.bf16.msra.mxu1 %v11535_v60  ;;  %v3245_v10 = vrot.slane %v1396_v53, %v11538_v38  ;;  %v3329_v49 = vrot.slane %v1413_v51, %v11542_v12  ;;  %v1399_v46 = vmul.f32 0.0625, %v11543_v1  ;;  %v3236_v60 = vsel %vm2895_vm3, %v3235_v57, %v3231_v62  ;;  %v11546_v53 = vld [vmem:[#allocation23_spill] sm:$0xff] }
 0x1c3   : > { %6228 = vmatprep.subr.bf16.mxu1 %v11541_v54  ;;  %v3320_v13 = vsel %vm2902_vm4, %v3319_v8, %v3315_v28  ;;  %v3250_v47 = vrot.slane %v1397_v21, %v11542_v12  ;;  %v1416_v44 = vmul.f32 0.0625, %v8308_v56  ;;  %v11544_v31 = vpack.c.bf16 %v8209_v6, %v8207_v5  ;;  %v11548_v42 = vld [vmem:[#allocation47_spill] sm:$0xff]  ;;  %v11549_v21 = vld [vmem:[#allocation48_spill] sm:$0xff] }
 0x1c4   : > { %v11545_v22 = vpack.c.bf16 %v8213_v11, %v8211_v45  ;;  %v3241_v9 = vsel %vm2902_vm4, %v3240_v4, %v3236_v60  ;;  %v3334_v51 = vrot.slane %v1414_v17, %v11546_v53  ;;  %v1400_v57 = vmul.f32 0.0625, %v11547_v26  ;;  %1088 = vadd.xlane.f32.xlu0 %v11548_v42  ;;  %v11550_v56 = vld [vmem:[#allocation52_spill] sm:$0xff]  ;;  %v792_v24 = vpop.xlane.xlu1 %791  ;;  %v8733_v12 = vld [vmem:[#allocation4 + $0xeb8] sm:$0xff] }
 0x1c5   : > { %5718 = vmatpush1.bf16.msra.mxu0 %v11544_v31  ;;  %v1417_v8 = vmul.f32 0.0625, %v8373_v0  ;;  %v11551_v62 = vpack.c.bf16 %v11549_v21, %v11550_v56  ;;  %v3325_v5 = vsel %vm2909_vm5, %v3324_v32, %v3320_v13  ;;  %v3255_v6 = vrot.slane %v1398_v37, %v11546_v53  ;;  %v11552_v45 = vld [vmem:[#allocation24_spill] sm:$0xff]  ;;  %v840_v0 = vpop.xlane.xlu0 %839  ;;  %v11560_v31 = vld [vmem:[#allocation67_spill] sm:$0xff] }
 0x1c6   : > { %6230 = vmatpush1.bf16.msra.mxu1 %v11545_v22  ;;  %v3339_v11 = vrot.slane %v1415_v39, %v11552_v45  ;;  %v1401_v4 = vmul.f32 0.0625, %v8375_v14  ;;  %v11553_v17 = vpack.c.bf16 %v8232_v55, %v8230_v19  ;;  %v3246_v63 = vsel %vm2909_vm5, %v3245_v10, %v3241_v9  ;;  %v11554_v39 = vld [vmem:[#allocation25_spill] sm:$0xff]  ;;  %v11562_v22 = vld [vmem:[#allocation54_spill] sm:$0xff]  ;;  %v8731_v53 = vld [vmem:[#allocation4 + $0xe98] sm:$0xff] }
 0x1c7   : > { %5720 = vmatprep.subr.bf16.mxu0 %v11551_v62  ;;  %v3330_v54 = vsel %vm2916_vm6, %v3329_v49, %v3325_v5  ;;  %v3260_v32 = vrot.slane %v1399_v46, %v11552_v45  ;;  %v1418_v28 = vmul.f32 0.0625, %v834_v3  ;;  %v3251_v37 = vsel %vm2916_vm6, %v3250_v47, %v3246_v63  ;;  %v11555_v55 = vld [vmem:[#allocation49_spill] sm:$0xff]  ;;  %v11559_v3 = vld [vmem:[#allocation26_spill] sm:$0xff] }
 0x1c8   : > { %6232 = vmatprep.subr.bf16.mxu1 %v11553_v17  ;;  %v3344_v1 = vrot.slane %v1416_v44, %v11554_v39  ;;  %v1402_v14 = vmul.f32 0.0625, %v786_v35  ;;  %v1419_v60 = vmul.f32 0.0625, %v837_v7  ;;  %v11556_v19 = vpack.c.bf16 %v8237_v18, %v11555_v55  ;;  %1040 = vadd.xlane.f32.xlu0 %v11560_v31  ;;  %v465_v62 = vld [vmem:[%s7055_s4 + $0x518] sm:$0xff]  ;;  %v11569_v63 = vld [vmem:[#allocation29_spill] sm:$0xff] }
 0x1c9   : > { %v11558_v13 = vpack.c.bf16 %v8241_v23, %v11557_v20  ;;  %v3335_v10 = vsel %vm2923_vm7, %v3334_v51, %v3330_v54  ;;  %v3265_v49 = vrot.slane %v1400_v57, %v11554_v39  ;;  %v3349_v46 = vrot.slane %v1417_v8, %v11559_v3  ;;  %v11564_v51 = vld [vmem:[#allocation59_spill] sm:$0xff]  ;;  %v843_v26 = vpop.xlane.xlu0 %842  ;;  %v795_v57 = vpop.xlane.xlu1 %794  ;;  %v492_v39 = vld [vmem:[%s7055_s4 + $0x5f0] sm:$0xff] }
 0x1ca   : > { %5722 = vmatpush1.bf16.msra.mxu0 %v11556_v19  ;;  %v1420_v47 = vmul.f32 0.0625, %v840_v0  ;;  %v11561_v35 = vpack.c.bf16 %v8259_v16, %v8257_v61  ;;  %v3256_v18 = vsel %vm2923_vm7, %v3255_v6, %v3251_v37  ;;  %v3340_v23 = vsel %vm2930_vm8, %v3339_v11, %v3335_v10  ;;  %1043 = vadd.xlane.f32.xlu1 %v11564_v51  ;;  %v481_v8 = vld [vmem:[%s7055_s4 + $0x598] sm:$0xff]  ;;  %v11566_v6 = vld [vmem:[#allocation28_spill] sm:$0xff]  ;;  %v1974_v10 = vld [vmem:[#allocation4 + $0xc08] sm:$0xff] }
 0x1cb   : > { %6234 = vmatpush1.bf16.msra.mxu1 %v11558_v13  ;;  %v3270_v7 = vrot.slane %v1401_v4, %v11559_v3  ;;  %v1403_v44 = vmul.f32 0.0625, %v789_v59  ;;  %v11563_v9 = vpack.c.bf16 %v8272_v15, %v11562_v22  ;;  %v3261_v42 = vsel %vm2930_vm8, %v3260_v32, %v3256_v18  ;;  %v11565_v61 = vld [vmem:[#allocation27_spill] sm:$0xff]  ;;  %v8716_v3 = vld [vmem:[#allocation4 + $0xe88] sm:$0xff] }
 0x1cc   : > { %5724 = vmatprep.subr.bf16.mxu0 %v11561_v35  ;;  %v3354_v16 = vrot.slane %v1418_v28, %v11565_v61  ;;  %v1404_v21 = vmul.f32 0.0625, %v792_v24  ;;  %v1421_v56 = vmul.f32 0.0625, %v843_v26  ;;  %v3345_v5 = vsel %vm2937_vm9, %v3344_v1, %v3340_v23  ;;  %1094 = vadd.xlane.f32.xlu0 %v8378_v33  ;;  %v11572_v37 = vld [vmem:[#allocation63_spill] sm:$0xff]  ;;  %v11573_v1 = vld [vmem:[#allocation57_spill] sm:$0xff]  ;;  %v11576_v35 = vld [vmem:[#allocation58_spill] sm:$0xff]  ;;  %11600 = vst [vmem:[#allocation35_spill] sm:$0xff] %v8716_v3 }
 0x1cd   : > { %6236 = vmatprep.subr.bf16.mxu1 %v11563_v9  ;;  %v3275_v59 = vrot.slane %v1402_v14, %v11565_v61  ;;  %v3359_v11 = vrot.slane %v1419_v60, %v11566_v6  ;;  %v11567_v15 = vpack.c.bf16 %v8287_v2, %v8275_v50  ;;  %v11568_v4 = vpack.c.bf16 %v8291_v48, %v8289_v36  ;;  %v11571_v36 = vld [vmem:[#allocation30_spill] sm:$0xff]  ;;  %v846_v33 = vpop.xlane.xlu0 %845  ;;  %v798_v55 = vpop.xlane.xlu1 %797  ;;  %v11578_v23 = vld [vmem:[#allocation60_spill] sm:$0xff]  ;;  %v1976_v9 = vld [vmem:[#allocation4 + $0xc18] sm:$0xff] }
 0x1ce   : > { %v1405_v17 = vmul.f32 0.0625, %v795_v57  ;;  %v3266_v0 = vsel %vm2937_vm9, %v3265_v49, %v3261_v42  ;;  %v3350_v24 = vsel %vm2944_vm10, %v3349_v46, %v3345_v5  ;;  %v3364_v54 = vrot.slane %v1420_v47, %v11569_v63  ;;  %v11575_v60 = vld [vmem:[#allocation66_spill] sm:$0xff]  ;;  %v1978_v49 = vld [vmem:[#allocation4 + $0xc28] sm:$0xff]  ;;  %v482_v22 = vld [vmem:[%s7055_s4 + $0x5a0] sm:$0xff] }
 0x1cf   : > { %5726 = vmatpush1.bf16.msra.mxu0 %v11567_v15  ;;  %6238 = vmatpush1.bf16.msra.mxu1 %v11568_v4  ;;  %v11570_v32 = vpack.c.bf16 %v8304_v30, %v8302_v58  ;;  %v1096_v50 = vsel %vm558_vm0, %v481_v8, 0.0  ;;  %v3271_v2 = vsel %vm2944_vm10, %v3270_v7, %v3266_v0  ;;  %v3280_v48 = vrot.slane %v1403_v44, %v11566_v6  ;;  %v11579_v7 = vld [vmem:[#allocation61_spill] sm:$0xff]  ;;  %v1980_v51 = vld [vmem:[#allocation4 + $0xc38] sm:$0xff]  ;;  %v11582_v42 = vld [vmem:[#allocation62_spill] sm:$0xff] }
 0x1d0   : > { %v3369_v28 = vrot.slane %v1421_v56, %v11571_v36  ;;  %v11574_v14 = vpack.c.bf16 %v11572_v37, %v11573_v1  ;;  %1046 = vadd.xlane.f32.xlu1 %v11575_v60  ;;  %v1048_v30 = vsel %vm558_vm0, %v465_v62, 0.0  ;;  %v3355_v58 = vsel %vm2951_vm11, %v3354_v16, %v3350_v24  ;;  %v11581_v26 = vld [vmem:[#allocation31_spill] sm:$0xff]  ;;  %1097 = vadd.xlane.f32.xlu0 %v1096_v50  ;;  %v11583_v16 = vld [vmem:[#allocation64_spill] sm:$0xff]  ;;  %v1975_v24 = vld [vmem:[#allocation4 + $0xc10] sm:$0xff] }
 0x1d1   : > { %5728 = vmatprep.subr.bf16.mxu0 %v11570_v32  ;;  %v3285_v19 = vrot.slane %v1404_v21, %v11569_v63  ;;  %v1422_v20 = vmul.f32 0.0625, %v846_v33  ;;  %v1406_v13 = vmul.f32 0.0625, %v798_v55  ;;  %v3276_v46 = vsel %vm2951_vm11, %v3275_v59, %v3271_v2  ;;  %v1973_v62 = vld [vmem:[#allocation4 + $0xc00] sm:$0xff]  ;;  %v8572_v15 = vpop.xlane.xlu1 %899  ;;  %v11586_v37 = vld [vmem:[#allocation65_spill] sm:$0xff]  ;;  %v1984_v55 = vld [vmem:[#allocation4 + $0xc58] sm:$0xff] }
 0x1d2   : > { %6240 = vmatprep.subr.bf16.mxu1 %v11574_v14  ;;  %v3360_v47 = vsel %vm2958_vm12, %v3359_v11, %v3355_v58  ;;  %v3290_v31 = vrot.slane %v1405_v17, %v11571_v36  ;;  %v11577_v18 = vpack.c.bf16 %v8337_v27, %v11576_v35  ;;  %v11580_v44 = vpack.c.bf16 %v11578_v23, %v11579_v7  ;;  %v466_v27 = vld [vmem:[%s7055_s4 + $0x520] sm:$0xff]  ;;  %v8570_v11 = vpop.xlane.xlu0 %896  ;;  %v483_v33 = vld [vmem:[%s7055_s4 + $0x5a8] sm:$0xff]  ;;  %v8712_v6 = vld [vmem:[#allocation4 + $0xe50] sm:$0xff] }
 0x1d3   : > { %v3374_v57 = vrot.slane %v1422_v20, %v11581_v26  ;;  %v3295_v8 = vrot.slane %v1406_v13, %v11581_v26  ;;  %v11584_v21 = vpack.c.bf16 %v11582_v42, %v11583_v16  ;;  %v3365_v56 = vsel %vm2965_vm13, %v3364_v54, %v3360_v47  ;;  %v1977_v0 = vld [vmem:[#allocation4 + $0xc20] sm:$0xff]  ;;  %v1979_v54 = vld [vmem:[#allocation4 + $0xc30] sm:$0xff]  ;;  %v1994_v23 = vld [vmem:[#allocation4 + $0xca8] sm:$0xff] }
 0x1d4   : > { %5730 = vmatpush1.bf16.msra.mxu0 %v11577_v18  ;;  %6242 = vmatpush1.bf16.msra.mxu1 %v11580_v44  ;;  %v3281_v5 = vsel %vm2958_vm12, %v3280_v48, %v3276_v46  ;;  %v11585_v59 = vpack.c.bf16 %v8394_v29, %v8385_v25  ;;  %v3370_v4 = vsel %vm2972_vm14, %v3369_v28, %v3365_v56  ;;  %v1099_v50 = vsel %vm558_vm0, %v482_v22, 0.0  ;;  %v1982_v29 = vld [vmem:[#allocation4 + $0xc48] sm:$0xff]  ;;  %v1983_v46 = vld [vmem:[#allocation4 + $0xc50] sm:$0xff]  ;;  %v1992_v22 = vld [vmem:[#allocation4 + $0xc98] sm:$0xff] }
 0x1d5   : > { %5732 = vmatprep.subr.bf16.mxu0 %v11584_v21  ;;  %1049 = vadd.xlane.f32.xlu1 %v1048_v30  ;;  %v5735_v17 = vpack.c.bf16 %v1978_v49, %v1974_v10  ;;  %v3375_v32 = vsel %vm2979_vm15, %v3374_v57, %v3370_v4  ;;  %v6247_v2 = vpack.c.bf16 %v1980_v51, %v1976_v9  ;;  %v1986_v48 = vld [vmem:[#allocation4 + $0xc68] sm:$0xff]  ;;  %v1051_v14 = vsel %vm558_vm0, %v466_v27, 0.0  ;;  %v1988_v30 = vld [vmem:[#allocation4 + $0xc78] sm:$0xff]  ;;  %v1985_v49 = vld [vmem:[#allocation4 + $0xc60] sm:$0xff] }
 0x1d6   : > { %6244 = vmatprep.subr.bf16.mxu1 %v11585_v59  ;;  %v3286_v25 = vsel %vm2965_vm13, %v3285_v19, %v3281_v5  ;;  %v11587_v1 = vpack.c.bf16 %v8398_v34, %v11586_v37  ;;  %v11588_v28 = vpack.c.bf16 %v8412_v52, %v8410_v40  ;;  %4388 = vmatprep.mubr.f32.mxu0 %v3375_v32  ;;  %v467_v13 = vld [vmem:[%s7055_s4 + $0x528] sm:$0xff]  ;;  %v8589_v40 = vpop.xlane.xlu0 %848  ;;  %v8591_v52 = vpop.xlane.xlu1 %851  ;;  %v1987_v47 = vld [vmem:[#allocation4 + $0xc70] sm:$0xff]  ;;  %v1996_v9 = vld [vmem:[#allocation4 + $0xcb8] sm:$0xff] }
 0x1d7   : > { %v3291_v60 = vsel %vm2972_vm14, %v3290_v31, %v3286_v25  ;;  %4956 = vmatprep.mubr.f32.mxu1 %v3375_v32  ;;  %v5737_v19 = vpack.c.bf16 %v1977_v0, %v1973_v62  ;;  %v6249_v20 = vpack.c.bf16 %v1979_v54, %v1975_v24  ;;  %v1981_v34 = vld [vmem:[#allocation4 + $0xc40] sm:$0xff]  ;;  %1100 = vadd.xlane.f32.xlu0 %v1099_v50  ;;  %v1102_v31 = vsel %vm558_vm0, %v483_v33, 0.0  ;;  %v1990_v18 = vld [vmem:[#allocation4 + $0xc88] sm:$0xff]  ;;  %v1991_v62 = vld [vmem:[#allocation4 + $0xc90] sm:$0xff] }
 0x1d8   : > { %5734 = vmatpush1.bf16.msra.mxu0 %v11587_v1  ;;  %6246 = vmatpush1.bf16.msra.mxu1 %v11588_v28  ;;  %v3296_v58 = vsel %vm2979_vm15, %v3295_v8, %v3291_v60  ;;  %v5739_v10 = vpack.c.bf16 %v1986_v48, %v1982_v29  ;;  %v6251_v35 = vpack.c.bf16 %v1988_v30, %v1984_v55  ;;  %v1054_v7 = vsel %vm558_vm0, %v467_v13, 0.0  ;;  %v484_v44 = vld [vmem:[%s7055_s4 + $0x5b0] sm:$0xff]  ;;  %v1989_v42 = vld [vmem:[#allocation4 + $0xc80] sm:$0xff]  ;;  %v485_v54 = vld [vmem:[%s7055_s4 + $0x5b8] sm:$0xff] }
 0x1d9   : > { %5736 = vmatprep.subr.bf16.mxu0 %v5735_v17  ;;  %6248 = vmatprep.subr.bf16.mxu1 %v6247_v2  ;;  %v5741_v51 = vpack.c.bf16 %v1985_v49, %v1981_v34  ;;  %v6253_v57 = vpack.c.bf16 %v1987_v47, %v1983_v46  ;;  %v468_v8 = vld [vmem:[%s7055_s4 + $0x530] sm:$0xff]  ;;  %v5743_v56 = vpack.c.bf16 %v1994_v23, %v1990_v18  ;;  %v1993_v27 = vld [vmem:[#allocation4 + $0xca0] sm:$0xff]  ;;  %v1105_v59 = vsel %vm558_vm0, %v484_v44, 0.0  ;;  %v2000_v32 = vld [vmem:[#allocation4 + $0xcd8] sm:$0xff] }
 0x1da   : > { %1052 = vadd.xlane.f32.xlu1 %v1051_v14  ;;  %v8597_v16 = vpop.xlane.xlu0 %902  ;;  %v8599_v21 = vpop.xlane.xlu1 %854  ;;  %v1995_v5 = vld [vmem:[#allocation4 + $0xcb0] sm:$0xff]  ;;  %v6255_v4 = vpack.c.bf16 %v1996_v9, %v1992_v22  ;;  %v1998_v17 = vld [vmem:[#allocation4 + $0xcc8] sm:$0xff]  ;;  %v1057_v24 = vsel %vm558_vm0, %v468_v8, 0.0  ;;  %v2004_v50 = vld [vmem:[#allocation4 + $0xcf8] sm:$0xff]  ;;  %v5745_v2 = vpack.c.bf16 %v1993_v27, %v1989_v42  ;;  %v1108_v55 = vsel %vm558_vm0, %v485_v54, 0.0 }
 0x1db   : > { %4389 = vmatmul.mubr.f32.vlgmr.msra.gmra.mrb[0].mxu0 %v3296_v58  ;;  %4957 = vmatmul.mubr.f32.vlgmr.msra.gmra.mrb[0].mxu1 %v3296_v58  ;;  %v2002_v0 = vld [vmem:[#allocation4 + $0xce8] sm:$0xff]  ;;  %v6257_v25 = vpack.c.bf16 %v1995_v5, %v1991_v62  ;;  %v469_v29 = vld [vmem:[%s7055_s4 + $0x538] sm:$0xff]  ;;  %v1997_v48 = vld [vmem:[#allocation4 + $0xcc0] sm:$0xff]  ;;  %v6259_v30 = vpack.c.bf16 %v2004_v50, %v2000_v32 }
 0x1dc   : > { %5738 = vmatpush1.bf16.msra.mxu0 %v5737_v19  ;;  %6250 = vmatpush1.bf16.msra.mxu1 %v6249_v20  ;;  %v5747_v28 = vpack.c.bf16 %v2002_v0, %v1998_v17  ;;  %v2001_v14 = vld [vmem:[#allocation4 + $0xce0] sm:$0xff]  ;;  %v1999_v60 = vld [vmem:[#allocation4 + $0xcd0] sm:$0xff]  ;;  %v2006_v58 = vld [vmem:[#allocation4 + $0xd08] sm:$0xff]  ;;  %v1060_v20 = vsel %vm558_vm0, %v469_v29, 0.0 }
 0x1dd   : > { %1103 = vadd.xlane.f32.xlu0 %v1102_v31  ;;  %5740 = vmatprep.subr.bf16.mxu0 %v5739_v10  ;;  %v2003_v33 = vld [vmem:[#allocation4 + $0xcf0] sm:$0xff]  ;;  %v2010_v19 = vld [vmem:[#allocation4 + $0xd28] sm:$0xff]  ;;  %v486_v13 = vld [vmem:[%s7055_s4 + $0x5c0] sm:$0xff]  ;;  %v5749_v49 = vpack.c.bf16 %v2001_v14, %v1997_v48 }
 0x1de   : > { %1055 = vadd.xlane.f32.xlu1 %v1054_v7  ;;  %6252 = vmatprep.subr.bf16.mxu1 %v6251_v35  ;;  %v8605_v37 = vpop.xlane.xlu0 %905  ;;  %v8607_v1 = vpop.xlane.xlu1 %857  ;;  %v2008_v34 = vld [vmem:[#allocation4 + $0xd18] sm:$0xff]  ;;  %v6261_v46 = vpack.c.bf16 %v2003_v33, %v1999_v60  ;;  %v2005_v31 = vld [vmem:[#allocation4 + $0xd00] sm:$0xff]  ;;  %v5751_v7 = vpack.c.bf16 %v2010_v19, %v2006_v58  ;;  %v2007_v44 = vld [vmem:[#allocation4 + $0xd10] sm:$0xff] }
 0x1df   : > { %11589 = vst [vmem:[#allocation50_spill] sm:$0xff] %v8605_v37  ;;  %11590 = vst [vmem:[#allocation32_spill] sm:$0xff] %v8607_v1  ;;  %v2012_v10 = vld [vmem:[#allocation4 + $0xd38] sm:$0xff]  ;;  %v2009_v35 = vld [vmem:[#allocation4 + $0xd20] sm:$0xff] }
 0x1e0   : > { %5742 = vmatpush1.bf16.msra.mxu0 %v5741_v51  ;;  %6254 = vmatpush1.bf16.msra.mxu1 %v6253_v57  ;;  %v470_v47 = vld [vmem:[%s7055_s4 + $0x540] sm:$0xff]  ;;  %v2011_v22 = vld [vmem:[#allocation4 + $0xd30] sm:$0xff]  ;;  %v2014_v9 = vld [vmem:[#allocation4 + $0xd48] sm:$0xff]  ;;  %v1111_v51 = vsel %vm558_vm0, %v486_v13, 0.0  ;;  %v6263_v57 = vpack.c.bf16 %v2012_v10, %v2008_v34 }
 0x1e1   : > { %1106 = vadd.xlane.f32.xlu0 %v1105_v59  ;;  %5744 = vmatprep.subr.bf16.mxu0 %v5743_v56  ;;  %v487_v8 = vld [vmem:[%s7055_s4 + $0x5c8] sm:$0xff]  ;;  %v2016_v56 = vld [vmem:[#allocation4 + $0xd58] sm:$0xff]  ;;  %v1063_v27 = vsel %vm558_vm0, %v470_v47, 0.0  ;;  %v6265_v17 = vpack.c.bf16 %v2011_v22, %v2007_v44  ;;  %v2019_v54 = vld [vmem:[#allocation4 + $0xd70] sm:$0xff] }
 0x1e2   : > { %1058 = vadd.xlane.f32.xlu1 %v1057_v24  ;;  %6256 = vmatprep.subr.bf16.mxu1 %v6255_v4  ;;  %v8613_v18 = vpop.xlane.xlu0 %908  ;;  %v8615_v23 = vpop.xlane.xlu1 %860  ;;  %v2018_v42 = vld [vmem:[#allocation4 + $0xd68] sm:$0xff]  ;;  %v2020_v5 = vld [vmem:[#allocation4 + $0xd78] sm:$0xff]  ;;  %v8621_v59 = vld [vmem:[#allocation4 + $0xd40] sm:$0xff]  ;;  %v5753_v4 = vpack.c.bf16 %v2009_v35, %v2005_v31 }
 0x1e3   : > { %11591 = vst [vmem:[#allocation40_spill] sm:$0xff] %v8613_v18  ;;  %11592 = vst [vmem:[#allocation39_spill] sm:$0xff] %v8615_v23  ;;  %v471_v62 = vld [vmem:[%s7055_s4 + $0x548] sm:$0xff]  ;;  %v2015_v24 = vld [vmem:[#allocation4 + $0xd50] sm:$0xff]  ;;  %v6267_v14 = vpack.c.bf16 %v2020_v5, %v2016_v56 }
 0x1e4   : > { %5746 = vmatpush1.bf16.msra.mxu0 %v5745_v2  ;;  %6258 = vmatpush1.bf16.msra.mxu1 %v6257_v25  ;;  %v2017_v0 = vld [vmem:[#allocation4 + $0xd60] sm:$0xff]  ;;  %v5755_v2 = vpack.c.bf16 %v2018_v42, %v2014_v9  ;;  %v8627_v25 = vld [vmem:[#allocation4 + $0xd88] sm:$0xff]  ;;  %v8631_v48 = vld [vmem:[#allocation4 + $0xd98] sm:$0xff]  ;;  %v6269_v10 = vpack.c.bf16 %v2019_v54, %v2015_v24 }
 0x1e5   : > { %1109 = vadd.xlane.f32.xlu0 %v1108_v55  ;;  %5748 = vmatprep.subr.bf16.mxu0 %v5747_v28  ;;  %v8629_v29 = vld [vmem:[#allocation4 + $0xda8] sm:$0xff]  ;;  %v1114_v28 = vsel %vm558_vm0, %v487_v8, 0.0  ;;  %v8636_v55 = vld [vmem:[#allocation4 + $0xdb8] sm:$0xff]  ;;  %v8639_v58 = vld [vmem:[#allocation4 + $0xd80] sm:$0xff]  ;;  %v5757_v34 = vpack.c.bf16 %v2017_v0, %v8621_v59 }
 0x1e6   : > { %1061 = vadd.xlane.f32.xlu1 %v1060_v20  ;;  %6260 = vmatprep.subr.bf16.mxu1 %v6259_v30  ;;  %v8623_v32 = vpop.xlane.xlu0 %911  ;;  %v8625_v50 = vpop.xlane.xlu1 %863  ;;  %v488_v60 = vld [vmem:[%s7055_s4 + $0x5d0] sm:$0xff]  ;;  %v1066_v30 = vsel %vm558_vm0, %v471_v62, 0.0  ;;  %v8641_v19 = vld [vmem:[#allocation4 + $0xda0] sm:$0xff]  ;;  %v8653_v31 = vld [vmem:[#allocation4 + $0xdd8] sm:$0xff]  ;;  %v5759_v22 = vpack.c.bf16 %v8629_v29, %v8627_v25  ;;  %v6271_v5 = vpack.c.bf16 %v8636_v55, %v8631_v48 }
 0x1e7   : > { %11593 = vst [vmem:[#allocation42_spill] sm:$0xff] %v8623_v32  ;;  %11594 = vst [vmem:[#allocation53_spill] sm:$0xff] %v8625_v50  ;;  %v472_v33 = vld [vmem:[%s7055_s4 + $0x550] sm:$0xff]  ;;  %v8655_v35 = vld [vmem:[#allocation4 + $0xdf8] sm:$0xff]  ;;  %v1117_v62 = vsel %vm558_vm0, %v488_v60, 0.0 }
 0x1e8   : > { %5750 = vmatpush1.bf16.msra.mxu0 %v5749_v49  ;;  %6262 = vmatpush1.bf16.msra.mxu1 %v6261_v46  ;;  %v8643_v20 = vld [vmem:[#allocation4 + $0xd90] sm:$0xff]  ;;  %v8649_v46 = vld [vmem:[#allocation4 + $0xdc8] sm:$0xff]  ;;  %v490_v59 = vld [vmem:[%s7055_s4 + $0x5e0] sm:$0xff] }
 0x1e9   : > { %1112 = vadd.xlane.f32.xlu0 %v1111_v51  ;;  %5752 = vmatprep.subr.bf16.mxu0 %v5751_v7  ;;  %v8645_v13 = vld [vmem:[#allocation4 + $0xdb0] sm:$0xff]  ;;  %v8651_v47 = vld [vmem:[#allocation4 + $0xde8] sm:$0xff]  ;;  %v8664_v51 = vld [vmem:[#allocation4 + $0xdc0] sm:$0xff] }
 0x1ea   : > { %1064 = vadd.xlane.f32.xlu1 %v1063_v27  ;;  %6264 = vmatprep.subr.bf16.mxu1 %v6263_v57  ;;  %v489_v49 = vld [vmem:[%s7055_s4 + $0x5d8] sm:$0xff]  ;;  %v8657_v7 = vpop.xlane.xlu0 %914  ;;  %v8659_v44 = vpop.xlane.xlu1 %866  ;;  %v8666_v57 = vld [vmem:[#allocation4 + $0xde0] sm:$0xff]  ;;  %v8672_v56 = vld [vmem:[#allocation4 + $0xe08] sm:$0xff] }
 0x1eb   : > { %11595 = vst [vmem:[#allocation36_spill] sm:$0xff] %v8657_v7  ;;  %11596 = vst [vmem:[#allocation51_spill] sm:$0xff] %v8659_v44  ;;  %v473_v9 = vld [vmem:[%s7055_s4 + $0x558] sm:$0xff]  ;;  %v8674_v27 = vld [vmem:[#allocation4 + $0xe28] sm:$0xff] }
 0x1ec   : > { %5754 = vmatpush1.bf16.msra.mxu0 %v5753_v4  ;;  %6266 = vmatpush1.bf16.msra.mxu1 %v6265_v17  ;;  %v8668_v8 = vld [vmem:[#allocation4 + $0xdd0] sm:$0xff]  ;;  %v474_v4 = vld [vmem:[%s7055_s4 + $0x560] sm:$0xff]  ;;  %v8697_v48 = vld [vmem:[#allocation4 + $0xe68] sm:$0xff] }
 0x1ed   : > { %1115 = vadd.xlane.f32.xlu0 %v1114_v28  ;;  %5756 = vmatprep.subr.bf16.mxu0 %v5755_v2  ;;  %v8670_v42 = vld [vmem:[#allocation4 + $0xdf0] sm:$0xff]  ;;  %v8681_v17 = vld [vmem:[#allocation4 + $0xe18] sm:$0xff]  ;;  %v8685_v24 = vld [vmem:[#allocation4 + $0xe00] sm:$0xff]  ;;  %v1069_v2 = vsel %vm558_vm0, %v472_v33, 0.0  ;;  %v6273_v33 = vpack.c.bf16 %v8645_v13, %v8643_v20  ;;  %v1120_v20 = vsel %vm558_vm0, %v489_v49, 0.0  ;;  %v5763_v13 = vpack.c.bf16 %v8651_v47, %v8649_v46 }
 0x1ee   : > { %1067 = vadd.xlane.f32.xlu1 %v1066_v30  ;;  %6268 = vmatprep.subr.bf16.mxu1 %v6267_v14  ;;  %v8683_v0 = vld [vmem:[#allocation4 + $0xe38] sm:$0xff]  ;;  %v8687_v54 = vld [vmem:[#allocation4 + $0xe20] sm:$0xff]  ;;  %v8690_v25 = vld [vmem:[#allocation4 + $0xe10] sm:$0xff]  ;;  %v5761_v30 = vpack.c.bf16 %v8641_v19, %v8639_v58  ;;  %v8720_v58 = vpop.xlane.xlu0 %917  ;;  %v8722_v19 = vpop.xlane.xlu1 %869  ;;  %v1072_v49 = vsel %vm558_vm0, %v473_v9, 0.0  ;;  %v5765_v46 = vpack.c.bf16 %v8666_v57, %v8664_v51  ;;  %v6277_v47 = vpack.c.bf16 %v8670_v42, %v8668_v8 }
 0x1ef   : > { %v8692_v29 = vld [vmem:[#allocation4 + $0xe30] sm:$0xff]  ;;  %v491_v28 = vld [vmem:[%s7055_s4 + $0x5e8] sm:$0xff]  ;;  %v8699_v60 = vld [vmem:[#allocation4 + $0xe58] sm:$0xff]  ;;  %11602 = vst [vmem:[#allocation43_spill] sm:$0xff] %v8720_v58  ;;  %v1123_v51 = vsel %vm558_vm0, %v490_v59, 0.0  ;;  %v8761_v57 = vsel %vm558_vm0, %v474_v4, 0.0 }
 0x1f0   : > { %v8695_v14 = vld [vmem:[#allocation4 + $0xe48] sm:$0xff]  ;;  %11598 = vst [vmem:[#allocation33_spill] sm:$0xff] %v8699_v60  ;;  %v8701_v55 = vld [vmem:[#allocation4 + $0xe78] sm:$0xff]  ;;  %5758 = vmatpush1.bf16.msra.mxu0 %v5757_v34  ;;  %6270 = vmatpush1.bf16.msra.mxu1 %v6269_v10  ;;  %v8708_v36 = vld [vmem:[#allocation4 + $0xe40] sm:$0xff]  ;;  %v6275_v10 = vpack.c.bf16 %v8655_v35, %v8653_v31  ;;  %v8783_v42 = vsel %vm558_vm0, %v491_v28, 0.0 }
 0x1f1   : > { %11597 = vst [vmem:[#allocation41_spill] sm:$0xff] %v8695_v14  ;;  %11599 = vst [vmem:[#allocation34_spill] sm:$0xff] %v8701_v55  ;;  %v475_v26 = vld [vmem:[%s7055_s4 + $0x568] sm:$0xff]  ;;  %v8714_v61 = vld [vmem:[#allocation4 + $0xe70] sm:$0xff]  ;;  %1118 = vadd.xlane.f32.xlu0 %v1117_v62  ;;  %5760 = vmatprep.subr.bf16.mxu0 %v5759_v22 }
 0x1f2   : > { %v8710_v63 = vld [vmem:[#allocation4 + $0xe60] sm:$0xff]  ;;  %v8718_v34 = vld [vmem:[#allocation4 + $0xea8] sm:$0xff]  ;;  %11603 = vst [vmem:[#allocation37_spill] sm:$0xff] %v8722_v19  ;;  %1070 = vadd.xlane.f32.xlu1 %v1069_v2  ;;  %6272 = vmatprep.subr.bf16.mxu1 %v6271_v5  ;;  %v8746_v35 = vld [vmem:[#allocation4 + $0xe90] sm:$0xff]  ;;  %v8799_v28 = vpop.xlane.xlu0 %920  ;;  %v8801_v8 = vpop.xlane.xlu1 %872  ;;  %v8804_v43 = vsel %vm558_vm0, %v475_v26, 0.0  ;;  %v8820_v26 = vsel %vm558_vm0, %v492_v39, 0.0 }
 0x1f3   : > { %11601 = vst [vmem:[#allocation44_spill] sm:$0xff] %v8718_v34  ;;  %v476_v45 = vld [vmem:[%s7055_s4 + $0x570] sm:$0xff]  ;;  %v8735_v22 = vld [vmem:[#allocation4 + $0xe80] sm:$0xff]  ;;  %v493_v38 = vld [vmem:[%s7055_s4 + $0x5f8] sm:$0xff] }
 0x1f4   : > { %11604 = vst [vmem:[#allocation38_spill] sm:$0xff] %v8735_v22  ;;  %v8737_v62 = vld [vmem:[#allocation4 + $0xea0] sm:$0xff]  ;;  %v8748_v19 = vld [vmem:[#allocation4 + $0xeb0] sm:$0xff]  ;;  %v8751_v58 = vld [vmem:[#allocation4 + $0xec8] sm:$0xff]  ;;  %5762 = vmatpush1.bf16.msra.mxu0 %v5761_v30  ;;  %6274 = vmatpush1.bf16.msra.mxu1 %v6273_v33  ;;  %v8823_v32 = vsel %vm558_vm0, %v476_v45, 0.0 }
 0x1f5   : > { %11605 = vst [vmem:[#allocation45_spill] sm:$0xff] %v8737_v62  ;;  %v8753_v5 = vld [vmem:[#allocation4 + $0xee8] sm:$0xff]  ;;  %v8755_v2 = vld [vmem:[#allocation4 + $0xed8] sm:$0xff]  ;;  %v8768_v44 = vld [vmem:[#allocation4 + $0xec0] sm:$0xff]  ;;  %1121 = vadd.xlane.f32.xlu0 %v1120_v20  ;;  %5764 = vmatprep.subr.bf16.mxu0 %v5763_v13 }
 0x1f6   : > { %11606 = vst [vmem:[#allocation56_spill] sm:$0xff] %v8755_v2  ;;  %v8757_v9 = vld [vmem:[#allocation4 + $0xef8] sm:$0xff]  ;;  %v8772_v7 = vld [vmem:[#allocation4 + $0xed0] sm:$0xff]  ;;  %v8776_v59 = vld [vmem:[#allocation4 + $0xf08] sm:$0xff]  ;;  %1073 = vadd.xlane.f32.xlu1 %v1072_v49  ;;  %6276 = vmatprep.subr.bf16.mxu1 %v6275_v10  ;;  %v8838_v10 = vsel %vm558_vm0, %v493_v38, 0.0 }
 0x1f7   : > { %11607 = vst [vmem:[#allocation55_spill] sm:$0xff] %v8757_v9  ;;  %v477_v31 = vld [vmem:[%s7055_s4 + $0x578] sm:$0xff]  ;;  %11608 = vst [vmem:[#allocation47_spill] sm:$0xff] %v8776_v59  ;;  %v8778_v4 = vld [vmem:[#allocation4 + $0xf28] sm:$0xff] }
 0x1f8   : > { %v8774_v50 = vld [vmem:[#allocation4 + $0xef0] sm:$0xff]  ;;  %v510_v23 = vld [vmem:[%s7055_s4 + $0x680] sm:$0xff]  ;;  %v511_v30 = vld [vmem:[%s7055_s4 + $0x688] sm:$0xff]  ;;  %11611 = vst [vmem:[#allocation49_spill] sm:$0xff] %v8799_v28  ;;  %5766 = vmatpush1.bf16.msra.mxu0 %v5765_v46  ;;  %6278 = vmatpush1.bf16.msra.mxu1 %v6277_v47  ;;  %v8850_v62 = vsel %vm558_vm0, %v477_v31, 0.0  ;;  %v11617_v46 = vpack.c.bf16 %v8674_v27, %v8672_v56  ;;  %v8866_v47 = vpop.xlane.xlu0 %923  ;;  %v8868_v31 = vpop.xlane.xlu1 %875 }
 0x1f9   : > { %v8790_v18 = vld [vmem:[#allocation4 + $0xf18] sm:$0xff]  ;;  %v8795_v33 = vld [vmem:[#allocation4 + $0xf00] sm:$0xff]  ;;  %11612 = vst [vmem:[#allocation46_spill] sm:$0xff] %v8801_v8  ;;  %v8812_v14 = vld [vmem:[#allocation4 + $0xf10] sm:$0xff]  ;;  %1124 = vadd.xlane.f32.xlu0 %v1123_v51  ;;  %v8871_v39 = vsel %vm558_vm0, %v510_v23, 0.0  ;;  %v8876_v38 = vsel %vm558_vm0, %v511_v30, 0.0  ;;  %v11621_v23 = vpack.c.bf16 %v8683_v0, %v8681_v17 }
 0x1fa   : > { %v8792_v1 = vld [vmem:[#allocation4 + $0xf38] sm:$0xff]  ;;  %11609 = vst [vmem:[#allocation48_spill] sm:$0xff] %v8795_v33  ;;  %v8797_v37 = vld [vmem:[#allocation4 + $0xf20] sm:$0xff]  ;;  %v8814_v20 = vld [vmem:[#allocation4 + $0xf30] sm:$0xff]  ;;  %5768 = vmatprep.subr.bf16.mxu0 %v11617_v46  ;;  %1076 = vadd.xlane.f32.xlu1 %v8761_v57  ;;  %v1439_v17 = vmul.f32 0.0625, %v8570_v11  ;;  %v1440_v0 = vmul.f32 0.0625, %v8572_v15  ;;  %v11627_v15 = vpack.c.bf16 %v8687_v54, %v8685_v24 }
 0x1fb   : > { %11610 = vst [vmem:[#allocation52_spill] sm:$0xff] %v8797_v37  ;;  %v494_v13 = vld [vmem:[%s7055_s4 + $0x600] sm:$0xff]  ;;  %v8817_v28 = vld [vmem:[#allocation4 + $0xf48] sm:$0xff]  ;;  %v8858_v49 = vld [vmem:[#allocation4 + $0xf50] sm:$0xff]  ;;  %6280 = vmatprep.subr.bf16.mxu1 %v11621_v23  ;;  %v1441_v11 = vmul.f32 0.0625, %v8597_v16 }
 0x1fc   : > { %v8829_v8 = vld [vmem:[#allocation4 + $0xf68] sm:$0xff]  ;;  %v8831_v3 = vld [vmem:[#allocation4 + $0xf58] sm:$0xff]  ;;  %v8845_v60 = vld [vmem:[#allocation4 + $0xf40] sm:$0xff]  ;;  %v8893_v30 = vsel %vm558_vm0, %v494_v13, 0.0  ;;  %5770 = vmatpush1.bf16.msra.mxu0 %v11627_v15  ;;  %v8933_v16 = vpop.xlane.xlu0 %926 }
 0x1fd   : > { %11613 = vst [vmem:[#allocation67_spill] sm:$0xff] %v8831_v3  ;;  %v8833_v34 = vld [vmem:[#allocation4 + $0xf78] sm:$0xff]  ;;  %v495_v55 = vld [vmem:[%s7055_s4 + $0x608] sm:$0xff]  ;;  %11615 = vst [vmem:[#allocation59_spill] sm:$0xff] %v8845_v60  ;;  %v1423_v3 = vmul.f32 0.0625, %v8589_v40  ;;  %v1425_v60 = vmul.f32 0.0625, %v8599_v21  ;;  %1127 = vadd.xlane.f32.xlu0 %v8783_v42 }
 0x1fe   : > { %11614 = vst [vmem:[#allocation54_spill] sm:$0xff] %v8833_v34  ;;  %v8847_v22 = vld [vmem:[#allocation4 + $0xf60] sm:$0xff]  ;;  %v8860_v2 = vld [vmem:[#allocation4 + $0xf70] sm:$0xff]  ;;  %v8880_v59 = vld [vmem:[#allocation4 + $0xf88] sm:$0xff]  ;;  %v8907_v23 = vsel %vm558_vm0, %v495_v55, 0.0  ;;  %v1424_v34 = vmul.f32 0.0625, %v8591_v52  ;;  %v11628_v55 = vpack.c.bf16 %v8692_v29, %v8690_v25  ;;  %1079 = vadd.xlane.f32.xlu1 %v8804_v43 }
 0x1ff   : > { %11616 = vst [vmem:[#allocation63_spill] sm:$0xff] %v8847_v22  ;;  %v512_v9 = vld [vmem:[%s7055_s4 + $0x690] sm:$0xff]  ;;  %11618 = vst [vmem:[#allocation57_spill] sm:$0xff] %v8880_v59  ;;  %v8884_v27 = vld [vmem:[#allocation4 + $0xf98] sm:$0xff]  ;;  %v8935_v22 = vpop.xlane.xlu1 %878 }
 0x200   : > { %v8882_v56 = vld [vmem:[#allocation4 + $0xfa8] sm:$0xff]  ;;  %11620 = vst [vmem:[#allocation58_spill] sm:$0xff] %v8884_v27  ;;  %v8899_v33 = vld [vmem:[#allocation4 + $0xfb8] sm:$0xff]  ;;  %v8902_v57 = vld [vmem:[#allocation4 + $0xf80] sm:$0xff]  ;;  %6282 = vmatpush1.bf16.msra.mxu1 %v11628_v55  ;;  %v8938_v24 = vsel %vm558_vm0, %v512_v9, 0.0 }
 0x201   : > { %11619 = vst [vmem:[#allocation66_spill] sm:$0xff] %v8882_v56  ;;  %11622 = vst [vmem:[#allocation60_spill] sm:$0xff] %v8899_v33  ;;  %v496_v37 = vld [vmem:[%s7055_s4 + $0x610] sm:$0xff]  ;;  %v8911_v46 = vld [vmem:[#allocation4 + $0xfa0] sm:$0xff]  ;;  %1130 = vadd.xlane.f32.xlu0 %v8820_v26  ;;  %v11652_v26 = vpack.c.bf16 %v8733_v12, %v8731_v53 }
 0x202   : > { %11623 = vst [vmem:[#allocation61_spill] sm:$0xff] %v8902_v57  ;;  %11624 = vst [vmem:[#allocation62_spill] sm:$0xff] %v8911_v46  ;;  %v8913_v51 = vld [vmem:[#allocation4 + $0xf90] sm:$0xff]  ;;  %v11629_v40 = vld [vmem:[#allocation41_spill] sm:$0xff]  ;;  %1082 = vadd.xlane.f32.xlu1 %v8823_v32 }
 0x203   : > { %11625 = vst [vmem:[#allocation64_spill] sm:$0xff] %v8913_v51  ;;  %v8915_v45 = vld [vmem:[#allocation4 + $0xfb0] sm:$0xff]  ;;  %v11630_v52 = vpack.c.bf16 %v8697_v48, %v11629_v40  ;;  %v8944_v21 = vld [vmem:[#allocation4 + $0xfc8] sm:$0xff]  ;;  %v8952_v40 = vsel %vm558_vm0, %v496_v37, 0.0  ;;  %v8960_v54 = vld [vmem:[#allocation4 + $0xfd8] sm:$0xff] }
 0x204   : > { %11626 = vst [vmem:[#allocation65_spill] sm:$0xff] %v8915_v45  ;;  %v11631_v29 = vld [vmem:[#allocation50_spill] sm:$0xff]  ;;  %v11633_v15 = vld [vmem:[#allocation33_spill] sm:$0xff]  ;;  %11635 = vst [vmem:[#allocation41_spill] sm:$0xff] %v8952_v40 }
 0x205   : > { %5772 = vmatprep.subr.bf16.mxu0 %v11630_v52  ;;  %v1442_v42 = vmul.f32 0.0625, %v11631_v29  ;;  %v11632_v48 = vld [vmem:[#allocation34_spill] sm:$0xff]  ;;  %v8958_v25 = vld [vmem:[#allocation4 + $0xfe8] sm:$0xff]  ;;  %11636 = vst [vmem:[#allocation50_spill] sm:$0xff] %v8960_v54  ;;  %v8962_v29 = vld [vmem:[#allocation4 + $0xff8] sm:$0xff]  ;;  %1133 = vadd.xlane.f32.xlu0 %v8838_v10 }
 0x206   : > { %v11634_v55 = vpack.c.bf16 %v11632_v48, %v11633_v15  ;;  %v11637_v43 = vld [vmem:[#allocation16_spill] sm:$0xff]  ;;  %v11638_v27 = vld [vmem:[#allocation17_spill] sm:$0xff]  ;;  %v11641_v45 = vld [vmem:[#allocation18_spill] sm:$0xff]  ;;  %1085 = vadd.xlane.f32.xlu1 %v8850_v62  ;;  %v1449_v62 = vmul.f32 0.0625, %v8933_v16 }
 0x207   : > { %v3458_v13 = vrot.slane %v1439_v17, %v11637_v43  ;;  %v3462_v48 = vrot.slane %v1440_v0, %v11638_v27  ;;  %v11639_v15 = vld [vmem:[#allocation32_spill] sm:$0xff]  ;;  %v3379_v52 = vrot.slane %v1423_v3, %v11637_v43  ;;  %v3383_v51 = vrot.slane %v1424_v34, %v11638_v27  ;;  %v11642_v46 = vld [vmem:[#allocation39_spill] sm:$0xff]  ;;  %v11656_v53 = vld [vmem:[#allocation45_spill] sm:$0xff] }
 0x208   : > { %6284 = vmatprep.subr.bf16.mxu1 %v11634_v55  ;;  %v1426_v55 = vmul.f32 0.0625, %v11639_v15  ;;  %v11640_v37 = vld [vmem:[#allocation40_spill] sm:$0xff]  ;;  %v3467_v57 = vrot.slane %v1441_v11, %v11641_v45  ;;  %v1427_v59 = vmul.f32 0.0625, %v11642_v46  ;;  %v11643_v17 = vpack.c.bf16 %v8710_v63, %v8708_v36  ;;  %v11647_v34 = vld [vmem:[#allocation35_spill] sm:$0xff]  ;;  %v930_v11 = vpop.xlane.xlu0 %929  ;;  %v882_v46 = vpop.xlane.xlu1 %881 }
 0x209   : > { %v1443_v40 = vmul.f32 0.0625, %v11640_v37  ;;  %v8968_v33 = vld [vmem:[#allocation4 + $0xfc0] sm:$0xff]  ;;  %v11644_v0 = vpack.c.bf16 %v8714_v61, %v8712_v6  ;;  %v3388_v15 = vrot.slane %v1425_v60, %v11641_v45  ;;  %v11645_v37 = vld [vmem:[#allocation42_spill] sm:$0xff]  ;;  %v11649_v61 = vld [vmem:[#allocation19_spill] sm:$0xff]  ;;  %1184 = vadd.xlane.f32.xlu0 %v8871_v39 }
 0x20a   : > { %v8970_v9 = vld [vmem:[#allocation4 + $0xfe0] sm:$0xff]  ;;  %5774 = vmatpush1.bf16.msra.mxu0 %v11643_v17  ;;  %v1444_v56 = vmul.f32 0.0625, %v11645_v37  ;;  %v3472_v6 = vrot.slane %v1442_v42, %v11649_v61  ;;  %v11650_v17 = vld [vmem:[#allocation53_spill] sm:$0xff]  ;;  %v11654_v42 = vld [vmem:[#allocation51_spill] sm:$0xff]  ;;  %1187 = vadd.xlane.f32.xlu1 %v8876_v38 }
 0x20b   : > { %6286 = vmatpush1.bf16.msra.mxu1 %v11644_v0  ;;  %v11646_v3 = vld [vmem:[#allocation44_spill] sm:$0xff]  ;;  %v1428_v60 = vmul.f32 0.0625, %v11650_v17  ;;  %v1429_v45 = vmul.f32 0.0625, %v11654_v42  ;;  %v3384_v17 = vsel %vm2881_vm1, %v3383_v51, %v3379_v52  ;;  %v11655_v43 = vld [vmem:[#allocation43_spill] sm:$0xff]  ;;  %v11661_v42 = vld [vmem:[#allocation37_spill] sm:$0xff] }
 0x20c   : > { %v11648_v27 = vpack.c.bf16 %v11646_v3, %v11647_v34  ;;  %v11651_v0 = vld [vmem:[#allocation36_spill] sm:$0xff]  ;;  %6288 = vmatprep.subr.bf16.mxu1 %v11652_v26  ;;  %v3463_v3 = vsel %vm2881_vm1, %v3462_v48, %v3458_v13  ;;  %v3393_v34 = vrot.slane %v1426_v55, %v11649_v61  ;;  %v1446_v12 = vmul.f32 0.0625, %v11655_v43  ;;  %v11657_v26 = vld [vmem:[#allocation38_spill] sm:$0xff]  ;;  %v11660_v48 = vld [vmem:[#allocation21_spill] sm:$0xff]  ;;  %v933_v43 = vpop.xlane.xlu0 %932 }
 0x20d   : > { %v1445_v37 = vmul.f32 0.0625, %v11651_v0  ;;  %v11653_v36 = vld [vmem:[#allocation20_spill] sm:$0xff]  ;;  %v3468_v0 = vsel %vm2888_vm2, %v3467_v57, %v3463_v3  ;;  %v11658_v54 = vpack.c.bf16 %v11656_v53, %v11657_v26  ;;  %v11659_v13 = vpack.c.bf16 %v8748_v19, %v8746_v35  ;;  %v11662_v52 = vld [vmem:[#allocation49_spill] sm:$0xff]  ;;  %v11664_v35 = vld [vmem:[#allocation22_spill] sm:$0xff]  ;;  %1136 = vadd.xlane.f32.xlu0 %v8893_v30 }
 0x20e   : > { %5776 = vmatprep.subr.bf16.mxu0 %v11648_v27  ;;  %v5797_v27 = vpack.c.bf16 %v8970_v9, %v8968_v33  ;;  %v3477_v63 = vrot.slane %v1443_v40, %v11653_v36  ;;  %v3398_v32 = vrot.slane %v1427_v59, %v11653_v36  ;;  %v3389_v40 = vsel %vm2888_vm2, %v3388_v15, %v3384_v17  ;;  %v11665_v17 = vld [vmem:[#allocation46_spill] sm:$0xff]  ;;  %v11666_v53 = vld [vmem:[#allocation55_spill] sm:$0xff]  ;;  %v11667_v26 = vld [vmem:[#allocation56_spill] sm:$0xff] }
 0x20f   : > { %5778 = vmatpush1.bf16.msra.mxu0 %v11658_v54  ;;  %6290 = vmatpush1.bf16.msra.mxu1 %v11659_v13  ;;  %v3482_v55 = vrot.slane %v1444_v56, %v11660_v48  ;;  %v1430_v51 = vmul.f32 0.0625, %v11661_v42  ;;  %v1447_v57 = vmul.f32 0.0625, %v11662_v52  ;;  %v11663_v59 = vpack.c.bf16 %v8753_v5, %v8751_v58  ;;  %v885_v54 = vpop.xlane.xlu1 %884  ;;  %v11676_v39 = vld [vmem:[#allocation25_spill] sm:$0xff]  ;;  %v9332_v61 = vld [vmem:[#allocation4 + $0x12c0] sm:$0xff] }
 0x210   : > { %v3473_v3 = vsel %vm2895_vm3, %v3472_v6, %v3468_v0  ;;  %v3403_v19 = vrot.slane %v1428_v60, %v11660_v48  ;;  %v3487_v15 = vrot.slane %v1445_v37, %v11664_v35  ;;  %v1431_v56 = vmul.f32 0.0625, %v11665_v17  ;;  %v11669_v0 = vld [vmem:[#allocation23_spill] sm:$0xff]  ;;  %1139 = vadd.xlane.f32.xlu1 %v8907_v23  ;;  %v9312_v48 = vld [vmem:[#allocation4 + $0x12b0] sm:$0xff] }
 0x211   : > { %5780 = vmatprep.subr.bf16.mxu0 %v11663_v59  ;;  %v11668_v13 = vpack.c.bf16 %v11666_v53, %v11667_v26  ;;  %v3394_v10 = vsel %vm2895_vm3, %v3393_v34, %v3389_v40  ;;  %v3478_v58 = vsel %vm2902_vm4, %v3477_v63, %v3473_v3  ;;  %v3408_v5 = vrot.slane %v1429_v45, %v11664_v35  ;;  %v11672_v63 = vld [vmem:[#allocation24_spill] sm:$0xff] }
 0x212   : > { %v1448_v6 = vmul.f32 0.0625, %v8866_v47  ;;  %v3399_v60 = vsel %vm2902_vm4, %v3398_v32, %v3394_v10  ;;  %v3492_v37 = vrot.slane %v1446_v12, %v11669_v0  ;;  %v1432_v42 = vmul.f32 0.0625, %v8868_v31  ;;  %v11673_v31 = vld [vmem:[#allocation47_spill] sm:$0xff]  ;;  %v11679_v53 = vld [vmem:[#allocation48_spill] sm:$0xff]  ;;  %1190 = vadd.xlane.f32.xlu0 %v8938_v24 }
 0x213   : > { %6292 = vmatprep.subr.bf16.mxu1 %v11668_v13  ;;  %v11670_v52 = vpack.c.bf16 %v8770_v41, %v8768_v44  ;;  %v11671_v34 = vpack.c.bf16 %v8774_v50, %v8772_v7  ;;  %v3483_v45 = vsel %vm2909_vm5, %v3482_v55, %v3478_v58  ;;  %v3413_v47 = vrot.slane %v1430_v51, %v11669_v0  ;;  %v936_v41 = vpop.xlane.xlu0 %935  ;;  %v888_v44 = vpop.xlane.xlu1 %887  ;;  %v9295_v0 = vld [vmem:[#allocation4 + $0x12b8] sm:$0xff]  ;;  %v9297_v35 = vld [vmem:[#allocation4 + $0x1280] sm:$0xff] }
 0x214   : > { %v3497_v32 = vrot.slane %v1447_v57, %v11672_v63  ;;  %v1433_v12 = vmul.f32 0.0625, %v8935_v22  ;;  %v11674_v16 = vpack.c.bf16 %v8778_v4, %v11673_v31  ;;  %v3404_v40 = vsel %vm2909_vm5, %v3403_v19, %v3399_v60  ;;  %11729 = vst [vmem:[#allocation56_spill] sm:$0xff] %v9297_v35  ;;  %v9417_v35 = vld [vmem:[#allocation4 + $0x1388] sm:$0xff] }
 0x215   : > { %5782 = vmatpush1.bf16.msra.mxu0 %v11670_v52  ;;  %6294 = vmatpush1.bf16.msra.mxu1 %v11671_v34  ;;  %v3488_v50 = vsel %vm2916_vm6, %v3487_v15, %v3483_v45  ;;  %v3418_v7 = vrot.slane %v1431_v56, %v11672_v63  ;;  %v1450_v55 = vmul.f32 0.0625, %v930_v11  ;;  %v11675_v51 = vpack.c.bf16 %v8792_v1, %v8790_v18  ;;  %v11677_v15 = vld [vmem:[#allocation26_spill] sm:$0xff]  ;;  %v11678_v56 = vld [vmem:[#allocation52_spill] sm:$0xff]  ;;  %v9293_v63 = vld [vmem:[#allocation4 + $0x1298] sm:$0xff] }
 0x216   : > { %5784 = vmatprep.subr.bf16.mxu0 %v11674_v16  ;;  %v3409_v22 = vsel %vm2916_vm6, %v3408_v5, %v3404_v40  ;;  %v3502_v4 = vrot.slane %v1448_v6, %v11676_v39  ;;  %v1434_v57 = vmul.f32 0.0625, %v882_v46  ;;  %v1451_v59 = vmul.f32 0.0625, %v933_v43  ;;  %v513_v5 = vld [vmem:[%s7055_s4 + $0x698] sm:$0xff]  ;;  %v11687_v52 = vld [vmem:[#allocation28_spill] sm:$0xff] }
 0x217   : > { %6296 = vmatprep.subr.bf16.mxu1 %v11675_v51  ;;  %v3493_v3 = vsel %vm2923_vm7, %v3492_v37, %v3488_v50  ;;  %v3423_v19 = vrot.slane %v1432_v42, %v11676_v39  ;;  %v3507_v17 = vrot.slane %v1449_v62, %v11677_v15  ;;  %v1452_v11 = vmul.f32 0.0625, %v936_v41  ;;  %v939_v10 = vpop.xlane.xlu0 %938  ;;  %v891_v58 = vpop.xlane.xlu1 %890  ;;  %v11684_v37 = vld [vmem:[#allocation54_spill] sm:$0xff]  ;;  %v11685_v42 = vld [vmem:[#allocation67_spill] sm:$0xff] }
 0x218   : > { %v11680_v1 = vpack.c.bf16 %v11678_v56, %v11679_v53  ;;  %v11681_v18 = vpack.c.bf16 %v8814_v20, %v8812_v14  ;;  %v3414_v38 = vsel %vm2923_vm7, %v3413_v47, %v3409_v22  ;;  %v3498_v46 = vsel %vm2930_vm8, %v3497_v32, %v3493_v3  ;;  %v11683_v20 = vld [vmem:[#allocation27_spill] sm:$0xff]  ;;  %v2095_v50 = vld [vmem:[#allocation4 + $0xfd0] sm:$0xff]  ;;  %v11697_v56 = vld [vmem:[#allocation60_spill] sm:$0xff] }
 0x219   : > { %v3428_v43 = vrot.slane %v1433_v12, %v11677_v15  ;;  %v1435_v26 = vmul.f32 0.0625, %v885_v54  ;;  %v11682_v13 = vpack.c.bf16 %v8829_v8, %v8817_v28  ;;  %v3419_v14 = vsel %vm2930_vm8, %v3418_v7, %v3414_v38  ;;  %v497_v54 = vld [vmem:[%s7055_s4 + $0x618] sm:$0xff]  ;;  %v11688_v12 = vld [vmem:[#allocation29_spill] sm:$0xff] }
 0x21a   : > { %5786 = vmatpush1.bf16.msra.mxu0 %v11680_v1  ;;  %6298 = vmatpush1.bf16.msra.mxu1 %v11681_v18  ;;  %v3512_v6 = vrot.slane %v1450_v55, %v11683_v20  ;;  %v9081_v60 = vmul.f32 0.0625, %v888_v44  ;;  %v11686_v62 = vpack.c.bf16 %v11684_v37, %v11685_v42  ;;  %v1453_v30 = vmul.f32 0.0625, %v939_v10  ;;  %v11689_v16 = vld [vmem:[#allocation63_spill] sm:$0xff]  ;;  %v2099_v7 = vld [vmem:[#allocation4 + $0xff0] sm:$0xff]  ;;  %v11700_v18 = vld [vmem:[#allocation41_spill] sm:$0xff] }
 0x21b   : > { %5788 = vmatprep.subr.bf16.mxu0 %v11682_v13  ;;  %v3503_v8 = vsel %vm2937_vm9, %v3502_v4, %v3498_v46  ;;  %v3433_v28 = vrot.slane %v1434_v57, %v11683_v20  ;;  %v3517_v34 = vrot.slane %v1451_v59, %v11687_v52  ;;  %v1437_v45 = vmul.f32 0.0625, %v891_v58  ;;  %v11690_v41 = vld [vmem:[#allocation59_spill] sm:$0xff]  ;;  %v11693_v22 = vld [vmem:[#allocation30_spill] sm:$0xff]  ;;  %v11695_v59 = vld [vmem:[#allocation57_spill] sm:$0xff]  ;;  %1142 = vadd.xlane.f32.xlu1 %v11700_v18 }
 0x21c   : > { %6300 = vmatprep.subr.bf16.mxu1 %v11686_v62  ;;  %v3424_v47 = vsel %vm2937_vm9, %v3423_v19, %v3419_v14  ;;  %v3508_v32 = vsel %vm2944_vm10, %v3507_v17, %v3503_v8  ;;  %v3522_v31 = vrot.slane %v1452_v11, %v11688_v12  ;;  %v11691_v44 = vpack.c.bf16 %v11689_v16, %v11690_v41  ;;  %v11694_v57 = vld [vmem:[#allocation66_spill] sm:$0xff]  ;;  %v942_v19 = vpop.xlane.xlu0 %941  ;;  %v2102_v46 = vld [vmem:[#allocation4 + $0x1008] sm:$0xff]  ;;  %v2104_v14 = vld [vmem:[#allocation4 + $0x1018] sm:$0xff] }
 0x21d   : > { %v11692_v23 = vpack.c.bf16 %v8860_v2, %v8858_v49  ;;  %v1192_v40 = vsel %vm558_vm0, %v513_v5, 0.0  ;;  %v3429_v55 = vsel %vm2944_vm10, %v3428_v43, %v3424_v47  ;;  %v3438_v51 = vrot.slane %v1435_v26, %v11687_v52  ;;  %v894_v2 = vpop.xlane.xlu1 %893  ;;  %v11698_v53 = vld [vmem:[#allocation58_spill] sm:$0xff]  ;;  %v2106_v43 = vld [vmem:[#allocation4 + $0x1028] sm:$0xff]  ;;  %v514_v5 = vld [vmem:[%s7055_s4 + $0x6a0] sm:$0xff] }
 0x21e   : > { %5790 = vmatpush1.bf16.msra.mxu0 %v11691_v44  ;;  %v3527_v4 = vrot.slane %v1453_v30, %v11693_v22  ;;  %v11696_v3 = vpack.c.bf16 %v11694_v57, %v11695_v59  ;;  %v1144_v49 = vsel %vm558_vm0, %v497_v54, 0.0  ;;  %v3513_v17 = vsel %vm2951_vm11, %v3512_v6, %v3508_v32  ;;  %v2108_v6 = vld [vmem:[#allocation4 + $0x1038] sm:$0xff]  ;;  %v11702_v42 = vld [vmem:[#allocation62_spill] sm:$0xff]  ;;  %v11703_v62 = vld [vmem:[#allocation61_spill] sm:$0xff]  ;;  %1193 = vadd.xlane.f32.xlu0 %v1192_v40 }
 0x21f   : > { %6302 = vmatpush1.bf16.msra.mxu1 %v11692_v23  ;;  %v3443_v11 = vrot.slane %v9081_v60, %v11688_v12  ;;  %v11699_v1 = vpack.c.bf16 %v11697_v56, %v11698_v53  ;;  %v1454_v24 = vmul.f32 0.0625, %v942_v19  ;;  %v1438_v38 = vmul.f32 0.0625, %v894_v2  ;;  %v11701_v60 = vld [vmem:[#allocation31_spill] sm:$0xff]  ;;  %v11705_v54 = vld [vmem:[#allocation65_spill] sm:$0xff]  ;;  %v11706_v8 = vld [vmem:[#allocation64_spill] sm:$0xff]  ;;  %1145 = vadd.xlane.f32.xlu1 %v1144_v49  ;;  %11743 = vst [vmem:[#allocation61_spill] sm:$0xff] %v9417_v35 }
 0x220   : > { %5792 = vmatprep.subr.bf16.mxu0 %v11696_v3  ;;  %v3434_v26 = vsel %vm2951_vm11, %v3433_v28, %v3429_v55  ;;  %v3518_v13 = vsel %vm2958_vm12, %v3517_v34, %v3513_v17  ;;  %v3448_v10 = vrot.slane %v1437_v45, %v11693_v22  ;;  %v6309_v58 = vpack.c.bf16 %v2099_v7, %v2095_v50  ;;  %v498_v32 = vld [vmem:[%s7055_s4 + $0x620] sm:$0xff]  ;;  %v9134_v44 = vpop.xlane.xlu0 %992  ;;  %v2103_v57 = vld [vmem:[#allocation4 + $0x1010] sm:$0xff]  ;;  %v2110_v19 = vld [vmem:[#allocation4 + $0x1048] sm:$0xff] }
 0x221   : > { %6304 = vmatprep.subr.bf16.mxu1 %v11699_v1  ;;  %v3532_v37 = vrot.slane %v1454_v24, %v11701_v60  ;;  %v11704_v30 = vpack.c.bf16 %v11702_v42, %v11703_v62  ;;  %v11707_v47 = vpack.c.bf16 %v11705_v54, %v11706_v8  ;;  %v3453_v28 = vrot.slane %v1438_v38, %v11701_v60  ;;  %v2101_v45 = vld [vmem:[#allocation4 + $0x1000] sm:$0xff]  ;;  %v9136_v23 = vpop.xlane.xlu1 %995  ;;  %v11709_v59 = vld [vmem:[#allocation50_spill] sm:$0xff]  ;;  %v2116_v53 = vld [vmem:[#allocation4 + $0x1078] sm:$0xff] }
 0x222   : > { %v3523_v34 = vsel %vm2965_vm13, %v3522_v31, %v3518_v13  ;;  %v3439_v16 = vsel %vm2958_vm12, %v3438_v51, %v3434_v26  ;;  %v11708_v41 = vpack.c.bf16 %v8958_v25, %v8944_v21  ;;  %v5799_v7 = vpack.c.bf16 %v2106_v43, %v2102_v46  ;;  %v2105_v55 = vld [vmem:[#allocation4 + $0x1020] sm:$0xff]  ;;  %v2107_v31 = vld [vmem:[#allocation4 + $0x1030] sm:$0xff]  ;;  %v9280_v15 = vld [vmem:[#allocation4 + $0x1288] sm:$0xff] }
 0x223   : > { %5794 = vmatpush1.bf16.msra.mxu0 %v11704_v30  ;;  %6306 = vmatpush1.bf16.msra.mxu1 %v11707_v47  ;;  %v3528_v50 = vsel %vm2972_vm14, %v3527_v4, %v3523_v34  ;;  %v11710_v3 = vpack.c.bf16 %v8962_v29, %v11709_v59  ;;  %v1195_v25 = vsel %vm558_vm0, %v514_v5, 0.0  ;;  %v6311_v21 = vpack.c.bf16 %v2108_v6, %v2104_v14  ;;  %v2114_v4 = vld [vmem:[#allocation4 + $0x1068] sm:$0xff]  ;;  %v2112_v29 = vld [vmem:[#allocation4 + $0x1058] sm:$0xff]  ;;  %v2109_v24 = vld [vmem:[#allocation4 + $0x1040] sm:$0xff] }
 0x224   : > { %5796 = vmatprep.subr.bf16.mxu0 %v11708_v41  ;;  %v3533_v40 = vsel %vm2979_vm15, %v3532_v37, %v3528_v50  ;;  %v3444_v51 = vsel %vm2965_vm13, %v3443_v11, %v3439_v16  ;;  %v1147_v2 = vsel %vm558_vm0, %v498_v32, 0.0  ;;  %v515_v56 = vld [vmem:[%s7055_s4 + $0x6a8] sm:$0xff]  ;;  %v5801_v1 = vpack.c.bf16 %v2105_v55, %v2101_v45  ;;  %1196 = vadd.xlane.f32.xlu0 %v1195_v25  ;;  %v9153_v38 = vpop.xlane.xlu0 %944  ;;  %v2111_v13 = vld [vmem:[#allocation4 + $0x1050] sm:$0xff]  ;;  %v2120_v6 = vld [vmem:[#allocation4 + $0x1098] sm:$0xff] }
 0x225   : > { %6308 = vmatprep.subr.bf16.mxu1 %v11710_v3  ;;  %4459 = vmatprep.mubr.f32.mxu0 %v3533_v40  ;;  %v3449_v17 = vsel %vm2972_vm14, %v3448_v10, %v3444_v51  ;;  %v6313_v11 = vpack.c.bf16 %v2107_v31, %v2103_v57  ;;  %v499_v18 = vld [vmem:[%s7055_s4 + $0x628] sm:$0xff]  ;;  %v9155_v46 = vpop.xlane.xlu1 %947  ;;  %v5803_v43 = vpack.c.bf16 %v2114_v4, %v2110_v19  ;;  %v2115_v10 = vld [vmem:[#allocation4 + $0x1070] sm:$0xff]  ;;  %v1198_v33 = vsel %vm558_vm0, %v515_v56, 0.0  ;;  %v2124_v37 = vld [vmem:[#allocation4 + $0x10b8] sm:$0xff] }
 0x226   : > { %5027 = vmatprep.mubr.f32.mxu1 %v3533_v40  ;;  %v3454_v49 = vsel %vm2979_vm15, %v3453_v28, %v3449_v17  ;;  %v2113_v26 = vld [vmem:[#allocation4 + $0x1060] sm:$0xff]  ;;  %1148 = vadd.xlane.f32.xlu1 %v1147_v2  ;;  %v6315_v9 = vpack.c.bf16 %v2116_v53, %v2112_v29  ;;  %v1150_v5 = vsel %vm558_vm0, %v499_v18, 0.0  ;;  %v516_v14 = vld [vmem:[%s7055_s4 + $0x6b0] sm:$0xff]  ;;  %v6317_v62 = vpack.c.bf16 %v2115_v10, %v2111_v13  ;;  %v517_v57 = vld [vmem:[%s7055_s4 + $0x6b8] sm:$0xff] }
 0x227   : > { %5798 = vmatpush1.bf16.msra.mxu0 %v5797_v27  ;;  %6310 = vmatpush1.bf16.msra.mxu1 %v6309_v58  ;;  %v2118_v27 = vld [vmem:[#allocation4 + $0x1088] sm:$0xff]  ;;  %v5805_v42 = vpack.c.bf16 %v2113_v26, %v2109_v24  ;;  %v2117_v54 = vld [vmem:[#allocation4 + $0x1080] sm:$0xff]  ;;  %v2119_v32 = vld [vmem:[#allocation4 + $0x1090] sm:$0xff]  ;;  %v1201_v16 = vsel %vm558_vm0, %v516_v14, 0.0  ;;  %v6319_v41 = vpack.c.bf16 %v2124_v37, %v2120_v6  ;;  %v1204_v29 = vsel %vm558_vm0, %v517_v57, 0.0  ;;  %11726 = vst [vmem:[#allocation49_spill] sm:$0xff] %v9280_v15 }
 0x228   : > { %5800 = vmatprep.subr.bf16.mxu0 %v5799_v7  ;;  %6312 = vmatprep.subr.bf16.mxu1 %v6311_v21  ;;  %v2122_v58 = vld [vmem:[#allocation4 + $0x10a8] sm:$0xff]  ;;  %v9161_v8 = vpop.xlane.xlu0 %998  ;;  %v2121_v34 = vld [vmem:[#allocation4 + $0x10a0] sm:$0xff]  ;;  %v2123_v45 = vld [vmem:[#allocation4 + $0x10b0] sm:$0xff] }
 0x229   : > { %v500_v30 = vld [vmem:[%s7055_s4 + $0x630] sm:$0xff]  ;;  %1199 = vadd.xlane.f32.xlu0 %v1198_v33  ;;  %11711 = vst [vmem:[#allocation34_spill] sm:$0xff] %v9161_v8  ;;  %v9163_v47 = vpop.xlane.xlu1 %950  ;;  %v5807_v28 = vpack.c.bf16 %v2122_v58, %v2118_v27  ;;  %v2128_v31 = vld [vmem:[#allocation4 + $0x10d8] sm:$0xff]  ;;  %v5809_v3 = vpack.c.bf16 %v2121_v34, %v2117_v54  ;;  %v6321_v40 = vpack.c.bf16 %v2123_v45, %v2119_v32  ;;  %v2125_v21 = vld [vmem:[#allocation4 + $0x10c0] sm:$0xff] }
 0x22a   : > { %4460 = vmatmul.mubr.f32.vlgmr.msra.gmra.mrb[0].mxu0 %v3454_v49  ;;  %5028 = vmatmul.mubr.f32.vlgmr.msra.gmra.mrb[0].mxu1 %v3454_v49  ;;  %11712 = vst [vmem:[#allocation33_spill] sm:$0xff] %v9163_v47  ;;  %v2126_v50 = vld [vmem:[#allocation4 + $0x10c8] sm:$0xff]  ;;  %v1153_v55 = vsel %vm558_vm0, %v500_v30, 0.0  ;;  %v2132_v59 = vld [vmem:[#allocation4 + $0x10f8] sm:$0xff]  ;;  %v2129_v2 = vld [vmem:[#allocation4 + $0x10e0] sm:$0xff] }
 0x22b   : > { %5802 = vmatpush1.bf16.msra.mxu0 %v5801_v1  ;;  %6314 = vmatpush1.bf16.msra.mxu1 %v6313_v11  ;;  %v2130_v7 = vld [vmem:[#allocation4 + $0x10e8] sm:$0xff]  ;;  %v501_v25 = vld [vmem:[%s7055_s4 + $0x638] sm:$0xff]  ;;  %v6323_v53 = vpack.c.bf16 %v2132_v59, %v2128_v31  ;;  %v518_v18 = vld [vmem:[%s7055_s4 + $0x6c0] sm:$0xff]  ;;  %v5813_v26 = vpack.c.bf16 %v2129_v2, %v2125_v21 }
 0x22c   : > { %5804 = vmatprep.subr.bf16.mxu0 %v5803_v43  ;;  %1151 = vadd.xlane.f32.xlu1 %v1150_v5  ;;  %v9169_v51 = vpop.xlane.xlu0 %1001  ;;  %v5811_v4 = vpack.c.bf16 %v2130_v7, %v2126_v50  ;;  %v2127_v17 = vld [vmem:[#allocation4 + $0x10d0] sm:$0xff]  ;;  %v2134_v49 = vld [vmem:[#allocation4 + $0x1108] sm:$0xff]  ;;  %v1156_v11 = vsel %vm558_vm0, %v501_v25, 0.0  ;;  %v2136_v24 = vld [vmem:[#allocation4 + $0x1118] sm:$0xff] }
 0x22d   : > { %6316 = vmatprep.subr.bf16.mxu1 %v6315_v9  ;;  %1202 = vadd.xlane.f32.xlu0 %v1201_v16  ;;  %11713 = vst [vmem:[#allocation32_spill] sm:$0xff] %v9169_v51  ;;  %v9171_v19 = vpop.xlane.xlu1 %953  ;;  %v2131_v56 = vld [vmem:[#allocation4 + $0x10f0] sm:$0xff]  ;;  %v2138_v1 = vld [vmem:[#allocation4 + $0x1128] sm:$0xff]  ;;  %v2140_v43 = vld [vmem:[#allocation4 + $0x1138] sm:$0xff] }
 0x22e   : > { %11714 = vst [vmem:[#allocation40_spill] sm:$0xff] %v9171_v19  ;;  %v6325_v13 = vpack.c.bf16 %v2131_v56, %v2127_v17  ;;  %v502_v10 = vld [vmem:[%s7055_s4 + $0x640] sm:$0xff]  ;;  %v5815_v58 = vpack.c.bf16 %v2138_v1, %v2134_v49  ;;  %v2135_v5 = vld [vmem:[#allocation4 + $0x1110] sm:$0xff]  ;;  %v2142_v6 = vld [vmem:[#allocation4 + $0x1148] sm:$0xff] }
 0x22f   : > { %5806 = vmatpush1.bf16.msra.mxu0 %v5805_v42  ;;  %6318 = vmatpush1.bf16.msra.mxu1 %v6317_v62  ;;  %v2133_v33 = vld [vmem:[#allocation4 + $0x1100] sm:$0xff]  ;;  %v2139_v14 = vld [vmem:[#allocation4 + $0x1130] sm:$0xff]  ;;  %v1207_v42 = vsel %vm558_vm0, %v518_v18, 0.0  ;;  %v6327_v62 = vpack.c.bf16 %v2140_v43, %v2136_v24  ;;  %v2146_v54 = vld [vmem:[#allocation4 + $0x1168] sm:$0xff]  ;;  %v1159_v34 = vsel %vm558_vm0, %v502_v10, 0.0 }
 0x230   : > { %5808 = vmatprep.subr.bf16.mxu0 %v5807_v28  ;;  %1154 = vadd.xlane.f32.xlu1 %v1153_v55  ;;  %v2137_v9 = vld [vmem:[#allocation4 + $0x1120] sm:$0xff]  ;;  %v9177_v27 = vpop.xlane.xlu0 %1004  ;;  %v2144_v28 = vld [vmem:[#allocation4 + $0x1158] sm:$0xff]  ;;  %v6329_v50 = vpack.c.bf16 %v2139_v14, %v2135_v5  ;;  %v2143_v55 = vld [vmem:[#allocation4 + $0x1150] sm:$0xff]  ;;  %v5819_v59 = vpack.c.bf16 %v2146_v54, %v2142_v6 }
 0x231   : > { %6320 = vmatprep.subr.bf16.mxu1 %v6319_v41  ;;  %1205 = vadd.xlane.f32.xlu0 %v1204_v29  ;;  %11715 = vst [vmem:[#allocation39_spill] sm:$0xff] %v9177_v27  ;;  %v9179_v37 = vpop.xlane.xlu1 %956  ;;  %v519_v30 = vld [vmem:[%s7055_s4 + $0x6c8] sm:$0xff]  ;;  %v2148_v45 = vld [vmem:[#allocation4 + $0x1178] sm:$0xff]  ;;  %v5817_v41 = vpack.c.bf16 %v2137_v9, %v2133_v33  ;;  %v2147_v57 = vld [vmem:[#allocation4 + $0x1170] sm:$0xff] }
 0x232   : > { %11716 = vst [vmem:[#allocation42_spill] sm:$0xff] %v9179_v37  ;;  %v503_v32 = vld [vmem:[%s7055_s4 + $0x648] sm:$0xff]  ;;  %v9193_v25 = vld [vmem:[#allocation4 + $0x1198] sm:$0xff]  ;;  %v6331_v2 = vpack.c.bf16 %v2148_v45, %v2144_v28  ;;  %v520_v17 = vld [vmem:[%s7055_s4 + $0x6d0] sm:$0xff]  ;;  %v6333_v43 = vpack.c.bf16 %v2147_v57, %v2143_v55 }
 0x233   : > { %5810 = vmatpush1.bf16.msra.mxu0 %v5809_v3  ;;  %6322 = vmatpush1.bf16.msra.mxu1 %v6321_v40  ;;  %v9185_v16 = vld [vmem:[#allocation4 + $0x1140] sm:$0xff]  ;;  %v9189_v3 = vld [vmem:[#allocation4 + $0x1188] sm:$0xff]  ;;  %v9200_v29 = vld [vmem:[#allocation4 + $0x11b8] sm:$0xff] }
 0x234   : > { %5812 = vmatprep.subr.bf16.mxu0 %v5811_v4  ;;  %1157 = vadd.xlane.f32.xlu1 %v1156_v11  ;;  %v2145_v7 = vld [vmem:[#allocation4 + $0x1160] sm:$0xff]  ;;  %v9187_v31 = vpop.xlane.xlu0 %1007  ;;  %v9191_v40 = vld [vmem:[#allocation4 + $0x11a8] sm:$0xff]  ;;  %v1210_v4 = vsel %vm558_vm0, %v519_v30, 0.0  ;;  %v9207_v11 = vld [vmem:[#allocation4 + $0x1190] sm:$0xff]  ;;  %v6335_v45 = vpack.c.bf16 %v9200_v29, %v9193_v25 }
 0x235   : > { %6324 = vmatprep.subr.bf16.mxu1 %v6323_v53  ;;  %1208 = vadd.xlane.f32.xlu0 %v1207_v42  ;;  %11717 = vst [vmem:[#allocation44_spill] sm:$0xff] %v9187_v31  ;;  %v9195_v21 = vpop.xlane.xlu1 %959  ;;  %v504_v56 = vld [vmem:[%s7055_s4 + $0x650] sm:$0xff]  ;;  %v1162_v53 = vsel %vm558_vm0, %v503_v32, 0.0  ;;  %v9203_v49 = vld [vmem:[#allocation4 + $0x1180] sm:$0xff]  ;;  %v5821_v24 = vpack.c.bf16 %v2145_v7, %v9185_v16  ;;  %v9217_v33 = vld [vmem:[#allocation4 + $0x11d8] sm:$0xff]  ;;  %v5823_v5 = vpack.c.bf16 %v9191_v40, %v9189_v3  ;;  %v1213_v32 = vsel %vm558_vm0, %v520_v17, 0.0 }
 0x236   : > { %11718 = vst [vmem:[#allocation35_spill] sm:$0xff] %v9195_v21  ;;  %v9205_v1 = vld [vmem:[#allocation4 + $0x11a0] sm:$0xff]  ;;  %v9209_v18 = vld [vmem:[#allocation4 + $0x11b0] sm:$0xff]  ;;  %v9215_v10 = vld [vmem:[#allocation4 + $0x11e8] sm:$0xff] }
 0x237   : > { %5814 = vmatpush1.bf16.msra.mxu0 %v5813_v26  ;;  %6326 = vmatpush1.bf16.msra.mxu1 %v6325_v13  ;;  %v521_v26 = vld [vmem:[%s7055_s4 + $0x6d8] sm:$0xff]  ;;  %v9213_v13 = vld [vmem:[#allocation4 + $0x11c8] sm:$0xff]  ;;  %v9226_v6 = vld [vmem:[#allocation4 + $0x11c0] sm:$0xff] }
 0x238   : > { %5816 = vmatprep.subr.bf16.mxu0 %v5815_v58  ;;  %1160 = vadd.xlane.f32.xlu1 %v1159_v34  ;;  %v9219_v9 = vld [vmem:[#allocation4 + $0x11f8] sm:$0xff]  ;;  %v9221_v58 = vpop.xlane.xlu0 %1010  ;;  %v9228_v42 = vld [vmem:[#allocation4 + $0x11e0] sm:$0xff]  ;;  %v9232_v30 = vld [vmem:[#allocation4 + $0x11f0] sm:$0xff] }
 0x239   : > { %6328 = vmatprep.subr.bf16.mxu1 %v6327_v62  ;;  %1211 = vadd.xlane.f32.xlu0 %v1210_v4  ;;  %11719 = vst [vmem:[#allocation53_spill] sm:$0xff] %v9221_v58  ;;  %v505_v14 = vld [vmem:[%s7055_s4 + $0x658] sm:$0xff]  ;;  %v9234_v54 = vld [vmem:[#allocation4 + $0x1208] sm:$0xff]  ;;  %v9238_v34 = vpop.xlane.xlu1 %962  ;;  %v522_v16 = vld [vmem:[%s7055_s4 + $0x6e0] sm:$0xff] }
 0x23a   : > { %v9230_v62 = vld [vmem:[#allocation4 + $0x11d0] sm:$0xff]  ;;  %v9236_v28 = vld [vmem:[#allocation4 + $0x1228] sm:$0xff]  ;;  %11720 = vst [vmem:[#allocation36_spill] sm:$0xff] %v9238_v34  ;;  %v9247_v7 = vld [vmem:[#allocation4 + $0x1238] sm:$0xff] }
 0x23b   : > { %5818 = vmatpush1.bf16.msra.mxu0 %v5817_v41  ;;  %6330 = vmatpush1.bf16.msra.mxu1 %v6329_v50  ;;  %v506_v41 = vld [vmem:[%s7055_s4 + $0x660] sm:$0xff]  ;;  %v9254_v3 = vld [vmem:[#allocation4 + $0x1210] sm:$0xff]  ;;  %v523_v4 = vld [vmem:[%s7055_s4 + $0x6e8] sm:$0xff] }
 0x23c   : > { %5820 = vmatprep.subr.bf16.mxu0 %v5819_v59  ;;  %1163 = vadd.xlane.f32.xlu1 %v1162_v53  ;;  %v9245_v50 = vld [vmem:[#allocation4 + $0x1218] sm:$0xff]  ;;  %v9249_v55 = vld [vmem:[#allocation4 + $0x1200] sm:$0xff]  ;;  %v1165_v59 = vsel %vm558_vm0, %v504_v56, 0.0  ;;  %v9256_v40 = vld [vmem:[#allocation4 + $0x1230] sm:$0xff]  ;;  %v5825_v53 = vpack.c.bf16 %v9205_v1, %v9203_v49  ;;  %v6337_v56 = vpack.c.bf16 %v9209_v18, %v9207_v11  ;;  %v9284_v49 = vpop.xlane.xlu0 %1013  ;;  %v1216_v1 = vsel %vm558_vm0, %v521_v26, 0.0 }
 0x23d   : > { %6332 = vmatprep.subr.bf16.mxu1 %v6331_v2  ;;  %v9251_v57 = vld [vmem:[#allocation4 + $0x1220] sm:$0xff]  ;;  %v9259_v2 = vld [vmem:[#allocation4 + $0x1248] sm:$0xff]  ;;  %v9263_v17 = vld [vmem:[#allocation4 + $0x1258] sm:$0xff]  ;;  %1214 = vadd.xlane.f32.xlu0 %v1213_v32  ;;  %11728 = vst [vmem:[#allocation55_spill] sm:$0xff] %v9284_v49  ;;  %v5827_v11 = vpack.c.bf16 %v9215_v10, %v9213_v13  ;;  %v6339_v18 = vpack.c.bf16 %v9219_v9, %v9217_v33  ;;  %v9301_v26 = vpop.xlane.xlu1 %965  ;;  %v1168_v13 = vsel %vm558_vm0, %v505_v14, 0.0  ;;  %v1219_v10 = vsel %vm558_vm0, %v522_v16, 0.0 }
 0x23e   : > { %11721 = vst [vmem:[#allocation51_spill] sm:$0xff] %v9259_v2  ;;  %v9261_v25 = vld [vmem:[#allocation4 + $0x1268] sm:$0xff]  ;;  %11722 = vst [vmem:[#allocation43_spill] sm:$0xff] %v9263_v17  ;;  %v9265_v29 = vld [vmem:[#allocation4 + $0x1278] sm:$0xff]  ;;  %v9325_v33 = vsel %vm558_vm0, %v506_v41, 0.0  ;;  %v9347_v36 = vsel %vm558_vm0, %v523_v4, 0.0 }
 0x23f   : > { %11723 = vst [vmem:[#allocation45_spill] sm:$0xff] %v9265_v29  ;;  %5822 = vmatpush1.bf16.msra.mxu0 %v5821_v24  ;;  %6334 = vmatpush1.bf16.msra.mxu1 %v6333_v43  ;;  %v507_v60 = vld [vmem:[%s7055_s4 + $0x668] sm:$0xff]  ;;  %v9276_v52 = vld [vmem:[#allocation4 + $0x1250] sm:$0xff]  ;;  %11731 = vst [vmem:[#allocation52_spill] sm:$0xff] %v9301_v26 }
 0x240   : > { %v9272_v22 = vld [vmem:[#allocation4 + $0x1240] sm:$0xff]  ;;  %11724 = vst [vmem:[#allocation38_spill] sm:$0xff] %v9276_v52  ;;  %v9278_v20 = vld [vmem:[#allocation4 + $0x1270] sm:$0xff]  ;;  %v9282_v24 = vld [vmem:[#allocation4 + $0x12a8] sm:$0xff]  ;;  %5824 = vmatprep.subr.bf16.mxu0 %v5823_v5  ;;  %1166 = vadd.xlane.f32.xlu1 %v1165_v59  ;;  %v9363_v4 = vpop.xlane.xlu0 %1016  ;;  %v9366_v37 = vsel %vm558_vm0, %v507_v60, 0.0 }
 0x241   : > { %v9274_v12 = vld [vmem:[#allocation4 + $0x1260] sm:$0xff]  ;;  %11725 = vst [vmem:[#allocation37_spill] sm:$0xff] %v9278_v20  ;;  %11727 = vst [vmem:[#allocation46_spill] sm:$0xff] %v9282_v24  ;;  %v524_v43 = vld [vmem:[%s7055_s4 + $0x6f0] sm:$0xff]  ;;  %6336 = vmatprep.subr.bf16.mxu1 %v6335_v45  ;;  %1217 = vadd.xlane.f32.xlu0 %v1216_v1  ;;  %v9387_v9 = vpop.xlane.xlu1 %968 }
 0x242   : > { %v508_v39 = vld [vmem:[%s7055_s4 + $0x670] sm:$0xff]  ;;  %v9299_v5 = vld [vmem:[#allocation4 + $0x12a0] sm:$0xff]  ;;  %v525_v59 = vld [vmem:[%s7055_s4 + $0x6f8] sm:$0xff]  ;;  %11735 = vst [vmem:[#allocation63_spill] sm:$0xff] %v9363_v4  ;;  %v9390_v27 = vsel %vm558_vm0, %v524_v43, 0.0 }
 0x243   : > { %11730 = vst [vmem:[#allocation47_spill] sm:$0xff] %v9299_v5  ;;  %v9310_v32 = vld [vmem:[#allocation4 + $0x1290] sm:$0xff]  ;;  %v9315_v45 = vld [vmem:[#allocation4 + $0x12c8] sm:$0xff]  ;;  %v9319_v49 = vld [vmem:[#allocation4 + $0x12d8] sm:$0xff]  ;;  %5826 = vmatpush1.bf16.msra.mxu0 %v5825_v53  ;;  %6338 = vmatpush1.bf16.msra.mxu1 %v6337_v56  ;;  %v9393_v17 = vsel %vm558_vm0, %v508_v39, 0.0  ;;  %v9407_v43 = vsel %vm558_vm0, %v525_v59, 0.0  ;;  %v11744_v5 = vpack.c.bf16 %v9228_v42, %v9226_v6  ;;  %v11745_v59 = vpack.c.bf16 %v9232_v30, %v9230_v62 }
 0x244   : > { %11732 = vst [vmem:[#allocation48_spill] sm:$0xff] %v9315_v45  ;;  %v9317_v26 = vld [vmem:[#allocation4 + $0x12e8] sm:$0xff]  ;;  %11733 = vst [vmem:[#allocation54_spill] sm:$0xff] %v9319_v49  ;;  %v9321_v14 = vld [vmem:[#allocation4 + $0x12f8] sm:$0xff]  ;;  %5828 = vmatprep.subr.bf16.mxu0 %v5827_v11  ;;  %1169 = vadd.xlane.f32.xlu1 %v1168_v13  ;;  %v11748_v42 = vpack.c.bf16 %v9236_v28, %v9234_v54  ;;  %v9442_v62 = vpop.xlane.xlu0 %1019 }
 0x245   : > { %11734 = vst [vmem:[#allocation67_spill] sm:$0xff] %v9321_v14  ;;  %v509_v34 = vld [vmem:[%s7055_s4 + $0x678] sm:$0xff]  ;;  %v9334_v58 = vld [vmem:[#allocation4 + $0x12e0] sm:$0xff]  ;;  %v9340_v16 = vld [vmem:[#allocation4 + $0x1308] sm:$0xff]  ;;  %6340 = vmatprep.subr.bf16.mxu1 %v6339_v18  ;;  %1220 = vadd.xlane.f32.xlu0 %v1219_v10  ;;  %v9464_v28 = vpop.xlane.xlu1 %971 }
 0x246   : > { %v9336_v21 = vld [vmem:[#allocation4 + $0x12d0] sm:$0xff]  ;;  %v9342_v41 = vld [vmem:[#allocation4 + $0x1328] sm:$0xff]  ;;  %v542_v19 = vld [vmem:[%s7055_s4 + $0x780] sm:$0xff]  ;;  %11736 = vst [vmem:[#allocation59_spill] sm:$0xff] %v9366_v37  ;;  %v9426_v18 = vsel %vm558_vm0, %v509_v34, 0.0 }
 0x247   : > { %v9338_v31 = vld [vmem:[#allocation4 + $0x12f0] sm:$0xff]  ;;  %v9354_v51 = vld [vmem:[#allocation4 + $0x1318] sm:$0xff]  ;;  %v543_v53 = vld [vmem:[%s7055_s4 + $0x788] sm:$0xff]  ;;  %11739 = vst [vmem:[#allocation60_spill] sm:$0xff] %v9387_v9  ;;  %5830 = vmatpush1.bf16.msra.mxu0 %v11744_v5  ;;  %6342 = vmatpush1.bf16.msra.mxu1 %v11745_v59  ;;  %v9445_v30 = vsel %vm558_vm0, %v542_v19, 0.0  ;;  %v11752_v19 = vpack.c.bf16 %v9247_v7, %v9245_v50  ;;  %v1471_v7 = vmul.f32 0.0625, %v9134_v44  ;;  %v11759_v44 = vpack.c.bf16 %v9251_v57, %v9249_v55 }
 0x248   : > { %v9356_v47 = vld [vmem:[#allocation4 + $0x1338] sm:$0xff]  ;;  %v9359_v56 = vld [vmem:[#allocation4 + $0x1300] sm:$0xff]  ;;  %v9374_v29 = vld [vmem:[#allocation4 + $0x1310] sm:$0xff]  ;;  %5832 = vmatprep.subr.bf16.mxu0 %v11748_v42  ;;  %v9450_v5 = vsel %vm558_vm0, %v543_v53, 0.0  ;;  %1172 = vadd.xlane.f32.xlu1 %v9325_v33  ;;  %v9511_v55 = vpop.xlane.xlu0 %1022 }
 0x249   : > { %v9361_v8 = vld [vmem:[#allocation4 + $0x1320] sm:$0xff]  ;;  %v9376_v2 = vld [vmem:[#allocation4 + $0x1330] sm:$0xff]  ;;  %v9379_v11 = vld [vmem:[#allocation4 + $0x1348] sm:$0xff]  ;;  %6344 = vmatprep.subr.bf16.mxu1 %v11752_v19  ;;  %v1472_v19 = vmul.f32 0.0625, %v9136_v23  ;;  %1223 = vadd.xlane.f32.xlu0 %v9347_v36 }
 0x24a   : > { %v526_v1 = vld [vmem:[%s7055_s4 + $0x700] sm:$0xff]  ;;  %v9381_v4 = vld [vmem:[#allocation4 + $0x1368] sm:$0xff]  ;;  %v9413_v9 = vld [vmem:[#allocation4 + $0x1350] sm:$0xff] }
 0x24b   : > { %v9383_v60 = vld [vmem:[#allocation4 + $0x1358] sm:$0xff]  ;;  %v527_v52 = vld [vmem:[%s7055_s4 + $0x708] sm:$0xff]  ;;  %11742 = vst [vmem:[#allocation62_spill] sm:$0xff] %v9413_v9  ;;  %v9415_v24 = vld [vmem:[#allocation4 + $0x1370] sm:$0xff]  ;;  %v9469_v42 = vsel %vm558_vm0, %v526_v1, 0.0  ;;  %5834 = vmatpush1.bf16.msra.mxu0 %v11759_v44 }
 0x24c   : > { %11737 = vst [vmem:[#allocation66_spill] sm:$0xff] %v9383_v60  ;;  %v9385_v37 = vld [vmem:[#allocation4 + $0x1378] sm:$0xff]  ;;  %v9400_v20 = vld [vmem:[#allocation4 + $0x1340] sm:$0xff]  ;;  %v544_v14 = vld [vmem:[%s7055_s4 + $0x790] sm:$0xff]  ;;  %v9484_v53 = vsel %vm558_vm0, %v527_v52, 0.0  ;;  %v1455_v60 = vmul.f32 0.0625, %v9153_v38  ;;  %v11760_v52 = vpack.c.bf16 %v9256_v40, %v9254_v3 }
 0x24d   : > { %11738 = vst [vmem:[#allocation57_spill] sm:$0xff] %v9385_v37  ;;  %11740 = vst [vmem:[#allocation58_spill] sm:$0xff] %v9400_v20  ;;  %v9402_v13 = vld [vmem:[#allocation4 + $0x1360] sm:$0xff]  ;;  %v9435_v45 = vld [vmem:[#allocation4 + $0x13a8] sm:$0xff]  ;;  %v1456_v37 = vmul.f32 0.0625, %v9155_v46  ;;  %v9514_v57 = vsel %vm558_vm0, %v544_v14, 0.0  ;;  %1226 = vadd.xlane.f32.xlu0 %v9390_v27  ;;  %v11788_v27 = vpack.c.bf16 %v9295_v0, %v9293_v63 }
 0x24e   : > { %11741 = vst [vmem:[#allocation41_spill] sm:$0xff] %v9402_v13  ;;  %11746 = vst [vmem:[#allocation65_spill] sm:$0xff] %v9435_v45  ;;  %v9437_v6 = vld [vmem:[#allocation4 + $0x1398] sm:$0xff]  ;;  %v9456_v10 = vld [vmem:[#allocation4 + $0x1380] sm:$0xff]  ;;  %6346 = vmatpush1.bf16.msra.mxu1 %v11760_v52 }
 0x24f   : > { %11747 = vst [vmem:[#allocation64_spill] sm:$0xff] %v9437_v6  ;;  %v9454_v49 = vld [vmem:[#allocation4 + $0x13b8] sm:$0xff]  ;;  %11750 = vst [vmem:[#allocation68_spill] sm:$0xff] %v9456_v10  ;;  %v9458_v54 = vld [vmem:[#allocation4 + $0x13a0] sm:$0xff] }
 0x250   : > { %11749 = vst [vmem:[#allocation50_spill] sm:$0xff] %v9454_v49  ;;  %11751 = vst [vmem:[#allocation69_spill] sm:$0xff] %v9458_v54  ;;  %v9475_v39 = vld [vmem:[#allocation4 + $0x1390] sm:$0xff]  ;;  %v9479_v50 = vld [vmem:[#allocation4 + $0x13c8] sm:$0xff] }
 0x251   : > { %11753 = vst [vmem:[#allocation70_spill] sm:$0xff] %v9475_v39  ;;  %v9477_v33 = vld [vmem:[#allocation4 + $0x13b0] sm:$0xff]  ;;  %11755 = vst [vmem:[#allocation72_spill] sm:$0xff] %v9479_v50  ;;  %v9488_v59 = vld [vmem:[#allocation4 + $0x13e8] sm:$0xff]  ;;  %1229 = vadd.xlane.f32.xlu0 %v9407_v43 }
 0x252   : > { %11754 = vst [vmem:[#allocation71_spill] sm:$0xff] %v9477_v33  ;;  %11756 = vst [vmem:[#allocation73_spill] sm:$0xff] %v9488_v59  ;;  %v9490_v15 = vld [vmem:[#allocation4 + $0x13d8] sm:$0xff]  ;;  %v11761_v20 = vld [vmem:[#allocation34_spill] sm:$0xff] }
 0x253   : > { %11757 = vst [vmem:[#allocation74_spill] sm:$0xff] %v9490_v15  ;;  %v9492_v34 = vld [vmem:[#allocation4 + $0x13f8] sm:$0xff]  ;;  %v1473_v13 = vmul.f32 0.0625, %v11761_v20  ;;  %11764 = vst [vmem:[#allocation34_spill] sm:$0xff] %v9514_v57  ;;  %v9520_v44 = vld [vmem:[#allocation4 + $0x13c0] sm:$0xff] }
 0x254   : > { %11758 = vst [vmem:[#allocation75_spill] sm:$0xff] %v9492_v34  ;;  %v11762_v38 = vld [vmem:[#allocation51_spill] sm:$0xff]  ;;  %v11765_v20 = vld [vmem:[#allocation33_spill] sm:$0xff]  ;;  %v9535_v23 = vld [vmem:[#allocation4 + $0x13e0] sm:$0xff] }
 0x255   : > { %v11763_v46 = vpack.c.bf16 %v9261_v25, %v11762_v38  ;;  %v1457_v52 = vmul.f32 0.0625, %v11765_v20  ;;  %v11766_v36 = vld [vmem:[#allocation59_spill] sm:$0xff]  ;;  %v11767_v1 = vld [vmem:[#allocation45_spill] sm:$0xff]  ;;  %v9537_v20 = vld [vmem:[#allocation4 + $0x13d0] sm:$0xff]  ;;  %1280 = vadd.xlane.f32.xlu0 %v9445_v30 }
 0x256   : > { %1175 = vadd.xlane.f32.xlu1 %v11766_v36  ;;  %v11768_v25 = vld [vmem:[#allocation43_spill] sm:$0xff]  ;;  %11770 = vst [vmem:[#allocation51_spill] sm:$0xff] %v9537_v20  ;;  %v9539_v36 = vld [vmem:[#allocation4 + $0x13f0] sm:$0xff]  ;;  %v11771_v10 = vld [vmem:[#allocation16_spill] sm:$0xff] }
 0x257   : > { %5836 = vmatprep.subr.bf16.mxu0 %v11763_v46  ;;  %v11769_v38 = vpack.c.bf16 %v11767_v1, %v11768_v25  ;;  %v9527_v46 = vpop.xlane.xlu1 %974  ;;  %v3616_v1 = vrot.slane %v1471_v7, %v11771_v10  ;;  %v11772_v25 = vld [vmem:[#allocation17_spill] sm:$0xff]  ;;  %v11773_v54 = vld [vmem:[#allocation32_spill] sm:$0xff]  ;;  %v3537_v40 = vrot.slane %v1455_v60, %v11771_v10  ;;  %v11775_v34 = vld [vmem:[#allocation39_spill] sm:$0xff]  ;;  %v11777_v7 = vpack.c.bf16 %v9274_v12, %v9272_v22 }
 0x258   : > { %v1474_v6 = vmul.f32 0.0625, %v11773_v54  ;;  %v11774_v49 = vld [vmem:[#allocation40_spill] sm:$0xff]  ;;  %v9545_v39 = vld [vmem:[#allocation4 + $0x1408] sm:$0xff]  ;;  %v3541_v15 = vrot.slane %v1456_v37, %v11772_v25  ;;  %v1475_v50 = vmul.f32 0.0625, %v11775_v34  ;;  %v11776_v59 = vld [vmem:[#allocation42_spill] sm:$0xff]  ;;  %v1026_v34 = vpop.xlane.xlu0 %1025 }
 0x259   : > { %6348 = vmatprep.subr.bf16.mxu1 %v11769_v38  ;;  %v3620_v38 = vrot.slane %v1472_v19, %v11772_v25  ;;  %v1458_v14 = vmul.f32 0.0625, %v11774_v49  ;;  %v9547_v3 = vld [vmem:[#allocation4 + $0x1428] sm:$0xff]  ;;  %v1459_v33 = vmul.f32 0.0625, %v11776_v59  ;;  %5838 = vmatpush1.bf16.msra.mxu0 %v11777_v7  ;;  %v11779_v54 = vld [vmem:[#allocation38_spill] sm:$0xff]  ;;  %v11782_v57 = vld [vmem:[#allocation44_spill] sm:$0xff] }
 0x25a   : > { %v11778_v19 = vld [vmem:[#allocation37_spill] sm:$0xff]  ;;  %v11781_v49 = vld [vmem:[#allocation18_spill] sm:$0xff]  ;;  %v1476_v9 = vmul.f32 0.0625, %v11782_v57  ;;  %v11786_v59 = vld [vmem:[#allocation35_spill] sm:$0xff]  ;;  %1178 = vadd.xlane.f32.xlu1 %v9393_v17  ;;  %1232 = vadd.xlane.f32.xlu0 %v9469_v42 }
 0x25b   : > { %v11780_v35 = vpack.c.bf16 %v11778_v19, %v11779_v54  ;;  %v3625_v45 = vrot.slane %v1473_v13, %v11781_v49  ;;  %v11783_v60 = vld [vmem:[#allocation46_spill] sm:$0xff]  ;;  %v11784_v37 = vld [vmem:[#allocation49_spill] sm:$0xff]  ;;  %v1460_v13 = vmul.f32 0.0625, %v11786_v59  ;;  %v3621_v54 = vsel %vm2881_vm1, %v3620_v38, %v3616_v1  ;;  %v11790_v22 = vld [vmem:[#allocation36_spill] sm:$0xff] }
 0x25c   : > { %v11785_v25 = vpack.c.bf16 %v11783_v60, %v11784_v37  ;;  %v11787_v7 = vld [vmem:[#allocation53_spill] sm:$0xff]  ;;  %v11789_v60 = vld [vmem:[#allocation19_spill] sm:$0xff]  ;;  %v1461_v59 = vmul.f32 0.0625, %v11790_v22  ;;  %v11791_v17 = vld [vmem:[#allocation20_spill] sm:$0xff] }
 0x25d   : > { %6350 = vmatpush1.bf16.msra.mxu1 %v11780_v35  ;;  %v3546_v35 = vrot.slane %v1457_v52, %v11781_v49  ;;  %v1477_v57 = vmul.f32 0.0625, %v11787_v7  ;;  %v3630_v37 = vrot.slane %v1474_v6, %v11789_v60  ;;  %v3551_v52 = vrot.slane %v1458_v14, %v11789_v60  ;;  %v528_v12 = vld [vmem:[%s7055_s4 + $0x710] sm:$0xff]  ;;  %v11792_v63 = vld [vmem:[#allocation55_spill] sm:$0xff]  ;;  %v11794_v20 = vld [vmem:[#allocation56_spill] sm:$0xff] }
 0x25e   : > { %5840 = vmatprep.subr.bf16.mxu0 %v11785_v25  ;;  %6352 = vmatprep.subr.bf16.mxu1 %v11788_v27  ;;  %v978_v25 = vpop.xlane.xlu1 %977  ;;  %v3542_v7 = vsel %vm2881_vm1, %v3541_v15, %v3537_v40  ;;  %v3635_v49 = vrot.slane %v1475_v50, %v11791_v17  ;;  %v3556_v0 = vrot.slane %v1459_v33, %v11791_v17  ;;  %v1478_v27 = vmul.f32 0.0625, %v11792_v63  ;;  %v11793_v10 = vld [vmem:[#allocation47_spill] sm:$0xff]  ;;  %v11797_v1 = vld [vmem:[#allocation21_spill] sm:$0xff]  ;;  %v11798_v22 = vld [vmem:[#allocation52_spill] sm:$0xff] }
 0x25f   : > { %v11795_v19 = vpack.c.bf16 %v11793_v10, %v11794_v20  ;;  %v11796_v6 = vpack.c.bf16 %v9312_v48, %v9310_v32  ;;  %v3626_v14 = vsel %vm2888_vm2, %v3625_v45, %v3621_v54  ;;  %v3640_v38 = vrot.slane %v1476_v9, %v11797_v1  ;;  %v11799_v40 = vld [vmem:[#allocation63_spill] sm:$0xff]  ;;  %v11800_v33 = vld [vmem:[#allocation48_spill] sm:$0xff]  ;;  %v1029_v10 = vpop.xlane.xlu0 %1028  ;;  %v11802_v32 = vld [vmem:[#allocation22_spill] sm:$0xff]  ;;  %1181 = vadd.xlane.f32.xlu1 %v9426_v18 }
 0x260   : > { %v1462_v15 = vmul.f32 0.0625, %v11798_v22  ;;  %v1479_v50 = vmul.f32 0.0625, %v11799_v40  ;;  %v11801_v63 = vpack.c.bf16 %v9317_v26, %v11800_v33  ;;  %v3547_v20 = vsel %vm2888_vm2, %v3546_v35, %v3542_v7  ;;  %v11803_v9 = vld [vmem:[#allocation67_spill] sm:$0xff]  ;;  %v11804_v45 = vld [vmem:[#allocation54_spill] sm:$0xff]  ;;  %v11806_v7 = vld [vmem:[#allocation60_spill] sm:$0xff] }
 0x261   : > { %5842 = vmatpush1.bf16.msra.mxu0 %v11795_v19  ;;  %6354 = vmatpush1.bf16.msra.mxu1 %v11796_v6  ;;  %v3561_v48 = vrot.slane %v1460_v13, %v11797_v1  ;;  %v3645_v19 = vrot.slane %v1477_v57, %v11802_v32  ;;  %v11805_v54 = vpack.c.bf16 %v11803_v9, %v11804_v45  ;;  %v9609_v43 = vsel %vm558_vm0, %v528_v12, 0.0  ;;  %v11807_v40 = vld [vmem:[#allocation23_spill] sm:$0xff]  ;;  %v9906_v1 = vld [vmem:[#allocation4 + $0x1728] sm:$0xff] }
 0x262   : > { %5844 = vmatprep.subr.bf16.mxu0 %v11801_v63  ;;  %v981_v6 = vpop.xlane.xlu1 %980  ;;  %v3631_v26 = vsel %vm2895_vm3, %v3630_v37, %v3626_v14  ;;  %v3552_v22 = vsel %vm2895_vm3, %v3551_v52, %v3547_v20  ;;  %v3566_v35 = vrot.slane %v1461_v59, %v11802_v32  ;;  %v1463_v13 = vmul.f32 0.0625, %v11806_v7  ;;  %v11810_v14 = vld [vmem:[#allocation24_spill] sm:$0xff]  ;;  %v11813_v20 = vld [vmem:[#allocation25_spill] sm:$0xff]  ;;  %v529_v42 = vld [vmem:[%s7055_s4 + $0x718] sm:$0xff] }
 0x263   : > { %6356 = vmatprep.subr.bf16.mxu1 %v11805_v54  ;;  %v3636_v57 = vsel %vm2902_vm4, %v3635_v49, %v3631_v26  ;;  %v3557_v18 = vsel %vm2902_vm4, %v3556_v0, %v3552_v22  ;;  %v3650_v33 = vrot.slane %v1478_v27, %v11807_v40  ;;  %v1480_v63 = vmul.f32 0.0625, %v9442_v62  ;;  %1283 = vadd.xlane.f32.xlu1 %v9450_v5  ;;  %v11819_v26 = vld [vmem:[#allocation57_spill] sm:$0xff]  ;;  %v11820_v22 = vld [vmem:[#allocation66_spill] sm:$0xff]  ;;  %v9887_v32 = vld [vmem:[#allocation4 + $0x16c0] sm:$0xff] }
 0x264   : > { %v11808_v12 = vpack.c.bf16 %v9334_v58, %v9332_v61  ;;  %v11809_v37 = vpack.c.bf16 %v9338_v31, %v9336_v21  ;;  %v3641_v52 = vsel %vm2909_vm5, %v3640_v38, %v3636_v57  ;;  %v3571_v59 = vrot.slane %v1462_v15, %v11807_v40  ;;  %v1032_v61 = vpop.xlane.xlu0 %1031  ;;  %v9885_v40 = vld [vmem:[#allocation4 + $0x16f8] sm:$0xff]  ;;  %v9931_v60 = vld [vmem:[#allocation4 + $0x1748] sm:$0xff] }
 0x265   : > { %v3655_v49 = vrot.slane %v1479_v50, %v11810_v14  ;;  %v1481_v0 = vmul.f32 0.0625, %v9511_v55  ;;  %v11811_v62 = vpack.c.bf16 %v9342_v41, %v9340_v16  ;;  %v3562_v58 = vsel %vm2909_vm5, %v3561_v48, %v3557_v18  ;;  %v541_v17 = vld [vmem:[%s7055_s4 + $0x778] sm:$0xff] }
 0x266   : > { %5846 = vmatpush1.bf16.msra.mxu0 %v11808_v12  ;;  %6358 = vmatpush1.bf16.msra.mxu1 %v11809_v37  ;;  %v3646_v31 = vsel %vm2916_vm6, %v3645_v19, %v3641_v52  ;;  %v1464_v21 = vmul.f32 0.0625, %v9464_v28  ;;  %v1482_v27 = vmul.f32 0.0625, %v1026_v34  ;;  %v11812_v38 = vpack.c.bf16 %v9356_v47, %v9354_v51  ;;  %v984_v55 = vpop.xlane.xlu1 %983  ;;  %v11823_v12 = vld [vmem:[#allocation29_spill] sm:$0xff] }
 0x267   : > { %5848 = vmatprep.subr.bf16.mxu0 %v11811_v62  ;;  %v3567_v30 = vsel %vm2916_vm6, %v3566_v35, %v3562_v58  ;;  %v3576_v16 = vrot.slane %v1463_v13, %v11810_v14  ;;  %v1465_v41 = vmul.f32 0.0625, %v9527_v46  ;;  %v1483_v15 = vmul.f32 0.0625, %v1029_v10  ;;  %v11816_v10 = vld [vmem:[#allocation26_spill] sm:$0xff]  ;;  %1235 = vadd.xlane.f32.xlu1 %v9484_v53  ;;  %v11824_v52 = vld [vmem:[#allocation41_spill] sm:$0xff] }
 0x268   : > { %6360 = vmatprep.subr.bf16.mxu1 %v11812_v38  ;;  %v3651_v50 = vsel %vm2923_vm7, %v3650_v33, %v3646_v31  ;;  %v3660_v28 = vrot.slane %v1480_v63, %v11813_v20  ;;  %v1466_v34 = vmul.f32 0.0625, %v978_v25  ;;  %v1484_v48 = vmul.f32 0.0625, %v1032_v61  ;;  %v11827_v53 = vld [vmem:[#allocation62_spill] sm:$0xff]  ;;  %v11831_v38 = vld [vmem:[#allocation65_spill] sm:$0xff] }
 0x269   : > { %v11814_v47 = vpack.c.bf16 %v9361_v8, %v9359_v56  ;;  %v11815_v51 = vpack.c.bf16 %v9376_v2, %v9374_v29  ;;  %v3572_v5 = vsel %vm2923_vm7, %v3571_v59, %v3567_v30  ;;  %v3656_v46 = vsel %vm2930_vm8, %v3655_v49, %v3651_v50  ;;  %v1035_v8 = vpop.xlane.xlu0 %1034  ;;  %v545_v56 = vld [vmem:[%s7055_s4 + $0x798] sm:$0xff]  ;;  %v9873_v14 = vld [vmem:[#allocation4 + $0x16c8] sm:$0xff] }
 0x26a   : > { %v3665_v19 = vrot.slane %v1481_v0, %v11816_v10  ;;  %v1467_v9 = vmul.f32 0.0625, %v981_v6  ;;  %v11817_v25 = vpack.c.bf16 %v9381_v4, %v9379_v11  ;;  %v3581_v45 = vrot.slane %v1464_v21, %v11813_v20  ;;  %v11818_v2 = vld [vmem:[#allocation27_spill] sm:$0xff]  ;;  %v987_v7 = vpop.xlane.xlu1 %986  ;;  %v11822_v11 = vld [vmem:[#allocation28_spill] sm:$0xff]  ;;  %v11825_v59 = vld [vmem:[#allocation58_spill] sm:$0xff]  ;;  %11862 = vst [vmem:[#allocation37_spill] sm:$0xff] %v9873_v14 }
 0x26b   : > { %5850 = vmatpush1.bf16.msra.mxu0 %v11814_v47  ;;  %6362 = vmatpush1.bf16.msra.mxu1 %v11815_v51  ;;  %v3670_v29 = vrot.slane %v1482_v27, %v11818_v2  ;;  %v1468_v54 = vmul.f32 0.0625, %v984_v55  ;;  %v11821_v35 = vpack.c.bf16 %v11819_v26, %v11820_v22  ;;  %v1485_v6 = vmul.f32 0.0625, %v1035_v8  ;;  %v11829_v31 = vld [vmem:[#allocation30_spill] sm:$0xff]  ;;  %v11832_v55 = vld [vmem:[#allocation61_spill] sm:$0xff]  ;;  %v2232_v8 = vld [vmem:[#allocation4 + $0x1418] sm:$0xff] }
 0x26c   : > { %5852 = vmatprep.subr.bf16.mxu0 %v11817_v25  ;;  %v3577_v13 = vsel %vm2930_vm8, %v3576_v16, %v3572_v5  ;;  %v3586_v4 = vrot.slane %v1465_v41, %v11816_v10  ;;  %v3675_v57 = vrot.slane %v1483_v15, %v11822_v11  ;;  %v1469_v18 = vmul.f32 0.0625, %v987_v7  ;;  %v11830_v27 = vld [vmem:[#allocation34_spill] sm:$0xff]  ;;  %1238 = vadd.xlane.f32.xlu1 %v9609_v43  ;;  %v546_v25 = vld [vmem:[%s7055_s4 + $0x7a0] sm:$0xff]  ;;  %v11838_v26 = vld [vmem:[#allocation69_spill] sm:$0xff] }
 0x26d   : > { %6364 = vmatprep.subr.bf16.mxu1 %v11821_v35  ;;  %v3661_v33 = vsel %vm2937_vm9, %v3660_v28, %v3656_v46  ;;  %v3591_v63 = vrot.slane %v1466_v34, %v11818_v2  ;;  %v3680_v37 = vrot.slane %v1484_v48, %v11823_v12  ;;  %v11826_v49 = vpack.c.bf16 %v11824_v52, %v11825_v59  ;;  %v1038_v16 = vpop.xlane.xlu0 %1037  ;;  %v11834_v28 = vld [vmem:[#allocation50_spill] sm:$0xff]  ;;  %v11835_v34 = vld [vmem:[#allocation64_spill] sm:$0xff]  ;;  %v11841_v43 = vld [vmem:[#allocation71_spill] sm:$0xff] }
 0x26e   : > { %v11828_v0 = vpack.c.bf16 %v9415_v24, %v11827_v53  ;;  %v1288_v62 = vsel %vm558_vm0, %v545_v56, 0.0  ;;  %v3666_v61 = vsel %vm2944_vm10, %v3665_v19, %v3661_v33  ;;  %v3596_v58 = vrot.slane %v1467_v9, %v11822_v11  ;;  %1286 = vadd.xlane.f32.xlu0 %v11830_v27  ;;  %v990_v51 = vpop.xlane.xlu1 %989  ;;  %v2236_v56 = vld [vmem:[#allocation4 + $0x1438] sm:$0xff]  ;;  %v11839_v22 = vld [vmem:[#allocation68_spill] sm:$0xff]  ;;  %v11844_v33 = vld [vmem:[#allocation73_spill] sm:$0xff] }
 0x26f   : > { %5854 = vmatpush1.bf16.msra.mxu0 %v11826_v49  ;;  %v3685_v21 = vrot.slane %v1485_v6, %v11829_v31  ;;  %v11833_v30 = vpack.c.bf16 %v11831_v38, %v11832_v55  ;;  %v1240_v41 = vsel %vm558_vm0, %v529_v42, 0.0  ;;  %v3582_v24 = vsel %vm2937_vm9, %v3581_v45, %v3577_v13  ;;  %v11842_v6 = vld [vmem:[#allocation70_spill] sm:$0xff]  ;;  %v530_v13 = vld [vmem:[%s7055_s4 + $0x720] sm:$0xff]  ;;  %v9978_v14 = vld [vmem:[#allocation4 + $0x17a8] sm:$0xff] }
 0x270   : > { %6366 = vmatpush1.bf16.msra.mxu1 %v11828_v0  ;;  %v3671_v15 = vsel %vm2951_vm11, %v3670_v29, %v3666_v61  ;;  %v3601_v50 = vrot.slane %v1468_v54, %v11823_v12  ;;  %v11836_v48 = vpack.c.bf16 %v11834_v28, %v11835_v34  ;;  %v1486_v47 = vmul.f32 0.0625, %v1038_v16  ;;  %v11837_v29 = vld [vmem:[#allocation31_spill] sm:$0xff]  ;;  %v2233_v53 = vld [vmem:[#allocation4 + $0x1420] sm:$0xff]  ;;  %v2231_v0 = vld [vmem:[#allocation4 + $0x1410] sm:$0xff]  ;;  %1241 = vadd.xlane.f32.xlu1 %v1240_v41 }
 0x271   : > { %5856 = vmatprep.subr.bf16.mxu0 %v11833_v30  ;;  %v3587_v5 = vsel %vm2944_vm10, %v3586_v4, %v3582_v24  ;;  %v3676_v46 = vsel %vm2958_vm12, %v3675_v57, %v3671_v15  ;;  %v3606_v19 = vrot.slane %v1469_v18, %v11829_v31  ;;  %v1470_v9 = vmul.f32 0.0625, %v990_v51  ;;  %v2229_v4 = vld [vmem:[#allocation4 + $0x1400] sm:$0xff]  ;;  %v9713_v59 = vpop.xlane.xlu0 %1088  ;;  %v2235_v61 = vld [vmem:[#allocation4 + $0x1430] sm:$0xff]  ;;  %v2242_v24 = vld [vmem:[#allocation4 + $0x1468] sm:$0xff] }
 0x272   : > { %6368 = vmatprep.subr.bf16.mxu1 %v11836_v48  ;;  %v3592_v45 = vsel %vm2951_vm11, %v3591_v63, %v3587_v5  ;;  %v3690_v54 = vrot.slane %v1486_v47, %v11837_v29  ;;  %v11840_v35 = vpack.c.bf16 %v11838_v26, %v11839_v22  ;;  %v11843_v7 = vpack.c.bf16 %v11841_v43, %v11842_v6  ;;  %v11845_v63 = vld [vmem:[#allocation72_spill] sm:$0xff]  ;;  %v11848_v27 = vld [vmem:[#allocation74_spill] sm:$0xff]  ;;  %v2240_v41 = vld [vmem:[#allocation4 + $0x1458] sm:$0xff] }
 0x273   : > { %v3681_v42 = vsel %vm2965_vm13, %v3680_v37, %v3676_v46  ;;  %v3597_v57 = vsel %vm2958_vm12, %v3596_v58, %v3592_v45  ;;  %v3611_v18 = vrot.slane %v1470_v9, %v11837_v29  ;;  %1289 = vadd.xlane.f32.xlu0 %v1288_v62  ;;  %v11846_v52 = vpack.c.bf16 %v11844_v33, %v11845_v63  ;;  %v11847_v37 = vld [vmem:[#allocation75_spill] sm:$0xff]  ;;  %v9719_v58 = vpop.xlane.xlu1 %1091  ;;  %v547_v34 = vld [vmem:[%s7055_s4 + $0x7a8] sm:$0xff]  ;;  %v2239_v45 = vld [vmem:[#allocation4 + $0x1450] sm:$0xff] }
 0x274   : > { %5858 = vmatpush1.bf16.msra.mxu0 %v11840_v35  ;;  %6370 = vmatpush1.bf16.msra.mxu1 %v11843_v7  ;;  %v3686_v49 = vsel %vm2972_vm14, %v3685_v21, %v3681_v42  ;;  %v11849_v38 = vpack.c.bf16 %v11847_v37, %v11848_v27  ;;  %v1291_v55 = vsel %vm558_vm0, %v546_v25, 0.0  ;;  %v6375_v30 = vpack.c.bf16 %v2236_v56, %v2232_v8  ;;  %v2238_v21 = vld [vmem:[#allocation4 + $0x1448] sm:$0xff]  ;;  %v2244_v48 = vld [vmem:[#allocation4 + $0x1478] sm:$0xff]  ;;  %v2237_v8 = vld [vmem:[#allocation4 + $0x1440] sm:$0xff] }
 0x275   : > { %5860 = vmatprep.subr.bf16.mxu0 %v11846_v52  ;;  %v3691_v62 = vsel %vm2979_vm15, %v3690_v54, %v3686_v49  ;;  %v3602_v16 = vsel %vm2965_vm13, %v3601_v50, %v3597_v57  ;;  %v1243_v15 = vsel %vm558_vm0, %v530_v13, 0.0  ;;  %v11850_v47 = vpack.c.bf16 %v9535_v23, %v9520_v44  ;;  %v11851_v51 = vld [vmem:[#allocation51_spill] sm:$0xff]  ;;  %v531_v25 = vld [vmem:[%s7055_s4 + $0x728] sm:$0xff]  ;;  %v9738_v56 = vpop.xlane.xlu0 %1040  ;;  %v2243_v54 = vld [vmem:[#allocation4 + $0x1470] sm:$0xff] }
 0x276   : > { %6372 = vmatprep.subr.bf16.mxu1 %v11849_v38  ;;  %4530 = vmatprep.mubr.f32.mxu0 %v3691_v62  ;;  %v3607_v28 = vsel %vm2972_vm14, %v3606_v19, %v3602_v16  ;;  %v11852_v5 = vpack.c.bf16 %v9539_v36, %v11851_v51  ;;  %v5865_v46 = vpack.c.bf16 %v2233_v53, %v2229_v4  ;;  %v2241_v44 = vld [vmem:[#allocation4 + $0x1460] sm:$0xff]  ;;  %v1294_v26 = vsel %vm558_vm0, %v547_v34, 0.0  ;;  %v2246_v35 = vld [vmem:[#allocation4 + $0x1488] sm:$0xff]  ;;  %v2248_v6 = vld [vmem:[#allocation4 + $0x1498] sm:$0xff] }
 0x277   : > { %5098 = vmatprep.mubr.f32.mxu1 %v3691_v62  ;;  %v3612_v50 = vsel %vm2979_vm15, %v3611_v18, %v3607_v28  ;;  %v6377_v9 = vpack.c.bf16 %v2235_v61, %v2231_v0  ;;  %1292 = vadd.xlane.f32.xlu0 %v1291_v55  ;;  %v11853_v19 = vpack.c.bf16 %v9547_v3, %v9545_v39  ;;  %v9740_v36 = vpop.xlane.xlu1 %1043  ;;  %v2250_v43 = vld [vmem:[#allocation4 + $0x14a8] sm:$0xff]  ;;  %v1246_v39 = vsel %vm558_vm0, %v531_v25, 0.0  ;;  %v2252_v7 = vld [vmem:[#allocation4 + $0x14b8] sm:$0xff]  ;;  %v2245_v57 = vld [vmem:[#allocation4 + $0x1480] sm:$0xff] }
 0x278   : > { %5862 = vmatpush1.bf16.msra.mxu0 %v11850_v47  ;;  %6374 = vmatpush1.bf16.msra.mxu1 %v11852_v5  ;;  %v5867_v23 = vpack.c.bf16 %v2242_v24, %v2238_v21  ;;  %v6379_v22 = vpack.c.bf16 %v2244_v48, %v2240_v41  ;;  %v548_v3 = vld [vmem:[%s7055_s4 + $0x7b0] sm:$0xff]  ;;  %v5869_v42 = vpack.c.bf16 %v2241_v44, %v2237_v8  ;;  %v2249_v63 = vld [vmem:[#allocation4 + $0x14a0] sm:$0xff]  ;;  %v549_v62 = vld [vmem:[%s7055_s4 + $0x7b8] sm:$0xff] }
 0x279   : > { %5864 = vmatprep.subr.bf16.mxu0 %v11853_v19  ;;  %6376 = vmatprep.subr.bf16.mxu1 %v6375_v30  ;;  %v6381_v13 = vpack.c.bf16 %v2243_v54, %v2239_v45  ;;  %v532_v4 = vld [vmem:[%s7055_s4 + $0x730] sm:$0xff]  ;;  %v9746_v18 = vpop.xlane.xlu0 %1094  ;;  %v5871_v33 = vpack.c.bf16 %v2250_v43, %v2246_v35  ;;  %v1297_v0 = vsel %vm558_vm0, %v548_v3, 0.0  ;;  %v6383_v61 = vpack.c.bf16 %v2252_v7, %v2248_v6  ;;  %v2256_v55 = vld [vmem:[#allocation4 + $0x14d8] sm:$0xff]  ;;  %v2257_v41 = vld [vmem:[#allocation4 + $0x14e0] sm:$0xff] }
 0x27a   : > { %1244 = vadd.xlane.f32.xlu1 %v1243_v15  ;;  %v2247_v52 = vld [vmem:[#allocation4 + $0x1490] sm:$0xff]  ;;  %v2254_v37 = vld [vmem:[#allocation4 + $0x14c8] sm:$0xff]  ;;  %v1249_v38 = vsel %vm558_vm0, %v532_v4, 0.0  ;;  %v2260_v30 = vld [vmem:[#allocation4 + $0x14f8] sm:$0xff]  ;;  %v5873_v16 = vpack.c.bf16 %v2249_v63, %v2245_v57  ;;  %v1300_v5 = vsel %vm558_vm0, %v549_v62, 0.0 }
 0x27b   : > { %4531 = vmatmul.mubr.f32.vlgmr.msra.gmra.mrb[0].mxu0 %v3612_v50  ;;  %5099 = vmatmul.mubr.f32.vlgmr.msra.gmra.mrb[0].mxu1 %v3612_v50  ;;  %v2251_v49 = vld [vmem:[#allocation4 + $0x14b0] sm:$0xff]  ;;  %v9748_v53 = vpop.xlane.xlu1 %1046  ;;  %v2258_v27 = vld [vmem:[#allocation4 + $0x14e8] sm:$0xff]  ;;  %v2253_v15 = vld [vmem:[#allocation4 + $0x14c0] sm:$0xff]  ;;  %v6387_v50 = vpack.c.bf16 %v2260_v30, %v2256_v55 }
 0x27c   : > { %5866 = vmatpush1.bf16.msra.mxu0 %v5865_v46  ;;  %6378 = vmatpush1.bf16.msra.mxu1 %v6377_v9  ;;  %v6385_v21 = vpack.c.bf16 %v2251_v49, %v2247_v52  ;;  %v533_v24 = vld [vmem:[%s7055_s4 + $0x738] sm:$0xff]  ;;  %v5875_v34 = vpack.c.bf16 %v2258_v27, %v2254_v37  ;;  %v2262_v46 = vld [vmem:[#allocation4 + $0x1508] sm:$0xff]  ;;  %v550_v8 = vld [vmem:[%s7055_s4 + $0x7c0] sm:$0xff]  ;;  %v5877_v44 = vpack.c.bf16 %v2257_v41, %v2253_v15 }
 0x27d   : > { %1295 = vadd.xlane.f32.xlu0 %v1294_v26  ;;  %5868 = vmatprep.subr.bf16.mxu0 %v5867_v23  ;;  %v9754_v28 = vpop.xlane.xlu0 %1097  ;;  %v2255_v48 = vld [vmem:[#allocation4 + $0x14d0] sm:$0xff]  ;;  %v2266_v9 = vld [vmem:[#allocation4 + $0x1528] sm:$0xff]  ;;  %v1252_v25 = vsel %vm558_vm0, %v533_v24, 0.0  ;;  %v2264_v19 = vld [vmem:[#allocation4 + $0x1518] sm:$0xff]  ;;  %v1303_v6 = vsel %vm558_vm0, %v550_v8, 0.0 }
 0x27e   : > { %1247 = vadd.xlane.f32.xlu1 %v1246_v39  ;;  %6380 = vmatprep.subr.bf16.mxu1 %v6379_v22  ;;  %v2259_v47 = vld [vmem:[#allocation4 + $0x14f0] sm:$0xff]  ;;  %v2268_v23 = vld [vmem:[#allocation4 + $0x1538] sm:$0xff]  ;;  %v2261_v26 = vld [vmem:[#allocation4 + $0x1500] sm:$0xff]  ;;  %v5879_v22 = vpack.c.bf16 %v2266_v9, %v2262_v46 }
 0x27f   : > { %v9756_v51 = vpop.xlane.xlu1 %1049  ;;  %v6389_v45 = vpack.c.bf16 %v2259_v47, %v2255_v48  ;;  %v534_v54 = vld [vmem:[%s7055_s4 + $0x740] sm:$0xff]  ;;  %v2263_v43 = vld [vmem:[#allocation4 + $0x1510] sm:$0xff]  ;;  %v6391_v7 = vpack.c.bf16 %v2268_v23, %v2264_v19  ;;  %v2278_v30 = vld [vmem:[#allocation4 + $0x1588] sm:$0xff] }
 0x280   : > { %5870 = vmatpush1.bf16.msra.mxu0 %v5869_v42  ;;  %6382 = vmatpush1.bf16.msra.mxu1 %v6381_v13  ;;  %v2265_v35 = vld [vmem:[#allocation4 + $0x1520] sm:$0xff]  ;;  %v2267_v39 = vld [vmem:[#allocation4 + $0x1530] sm:$0xff]  ;;  %v2270_v42 = vld [vmem:[#allocation4 + $0x1548] sm:$0xff]  ;;  %v1255_v57 = vsel %vm558_vm0, %v534_v54, 0.0 }
 0x281   : > { %1298 = vadd.xlane.f32.xlu0 %v1297_v0  ;;  %5872 = vmatprep.subr.bf16.mxu0 %v5871_v33  ;;  %v9762_v3 = vpop.xlane.xlu0 %1100  ;;  %v2274_v13 = vld [vmem:[#allocation4 + $0x1568] sm:$0xff]  ;;  %v2272_v63 = vld [vmem:[#allocation4 + $0x1558] sm:$0xff]  ;;  %v5881_v49 = vpack.c.bf16 %v2265_v35, %v2261_v26  ;;  %v6393_v0 = vpack.c.bf16 %v2267_v39, %v2263_v43  ;;  %v2269_v37 = vld [vmem:[#allocation4 + $0x1540] sm:$0xff] }
 0x282   : > { %1250 = vadd.xlane.f32.xlu1 %v1249_v38  ;;  %6384 = vmatprep.subr.bf16.mxu1 %v6383_v61  ;;  %v551_v33 = vld [vmem:[%s7055_s4 + $0x7c8] sm:$0xff]  ;;  %v2276_v52 = vld [vmem:[#allocation4 + $0x1578] sm:$0xff]  ;;  %v5883_v38 = vpack.c.bf16 %v2274_v13, %v2270_v42  ;;  %v2271_v62 = vld [vmem:[#allocation4 + $0x1550] sm:$0xff] }
 0x283   : > { %v9765_v4 = vpop.xlane.xlu1 %1052  ;;  %v535_v61 = vld [vmem:[%s7055_s4 + $0x748] sm:$0xff]  ;;  %v2275_v55 = vld [vmem:[#allocation4 + $0x1570] sm:$0xff]  ;;  %v6395_v24 = vpack.c.bf16 %v2276_v52, %v2272_v63  ;;  %v2280_v41 = vld [vmem:[#allocation4 + $0x1598] sm:$0xff] }
 0x284   : > { %5874 = vmatpush1.bf16.msra.mxu0 %v5873_v16  ;;  %6386 = vmatpush1.bf16.msra.mxu1 %v6385_v21  ;;  %11854 = vst [vmem:[#allocation33_spill] sm:$0xff] %v9765_v4  ;;  %v2273_v27 = vld [vmem:[#allocation4 + $0x1560] sm:$0xff]  ;;  %v1306_v21 = vsel %vm558_vm0, %v551_v33, 0.0  ;;  %v552_v15 = vld [vmem:[%s7055_s4 + $0x7d0] sm:$0xff]  ;;  %v1258_v47 = vsel %vm558_vm0, %v535_v61, 0.0  ;;  %v9784_v26 = vld [vmem:[#allocation4 + $0x15d8] sm:$0xff] }
 0x285   : > { %1301 = vadd.xlane.f32.xlu0 %v1300_v5  ;;  %5876 = vmatprep.subr.bf16.mxu0 %v5875_v34  ;;  %v9770_v16 = vpop.xlane.xlu0 %1103  ;;  %v2282_v34 = vld [vmem:[#allocation4 + $0x15a8] sm:$0xff]  ;;  %v9778_v46 = vld [vmem:[#allocation4 + $0x1580] sm:$0xff]  ;;  %v5885_v9 = vpack.c.bf16 %v2273_v27, %v2269_v37  ;;  %v2279_v19 = vld [vmem:[#allocation4 + $0x1590] sm:$0xff]  ;;  %v1309_v35 = vsel %vm558_vm0, %v552_v15, 0.0 }
 0x286   : > { %1253 = vadd.xlane.f32.xlu1 %v1252_v25  ;;  %6388 = vmatprep.subr.bf16.mxu1 %v6387_v50  ;;  %11855 = vst [vmem:[#allocation59_spill] sm:$0xff] %v9770_v16  ;;  %v536_v5 = vld [vmem:[%s7055_s4 + $0x750] sm:$0xff]  ;;  %v2284_v50 = vld [vmem:[#allocation4 + $0x15b8] sm:$0xff]  ;;  %v6397_v25 = vpack.c.bf16 %v2275_v55, %v2271_v62  ;;  %v2281_v8 = vld [vmem:[#allocation4 + $0x15a0] sm:$0xff] }
 0x287   : > { %v9774_v48 = vpop.xlane.xlu1 %1055  ;;  %v2283_v23 = vld [vmem:[#allocation4 + $0x15b0] sm:$0xff]  ;;  %v9782_v54 = vld [vmem:[#allocation4 + $0x15e8] sm:$0xff]  ;;  %v6399_v43 = vpack.c.bf16 %v2284_v50, %v2280_v41  ;;  %v1261_v13 = vsel %vm558_vm0, %v536_v5, 0.0  ;;  %v9798_v33 = vld [vmem:[#allocation4 + $0x15e0] sm:$0xff] }
 0x288   : > { %5878 = vmatpush1.bf16.msra.mxu0 %v5877_v44  ;;  %6390 = vmatpush1.bf16.msra.mxu1 %v6389_v45  ;;  %11856 = vst [vmem:[#allocation45_spill] sm:$0xff] %v9774_v48  ;;  %v5887_v44 = vpack.c.bf16 %v2282_v34, %v2278_v30  ;;  %v9780_v45 = vld [vmem:[#allocation4 + $0x15c8] sm:$0xff]  ;;  %v553_v39 = vld [vmem:[%s7055_s4 + $0x7d8] sm:$0xff]  ;;  %v554_v61 = vld [vmem:[%s7055_s4 + $0x7e0] sm:$0xff] }
 0x289   : > { %1304 = vadd.xlane.f32.xlu0 %v1303_v6  ;;  %5880 = vmatprep.subr.bf16.mxu0 %v5879_v22  ;;  %v9786_v22 = vpop.xlane.xlu0 %1106  ;;  %v537_v6 = vld [vmem:[%s7055_s4 + $0x758] sm:$0xff]  ;;  %v9806_v37 = vld [vmem:[#allocation4 + $0x1608] sm:$0xff]  ;;  %v5891_v55 = vpack.c.bf16 %v9782_v54, %v9780_v45  ;;  %v538_v30 = vld [vmem:[%s7055_s4 + $0x760] sm:$0xff]  ;;  %v1312_v50 = vsel %vm558_vm0, %v553_v39, 0.0 }
 0x28a   : > { %1256 = vadd.xlane.f32.xlu1 %v1255_v57  ;;  %6392 = vmatprep.subr.bf16.mxu1 %v6391_v7  ;;  %11857 = vst [vmem:[#allocation43_spill] sm:$0xff] %v9786_v22  ;;  %v9791_v7 = vld [vmem:[#allocation4 + $0x15f8] sm:$0xff]  ;;  %v9796_v57 = vld [vmem:[#allocation4 + $0x15c0] sm:$0xff]  ;;  %v9800_v63 = vld [vmem:[#allocation4 + $0x15d0] sm:$0xff]  ;;  %v1264_v54 = vsel %vm558_vm0, %v537_v6, 0.0 }
 0x28b   : > { %v9793_v42 = vpop.xlane.xlu1 %1058  ;;  %v9802_v52 = vld [vmem:[#allocation4 + $0x15f0] sm:$0xff]  ;;  %v9808_v27 = vld [vmem:[#allocation4 + $0x1628] sm:$0xff]  ;;  %v9812_v62 = vld [vmem:[#allocation4 + $0x1638] sm:$0xff]  ;;  %v5893_v31 = vpack.c.bf16 %v9798_v33, %v9796_v57  ;;  %v1315_v57 = vsel %vm558_vm0, %v554_v61, 0.0 }
 0x28c   : > { %5882 = vmatpush1.bf16.msra.mxu0 %v5881_v49  ;;  %6394 = vmatpush1.bf16.msra.mxu1 %v6393_v0  ;;  %11858 = vst [vmem:[#allocation32_spill] sm:$0xff] %v9793_v42  ;;  %v5889_v49 = vpack.c.bf16 %v2281_v8, %v9778_v46  ;;  %v6401_v0 = vpack.c.bf16 %v2283_v23, %v2279_v19  ;;  %v9821_v15 = vld [vmem:[#allocation4 + $0x1610] sm:$0xff]  ;;  %v9825_v41 = vld [vmem:[#allocation4 + $0x1648] sm:$0xff]  ;;  %v9836_v8 = vld [vmem:[#allocation4 + $0x1658] sm:$0xff] }
 0x28d   : > { %1307 = vadd.xlane.f32.xlu0 %v1306_v21  ;;  %5884 = vmatprep.subr.bf16.mxu0 %v5883_v38  ;;  %v9810_v38 = vld [vmem:[#allocation4 + $0x1618] sm:$0xff]  ;;  %v9817_v21 = vld [vmem:[#allocation4 + $0x1600] sm:$0xff]  ;;  %v9823_v34 = vld [vmem:[#allocation4 + $0x1630] sm:$0xff]  ;;  %v9829_v5 = vpop.xlane.xlu0 %1109  ;;  %v6403_v46 = vpack.c.bf16 %v9791_v7, %v9784_v26  ;;  %v6405_v6 = vpack.c.bf16 %v9802_v52, %v9800_v63  ;;  %v5895_v33 = vpack.c.bf16 %v9808_v27, %v9806_v37  ;;  %v1267_v37 = vsel %vm558_vm0, %v538_v30, 0.0 }
 0x28e   : > { %1259 = vadd.xlane.f32.xlu1 %v1258_v47  ;;  %6396 = vmatprep.subr.bf16.mxu1 %v6395_v24  ;;  %v9819_v24 = vld [vmem:[#allocation4 + $0x1620] sm:$0xff]  ;;  %v9827_v47 = vld [vmem:[#allocation4 + $0x1668] sm:$0xff]  ;;  %11859 = vst [vmem:[#allocation40_spill] sm:$0xff] %v9829_v5  ;;  %v9838_v19 = vld [vmem:[#allocation4 + $0x1678] sm:$0xff]  ;;  %v6407_v63 = vpack.c.bf16 %v9812_v62, %v9810_v38  ;;  %v6409_v38 = vpack.c.bf16 %v9823_v34, %v9821_v15  ;;  %v1489_v62 = vmul.f32 0.0625, %v9748_v53 }
 0x28f   : > { %v9840_v23 = vld [vmem:[#allocation4 + $0x1640] sm:$0xff]  ;;  %v9844_v45 = vpop.xlane.xlu1 %1061  ;;  %v556_v26 = vld [vmem:[%s7055_s4 + $0x7f0] sm:$0xff]  ;;  %v9858_v29 = vld [vmem:[#allocation4 + $0x16b8] sm:$0xff]  ;;  %v5897_v27 = vpack.c.bf16 %v9819_v24, %v9817_v21 }
 0x290   : > { %5886 = vmatpush1.bf16.msra.mxu0 %v5885_v9  ;;  %6398 = vmatpush1.bf16.msra.mxu1 %v6397_v25  ;;  %v555_v9 = vld [vmem:[%s7055_s4 + $0x7e8] sm:$0xff]  ;;  %11860 = vst [vmem:[#allocation39_spill] sm:$0xff] %v9844_v45  ;;  %v540_v12 = vld [vmem:[%s7055_s4 + $0x770] sm:$0xff]  ;;  %v557_v52 = vld [vmem:[%s7055_s4 + $0x7f8] sm:$0xff] }
 0x291   : > { %1310 = vadd.xlane.f32.xlu0 %v1309_v35  ;;  %5888 = vmatprep.subr.bf16.mxu0 %v5887_v44  ;;  %v539_v25 = vld [vmem:[%s7055_s4 + $0x768] sm:$0xff]  ;;  %v9847_v35 = vld [vmem:[#allocation4 + $0x1650] sm:$0xff]  ;;  %v9895_v61 = vpop.xlane.xlu0 %1112  ;;  %v1318_v24 = vsel %vm558_vm0, %v555_v9, 0.0  ;;  %v9946_v16 = vld [vmem:[#allocation4 + $0x1778] sm:$0xff] }
 0x292   : > { %1262 = vadd.xlane.f32.xlu1 %v1261_v13  ;;  %6400 = vmatprep.subr.bf16.mxu1 %v6399_v43  ;;  %v9842_v44 = vld [vmem:[#allocation4 + $0x1660] sm:$0xff]  ;;  %v9849_v43 = vld [vmem:[#allocation4 + $0x1670] sm:$0xff]  ;;  %v9852_v39 = vld [vmem:[#allocation4 + $0x1688] sm:$0xff]  ;;  %11865 = vst [vmem:[#allocation46_spill] sm:$0xff] %v9895_v61  ;;  %v9922_v15 = vsel %vm558_vm0, %v539_v25, 0.0  ;;  %v9938_v25 = vsel %vm558_vm0, %v556_v26, 0.0 }
 0x293   : > { %v9854_v7 = vld [vmem:[#allocation4 + $0x16a8] sm:$0xff]  ;;  %v9856_v13 = vld [vmem:[#allocation4 + $0x1698] sm:$0xff]  ;;  %v9865_v11 = vld [vmem:[#allocation4 + $0x1680] sm:$0xff]  ;;  %v9918_v21 = vpop.xlane.xlu1 %1064  ;;  %v11882_v53 = vpack.c.bf16 %v9849_v43, %v9847_v35 }
 0x294   : > { %11861 = vst [vmem:[#allocation42_spill] sm:$0xff] %v9856_v13  ;;  %5890 = vmatpush1.bf16.msra.mxu0 %v5889_v49  ;;  %6402 = vmatpush1.bf16.msra.mxu1 %v6401_v0  ;;  %v9867_v2 = vld [vmem:[#allocation4 + $0x16a0] sm:$0xff]  ;;  %v9869_v10 = vld [vmem:[#allocation4 + $0x1690] sm:$0xff]  ;;  %v9875_v49 = vld [vmem:[#allocation4 + $0x16e8] sm:$0xff]  ;;  %v11887_v35 = vpack.c.bf16 %v9854_v7, %v9852_v39 }
 0x295   : > { %v9871_v20 = vld [vmem:[#allocation4 + $0x16b0] sm:$0xff]  ;;  %1313 = vadd.xlane.f32.xlu0 %v1312_v50  ;;  %5892 = vmatprep.subr.bf16.mxu0 %v5891_v55  ;;  %v9883_v0 = vld [vmem:[#allocation4 + $0x16d8] sm:$0xff]  ;;  %v9889_v45 = vld [vmem:[#allocation4 + $0x16e0] sm:$0xff]  ;;  %11867 = vst [vmem:[#allocation35_spill] sm:$0xff] %v9918_v21 }
 0x296   : > { %v9891_v5 = vld [vmem:[#allocation4 + $0x16d0] sm:$0xff]  ;;  %1265 = vadd.xlane.f32.xlu1 %v1264_v54  ;;  %6404 = vmatprep.subr.bf16.mxu1 %v6403_v46  ;;  %v9904_v50 = vld [vmem:[#allocation4 + $0x1708] sm:$0xff]  ;;  %v9908_v54 = vld [vmem:[#allocation4 + $0x1718] sm:$0xff] }
 0x297   : > { %11863 = vst [vmem:[#allocation38_spill] sm:$0xff] %v9891_v5  ;;  %v9893_v55 = vld [vmem:[#allocation4 + $0x16f0] sm:$0xff]  ;;  %v9910_v46 = vld [vmem:[#allocation4 + $0x1738] sm:$0xff]  ;;  %v9912_v61 = vld [vmem:[#allocation4 + $0x1700] sm:$0xff] }
 0x298   : > { %11864 = vst [vmem:[#allocation44_spill] sm:$0xff] %v9893_v55  ;;  %v9914_v30 = vld [vmem:[#allocation4 + $0x1720] sm:$0xff]  ;;  %v9916_v42 = vld [vmem:[#allocation4 + $0x1710] sm:$0xff]  ;;  %v9933_v48 = vld [vmem:[#allocation4 + $0x1768] sm:$0xff]  ;;  %5894 = vmatpush1.bf16.msra.mxu0 %v5893_v31  ;;  %6406 = vmatpush1.bf16.msra.mxu1 %v6405_v6  ;;  %v9951_v31 = vsel %vm558_vm0, %v540_v12, 0.0  ;;  %v9968_v12 = vsel %vm558_vm0, %v557_v52, 0.0 }
 0x299   : > { %11866 = vst [vmem:[#allocation49_spill] sm:$0xff] %v9916_v42  ;;  %v9929_v22 = vld [vmem:[#allocation4 + $0x1730] sm:$0xff]  ;;  %v9944_v21 = vld [vmem:[#allocation4 + $0x1758] sm:$0xff]  ;;  %v9948_v4 = vld [vmem:[#allocation4 + $0x1740] sm:$0xff]  ;;  %1316 = vadd.xlane.f32.xlu0 %v1315_v57  ;;  %5896 = vmatprep.subr.bf16.mxu0 %v5895_v33  ;;  %v9965_v57 = vpop.xlane.xlu0 %1115  ;;  %v1506_v6 = vmul.f32 0.0625, %v9754_v28 }
 0x29a   : > { %11868 = vst [vmem:[#allocation53_spill] sm:$0xff] %v9929_v22  ;;  %11869 = vst [vmem:[#allocation36_spill] sm:$0xff] %v9948_v4  ;;  %v9959_v34 = vld [vmem:[#allocation4 + $0x1760] sm:$0xff]  ;;  %v9961_v9 = vld [vmem:[#allocation4 + $0x1750] sm:$0xff]  ;;  %1268 = vadd.xlane.f32.xlu1 %v1267_v37  ;;  %6408 = vmatprep.subr.bf16.mxu1 %v6407_v63  ;;  %v9982_v63 = vpop.xlane.xlu1 %1067 }
 0x29b   : > { %11870 = vst [vmem:[#allocation55_spill] sm:$0xff] %v9959_v34  ;;  %v9963_v13 = vld [vmem:[#allocation4 + $0x1770] sm:$0xff]  ;;  %11871 = vst [vmem:[#allocation47_spill] sm:$0xff] %v9965_v57  ;;  %v9976_v26 = vld [vmem:[#allocation4 + $0x1788] sm:$0xff] }
 0x29c   : > { %v9980_v37 = vld [vmem:[#allocation4 + $0x1798] sm:$0xff]  ;;  %11872 = vst [vmem:[#allocation56_spill] sm:$0xff] %v9982_v63  ;;  %v9994_v5 = vld [vmem:[#allocation4 + $0x1780] sm:$0xff]  ;;  %5898 = vmatpush1.bf16.msra.mxu0 %v5897_v27  ;;  %6410 = vmatpush1.bf16.msra.mxu1 %v6409_v38  ;;  %v9999_v63 = vsel %vm558_vm0, %v541_v17, 0.0  ;;  %v10007_v52 = vld [vmem:[#allocation4 + $0x1790] sm:$0xff]  ;;  %v1503_v27 = vmul.f32 0.0625, %v9713_v59  ;;  %v11876_v38 = vpack.c.bf16 %v9827_v47, %v9825_v41  ;;  %v11880_v41 = vpack.c.bf16 %v9838_v19, %v9836_v8 }
 0x29d   : > { %v9992_v57 = vld [vmem:[#allocation4 + $0x17b8] sm:$0xff]  ;;  %v9996_v55 = vld [vmem:[#allocation4 + $0x17a0] sm:$0xff]  ;;  %11873 = vst [vmem:[#allocation52_spill] sm:$0xff] %v10007_v52  ;;  %v10009_v42 = vld [vmem:[#allocation4 + $0x17b0] sm:$0xff]  ;;  %v1504_v17 = vmul.f32 0.0625, %v9719_v58  ;;  %1319 = vadd.xlane.f32.xlu0 %v1318_v24  ;;  %v1487_v59 = vmul.f32 0.0625, %v9738_v56  ;;  %v10035_v47 = vpop.xlane.xlu0 %1118 }
 0x29e   : > { %11874 = vst [vmem:[#allocation63_spill] sm:$0xff] %v10009_v42  ;;  %v10011_v22 = vld [vmem:[#allocation4 + $0x17c8] sm:$0xff]  ;;  %5900 = vmatprep.subr.bf16.mxu0 %v11876_v38  ;;  %v10024_v4 = vld [vmem:[#allocation4 + $0x17d8] sm:$0xff]  ;;  %v1488_v58 = vmul.f32 0.0625, %v9740_v36  ;;  %v1505_v24 = vmul.f32 0.0625, %v9746_v18  ;;  %1271 = vadd.xlane.f32.xlu1 %v9922_v15  ;;  %v10041_v56 = vpop.xlane.xlu1 %1070  ;;  %v1490_v8 = vmul.f32 0.0625, %v9756_v51  ;;  %v11881_v15 = vpack.c.bf16 %v9842_v44, %v9840_v23 }
 0x29f   : > { %11875 = vst [vmem:[#allocation48_spill] sm:$0xff] %v10011_v22  ;;  %v10022_v33 = vld [vmem:[#allocation4 + $0x17e8] sm:$0xff]  ;;  %11878 = vst [vmem:[#allocation54_spill] sm:$0xff] %v10024_v4  ;;  %v10026_v34 = vld [vmem:[#allocation4 + $0x17f8] sm:$0xff]  ;;  %6412 = vmatprep.subr.bf16.mxu1 %v11880_v41  ;;  %v1507_v19 = vmul.f32 0.0625, %v9762_v3 }
 0x2a0   : > { %11877 = vst [vmem:[#allocation67_spill] sm:$0xff] %v10022_v33  ;;  %11879 = vst [vmem:[#allocation60_spill] sm:$0xff] %v10026_v34  ;;  %5902 = vmatpush1.bf16.msra.mxu0 %v11881_v15  ;;  %6414 = vmatpush1.bf16.msra.mxu1 %v11882_v53  ;;  %v10059_v36 = vld [vmem:[#allocation4 + $0x17c0] sm:$0xff]  ;;  %v11884_v38 = vld [vmem:[#allocation17_spill] sm:$0xff] }
 0x2a1   : > { %v10061_v18 = vld [vmem:[#allocation4 + $0x17e0] sm:$0xff]  ;;  %v3778_v52 = vrot.slane %v1504_v17, %v11884_v38  ;;  %v11885_v23 = vld [vmem:[#allocation33_spill] sm:$0xff]  ;;  %v11886_v15 = vld [vmem:[#allocation59_spill] sm:$0xff]  ;;  %1322 = vadd.xlane.f32.xlu0 %v9938_v25  ;;  %5904 = vmatprep.subr.bf16.mxu0 %v11887_v35  ;;  %v1122_v39 = vpop.xlane.xlu0 %1121 }
 0x2a2   : > { %v11883_v51 = vld [vmem:[#allocation16_spill] sm:$0xff]  ;;  %v1491_v44 = vmul.f32 0.0625, %v11885_v23  ;;  %v1508_v42 = vmul.f32 0.0625, %v11886_v15  ;;  %v10071_v43 = vld [vmem:[#allocation4 + $0x17d0] sm:$0xff]  ;;  %v11889_v4 = vld [vmem:[#allocation45_spill] sm:$0xff]  ;;  %1274 = vadd.xlane.f32.xlu1 %v9951_v31 }
 0x2a3   : > { %v3774_v3 = vrot.slane %v1503_v27, %v11883_v51  ;;  %v10073_v53 = vld [vmem:[#allocation4 + $0x17f0] sm:$0xff]  ;;  %v3695_v41 = vrot.slane %v1487_v59, %v11883_v51  ;;  %v3699_v27 = vrot.slane %v1488_v58, %v11884_v38  ;;  %v1492_v23 = vmul.f32 0.0625, %v11889_v4  ;;  %v11892_v35 = vld [vmem:[#allocation19_spill] sm:$0xff]  ;;  %v1074_v59 = vpop.xlane.xlu1 %1073  ;;  %v11894_v4 = vld [vmem:[#allocation20_spill] sm:$0xff] }
 0x2a4   : > { %v11888_v28 = vld [vmem:[#allocation18_spill] sm:$0xff]  ;;  %v3788_v34 = vrot.slane %v1506_v6, %v11892_v35  ;;  %v11893_v22 = vld [vmem:[#allocation43_spill] sm:$0xff]  ;;  %v3793_v38 = vrot.slane %v1507_v19, %v11894_v4  ;;  %v11895_v31 = vld [vmem:[#allocation32_spill] sm:$0xff] }
 0x2a5   : > { %v3783_v17 = vrot.slane %v1505_v24, %v11888_v28  ;;  %v11890_v25 = vld [vmem:[#allocation42_spill] sm:$0xff]  ;;  %v3704_v7 = vrot.slane %v1489_v62, %v11888_v28  ;;  %v1509_v33 = vmul.f32 0.0625, %v11893_v22  ;;  %v3709_v24 = vrot.slane %v1490_v8, %v11892_v35  ;;  %v11898_v8 = vld [vmem:[#allocation21_spill] sm:$0xff]  ;;  %v11899_v19 = vld [vmem:[#allocation40_spill] sm:$0xff]  ;;  %1325 = vadd.xlane.f32.xlu0 %v9968_v12 }
 0x2a6   : > { %v11891_v15 = vpack.c.bf16 %v9858_v29, %v11890_v25  ;;  %v1493_v51 = vmul.f32 0.0625, %v11895_v31  ;;  %v11896_v29 = vpack.c.bf16 %v9867_v2, %v9865_v11  ;;  %v11897_v62 = vpack.c.bf16 %v9871_v20, %v9869_v10  ;;  %v11900_v2 = vld [vmem:[#allocation37_spill] sm:$0xff]  ;;  %1277 = vadd.xlane.f32.xlu1 %v9999_v63 }
 0x2a7   : > { %v6437_v22 = vpack.c.bf16 %v10073_v53, %v10071_v43  ;;  %v3779_v6 = vsel %vm2881_vm1, %v3778_v52, %v3774_v3  ;;  %v3714_v25 = vrot.slane %v1491_v44, %v11894_v4  ;;  %v1510_v58 = vmul.f32 0.0625, %v11899_v19  ;;  %v1125_v3 = vpop.xlane.xlu0 %1124  ;;  %v11904_v44 = vld [vmem:[#allocation22_spill] sm:$0xff]  ;;  %v11906_v19 = vld [vmem:[#allocation35_spill] sm:$0xff] }
 0x2a8   : > { %6416 = vmatprep.subr.bf16.mxu1 %v11891_v15  ;;  %5906 = vmatpush1.bf16.msra.mxu0 %v11896_v29  ;;  %v3798_v15 = vrot.slane %v1508_v42, %v11898_v8  ;;  %v11901_v11 = vpack.c.bf16 %v9875_v49, %v11900_v2  ;;  %v3700_v20 = vsel %vm2881_vm1, %v3699_v27, %v3695_v41  ;;  %v11902_v29 = vld [vmem:[#allocation39_spill] sm:$0xff]  ;;  %v11905_v41 = vld [vmem:[#allocation46_spill] sm:$0xff]  ;;  %v1495_v2 = vmul.f32 0.0625, %v11906_v19  ;;  %v11919_v19 = vld [vmem:[#allocation49_spill] sm:$0xff] }
 0x2a9   : > { %6418 = vmatpush1.bf16.msra.mxu1 %v11897_v62  ;;  %v3784_v10 = vsel %vm2888_vm2, %v3783_v17, %v3779_v6  ;;  %v3719_v31 = vrot.slane %v1492_v23, %v11898_v8  ;;  %v1494_v52 = vmul.f32 0.0625, %v11902_v29  ;;  %v11903_v42 = vpack.c.bf16 %v9885_v40, %v9883_v0  ;;  %v1077_v17 = vpop.xlane.xlu1 %1076  ;;  %v11908_v0 = vld [vmem:[#allocation44_spill] sm:$0xff]  ;;  %v2376_v43 = vld [vmem:[#allocation4 + $0x1898] sm:$0xff]  ;;  %v10364_v8 = vld [vmem:[#allocation4 + $0x1b68] sm:$0xff] }
 0x2aa   : > { %5908 = vmatprep.subr.bf16.mxu0 %v11901_v11  ;;  %v3705_v12 = vsel %vm2888_vm2, %v3704_v7, %v3700_v20  ;;  %v3789_v49 = vsel %vm2895_vm3, %v3788_v34, %v3784_v10  ;;  %v3803_v62 = vrot.slane %v1509_v33, %v11904_v44  ;;  %v1511_v27 = vmul.f32 0.0625, %v11905_v41  ;;  %v11909_v7 = vld [vmem:[#allocation38_spill] sm:$0xff]  ;;  %v11911_v20 = vld [vmem:[#allocation23_spill] sm:$0xff] }
 0x2ab   : > { %6420 = vmatprep.subr.bf16.mxu1 %v11903_v42  ;;  %v3710_v23 = vsel %vm2895_vm3, %v3709_v24, %v3705_v12  ;;  %v3794_v6 = vsel %vm2902_vm4, %v3793_v38, %v3789_v49  ;;  %v3724_v63 = vrot.slane %v1493_v51, %v11904_v44  ;;  %v11907_v40 = vpack.c.bf16 %v9889_v45, %v9887_v32  ;;  %v11912_v10 = vld [vmem:[#allocation47_spill] sm:$0xff]  ;;  %v11915_v42 = vld [vmem:[#allocation56_spill] sm:$0xff]  ;;  %v1128_v12 = vpop.xlane.xlu0 %1127 }
 0x2ac   : > { %v11910_v34 = vpack.c.bf16 %v11908_v0, %v11909_v7  ;;  %v3715_v33 = vsel %vm2902_vm4, %v3714_v25, %v3710_v23  ;;  %v3799_v11 = vsel %vm2909_vm5, %v3798_v15, %v3794_v6  ;;  %v3808_v24 = vrot.slane %v1510_v58, %v11911_v20  ;;  %v11916_v49 = vld [vmem:[#allocation24_spill] sm:$0xff]  ;;  %v2380_v53 = vld [vmem:[#allocation4 + $0x18b8] sm:$0xff] }
 0x2ad   : > { %5910 = vmatpush1.bf16.msra.mxu0 %v11907_v40  ;;  %v1512_v38 = vmul.f32 0.0625, %v11912_v10  ;;  %v11913_v51 = vpack.c.bf16 %v9906_v1, %v9904_v50  ;;  %v11914_v32 = vpack.c.bf16 %v9910_v46, %v9908_v54  ;;  %v3720_v45 = vsel %vm2909_vm5, %v3719_v31, %v3715_v33  ;;  %v1080_v23 = vpop.xlane.xlu1 %1079 }
 0x2ae   : > { %6422 = vmatpush1.bf16.msra.mxu1 %v11910_v34  ;;  %v3729_v29 = vrot.slane %v1494_v52, %v11911_v20  ;;  %v1496_v25 = vmul.f32 0.0625, %v11915_v42  ;;  %v1513_v15 = vmul.f32 0.0625, %v10035_v47  ;;  %v3804_v58 = vsel %vm2916_vm6, %v3803_v62, %v3799_v11  ;;  %v11918_v47 = vld [vmem:[#allocation53_spill] sm:$0xff]  ;;  %v11925_v11 = vld [vmem:[#allocation27_spill] sm:$0xff] }
 0x2af   : > { %5912 = vmatprep.subr.bf16.mxu0 %v11913_v51  ;;  %6424 = vmatprep.subr.bf16.mxu1 %v11914_v32  ;;  %v3813_v41 = vrot.slane %v1511_v27, %v11916_v49  ;;  %v1497_v1 = vmul.f32 0.0625, %v10041_v56  ;;  %v1514_v50 = vmul.f32 0.0625, %v1122_v39  ;;  %v3725_v54 = vsel %vm2916_vm6, %v3724_v63, %v3720_v45  ;;  %v11921_v27 = vld [vmem:[#allocation25_spill] sm:$0xff]  ;;  %v1131_v34 = vpop.xlane.xlu0 %1130  ;;  %v11927_v51 = vld [vmem:[#allocation55_spill] sm:$0xff]  ;;  %v11928_v32 = vld [vmem:[#allocation36_spill] sm:$0xff] }
 0x2b0   : > { %v3734_v46 = vrot.slane %v1495_v2, %v11916_v49  ;;  %v1498_v31 = vmul.f32 0.0625, %v1074_v59  ;;  %v1515_v6 = vmul.f32 0.0625, %v1125_v3  ;;  %v11917_v52 = vpack.c.bf16 %v9914_v30, %v9912_v61  ;;  %v11924_v3 = vld [vmem:[#allocation26_spill] sm:$0xff] }
 0x2b1   : > { %v11920_v40 = vpack.c.bf16 %v11918_v47, %v11919_v19  ;;  %v3809_v62 = vsel %vm2923_vm7, %v3808_v24, %v3804_v58  ;;  %v3818_v56 = vrot.slane %v1512_v38, %v11921_v27  ;;  %v1499_v39 = vmul.f32 0.0625, %v1077_v17  ;;  %v2364_v19 = vld [vmem:[#allocation4 + $0x1838] sm:$0xff] }
 0x2b2   : > { %5914 = vmatpush1.bf16.msra.mxu0 %v11917_v52  ;;  %v1516_v0 = vmul.f32 0.0625, %v1128_v12  ;;  %v11922_v63 = vpack.c.bf16 %v9933_v48, %v9931_v60  ;;  %v11923_v59 = vpack.c.bf16 %v9946_v16, %v9944_v21  ;;  %v3730_v61 = vsel %vm2923_vm7, %v3729_v29, %v3725_v54  ;;  %v1083_v48 = vpop.xlane.xlu1 %1082  ;;  %v11926_v21 = vld [vmem:[#allocation28_spill] sm:$0xff]  ;;  %v11931_v12 = vld [vmem:[#allocation29_spill] sm:$0xff] }
 0x2b3   : > { %6426 = vmatpush1.bf16.msra.mxu1 %v11920_v40  ;;  %v3739_v30 = vrot.slane %v1496_v25, %v11921_v27  ;;  %v3823_v2 = vrot.slane %v1513_v15, %v11924_v3  ;;  %v1500_v7 = vmul.f32 0.0625, %v1080_v23  ;;  %v3814_v33 = vsel %vm2930_vm8, %v3813_v41, %v3809_v62  ;;  %v2362_v23 = vld [vmem:[#allocation4 + $0x1828] sm:$0xff] }
 0x2b4   : > { %5916 = vmatprep.subr.bf16.mxu0 %v11922_v63  ;;  %6428 = vmatprep.subr.bf16.mxu1 %v11923_v59  ;;  %v3744_v17 = vrot.slane %v1497_v1, %v11924_v3  ;;  %v3828_v24 = vrot.slane %v1514_v50, %v11925_v11  ;;  %v1517_v60 = vmul.f32 0.0625, %v1131_v34  ;;  %v3735_v10 = vsel %vm2930_vm8, %v3734_v46, %v3730_v61  ;;  %v2358_v50 = vld [vmem:[#allocation4 + $0x1808] sm:$0xff]  ;;  %v11934_v46 = vld [vmem:[#allocation30_spill] sm:$0xff]  ;;  %v11939_v34 = vld [vmem:[#allocation31_spill] sm:$0xff] }
 0x2b5   : > { %v3749_v16 = vrot.slane %v1498_v31, %v11925_v11  ;;  %v3833_v38 = vrot.slane %v1515_v6, %v11926_v21  ;;  %v11929_v45 = vpack.c.bf16 %v11927_v51, %v11928_v32  ;;  %v11930_v29 = vpack.c.bf16 %v9963_v13, %v9961_v9  ;;  %v1134_v6 = vpop.xlane.xlu0 %1133  ;;  %v2366_v51 = vld [vmem:[#allocation4 + $0x1848] sm:$0xff]  ;;  %v10346_v11 = vld [vmem:[#allocation4 + $0x1b20] sm:$0xff]  ;;  %v10348_v3 = vld [vmem:[#allocation4 + $0x1b10] sm:$0xff] }
 0x2b6   : > { %v1501_v42 = vmul.f32 0.0625, %v1083_v48  ;;  %v3819_v25 = vsel %vm2937_vm9, %v3818_v56, %v3814_v33  ;;  %v3754_v15 = vrot.slane %v1499_v39, %v11926_v21  ;;  %v3838_v58 = vrot.slane %v1516_v0, %v11931_v12  ;;  %v11936_v39 = vld [vmem:[#allocation63_spill] sm:$0xff]  ;;  %v11937_v0 = vld [vmem:[#allocation52_spill] sm:$0xff]  ;;  %11953 = vst [vmem:[#allocation65_spill] sm:$0xff] %v10348_v3  ;;  %v10432_v3 = vld [vmem:[#allocation4 + $0x1bc8] sm:$0xff] }
 0x2b7   : > { %5918 = vmatpush1.bf16.msra.mxu0 %v11929_v45  ;;  %6430 = vmatpush1.bf16.msra.mxu1 %v11930_v29  ;;  %v11932_v41 = vpack.c.bf16 %v9978_v14, %v9976_v26  ;;  %v11933_v1 = vpack.c.bf16 %v9992_v57, %v9980_v37  ;;  %v3740_v13 = vsel %vm2937_vm9, %v3739_v30, %v3735_v10  ;;  %v1518_v47 = vmul.f32 0.0625, %v1134_v6  ;;  %v1086_v57 = vpop.xlane.xlu1 %1085  ;;  %v2360_v37 = vld [vmem:[#allocation4 + $0x1818] sm:$0xff]  ;;  %v2357_v30 = vld [vmem:[#allocation4 + $0x1800] sm:$0xff]  ;;  %v11944_v10 = vld [vmem:[#allocation54_spill] sm:$0xff] }
 0x2b8   : > { %v3824_v9 = vsel %vm2944_vm10, %v3823_v2, %v3819_v25  ;;  %v3759_v54 = vrot.slane %v1500_v7, %v11931_v12  ;;  %v3843_v31 = vrot.slane %v1517_v60, %v11934_v46  ;;  %v3745_v52 = vsel %vm2944_vm10, %v3744_v17, %v3740_v13  ;;  %v2361_v2 = vld [vmem:[#allocation4 + $0x1820] sm:$0xff]  ;;  %v11940_v17 = vld [vmem:[#allocation67_spill] sm:$0xff] }
 0x2b9   : > { %5920 = vmatprep.subr.bf16.mxu0 %v11932_v41  ;;  %6432 = vmatprep.subr.bf16.mxu1 %v11933_v1  ;;  %v3829_v14 = vsel %vm2951_vm11, %v3828_v24, %v3824_v9  ;;  %v3764_v26 = vrot.slane %v1501_v42, %v11934_v46  ;;  %v3750_v40 = vsel %vm2951_vm11, %v3749_v16, %v3745_v52  ;;  %v1502_v59 = vmul.f32 0.0625, %v1086_v57  ;;  %v11941_v24 = vld [vmem:[#allocation48_spill] sm:$0xff]  ;;  %v2359_v16 = vld [vmem:[#allocation4 + $0x1810] sm:$0xff]  ;;  %v10212_v29 = vpop.xlane.xlu0 %1184  ;;  %v2368_v41 = vld [vmem:[#allocation4 + $0x1858] sm:$0xff] }
 0x2ba   : > { %v3834_v62 = vsel %vm2958_vm12, %v3833_v38, %v3829_v14  ;;  %v11935_v56 = vpack.c.bf16 %v9996_v55, %v9994_v5  ;;  %v11938_v63 = vpack.c.bf16 %v11936_v39, %v11937_v0  ;;  %v5927_v61 = vpack.c.bf16 %v2362_v23, %v2358_v50  ;;  %v11943_v48 = vld [vmem:[#allocation60_spill] sm:$0xff]  ;;  %v2363_v38 = vld [vmem:[#allocation4 + $0x1830] sm:$0xff]  ;;  %v2372_v1 = vld [vmem:[#allocation4 + $0x1878] sm:$0xff] }
 0x2bb   : > { %v3755_v7 = vsel %vm2958_vm12, %v3754_v15, %v3750_v40  ;;  %v3848_v33 = vrot.slane %v1518_v47, %v11939_v34  ;;  %v11942_v60 = vpack.c.bf16 %v11940_v17, %v11941_v24  ;;  %v11945_v5 = vpack.c.bf16 %v11943_v48, %v11944_v10  ;;  %v2370_v15 = vld [vmem:[#allocation4 + $0x1868] sm:$0xff]  ;;  %v10215_v50 = vpop.xlane.xlu1 %1187  ;;  %v2365_v6 = vld [vmem:[#allocation4 + $0x1840] sm:$0xff]  ;;  %v2367_v57 = vld [vmem:[#allocation4 + $0x1850] sm:$0xff] }
 0x2bc   : > { %5922 = vmatpush1.bf16.msra.mxu0 %v11935_v56  ;;  %6434 = vmatpush1.bf16.msra.mxu1 %v11938_v63  ;;  %v3839_v55 = vsel %vm2965_vm13, %v3838_v58, %v3834_v62  ;;  %v3760_v32 = vsel %vm2965_vm13, %v3759_v54, %v3755_v7  ;;  %v3769_v45 = vrot.slane %v1502_v59, %v11939_v34  ;;  %v2369_v52 = vld [vmem:[#allocation4 + $0x1860] sm:$0xff]  ;;  %v2375_v63 = vld [vmem:[#allocation4 + $0x1890] sm:$0xff]  ;;  %v2384_v7 = vld [vmem:[#allocation4 + $0x18d8] sm:$0xff] }
 0x2bd   : > { %5924 = vmatprep.subr.bf16.mxu0 %v11942_v60  ;;  %6436 = vmatprep.subr.bf16.mxu1 %v11945_v5  ;;  %v3844_v42 = vsel %vm2972_vm14, %v3843_v31, %v3839_v55  ;;  %v6439_v25 = vpack.c.bf16 %v2364_v19, %v2360_v37  ;;  %v3765_v58 = vsel %vm2972_vm14, %v3764_v26, %v3760_v32  ;;  %v2371_v26 = vld [vmem:[#allocation4 + $0x1870] sm:$0xff]  ;;  %v2374_v37 = vld [vmem:[#allocation4 + $0x1888] sm:$0xff]  ;;  %v2373_v62 = vld [vmem:[#allocation4 + $0x1880] sm:$0xff] }
 0x2be   : > { %v3849_v23 = vsel %vm2979_vm15, %v3848_v33, %v3844_v42  ;;  %v11946_v13 = vpack.c.bf16 %v10061_v18, %v10059_v36  ;;  %v3770_v9 = vsel %vm2979_vm15, %v3769_v45, %v3765_v58  ;;  %v5929_v54 = vpack.c.bf16 %v2361_v2, %v2357_v30  ;;  %v10226_v36 = vpop.xlane.xlu0 %1136  ;;  %v2378_v18 = vld [vmem:[#allocation4 + $0x18a8] sm:$0xff]  ;;  %v2377_v56 = vld [vmem:[#allocation4 + $0x18a0] sm:$0xff]  ;;  %v2379_v59 = vld [vmem:[#allocation4 + $0x18b0] sm:$0xff] }
 0x2bf   : > { %v6441_v31 = vpack.c.bf16 %v2363_v38, %v2359_v16  ;;  %4601 = vmatprep.mubr.f32.mxu0 %v3849_v23  ;;  %5169 = vmatprep.mubr.f32.mxu1 %v3849_v23  ;;  %v5931_v14 = vpack.c.bf16 %v2370_v15, %v2366_v51  ;;  %v6443_v47 = vpack.c.bf16 %v2372_v1, %v2368_v41  ;;  %v2386_v2 = vld [vmem:[#allocation4 + $0x18e8] sm:$0xff]  ;;  %v2388_v33 = vld [vmem:[#allocation4 + $0x18f8] sm:$0xff]  ;;  %v2381_v48 = vld [vmem:[#allocation4 + $0x18c0] sm:$0xff] }
 0x2c0   : > { %5926 = vmatpush1.bf16.msra.mxu0 %v11946_v13  ;;  %6438 = vmatpush1.bf16.msra.mxu1 %v6437_v22  ;;  %v10228_v22 = vpop.xlane.xlu1 %1139  ;;  %v5933_v19 = vpack.c.bf16 %v2369_v52, %v2365_v6  ;;  %v6445_v40 = vpack.c.bf16 %v2371_v26, %v2367_v57  ;;  %v5935_v39 = vpack.c.bf16 %v2378_v18, %v2374_v37  ;;  %v2385_v10 = vld [vmem:[#allocation4 + $0x18e0] sm:$0xff]  ;;  %v2383_v16 = vld [vmem:[#allocation4 + $0x18d0] sm:$0xff]  ;;  %v2390_v51 = vld [vmem:[#allocation4 + $0x1908] sm:$0xff] }
 0x2c1   : > { %5928 = vmatprep.subr.bf16.mxu0 %v5927_v61  ;;  %6440 = vmatprep.subr.bf16.mxu1 %v6439_v25  ;;  %v6447_v0 = vpack.c.bf16 %v2380_v53, %v2376_v43  ;;  %v2382_v61 = vld [vmem:[#allocation4 + $0x18c8] sm:$0xff]  ;;  %v5937_v24 = vpack.c.bf16 %v2377_v56, %v2373_v62  ;;  %v6449_v60 = vpack.c.bf16 %v2379_v59, %v2375_v63  ;;  %v2387_v38 = vld [vmem:[#allocation4 + $0x18f0] sm:$0xff]  ;;  %v2392_v42 = vld [vmem:[#allocation4 + $0x1918] sm:$0xff] }
 0x2c2   : > { %v10230_v30 = vpop.xlane.xlu0 %1190  ;;  %v5939_v5 = vpack.c.bf16 %v2386_v2, %v2382_v61  ;;  %v6451_v55 = vpack.c.bf16 %v2388_v33, %v2384_v7  ;;  %v2394_v45 = vld [vmem:[#allocation4 + $0x1928] sm:$0xff]  ;;  %v2396_v25 = vld [vmem:[#allocation4 + $0x1938] sm:$0xff]  ;;  %v5941_v41 = vpack.c.bf16 %v2385_v10, %v2381_v48  ;;  %v6453_v1 = vpack.c.bf16 %v2387_v38, %v2383_v16  ;;  %v2389_v23 = vld [vmem:[#allocation4 + $0x1900] sm:$0xff] }
 0x2c3   : > { %4602 = vmatmul.mubr.f32.vlgmr.msra.gmra.mrb[0].mxu0 %v3770_v9  ;;  %5170 = vmatmul.mubr.f32.vlgmr.msra.gmra.mrb[0].mxu1 %v3770_v9  ;;  %v2393_v58 = vld [vmem:[#allocation4 + $0x1920] sm:$0xff]  ;;  %v5943_v13 = vpack.c.bf16 %v2394_v45, %v2390_v51  ;;  %v6455_v9 = vpack.c.bf16 %v2396_v25, %v2392_v42  ;;  %v2398_v6 = vld [vmem:[#allocation4 + $0x1948] sm:$0xff]  ;;  %v2404_v57 = vld [vmem:[#allocation4 + $0x1978] sm:$0xff] }
 0x2c4   : > { %5930 = vmatpush1.bf16.msra.mxu0 %v5929_v54  ;;  %6442 = vmatpush1.bf16.msra.mxu1 %v6441_v31  ;;  %v10232_v17 = vpop.xlane.xlu1 %1142  ;;  %v2391_v54 = vld [vmem:[#allocation4 + $0x1910] sm:$0xff]  ;;  %v5945_v37 = vpack.c.bf16 %v2393_v58, %v2389_v23  ;;  %v2397_v43 = vld [vmem:[#allocation4 + $0x1940] sm:$0xff]  ;;  %v2410_v63 = vld [vmem:[#allocation4 + $0x19a8] sm:$0xff] }
 0x2c5   : > { %5932 = vmatprep.subr.bf16.mxu0 %v5931_v14  ;;  %6444 = vmatprep.subr.bf16.mxu1 %v6443_v47  ;;  %v2395_v31 = vld [vmem:[#allocation4 + $0x1930] sm:$0xff]  ;;  %v2402_v14 = vld [vmem:[#allocation4 + $0x1968] sm:$0xff]  ;;  %v2400_v47 = vld [vmem:[#allocation4 + $0x1958] sm:$0xff] }
 0x2c6   : > { %v10234_v32 = vpop.xlane.xlu0 %1193  ;;  %v6457_v18 = vpack.c.bf16 %v2395_v31, %v2391_v54  ;;  %v2401_v53 = vld [vmem:[#allocation4 + $0x1960] sm:$0xff]  ;;  %v2399_v62 = vld [vmem:[#allocation4 + $0x1950] sm:$0xff]  ;;  %v2408_v59 = vld [vmem:[#allocation4 + $0x1998] sm:$0xff] }
 0x2c7   : > { %v2403_v56 = vld [vmem:[#allocation4 + $0x1970] sm:$0xff]  ;;  %v2412_v61 = vld [vmem:[#allocation4 + $0x19b8] sm:$0xff]  ;;  %v5949_v7 = vpack.c.bf16 %v2401_v53, %v2397_v43  ;;  %v2414_v16 = vld [vmem:[#allocation4 + $0x19c8] sm:$0xff] }
 0x2c8   : > { %5934 = vmatpush1.bf16.msra.mxu0 %v5933_v19  ;;  %6446 = vmatpush1.bf16.msra.mxu1 %v6445_v40  ;;  %v10236_v15 = vpop.xlane.xlu1 %1145  ;;  %v5947_v19 = vpack.c.bf16 %v2402_v14, %v2398_v6  ;;  %v6459_v40 = vpack.c.bf16 %v2404_v57, %v2400_v47  ;;  %v6461_v33 = vpack.c.bf16 %v2403_v56, %v2399_v62  ;;  %v2418_v51 = vld [vmem:[#allocation4 + $0x19e8] sm:$0xff]  ;;  %v2416_v45 = vld [vmem:[#allocation4 + $0x19d8] sm:$0xff]  ;;  %v10270_v43 = vld [vmem:[#allocation4 + $0x1a20] sm:$0xff] }
 0x2c9   : > { %5936 = vmatprep.subr.bf16.mxu0 %v5935_v39  ;;  %6448 = vmatprep.subr.bf16.mxu1 %v6447_v0  ;;  %v2406_v39 = vld [vmem:[#allocation4 + $0x1988] sm:$0xff]  ;;  %v6463_v10 = vpack.c.bf16 %v2412_v61, %v2408_v59  ;;  %v2420_v42 = vld [vmem:[#allocation4 + $0x19f8] sm:$0xff]  ;;  %v5955_v31 = vpack.c.bf16 %v2418_v51, %v2414_v16  ;;  %v10272_v53 = vld [vmem:[#allocation4 + $0x1a10] sm:$0xff] }
 0x2ca   : > { %v10238_v52 = vpop.xlane.xlu0 %1196  ;;  %v5951_v48 = vpack.c.bf16 %v2410_v63, %v2406_v39  ;;  %v10258_v54 = vld [vmem:[#allocation4 + $0x1a08] sm:$0xff]  ;;  %v6467_v6 = vpack.c.bf16 %v2420_v42, %v2416_v45  ;;  %v10262_v47 = vld [vmem:[#allocation4 + $0x1a18] sm:$0xff]  ;;  %v10286_v59 = vld [vmem:[#allocation4 + $0x1a40] sm:$0xff] }
 0x2cb   : > { %v10260_v14 = vld [vmem:[#allocation4 + $0x1a28] sm:$0xff]  ;;  %v10264_v57 = vld [vmem:[#allocation4 + $0x1a38] sm:$0xff]  ;;  %v10288_v61 = vld [vmem:[#allocation4 + $0x1a60] sm:$0xff] }
 0x2cc   : > { %5938 = vmatpush1.bf16.msra.mxu0 %v5937_v24  ;;  %6450 = vmatpush1.bf16.msra.mxu1 %v6449_v60  ;;  %v10240_v26 = vpop.xlane.xlu1 %1148  ;;  %v2405_v24 = vld [vmem:[#allocation4 + $0x1980] sm:$0xff]  ;;  %v10278_v62 = vld [vmem:[#allocation4 + $0x1a68] sm:$0xff]  ;;  %v10280_v56 = vld [vmem:[#allocation4 + $0x1a58] sm:$0xff] }
 0x2cd   : > { %5940 = vmatprep.subr.bf16.mxu0 %v5939_v5  ;;  %6452 = vmatprep.subr.bf16.mxu1 %v6451_v55  ;;  %v2409_v60 = vld [vmem:[#allocation4 + $0x19a0] sm:$0xff]  ;;  %v2407_v5 = vld [vmem:[#allocation4 + $0x1990] sm:$0xff]  ;;  %v10282_v39 = vld [vmem:[#allocation4 + $0x1a78] sm:$0xff] }
 0x2ce   : > { %v10242_v0 = vpop.xlane.xlu0 %1199  ;;  %v2411_v55 = vld [vmem:[#allocation4 + $0x19b0] sm:$0xff]  ;;  %v5953_v23 = vpack.c.bf16 %v2409_v60, %v2405_v24  ;;  %v10294_v24 = vld [vmem:[#allocation4 + $0x1a88] sm:$0xff]  ;;  %v10306_v16 = vld [vmem:[#allocation4 + $0x1a80] sm:$0xff]  ;;  %v6475_v44 = vpack.c.bf16 %v10282_v39, %v10280_v56 }
 0x2cf   : > { %v6465_v58 = vpack.c.bf16 %v2411_v55, %v2407_v5  ;;  %v10296_v60 = vld [vmem:[#allocation4 + $0x1aa8] sm:$0xff]  ;;  %v10302_v5 = vld [vmem:[#allocation4 + $0x1a98] sm:$0xff]  ;;  %v10308_v51 = vld [vmem:[#allocation4 + $0x1aa0] sm:$0xff] }
 0x2d0   : > { %5942 = vmatpush1.bf16.msra.mxu0 %v5941_v41  ;;  %6454 = vmatpush1.bf16.msra.mxu1 %v6453_v1  ;;  %v10244_v2 = vpop.xlane.xlu1 %1151  ;;  %v10250_v41 = vld [vmem:[#allocation4 + $0x19c0] sm:$0xff]  ;;  %v10304_v55 = vld [vmem:[#allocation4 + $0x1ab8] sm:$0xff]  ;;  %v10310_v45 = vld [vmem:[#allocation4 + $0x1a90] sm:$0xff] }
 0x2d1   : > { %5944 = vmatprep.subr.bf16.mxu0 %v5943_v13  ;;  %6456 = vmatprep.subr.bf16.mxu1 %v6455_v9  ;;  %v10252_v1 = vld [vmem:[#allocation4 + $0x19e0] sm:$0xff]  ;;  %v10254_v13 = vld [vmem:[#allocation4 + $0x19d0] sm:$0xff]  ;;  %v10342_v12 = vld [vmem:[#allocation4 + $0x1b38] sm:$0xff]  ;;  %v6479_v56 = vpack.c.bf16 %v10304_v55, %v10302_v5  ;;  %v1538_v5 = vmul.f32 0.0625, %v10234_v32 }
 0x2d2   : > { %v10246_v38 = vpop.xlane.xlu0 %1202  ;;  %v10256_v9 = vld [vmem:[#allocation4 + $0x19f0] sm:$0xff]  ;;  %v10326_v34 = vld [vmem:[#allocation4 + $0x1ac0] sm:$0xff]  ;;  %v10404_v39 = vld [vmem:[#allocation4 + $0x1b98] sm:$0xff] }
 0x2d3   : > { %v10312_v42 = vld [vmem:[#allocation4 + $0x1ab0] sm:$0xff]  ;;  %v10328_v46 = vld [vmem:[#allocation4 + $0x1ae0] sm:$0xff]  ;;  %11960 = vst [vmem:[#allocation70_spill] sm:$0xff] %v10404_v39  ;;  %v10442_v55 = vld [vmem:[#allocation4 + $0x1bd8] sm:$0xff] }
 0x2d4   : > { %5946 = vmatpush1.bf16.msra.mxu0 %v5945_v37  ;;  %6458 = vmatpush1.bf16.msra.mxu1 %v6457_v18  ;;  %v10248_v25 = vpop.xlane.xlu1 %1154  ;;  %v10268_v18 = vld [vmem:[#allocation4 + $0x1a00] sm:$0xff]  ;;  %11963 = vst [vmem:[#allocation75_spill] sm:$0xff] %v10442_v55 }
 0x2d5   : > { %5948 = vmatprep.subr.bf16.mxu0 %v5947_v19  ;;  %6460 = vmatprep.subr.bf16.mxu1 %v6459_v40  ;;  %v10274_v19 = vld [vmem:[#allocation4 + $0x1a30] sm:$0xff]  ;;  %v10276_v40 = vld [vmem:[#allocation4 + $0x1a48] sm:$0xff]  ;;  %v10344_v21 = vld [vmem:[#allocation4 + $0x1b00] sm:$0xff]  ;;  %v5961_v49 = vpack.c.bf16 %v10270_v43, %v10268_v18  ;;  %v5965_v18 = vpack.c.bf16 %v10288_v61, %v10286_v59 }
 0x2d6   : > { %v10266_v37 = vpop.xlane.xlu0 %1205  ;;  %11952 = vst [vmem:[#allocation34_spill] sm:$0xff] %v10344_v21  ;;  %v6473_v20 = vpack.c.bf16 %v10274_v19, %v10272_v53  ;;  %v10372_v19 = vld [vmem:[#allocation4 + $0x1b58] sm:$0xff]  ;;  %v10384_v61 = vld [vmem:[#allocation4 + $0x1b60] sm:$0xff]  ;;  %v10402_v59 = vld [vmem:[#allocation4 + $0x1ba8] sm:$0xff] }
 0x2d7   : > { %11947 = vst [vmem:[#allocation57_spill] sm:$0xff] %v10266_v37  ;;  %v10362_v37 = vld [vmem:[#allocation4 + $0x1b48] sm:$0xff]  ;;  %11956 = vst [vmem:[#allocation64_spill] sm:$0xff] %v10384_v61  ;;  %v10428_v21 = vld [vmem:[#allocation4 + $0x1b90] sm:$0xff]  ;;  %v1519_v61 = vmul.f32 0.0625, %v10226_v36 }
 0x2d8   : > { %5950 = vmatpush1.bf16.msra.mxu0 %v5949_v7  ;;  %6462 = vmatpush1.bf16.msra.mxu1 %v6461_v33  ;;  %v10284_v63 = vpop.xlane.xlu1 %1157  ;;  %v10290_v7 = vld [vmem:[#allocation4 + $0x1a50] sm:$0xff]  ;;  %11959 = vst [vmem:[#allocation71_spill] sm:$0xff] %v10402_v59  ;;  %v10467_v32 = vld [vmem:[#allocation4 + $0x1bc0] sm:$0xff] }
 0x2d9   : > { %5952 = vmatprep.subr.bf16.mxu0 %v5951_v48  ;;  %6464 = vmatprep.subr.bf16.mxu1 %v6463_v10  ;;  %11948 = vst [vmem:[#allocation66_spill] sm:$0xff] %v10284_v63  ;;  %v10292_v33 = vld [vmem:[#allocation4 + $0x1a70] sm:$0xff]  ;;  %v5957_v48 = vpack.c.bf16 %v10252_v1, %v10250_v41  ;;  %v6469_v10 = vpack.c.bf16 %v10256_v9, %v10254_v13  ;;  %v10322_v13 = vld [vmem:[#allocation4 + $0x1ad8] sm:$0xff]  ;;  %v10469_v39 = vld [vmem:[#allocation4 + $0x1be0] sm:$0xff] }
 0x2da   : > { %v5959_v41 = vpack.c.bf16 %v10260_v14, %v10258_v54  ;;  %v6471_v1 = vpack.c.bf16 %v10264_v57, %v10262_v47  ;;  %v10324_v9 = vld [vmem:[#allocation4 + $0x1af8] sm:$0xff]  ;;  %v10334_v54 = vpop.xlane.xlu0 %1208  ;;  %v10336_v14 = vld [vmem:[#allocation4 + $0x1b08] sm:$0xff]  ;;  %v10360_v63 = vld [vmem:[#allocation4 + $0x1b30] sm:$0xff]  ;;  %v6477_v43 = vpack.c.bf16 %v10292_v33, %v10290_v7 }
 0x2db   : > { %11951 = vst [vmem:[#allocation62_spill] sm:$0xff] %v10334_v54  ;;  %v10338_v47 = vld [vmem:[#allocation4 + $0x1b28] sm:$0xff]  ;;  %v10340_v57 = vld [vmem:[#allocation4 + $0x1b18] sm:$0xff]  ;;  %v5963_v54 = vpack.c.bf16 %v10278_v62, %v10276_v40  ;;  %11954 = vst [vmem:[#allocation61_spill] sm:$0xff] %v10360_v63  ;;  %v1535_v63 = vmul.f32 0.0625, %v10212_v29  ;;  %v1520_v29 = vmul.f32 0.0625, %v10228_v22 }
 0x2dc   : > { %5954 = vmatpush1.bf16.msra.mxu0 %v5953_v23  ;;  %6466 = vmatpush1.bf16.msra.mxu1 %v6465_v58  ;;  %v10318_v23 = vld [vmem:[#allocation4 + $0x1ac8] sm:$0xff]  ;;  %v10350_v27 = vpop.xlane.xlu1 %1160  ;;  %v10374_v40 = vld [vmem:[#allocation4 + $0x1b78] sm:$0xff]  ;;  %v10376_v62 = vld [vmem:[#allocation4 + $0x1b40] sm:$0xff]  ;;  %v1522_v22 = vmul.f32 0.0625, %v10236_v15  ;;  %v1523_v15 = vmul.f32 0.0625, %v10240_v26 }
 0x2dd   : > { %5956 = vmatprep.subr.bf16.mxu0 %v5955_v31  ;;  %6468 = vmatprep.subr.bf16.mxu1 %v6467_v6  ;;  %v10320_v58 = vld [vmem:[#allocation4 + $0x1ae8] sm:$0xff]  ;;  %v10330_v31 = vld [vmem:[#allocation4 + $0x1ad0] sm:$0xff]  ;;  %11955 = vst [vmem:[#allocation50_spill] sm:$0xff] %v10376_v62  ;;  %v10444_v62 = vld [vmem:[#allocation4 + $0x1bf8] sm:$0xff] }
 0x2de   : > { %11949 = vst [vmem:[#allocation41_spill] sm:$0xff] %v10330_v31  ;;  %v10332_v6 = vld [vmem:[#allocation4 + $0x1af0] sm:$0xff]  ;;  %v10418_v31 = vld [vmem:[#allocation4 + $0x1b80] sm:$0xff]  ;;  %11964 = vst [vmem:[#allocation74_spill] sm:$0xff] %v10444_v62  ;;  %v3946_v62 = vrot.slane %v1538_v5, %v11892_v35 }
 0x2df   : > { %11950 = vst [vmem:[#allocation58_spill] sm:$0xff] %v10332_v6  ;;  %v10386_v7 = vld [vmem:[#allocation4 + $0x1b50] sm:$0xff]  ;;  %11961 = vst [vmem:[#allocation73_spill] sm:$0xff] %v10418_v31  ;;  %v10420_v6 = vld [vmem:[#allocation4 + $0x1ba0] sm:$0xff] }
 0x2e0   : > { %5958 = vmatpush1.bf16.msra.mxu0 %v5957_v48  ;;  %6470 = vmatpush1.bf16.msra.mxu1 %v6469_v10  ;;  %v10388_v33 = vld [vmem:[#allocation4 + $0x1b70] sm:$0xff]  ;;  %v10390_v48 = vpop.xlane.xlu0 %1211  ;;  %v10406_v53 = vpop.xlane.xlu1 %1163  ;;  %11962 = vst [vmem:[#allocation72_spill] sm:$0xff] %v10420_v6  ;;  %v10440_v10 = vld [vmem:[#allocation4 + $0x1be8] sm:$0xff]  ;;  %v11965_v59 = vld [vmem:[#allocation16_spill] sm:$0xff] }
 0x2e1   : > { %5960 = vmatprep.subr.bf16.mxu0 %v5959_v41  ;;  %6472 = vmatprep.subr.bf16.mxu1 %v6471_v1  ;;  %11957 = vst [vmem:[#allocation69_spill] sm:$0xff] %v10390_v48  ;;  %v10400_v1 = vld [vmem:[#allocation4 + $0x1b88] sm:$0xff]  ;;  %v10416_v48 = vld [vmem:[#allocation4 + $0x1bb8] sm:$0xff]  ;;  %v10430_v41 = vld [vmem:[#allocation4 + $0x1bb0] sm:$0xff]  ;;  %v3932_v31 = vrot.slane %v1535_v63, %v11965_v59 }
 0x2e2   : > { %11958 = vst [vmem:[#allocation68_spill] sm:$0xff] %v10400_v1  ;;  %v11966_v6 = vld [vmem:[#allocation17_spill] sm:$0xff] }
 0x2e3   : > { %v3857_v55 = vrot.slane %v1520_v29, %v11966_v6  ;;  %v1525_v29 = vmul.f32 0.0625, %v10248_v25  ;;  %v11972_v25 = vpack.c.bf16 %v10320_v58, %v10318_v23  ;;  %v11976_v58 = vld [vmem:[#allocation62_spill] sm:$0xff] }
 0x2e4   : > { %5962 = vmatpush1.bf16.msra.mxu0 %v5961_v49  ;;  %6474 = vmatpush1.bf16.msra.mxu1 %v6473_v20  ;;  %v1536_v49 = vmul.f32 0.0625, %v10215_v50  ;;  %v1537_v50 = vmul.f32 0.0625, %v10230_v30  ;;  %v1521_v20 = vmul.f32 0.0625, %v10232_v17  ;;  %v10455_v1 = vpop.xlane.xlu1 %1166  ;;  %v1539_v30 = vmul.f32 0.0625, %v10238_v52  ;;  %v10480_v17 = vld [vmem:[#allocation4 + $0x1bf0] sm:$0xff] }
 0x2e5   : > { %5964 = vmatprep.subr.bf16.mxu0 %v5963_v54  ;;  %6476 = vmatprep.subr.bf16.mxu1 %v6475_v44  ;;  %v10449_v54 = vpop.xlane.xlu0 %1214  ;;  %v1540_v52 = vmul.f32 0.0625, %v10242_v0  ;;  %v3853_v44 = vrot.slane %v1519_v61, %v11965_v59 }
 0x2e6   : > { %v3936_v36 = vrot.slane %v1536_v49, %v11966_v6  ;;  %v3941_v63 = vrot.slane %v1537_v50, %v11888_v28  ;;  %v1524_v49 = vmul.f32 0.0625, %v10244_v2  ;;  %v3862_v0 = vrot.slane %v1521_v20, %v11888_v28 }
 0x2e7   : > { %v3951_v61 = vrot.slane %v1539_v30, %v11894_v4  ;;  %v11968_v2 = vpack.c.bf16 %v10308_v51, %v10306_v16  ;;  %v11969_v20 = vpack.c.bf16 %v10312_v42, %v10310_v45  ;;  %v3872_v50 = vrot.slane %v1523_v15, %v11894_v4  ;;  %v11971_v30 = vld [vmem:[#allocation57_spill] sm:$0xff] }
 0x2e8   : > { %5966 = vmatpush1.bf16.msra.mxu0 %v5965_v18  ;;  %6478 = vmatpush1.bf16.msra.mxu1 %v6477_v43  ;;  %v11967_v18 = vpack.c.bf16 %v10296_v60, %v10294_v24  ;;  %v10478_v43 = vld [vmem:[#allocation4 + $0x1bd0] sm:$0xff]  ;;  %v1541_v24 = vmul.f32 0.0625, %v10246_v38  ;;  %v1170_v60 = vpop.xlane.xlu1 %1169  ;;  %v3937_v5 = vsel %vm2881_vm1, %v3936_v36, %v3932_v31  ;;  %v11973_v16 = vpack.c.bf16 %v10324_v9, %v10322_v13 }
 0x2e9   : > { %6480 = vmatprep.subr.bf16.mxu1 %v6479_v56  ;;  %v1218_v26 = vpop.xlane.xlu0 %1217  ;;  %v6501_v38 = vpack.c.bf16 %v10480_v17, %v10478_v43  ;;  %v3858_v51 = vsel %vm2881_vm1, %v3857_v55, %v3853_v44  ;;  %v3942_v45 = vsel %vm2888_vm2, %v3941_v63, %v3937_v5  ;;  %v11974_v31 = vld [vmem:[#allocation66_spill] sm:$0xff]  ;;  %v1527_v44 = vmul.f32 0.0625, %v10350_v27  ;;  %v2504_v17 = vld [vmem:[#allocation4 + $0x1c98] sm:$0xff] }
 0x2ea   : > { %5968 = vmatprep.subr.bf16.mxu0 %v11967_v18  ;;  %v3867_v18 = vrot.slane %v1522_v22, %v11892_v35  ;;  %v11970_v22 = vld [vmem:[#allocation21_spill] sm:$0xff]  ;;  %v1542_v35 = vmul.f32 0.0625, %v11971_v30  ;;  %v1526_v36 = vmul.f32 0.0625, %v11974_v31  ;;  %v1543_v30 = vmul.f32 0.0625, %v11976_v58  ;;  %v11985_v31 = vld [vmem:[#allocation24_spill] sm:$0xff]  ;;  %v2508_v43 = vld [vmem:[#allocation4 + $0x1cb8] sm:$0xff] }
 0x2eb   : > { %v3956_v56 = vrot.slane %v1540_v52, %v11970_v22  ;;  %v3877_v42 = vrot.slane %v1524_v49, %v11970_v22  ;;  %v3863_v52 = vsel %vm2888_vm2, %v3862_v0, %v3858_v51  ;;  %v11977_v63 = vpack.c.bf16 %v10328_v46, %v10326_v34  ;;  %v11978_v49 = vld [vmem:[#allocation58_spill] sm:$0xff]  ;;  %v11979_v0 = vld [vmem:[#allocation41_spill] sm:$0xff] }
 0x2ec   : > { %5970 = vmatpush1.bf16.msra.mxu0 %v11968_v2  ;;  %6482 = vmatpush1.bf16.msra.mxu1 %v11969_v20  ;;  %v3947_v2 = vsel %vm2895_vm3, %v3946_v62, %v3942_v45  ;;  %v11975_v20 = vld [vmem:[#allocation22_spill] sm:$0xff]  ;;  %v3868_v13 = vsel %vm2895_vm3, %v3867_v18, %v3863_v52  ;;  %v11980_v62 = vpack.c.bf16 %v11978_v49, %v11979_v0  ;;  %v11982_v51 = vld [vmem:[#allocation69_spill] sm:$0xff] }
 0x2ed   : > { %5972 = vmatprep.subr.bf16.mxu0 %v11972_v25  ;;  %6484 = vmatprep.subr.bf16.mxu1 %v11973_v16  ;;  %v1221_v15 = vpop.xlane.xlu0 %1220  ;;  %v3961_v23 = vrot.slane %v1541_v24, %v11975_v20  ;;  %v1173_v25 = vpop.xlane.xlu1 %1172  ;;  %v3952_v9 = vsel %vm2902_vm4, %v3951_v61, %v3947_v2  ;;  %v3882_v55 = vrot.slane %v1525_v29, %v11975_v20  ;;  %v11981_v16 = vld [vmem:[#allocation23_spill] sm:$0xff]  ;;  %v1544_v61 = vmul.f32 0.0625, %v11982_v51  ;;  %v10742_v20 = vld [vmem:[#allocation4 + $0x1f10] sm:$0xff] }
 0x2ee   : > { %v3873_v24 = vsel %vm2902_vm4, %v3872_v50, %v3868_v13  ;;  %v3957_v5 = vsel %vm2909_vm5, %v3956_v56, %v3952_v9  ;;  %v3966_v18 = vrot.slane %v1542_v35, %v11981_v16  ;;  %v11983_v29 = vpack.c.bf16 %v10338_v47, %v10336_v14  ;;  %v11989_v13 = vld [vmem:[#allocation65_spill] sm:$0xff] }
 0x2ef   : > { %v11984_v27 = vpack.c.bf16 %v10342_v12, %v10340_v57  ;;  %v3878_v46 = vsel %vm2909_vm5, %v3877_v42, %v3873_v24  ;;  %v3887_v34 = vrot.slane %v1526_v36, %v11981_v16  ;;  %v1528_v50 = vmul.f32 0.0625, %v10406_v53  ;;  %v11986_v36 = vld [vmem:[#allocation34_spill] sm:$0xff] }
 0x2f0   : > { %5974 = vmatpush1.bf16.msra.mxu0 %v11977_v63  ;;  %6486 = vmatpush1.bf16.msra.mxu1 %v11980_v62  ;;  %v1545_v56 = vmul.f32 0.0625, %v10449_v54  ;;  %v3962_v35 = vsel %vm2916_vm6, %v3961_v23, %v3957_v5  ;;  %v3971_v52 = vrot.slane %v1543_v30, %v11985_v31  ;;  %v1529_v14 = vmul.f32 0.0625, %v10455_v1  ;;  %v11988_v54 = vld [vmem:[#allocation61_spill] sm:$0xff]  ;;  %v11995_v5 = vld [vmem:[#allocation27_spill] sm:$0xff] }
 0x2f1   : > { %5976 = vmatprep.subr.bf16.mxu0 %v11983_v29  ;;  %6488 = vmatprep.subr.bf16.mxu1 %v11984_v27  ;;  %v1224_v45 = vpop.xlane.xlu0 %1223  ;;  %v1546_v47 = vmul.f32 0.0625, %v1218_v26  ;;  %v1176_v2 = vpop.xlane.xlu1 %1175  ;;  %v3883_v12 = vsel %vm2916_vm6, %v3882_v55, %v3878_v46  ;;  %v3892_v57 = vrot.slane %v1527_v44, %v11985_v31  ;;  %v1530_v42 = vmul.f32 0.0625, %v1170_v60  ;;  %v11991_v30 = vld [vmem:[#allocation25_spill] sm:$0xff]  ;;  %v11994_v44 = vld [vmem:[#allocation26_spill] sm:$0xff]  ;;  %v11997_v29 = vld [vmem:[#allocation64_spill] sm:$0xff] }
 0x2f2   : > { %v1547_v58 = vmul.f32 0.0625, %v1221_v15  ;;  %v11987_v53 = vpack.c.bf16 %v10346_v11, %v11986_v36  ;;  %v11990_v9 = vpack.c.bf16 %v11988_v54, %v11989_v13  ;;  %v3967_v23 = vsel %vm2923_vm7, %v3966_v18, %v3962_v35  ;;  %v11998_v27 = vld [vmem:[#allocation50_spill] sm:$0xff]  ;;  %v12001_v35 = vld [vmem:[#allocation29_spill] sm:$0xff] }
 0x2f3   : > { %v3976_v1 = vrot.slane %v1544_v61, %v11991_v30  ;;  %v1531_v26 = vmul.f32 0.0625, %v1173_v25  ;;  %v1548_v63 = vmul.f32 0.0625, %v1224_v45  ;;  %v11992_v55 = vpack.c.bf16 %v10364_v8, %v10362_v37 }
 0x2f4   : > { %5978 = vmatpush1.bf16.msra.mxu0 %v11987_v53  ;;  %6490 = vmatpush1.bf16.msra.mxu1 %v11990_v9  ;;  %v11993_v60 = vpack.c.bf16 %v10374_v40, %v10372_v19  ;;  %v3888_v11 = vsel %vm2923_vm7, %v3887_v34, %v3883_v12  ;;  %v3897_v15 = vrot.slane %v1528_v50, %v11991_v30  ;;  %v1532_v0 = vmul.f32 0.0625, %v1176_v2  ;;  %v11996_v40 = vld [vmem:[#allocation28_spill] sm:$0xff]  ;;  %v12005_v12 = vld [vmem:[#allocation70_spill] sm:$0xff] }
 0x2f5   : > { %5980 = vmatprep.subr.bf16.mxu0 %v11992_v55  ;;  %v3981_v49 = vrot.slane %v1545_v56, %v11994_v44  ;;  %v1227_v62 = vpop.xlane.xlu0 %1226  ;;  %v3972_v24 = vsel %vm2930_vm8, %v3971_v52, %v3967_v23  ;;  %v3902_v25 = vrot.slane %v1529_v14, %v11994_v44  ;;  %v3986_v18 = vrot.slane %v1546_v47, %v11995_v5  ;;  %v1179_v37 = vpop.xlane.xlu1 %1178  ;;  %v12002_v14 = vld [vmem:[#allocation71_spill] sm:$0xff]  ;;  %v12003_v47 = vld [vmem:[#allocation68_spill] sm:$0xff]  ;;  %v12007_v53 = vld [vmem:[#allocation30_spill] sm:$0xff] }
 0x2f6   : > { %6492 = vmatprep.subr.bf16.mxu1 %v11993_v60  ;;  %v1549_v8 = vmul.f32 0.0625, %v1227_v62  ;;  %v3893_v51 = vsel %vm2930_vm8, %v3892_v57, %v3888_v11  ;;  %v3907_v19 = vrot.slane %v1530_v42, %v11995_v5  ;;  %v3991_v61 = vrot.slane %v1547_v58, %v11996_v40  ;;  %v2486_v42 = vld [vmem:[#allocation4 + $0x1c08] sm:$0xff]  ;;  %v2492_v55 = vld [vmem:[#allocation4 + $0x1c38] sm:$0xff]  ;;  %v10730_v5 = vld [vmem:[#allocation4 + $0x1f00] sm:$0xff] }
 0x2f7   : > { %v11999_v46 = vpack.c.bf16 %v11997_v29, %v11998_v27  ;;  %v12000_v34 = vpack.c.bf16 %v10388_v33, %v10386_v7  ;;  %v1533_v50 = vmul.f32 0.0625, %v1179_v37  ;;  %v3977_v56 = vsel %vm2937_vm9, %v3976_v1, %v3972_v24  ;;  %v2490_v58 = vld [vmem:[#allocation4 + $0x1c28] sm:$0xff]  ;;  %v12015_v27 = vld [vmem:[#allocation75_spill] sm:$0xff]  ;;  %12021 = vst [vmem:[#allocation18_spill] sm:$0xff] %v10730_v5  ;;  %v10812_v5 = vld [vmem:[#allocation4 + $0x1f90] sm:$0xff] }
 0x2f8   : > { %v3912_v45 = vrot.slane %v1531_v26, %v11996_v40  ;;  %v3996_v52 = vrot.slane %v1548_v63, %v12001_v35  ;;  %v12004_v2 = vpack.c.bf16 %v12002_v14, %v12003_v47  ;;  %v12006_v57 = vpack.c.bf16 %v10416_v48, %v12005_v12  ;;  %v2488_v63 = vld [vmem:[#allocation4 + $0x1c18] sm:$0xff]  ;;  %12031 = vst [vmem:[#allocation35_spill] sm:$0xff] %v10812_v5 }
 0x2f9   : > { %5982 = vmatpush1.bf16.msra.mxu0 %v11999_v46  ;;  %6494 = vmatpush1.bf16.msra.mxu1 %v12000_v34  ;;  %v3898_v7 = vsel %vm2937_vm9, %v3897_v15, %v3893_v51  ;;  %v3982_v33 = vsel %vm2944_vm10, %v3981_v49, %v3977_v56  ;;  %v3917_v36 = vrot.slane %v1532_v0, %v12001_v35  ;;  %v1230_v13 = vpop.xlane.xlu0 %1229  ;;  %v1182_v48 = vpop.xlane.xlu1 %1181  ;;  %v12008_v15 = vld [vmem:[#allocation72_spill] sm:$0xff]  ;;  %v12009_v49 = vld [vmem:[#allocation73_spill] sm:$0xff]  ;;  %v12012_v51 = vld [vmem:[#allocation31_spill] sm:$0xff] }
 0x2fa   : > { %5984 = vmatprep.subr.bf16.mxu0 %v12004_v2  ;;  %6496 = vmatprep.subr.bf16.mxu1 %v12006_v57  ;;  %v4001_v54 = vrot.slane %v1549_v8, %v12007_v53  ;;  %v3903_v9 = vsel %vm2944_vm10, %v3902_v25, %v3898_v7  ;;  %v3987_v23 = vsel %vm2951_vm11, %v3986_v18, %v3982_v33  ;;  %v1550_v26 = vmul.f32 0.0625, %v1230_v13  ;;  %v2485_v18 = vld [vmem:[#allocation4 + $0x1c00] sm:$0xff]  ;;  %v2500_v12 = vld [vmem:[#allocation4 + $0x1c78] sm:$0xff] }
 0x2fb   : > { %v3922_v1 = vrot.slane %v1533_v50, %v12007_v53  ;;  %v3908_v60 = vsel %vm2951_vm11, %v3907_v19, %v3903_v9  ;;  %v3992_v11 = vsel %vm2958_vm12, %v3991_v61, %v3987_v23  ;;  %v12010_v0 = vpack.c.bf16 %v12008_v15, %v12009_v49  ;;  %v2489_v8 = vld [vmem:[#allocation4 + $0x1c20] sm:$0xff]  ;;  %v12014_v61 = vld [vmem:[#allocation74_spill] sm:$0xff]  ;;  %v2494_v50 = vld [vmem:[#allocation4 + $0x1c48] sm:$0xff] }
 0x2fc   : > { %v12011_v62 = vpack.c.bf16 %v10430_v41, %v10428_v21  ;;  %v1534_v24 = vmul.f32 0.0625, %v1182_v48  ;;  %v5991_v25 = vpack.c.bf16 %v2490_v58, %v2486_v42  ;;  %v3913_v37 = vsel %vm2958_vm12, %v3912_v45, %v3908_v60  ;;  %v2487_v21 = vld [vmem:[#allocation4 + $0x1c10] sm:$0xff]  ;;  %v2497_v13 = vld [vmem:[#allocation4 + $0x1c60] sm:$0xff]  ;;  %v2502_v48 = vld [vmem:[#allocation4 + $0x1c88] sm:$0xff] }
 0x2fd   : > { %5986 = vmatpush1.bf16.msra.mxu0 %v12010_v0  ;;  %v4006_v29 = vrot.slane %v1550_v26, %v12012_v51  ;;  %v12013_v19 = vpack.c.bf16 %v10440_v10, %v10432_v3  ;;  %v12016_v46 = vpack.c.bf16 %v12014_v61, %v12015_v27  ;;  %v3997_v34 = vsel %vm2965_vm13, %v3996_v52, %v3992_v11  ;;  %v2491_v41 = vld [vmem:[#allocation4 + $0x1c30] sm:$0xff]  ;;  %v10613_v45 = vpop.xlane.xlu0 %1280  ;;  %v2498_v3 = vld [vmem:[#allocation4 + $0x1c68] sm:$0xff]  ;;  %v2496_v10 = vld [vmem:[#allocation4 + $0x1c58] sm:$0xff]  ;;  %v10616_v57 = vpop.xlane.xlu1 %1283 }
 0x2fe   : > { %6498 = vmatpush1.bf16.msra.mxu1 %v12011_v62  ;;  %v3918_v56 = vsel %vm2965_vm13, %v3917_v36, %v3913_v37  ;;  %v3927_v14 = vrot.slane %v1534_v24, %v12012_v51  ;;  %v4002_v47 = vsel %vm2972_vm14, %v4001_v54, %v3997_v34  ;;  %v6503_v2 = vpack.c.bf16 %v2492_v55, %v2488_v63  ;;  %v2493_v54 = vld [vmem:[#allocation4 + $0x1c40] sm:$0xff]  ;;  %v2495_v26 = vld [vmem:[#allocation4 + $0x1c50] sm:$0xff]  ;;  %v2510_v24 = vld [vmem:[#allocation4 + $0x1cc8] sm:$0xff] }
 0x2ff   : > { %5988 = vmatprep.subr.bf16.mxu0 %v12013_v19  ;;  %6500 = vmatprep.subr.bf16.mxu1 %v12016_v46  ;;  %v4007_v42 = vsel %vm2979_vm15, %v4006_v29, %v4002_v47  ;;  %v3923_v52 = vsel %vm2972_vm14, %v3922_v1, %v3918_v56  ;;  %v12017_v58 = vpack.c.bf16 %v10469_v39, %v10467_v32  ;;  %v2499_v1 = vld [vmem:[#allocation4 + $0x1c70] sm:$0xff]  ;;  %v2506_v32 = vld [vmem:[#allocation4 + $0x1ca8] sm:$0xff]  ;;  %v2501_v60 = vld [vmem:[#allocation4 + $0x1c80] sm:$0xff] }
 0x300   : > { %v3928_v7 = vsel %vm2979_vm15, %v3927_v14, %v3923_v52  ;;  %v5993_v33 = vpack.c.bf16 %v2489_v8, %v2485_v18  ;;  %v6505_v36 = vpack.c.bf16 %v2491_v41, %v2487_v21  ;;  %4672 = vmatprep.mubr.f32.mxu0 %v4007_v42  ;;  %5240 = vmatprep.mubr.f32.mxu1 %v4007_v42  ;;  %v2505_v11 = vld [vmem:[#allocation4 + $0x1ca0] sm:$0xff]  ;;  %v2503_v0 = vld [vmem:[#allocation4 + $0x1c90] sm:$0xff]  ;;  %v2514_v18 = vld [vmem:[#allocation4 + $0x1ce8] sm:$0xff] }
 0x301   : > { %5990 = vmatpush1.bf16.msra.mxu0 %v12017_v58  ;;  %v5995_v9 = vpack.c.bf16 %v2498_v3, %v2494_v50  ;;  %v6507_v23 = vpack.c.bf16 %v2500_v12, %v2496_v10  ;;  %v10627_v39 = vpop.xlane.xlu0 %1232  ;;  %v5997_v63 = vpack.c.bf16 %v2497_v13, %v2493_v54  ;;  %v6509_v55 = vpack.c.bf16 %v2499_v1, %v2495_v26  ;;  %v2507_v62 = vld [vmem:[#allocation4 + $0x1cb0] sm:$0xff]  ;;  %v2512_v8 = vld [vmem:[#allocation4 + $0x1cd8] sm:$0xff]  ;;  %v2509_v27 = vld [vmem:[#allocation4 + $0x1cc0] sm:$0xff] }
 0x302   : > { %6502 = vmatpush1.bf16.msra.mxu1 %v6501_v38  ;;  %5992 = vmatprep.subr.bf16.mxu0 %v5991_v25  ;;  %v10629_v38 = vpop.xlane.xlu1 %1235  ;;  %v5999_v15 = vpack.c.bf16 %v2506_v32, %v2502_v48  ;;  %v6511_v49 = vpack.c.bf16 %v2508_v43, %v2504_v17  ;;  %v2516_v37 = vld [vmem:[#allocation4 + $0x1cf8] sm:$0xff]  ;;  %v6001_v19 = vpack.c.bf16 %v2505_v11, %v2501_v60  ;;  %v2513_v46 = vld [vmem:[#allocation4 + $0x1ce0] sm:$0xff]  ;;  %v2511_v41 = vld [vmem:[#allocation4 + $0x1cd0] sm:$0xff] }
 0x303   : > { %6504 = vmatprep.subr.bf16.mxu1 %v6503_v2  ;;  %v6513_v61 = vpack.c.bf16 %v2507_v62, %v2503_v0  ;;  %v6003_v34 = vpack.c.bf16 %v2514_v18, %v2510_v24  ;;  %v6515_v21 = vpack.c.bf16 %v2516_v37, %v2512_v8  ;;  %v2515_v50 = vld [vmem:[#allocation4 + $0x1cf0] sm:$0xff]  ;;  %v2518_v56 = vld [vmem:[#allocation4 + $0x1d08] sm:$0xff]  ;;  %v2520_v2 = vld [vmem:[#allocation4 + $0x1d18] sm:$0xff]  ;;  %v6005_v12 = vpack.c.bf16 %v2513_v46, %v2509_v27 }
 0x304   : > { %4673 = vmatmul.mubr.f32.vlgmr.msra.gmra.mrb[0].mxu0 %v3928_v7  ;;  %v2522_v47 = vld [vmem:[#allocation4 + $0x1d28] sm:$0xff]  ;;  %v2524_v3 = vld [vmem:[#allocation4 + $0x1d38] sm:$0xff]  ;;  %v6517_v42 = vpack.c.bf16 %v2515_v50, %v2511_v41  ;;  %v2517_v52 = vld [vmem:[#allocation4 + $0x1d00] sm:$0xff] }
 0x305   : > { %5241 = vmatmul.mubr.f32.vlgmr.msra.gmra.mrb[0].mxu1 %v3928_v7  ;;  %5994 = vmatpush1.bf16.msra.mxu0 %v5993_v33  ;;  %v10631_v25 = vpop.xlane.xlu0 %1286  ;;  %v2521_v58 = vld [vmem:[#allocation4 + $0x1d20] sm:$0xff]  ;;  %v6007_v7 = vpack.c.bf16 %v2522_v47, %v2518_v56  ;;  %v6519_v33 = vpack.c.bf16 %v2524_v3, %v2520_v2  ;;  %v2523_v54 = vld [vmem:[#allocation4 + $0x1d30] sm:$0xff]  ;;  %v2526_v13 = vld [vmem:[#allocation4 + $0x1d48] sm:$0xff] }
 0x306   : > { %6506 = vmatpush1.bf16.msra.mxu1 %v6505_v36  ;;  %5996 = vmatprep.subr.bf16.mxu0 %v5995_v9  ;;  %v10633_v29 = vpop.xlane.xlu1 %1238  ;;  %v2519_v36 = vld [vmem:[#allocation4 + $0x1d10] sm:$0xff]  ;;  %v2528_v26 = vld [vmem:[#allocation4 + $0x1d58] sm:$0xff]  ;;  %v6009_v32 = vpack.c.bf16 %v2521_v58, %v2517_v52  ;;  %v2525_v43 = vld [vmem:[#allocation4 + $0x1d40] sm:$0xff] }
 0x307   : > { %6508 = vmatprep.subr.bf16.mxu1 %v6507_v23  ;;  %v2530_v23 = vld [vmem:[#allocation4 + $0x1d68] sm:$0xff]  ;;  %v2532_v1 = vld [vmem:[#allocation4 + $0x1d78] sm:$0xff]  ;;  %v6521_v17 = vpack.c.bf16 %v2523_v54, %v2519_v36  ;;  %v2527_v11 = vld [vmem:[#allocation4 + $0x1d50] sm:$0xff] }
 0x308   : > { %v6523_v60 = vpack.c.bf16 %v2532_v1, %v2528_v26  ;;  %v2538_v62 = vld [vmem:[#allocation4 + $0x1da8] sm:$0xff]  ;;  %v2536_v24 = vld [vmem:[#allocation4 + $0x1d98] sm:$0xff]  ;;  %v2537_v27 = vld [vmem:[#allocation4 + $0x1da0] sm:$0xff] }
 0x309   : > { %5998 = vmatpush1.bf16.msra.mxu0 %v5997_v63  ;;  %v10635_v14 = vpop.xlane.xlu0 %1289  ;;  %v2529_v63 = vld [vmem:[#allocation4 + $0x1d60] sm:$0xff]  ;;  %v2540_v18 = vld [vmem:[#allocation4 + $0x1db8] sm:$0xff]  ;;  %v2539_v41 = vld [vmem:[#allocation4 + $0x1db0] sm:$0xff] }
 0x30a   : > { %6510 = vmatpush1.bf16.msra.mxu1 %v6509_v55  ;;  %6000 = vmatprep.subr.bf16.mxu0 %v5999_v15  ;;  %v10637_v10 = vpop.xlane.xlu1 %1241  ;;  %v6011_v55 = vpack.c.bf16 %v2530_v23, %v2526_v13  ;;  %v2531_v15 = vld [vmem:[#allocation4 + $0x1d70] sm:$0xff]  ;;  %v6013_v37 = vpack.c.bf16 %v2529_v63, %v2525_v43  ;;  %v2542_v50 = vld [vmem:[#allocation4 + $0x1dc8] sm:$0xff]  ;;  %v2544_v2 = vld [vmem:[#allocation4 + $0x1dd8] sm:$0xff] }
 0x30b   : > { %6512 = vmatprep.subr.bf16.mxu1 %v6511_v49  ;;  %v2534_v49 = vld [vmem:[#allocation4 + $0x1d88] sm:$0xff]  ;;  %v2548_v3 = vld [vmem:[#allocation4 + $0x1df8] sm:$0xff]  ;;  %v10653_v52 = vld [vmem:[#allocation4 + $0x1de0] sm:$0xff] }
 0x30c   : > { %v6015_v46 = vpack.c.bf16 %v2538_v62, %v2534_v49  ;;  %v2546_v47 = vld [vmem:[#allocation4 + $0x1de8] sm:$0xff]  ;;  %v2547_v36 = vld [vmem:[#allocation4 + $0x1df0] sm:$0xff]  ;;  %v6531_v23 = vpack.c.bf16 %v2548_v3, %v2544_v2  ;;  %v2552_v1 = vld [vmem:[#allocation4 + $0x1e18] sm:$0xff] }
 0x30d   : > { %6002 = vmatpush1.bf16.msra.mxu0 %v6001_v19  ;;  %v10639_v9 = vpop.xlane.xlu0 %1292  ;;  %v6525_v19 = vpack.c.bf16 %v2531_v15, %v2527_v11  ;;  %v10655_v54 = vld [vmem:[#allocation4 + $0x1e08] sm:$0xff]  ;;  %v6019_v13 = vpack.c.bf16 %v2546_v47, %v2542_v50  ;;  %v10659_v43 = vld [vmem:[#allocation4 + $0x1e00] sm:$0xff]  ;;  %v10673_v62 = vld [vmem:[#allocation4 + $0x1e58] sm:$0xff] }
 0x30e   : > { %6514 = vmatpush1.bf16.msra.mxu1 %v6513_v61  ;;  %6004 = vmatprep.subr.bf16.mxu0 %v6003_v34  ;;  %v10641_v48 = vpop.xlane.xlu1 %1244  ;;  %v2533_v61 = vld [vmem:[#allocation4 + $0x1d80] sm:$0xff]  ;;  %v6527_v34 = vpack.c.bf16 %v2540_v18, %v2536_v24  ;;  %v2554_v26 = vld [vmem:[#allocation4 + $0x1e28] sm:$0xff]  ;;  %v10675_v24 = vld [vmem:[#allocation4 + $0x1e78] sm:$0xff] }
 0x30f   : > { %6516 = vmatprep.subr.bf16.mxu1 %v6515_v21  ;;  %v2535_v21 = vld [vmem:[#allocation4 + $0x1d90] sm:$0xff]  ;;  %v6017_v58 = vpack.c.bf16 %v2537_v27, %v2533_v61  ;;  %v10661_v63 = vld [vmem:[#allocation4 + $0x1e20] sm:$0xff]  ;;  %v10667_v11 = vld [vmem:[#allocation4 + $0x1e48] sm:$0xff]  ;;  %v6023_v3 = vpack.c.bf16 %v2554_v26, %v10655_v54 }
 0x310   : > { %v10669_v15 = vld [vmem:[#allocation4 + $0x1e68] sm:$0xff]  ;;  %v10677_v18 = vld [vmem:[#allocation4 + $0x1e40] sm:$0xff]  ;;  %v10683_v61 = vld [vmem:[#allocation4 + $0x1e70] sm:$0xff]  ;;  %v6025_v30 = vpack.c.bf16 %v10661_v63, %v10659_v43 }
 0x311   : > { %6006 = vmatpush1.bf16.msra.mxu0 %v6005_v12  ;;  %v10643_v0 = vpop.xlane.xlu0 %1295  ;;  %v10693_v50 = vld [vmem:[#allocation4 + $0x1eb8] sm:$0xff]  ;;  %v10695_v47 = vld [vmem:[#allocation4 + $0x1e80] sm:$0xff]  ;;  %v10718_v54 = vld [vmem:[#allocation4 + $0x1ed0] sm:$0xff]  ;;  %v6027_v16 = vpack.c.bf16 %v10669_v15, %v10667_v11 }
 0x312   : > { %6518 = vmatpush1.bf16.msra.mxu1 %v6517_v42  ;;  %6008 = vmatprep.subr.bf16.mxu0 %v6007_v7  ;;  %v10645_v8 = vpop.xlane.xlu1 %1247  ;;  %v10651_v42 = vld [vmem:[#allocation4 + $0x1dc0] sm:$0xff]  ;;  %v6529_v7 = vpack.c.bf16 %v2539_v41, %v2535_v21  ;;  %v10689_v21 = vld [vmem:[#allocation4 + $0x1ea8] sm:$0xff]  ;;  %v10691_v41 = vld [vmem:[#allocation4 + $0x1e98] sm:$0xff] }
 0x313   : > { %6520 = vmatprep.subr.bf16.mxu1 %v6519_v33  ;;  %v2543_v33 = vld [vmem:[#allocation4 + $0x1dd0] sm:$0xff]  ;;  %v6021_v27 = vpack.c.bf16 %v10653_v52, %v10651_v42  ;;  %v10697_v2 = vld [vmem:[#allocation4 + $0x1ea0] sm:$0xff]  ;;  %v10704_v52 = vld [vmem:[#allocation4 + $0x1ec8] sm:$0xff] }
 0x314   : > { %v10702_v42 = vld [vmem:[#allocation4 + $0x1eb0] sm:$0xff]  ;;  %v10710_v51 = vld [vmem:[#allocation4 + $0x1ef8] sm:$0xff]  ;;  %v10712_v53 = vld [vmem:[#allocation4 + $0x1ec0] sm:$0xff] }
 0x315   : > { %6010 = vmatpush1.bf16.msra.mxu0 %v6009_v32  ;;  %v10647_v56 = vpop.xlane.xlu0 %1298  ;;  %v2556_v32 = vld [vmem:[#allocation4 + $0x1e38] sm:$0xff]  ;;  %12019 = vst [vmem:[#allocation33_spill] sm:$0xff] %v10712_v53  ;;  %v10714_v35 = vld [vmem:[#allocation4 + $0x1ee0] sm:$0xff]  ;;  %v10722_v26 = vld [vmem:[#allocation4 + $0x1f08] sm:$0xff] }
 0x316   : > { %6522 = vmatpush1.bf16.msra.mxu1 %v6521_v17  ;;  %6012 = vmatprep.subr.bf16.mxu0 %v6011_v55  ;;  %v10649_v12 = vpop.xlane.xlu1 %1250  ;;  %v10663_v55 = vld [vmem:[#allocation4 + $0x1e10] sm:$0xff]  ;;  %v10728_v40 = vld [vmem:[#allocation4 + $0x1f38] sm:$0xff] }
 0x317   : > { %6524 = vmatprep.subr.bf16.mxu1 %v6523_v60  ;;  %v10665_v60 = vld [vmem:[#allocation4 + $0x1e30] sm:$0xff]  ;;  %v10756_v11 = vld [vmem:[#allocation4 + $0x1f58] sm:$0xff] }
 0x318   : > { %v6537_v31 = vpack.c.bf16 %v10665_v60, %v10663_v55  ;;  %v10752_v55 = vld [vmem:[#allocation4 + $0x1f48] sm:$0xff]  ;;  %12024 = vst [vmem:[#allocation43_spill] sm:$0xff] %v10756_v11  ;;  %v10800_v53 = vld [vmem:[#allocation4 + $0x1fb8] sm:$0xff] }
 0x319   : > { %6014 = vmatpush1.bf16.msra.mxu0 %v6013_v37  ;;  %v10657_v17 = vpop.xlane.xlu0 %1301  ;;  %v10679_v37 = vld [vmem:[#allocation4 + $0x1e60] sm:$0xff]  ;;  %v10754_v60 = vld [vmem:[#allocation4 + $0x1f68] sm:$0xff] }
 0x31a   : > { %6526 = vmatpush1.bf16.msra.mxu1 %v6525_v19  ;;  %6016 = vmatprep.subr.bf16.mxu0 %v6015_v46  ;;  %v10671_v49 = vpop.xlane.xlu1 %1253  ;;  %v10681_v19 = vld [vmem:[#allocation4 + $0x1e50] sm:$0xff]  ;;  %v6533_v46 = vpack.c.bf16 %v2547_v36, %v2543_v33  ;;  %v10706_v33 = vld [vmem:[#allocation4 + $0x1ee8] sm:$0xff]  ;;  %v10708_v36 = vld [vmem:[#allocation4 + $0x1ed8] sm:$0xff]  ;;  %v6029_v43 = vpack.c.bf16 %v10679_v37, %v10677_v18 }
 0x31b   : > { %6528 = vmatprep.subr.bf16.mxu1 %v6527_v34  ;;  %12018 = vst [vmem:[#allocation51_spill] sm:$0xff] %v10671_v49  ;;  %v10687_v34 = vld [vmem:[#allocation4 + $0x1e88] sm:$0xff]  ;;  %v10744_v49 = vld [vmem:[#allocation4 + $0x1f30] sm:$0xff]  ;;  %v6541_v63 = vpack.c.bf16 %v10683_v61, %v10681_v19  ;;  %v10764_v18 = vld [vmem:[#allocation4 + $0x1f78] sm:$0xff] }
 0x31c   : > { %v6031_v15 = vpack.c.bf16 %v10689_v21, %v10687_v34  ;;  %12025 = vst [vmem:[#allocation20_spill] sm:$0xff] %v10764_v18  ;;  %v10766_v37 = vld [vmem:[#allocation4 + $0x1f40] sm:$0xff]  ;;  %v10822_v34 = vld [vmem:[#allocation4 + $0x1fc8] sm:$0xff]  ;;  %v1551_v18 = vmul.f32 0.0625, %v10627_v39 }
 0x31d   : > { %6018 = vmatpush1.bf16.msra.mxu0 %v6017_v58  ;;  %v6535_v58 = vpack.c.bf16 %v2556_v32, %v2552_v1  ;;  %v10724_v1 = vld [vmem:[#allocation4 + $0x1f28] sm:$0xff]  ;;  %v10726_v32 = vld [vmem:[#allocation4 + $0x1f18] sm:$0xff]  ;;  %v10768_v19 = vld [vmem:[#allocation4 + $0x1f60] sm:$0xff]  ;;  %12033 = vst [vmem:[#allocation38_spill] sm:$0xff] %v10822_v34 }
 0x31e   : > { %6530 = vmatpush1.bf16.msra.mxu1 %v6529_v7  ;;  %6020 = vmatprep.subr.bf16.mxu0 %v6019_v13  ;;  %v10700_v7 = vld [vmem:[#allocation4 + $0x1e90] sm:$0xff]  ;;  %v10716_v13 = vpop.xlane.xlu0 %1304  ;;  %v10732_v44 = vpop.xlane.xlu1 %1256  ;;  %v10810_v21 = vld [vmem:[#allocation4 + $0x1fa0] sm:$0xff]  ;;  %v10824_v11 = vld [vmem:[#allocation4 + $0x1fe8] sm:$0xff] }
 0x31f   : > { %6532 = vmatprep.subr.bf16.mxu1 %v6531_v23  ;;  %12020 = vst [vmem:[#allocation59_spill] sm:$0xff] %v10716_v13  ;;  %v10720_v23 = vld [vmem:[#allocation4 + $0x1ef0] sm:$0xff]  ;;  %12022 = vst [vmem:[#allocation45_spill] sm:$0xff] %v10732_v44  ;;  %v10740_v13 = vld [vmem:[#allocation4 + $0x1f20] sm:$0xff]  ;;  %v6539_v44 = vpack.c.bf16 %v10675_v24, %v10673_v62  ;;  %v6543_v62 = vpack.c.bf16 %v10693_v50, %v10691_v41 }
 0x320   : > { %12023 = vst [vmem:[#allocation42_spill] sm:$0xff] %v10740_v13  ;;  %v10780_v41 = vld [vmem:[#allocation4 + $0x1f50] sm:$0xff]  ;;  %v10796_v24 = vld [vmem:[#allocation4 + $0x1fa8] sm:$0xff]  ;;  %v1567_v13 = vmul.f32 0.0625, %v10613_v45  ;;  %12034 = vst [vmem:[#allocation47_spill] sm:$0xff] %v10824_v11  ;;  %v1552_v45 = vmul.f32 0.0625, %v10629_v38 }
 0x321   : > { %6022 = vmatpush1.bf16.msra.mxu0 %v6021_v27  ;;  %12027 = vst [vmem:[#allocation40_spill] sm:$0xff] %v10780_v41  ;;  %v10782_v50 = vld [vmem:[#allocation4 + $0x1f70] sm:$0xff]  ;;  %v1554_v38 = vmul.f32 0.0625, %v10637_v10  ;;  %v1555_v10 = vmul.f32 0.0625, %v10641_v48  ;;  %v12035_v48 = vld [vmem:[#allocation19_spill] sm:$0xff] }
 0x322   : > { %6534 = vmatpush1.bf16.msra.mxu1 %v6533_v46  ;;  %6024 = vmatprep.subr.bf16.mxu0 %v6023_v3  ;;  %v10770_v61 = vpop.xlane.xlu0 %1307  ;;  %12028 = vst [vmem:[#allocation37_spill] sm:$0xff] %v10782_v50  ;;  %v10784_v3 = vld [vmem:[#allocation4 + $0x1f88] sm:$0xff]  ;;  %v10820_v27 = vld [vmem:[#allocation4 + $0x1fb0] sm:$0xff]  ;;  %v1570_v46 = vmul.f32 0.0625, %v10635_v14  ;;  %v10847_v14 = vld [vmem:[#allocation4 + $0x1fd8] sm:$0xff]  ;;  %v4090_v50 = vrot.slane %v1567_v13, %v11965_v59  ;;  %v1556_v13 = vmul.f32 0.0625, %v10645_v8  ;;  %v12036_v8 = vpack.c.bf16 %v10697_v2, %v10695_v47 }
 0x323   : > { %6536 = vmatprep.subr.bf16.mxu1 %v6535_v58  ;;  %12026 = vst [vmem:[#allocation32_spill] sm:$0xff] %v10770_v61  ;;  %12029 = vst [vmem:[#allocation39_spill] sm:$0xff] %v10784_v3  ;;  %v10786_v58 = vpop.xlane.xlu1 %1259  ;;  %v10798_v61 = vld [vmem:[#allocation4 + $0x1f98] sm:$0xff]  ;;  %v12039_v47 = vpack.c.bf16 %v10710_v51, %v10708_v36 }
 0x324   : > { %12030 = vst [vmem:[#allocation46_spill] sm:$0xff] %v10786_v58  ;;  %v10808_v58 = vld [vmem:[#allocation4 + $0x1f80] sm:$0xff]  ;;  %12032 = vst [vmem:[#allocation44_spill] sm:$0xff] %v10820_v27  ;;  %v10849_v3 = vld [vmem:[#allocation4 + $0x1ff8] sm:$0xff]  ;;  %v4104_v5 = vrot.slane %v1570_v46, %v12035_v48  ;;  %v4025_v27 = vrot.slane %v1554_v38, %v12035_v48  ;;  %v4030_v46 = vrot.slane %v1555_v10, %v11894_v4 }
 0x325   : > { %6026 = vmatpush1.bf16.msra.mxu0 %v6025_v30  ;;  %v1568_v30 = vmul.f32 0.0625, %v10616_v57  ;;  %v1569_v57 = vmul.f32 0.0625, %v10631_v25  ;;  %v1571_v25 = vmul.f32 0.0625, %v10639_v9  ;;  %v1572_v9 = vmul.f32 0.0625, %v10643_v0  ;;  %v12041_v38 = vld [vmem:[#allocation22_spill] sm:$0xff]  ;;  %v12047_v48 = vld [vmem:[#allocation23_spill] sm:$0xff] }
 0x326   : > { %6538 = vmatpush1.bf16.msra.mxu1 %v6537_v31  ;;  %6028 = vmatprep.subr.bf16.mxu0 %v6027_v16  ;;  %v10829_v16 = vpop.xlane.xlu0 %1310  ;;  %v1553_v31 = vmul.f32 0.0625, %v10633_v29  ;;  %v4011_v29 = vrot.slane %v1551_v18, %v11965_v59  ;;  %v1573_v0 = vmul.f32 0.0625, %v10647_v56 }
 0x327   : > { %6540 = vmatprep.subr.bf16.mxu1 %v6539_v44  ;;  %v10835_v41 = vpop.xlane.xlu1 %1262  ;;  %v4094_v39 = vrot.slane %v1568_v30, %v11966_v6  ;;  %v4015_v44 = vrot.slane %v1552_v45, %v11966_v6  ;;  %v4099_v34 = vrot.slane %v1569_v57, %v11888_v28  ;;  %v4109_v59 = vrot.slane %v1571_v25, %v11894_v4 }
 0x328   : > { %v4020_v30 = vrot.slane %v1553_v31, %v11888_v28  ;;  %v1557_v6 = vmul.f32 0.0625, %v10649_v12  ;;  %v12037_v28 = vpack.c.bf16 %v10702_v42, %v10700_v7  ;;  %v4114_v31 = vrot.slane %v1572_v9, %v11970_v22 }
 0x329   : > { %6030 = vmatpush1.bf16.msra.mxu0 %v6029_v43  ;;  %v10855_v43 = vld [vmem:[#allocation4 + $0x1fc0] sm:$0xff]  ;;  %v4095_v18 = vsel %vm2881_vm1, %v4094_v39, %v4090_v50  ;;  %v1574_v45 = vmul.f32 0.0625, %v10657_v17  ;;  %v12038_v12 = vpack.c.bf16 %v10706_v33, %v10704_v52  ;;  %v4016_v2 = vsel %vm2881_vm1, %v4015_v44, %v4011_v29  ;;  %v12040_v50 = vld [vmem:[#allocation51_spill] sm:$0xff]  ;;  %v12043_v44 = vld [vmem:[#allocation45_spill] sm:$0xff] }
 0x32a   : > { %6542 = vmatpush1.bf16.msra.mxu1 %v6541_v63  ;;  %6032 = vmatprep.subr.bf16.mxu0 %v6031_v15  ;;  %v10857_v63 = vld [vmem:[#allocation4 + $0x1fe0] sm:$0xff]  ;;  %v1314_v11 = vpop.xlane.xlu0 %1313  ;;  %v4100_v7 = vsel %vm2888_vm2, %v4099_v34, %v4095_v18  ;;  %v4035_v42 = vrot.slane %v1556_v13, %v11970_v22  ;;  %v1558_v4 = vmul.f32 0.0625, %v12040_v50  ;;  %v4021_v39 = vsel %vm2888_vm2, %v4020_v30, %v4016_v2  ;;  %v12042_v33 = vld [vmem:[#allocation59_spill] sm:$0xff]  ;;  %v12044_v29 = vld [vmem:[#allocation33_spill] sm:$0xff] }
 0x32b   : > { %6544 = vmatprep.subr.bf16.mxu1 %v6543_v62  ;;  %v1266_v15 = vpop.xlane.xlu1 %1265  ;;  %v6563_v62 = vpack.c.bf16 %v10849_v3, %v10847_v14  ;;  %v6053_v56 = vpack.c.bf16 %v10857_v63, %v10855_v43  ;;  %v4105_v17 = vsel %vm2895_vm3, %v4104_v5, %v4100_v7  ;;  %v4119_v52 = vrot.slane %v1573_v0, %v12041_v38  ;;  %v12048_v0 = vld [vmem:[#allocation32_spill] sm:$0xff]  ;;  %v12054_v50 = vld [vmem:[#allocation18_spill] sm:$0xff] }
 0x32c   : > { %v1575_v25 = vmul.f32 0.0625, %v12042_v33  ;;  %v4026_v51 = vsel %vm2895_vm3, %v4025_v27, %v4021_v39  ;;  %v4110_v36 = vsel %vm2902_vm4, %v4109_v59, %v4105_v17  ;;  %v4040_v34 = vrot.slane %v1557_v6, %v12041_v38  ;;  %v12057_v17 = vld [vmem:[#allocation25_spill] sm:$0xff] }
 0x32d   : > { %6034 = vmatpush1.bf16.msra.mxu0 %v12036_v8  ;;  %v1559_v22 = vmul.f32 0.0625, %v12043_v44  ;;  %v12045_v9 = vpack.c.bf16 %v10714_v35, %v12044_v29  ;;  %v12046_v5 = vpack.c.bf16 %v10720_v23, %v10718_v54  ;;  %v4031_v13 = vsel %vm2902_vm4, %v4030_v46, %v4026_v51  ;;  %v12051_v23 = vld [vmem:[#allocation46_spill] sm:$0xff] }
 0x32e   : > { %6546 = vmatpush1.bf16.msra.mxu1 %v12037_v28  ;;  %6036 = vmatprep.subr.bf16.mxu0 %v12038_v12  ;;  %v1317_v57 = vpop.xlane.xlu0 %1316  ;;  %v4115_v30 = vsel %vm2909_vm5, %v4114_v31, %v4110_v36  ;;  %v4124_v27 = vrot.slane %v1574_v45, %v12047_v48  ;;  %v1576_v59 = vmul.f32 0.0625, %v12048_v0  ;;  %v12049_v6 = vpack.c.bf16 %v10724_v1, %v10722_v26  ;;  %v12052_v45 = vld [vmem:[#allocation24_spill] sm:$0xff] }
 0x32f   : > { %6548 = vmatprep.subr.bf16.mxu1 %v12039_v47  ;;  %v1269_v10 = vpop.xlane.xlu1 %1268  ;;  %v12050_v35 = vpack.c.bf16 %v10728_v40, %v10726_v32  ;;  %v4036_v8 = vsel %vm2909_vm5, %v4035_v42, %v4031_v13  ;;  %v4045_v54 = vrot.slane %v1558_v4, %v12047_v48  ;;  %v1560_v28 = vmul.f32 0.0625, %v12051_v23  ;;  %v12053_v42 = vld [vmem:[#allocation42_spill] sm:$0xff]  ;;  %v12064_v13 = vld [vmem:[#allocation28_spill] sm:$0xff] }
 0x330   : > { %v1577_v18 = vmul.f32 0.0625, %v10829_v16  ;;  %v4120_v31 = vsel %vm2916_vm6, %v4119_v52, %v4115_v30  ;;  %v4129_v12 = vrot.slane %v1575_v25, %v12052_v45  ;;  %v1561_v26 = vmul.f32 0.0625, %v10835_v41  ;;  %v12067_v0 = vld [vmem:[#allocation40_spill] sm:$0xff] }
 0x331   : > { %6038 = vmatpush1.bf16.msra.mxu0 %v12045_v9  ;;  %v1578_v1 = vmul.f32 0.0625, %v1314_v11  ;;  %v4041_v40 = vsel %vm2916_vm6, %v4040_v34, %v4036_v8  ;;  %v4050_v32 = vrot.slane %v1559_v22, %v12052_v45  ;;  %v1562_v2 = vmul.f32 0.0625, %v1266_v15  ;;  %v12059_v15 = vld [vmem:[#allocation20_spill] sm:$0xff]  ;;  %v12063_v22 = vld [vmem:[#allocation27_spill] sm:$0xff] }
 0x332   : > { %6550 = vmatpush1.bf16.msra.mxu1 %v12046_v5  ;;  %6040 = vmatprep.subr.bf16.mxu0 %v12049_v6  ;;  %v1320_v46 = vpop.xlane.xlu0 %1319  ;;  %v1579_v7 = vmul.f32 0.0625, %v1317_v57  ;;  %v12055_v4 = vpack.c.bf16 %v12053_v42, %v12054_v50  ;;  %v12056_v16 = vpack.c.bf16 %v10744_v49, %v10742_v20  ;;  %v4125_v39 = vsel %vm2923_vm7, %v4124_v27, %v4120_v31  ;;  %v12060_v57 = vld [vmem:[#allocation43_spill] sm:$0xff]  ;;  %v12062_v20 = vld [vmem:[#allocation26_spill] sm:$0xff]  ;;  %v12066_v27 = vld [vmem:[#allocation37_spill] sm:$0xff] }
 0x333   : > { %6552 = vmatprep.subr.bf16.mxu1 %v12050_v35  ;;  %v1272_v47 = vpop.xlane.xlu1 %1271  ;;  %v4134_v41 = vrot.slane %v1576_v59, %v12057_v17  ;;  %v1563_v11 = vmul.f32 0.0625, %v1269_v10  ;;  %v1580_v38 = vmul.f32 0.0625, %v1320_v46  ;;  %v12058_v52 = vpack.c.bf16 %v10754_v60, %v10752_v55  ;;  %v12075_v50 = vld [vmem:[#allocation44_spill] sm:$0xff] }
 0x334   : > { %v12061_v33 = vpack.c.bf16 %v12059_v15, %v12060_v57  ;;  %v4046_v25 = vsel %vm2923_vm7, %v4045_v54, %v4041_v40  ;;  %v4055_v51 = vrot.slane %v1560_v28, %v12057_v17  ;;  %v4139_v49 = vrot.slane %v1577_v18, %v12062_v20  ;;  %v12069_v54 = vld [vmem:[#allocation29_spill] sm:$0xff]  ;;  %v12070_v28 = vld [vmem:[#allocation39_spill] sm:$0xff]  ;;  %v12080_v15 = vld [vmem:[#allocation38_spill] sm:$0xff] }
 0x335   : > { %6042 = vmatpush1.bf16.msra.mxu0 %v12055_v4  ;;  %v1564_v36 = vmul.f32 0.0625, %v1272_v47  ;;  %v4130_v44 = vsel %vm2930_vm8, %v4129_v12, %v4125_v39  ;;  %v4060_v10 = vrot.slane %v1561_v26, %v12062_v20  ;;  %v4144_v29 = vrot.slane %v1578_v1, %v12063_v22  ;;  %v12073_v26 = vld [vmem:[#allocation30_spill] sm:$0xff]  ;;  %v12076_v4 = vld [vmem:[#allocation35_spill] sm:$0xff] }
 0x336   : > { %6554 = vmatpush1.bf16.msra.mxu1 %v12056_v16  ;;  %6044 = vmatprep.subr.bf16.mxu0 %v12058_v52  ;;  %v1323_v34 = vpop.xlane.xlu0 %1322  ;;  %v4051_v9 = vsel %vm2930_vm8, %v4050_v32, %v4046_v25  ;;  %v4065_v5 = vrot.slane %v1562_v2, %v12063_v22  ;;  %v4149_v30 = vrot.slane %v1579_v7, %v12064_v13  ;;  %v12079_v52 = vld [vmem:[#allocation47_spill] sm:$0xff]  ;;  %v12082_v14 = vlaneseq }
 0x337   : > { %6556 = vmatprep.subr.bf16.mxu1 %v12061_v33  ;;  %v1581_v55 = vmul.f32 0.0625, %v1323_v34  ;;  %v1275_v60 = vpop.xlane.xlu1 %1274  ;;  %v12065_v48 = vpack.c.bf16 %v10768_v19, %v10766_v37  ;;  %v12068_v59 = vpack.c.bf16 %v12066_v27, %v12067_v0  ;;  %v4135_v35 = vsel %vm2937_vm9, %v4134_v41, %v4130_v44  ;;  %v2607_v37 = vld [vmem:[#allocation4 + $0x1fd0] sm:$0xff]  ;;  %v12085_v44 = vld [vmem:[#allocation15_spill] sm:$0xff]  ;;  %v5357_v0 = vld [vmem:[#allocation7] sm:$0xf] }
 0x338   : > { %v1565_v6 = vmul.f32 0.0625, %v1275_v60  ;;  %v4070_v8 = vrot.slane %v1563_v11, %v12064_v13  ;;  %v4154_v23 = vrot.slane %v1580_v38, %v12069_v54  ;;  %v12071_v18 = vpack.c.bf16 %v10796_v24, %v12070_v28  ;;  %v2611_v19 = vld [vmem:[#allocation4 + $0x1ff0] sm:$0xff]  ;;  %v12078_v11 = vld [vmem:[#allocation31_spill] sm:$0xff] }
 0x339   : > { %6046 = vmatpush1.bf16.msra.mxu0 %v12065_v48  ;;  %v12072_v46 = vpack.c.bf16 %v10800_v53, %v10798_v61  ;;  %v4056_v31 = vsel %vm2937_vm9, %v4055_v51, %v4051_v9  ;;  %v4140_v45 = vsel %vm2944_vm10, %v4139_v49, %v4135_v35  ;;  %v4075_v12 = vrot.slane %v1564_v36, %v12069_v54  ;;  %v5360_v35 = vld [vmem:[#allocation9] sm:$0xf] }
 0x33a   : > { %6558 = vmatpush1.bf16.msra.mxu1 %v12068_v59  ;;  %6048 = vmatprep.subr.bf16.mxu0 %v12071_v18  ;;  %v4159_v1 = vrot.slane %v1581_v55, %v12073_v26  ;;  %v1326_v47 = vpop.xlane.xlu0 %1325  ;;  %v4061_v40 = vsel %vm2944_vm10, %v4060_v10, %v4056_v31  ;;  %v4145_v24 = vsel %vm2951_vm11, %v4144_v29, %v4140_v45  ;;  %vm10998_vm0 = vcmp.lt.s32.totalorder %v12082_v14, 512 }
 0x33b   : > { %6560 = vmatprep.subr.bf16.mxu1 %v12072_v46  ;;  %v4080_v32 = vrot.slane %v1565_v6, %v12073_v26  ;;  %v1582_v2 = vmul.f32 0.0625, %v1326_v47  ;;  %v1278_v53 = vpop.xlane.xlu1 %1277  ;;  %v4066_v61 = vsel %vm2951_vm11, %v4065_v5, %v4061_v40  ;;  %v4150_v7 = vsel %vm2958_vm12, %v4149_v30, %v4145_v24 }
 0x33c   : > { %v12074_v42 = vpack.c.bf16 %v10810_v21, %v10808_v58  ;;  %v12077_v16 = vpack.c.bf16 %v12075_v50, %v12076_v4  ;;  %v1566_v39 = vmul.f32 0.0625, %v1278_v53  ;;  %v6565_v17 = vpack.c.bf16 %v2611_v19, %v2607_v37 }
 0x33d   : > { %v4071_v41 = vsel %vm2958_vm12, %v4070_v8, %v4066_v61  ;;  %v4164_v38 = vrot.slane %v1582_v2, %v12078_v11  ;;  %v12081_v57 = vpack.c.bf16 %v12079_v52, %v12080_v15  ;;  %v4155_v21 = vsel %vm2965_vm13, %v4154_v23, %v4150_v7  ;;  %v5393_v2 = vld [vmem:[#allocation3] sm:$0x1] }
 0x33e   : > { %6050 = vmatpush1.bf16.msra.mxu0 %v12074_v42  ;;  %6562 = vmatpush1.bf16.msra.mxu1 %v12077_v16  ;;  %v4076_v58 = vsel %vm2965_vm13, %v4075_v12, %v4071_v41  ;;  %v4085_v33 = vrot.slane %v1566_v39, %v12078_v11  ;;  %v4160_v25 = vsel %vm2972_vm14, %v4159_v1, %v4155_v21  ;;  %v6866_v49 = vmov 0.0  }
 0x33f   : > { %6052 = vmatprep.subr.bf16.mxu0 %v12081_v57  ;;  %6564 = vmatprep.subr.bf16.mxu1 %v6563_v62  ;;  %v4165_v51 = vsel %vm2979_vm15, %v4164_v38, %v4160_v25  ;;  %v4081_v20 = vsel %vm2972_vm14, %v4080_v32, %v4076_v58  ;;  %301 = vst.msk [vmem:[#allocation2] sm:$0xf] %vm10998_vm0, %v6866_v49  ;;  %v6867_v36 = vmov 1966171168   ;;  %v5365_v54 = vsub.s32 0, %v12085_v44 }
 0x340   : > { %v4086_v3 = vsel %vm2979_vm15, %v4085_v33, %v4081_v20  ;;  %4743 = vmatprep.mubr.f32.mxu0 %v4165_v51  ;;  %5311 = vmatprep.mubr.f32.mxu1 %v4165_v51  ;;  %v5325_v34 = vunpack.c.l.s4 %v6867_v36  ;;  %v5369_v23 = vsub.s32 1, %v12085_v44  ;;  %v5373_v28 = vsub.s32 2, %v12085_v44 }
 0x341   : > { %v5377_v46 = vsub.s32 3, %v12085_v44  ;;  %vm5383_vm1 = vcmask 1040384   ;;  %vm5401_vm2 = vcmask 0  }
 0x342   : > { %6054 = vmatpush1.bf16.msra.mxu0 %v6053_v56  ;;  %6566 = vmatpush1.bf16.msra.mxu1 %v6565_v17  ;;  %v5326_v43 = vunpack.c.0.s8 %v5325_v34 }
 0x344   : > { %v5329_v10 = vsub.s32 %v5326_v43, %v12085_v44 }
 0x345   : > { %4744 = vmatmul.mubr.f32.vlgmr.msra.gmra.mrb[0].mxu0 %v4086_v3  ;;  %5312 = vmatmul.mubr.f32.vlgmr.msra.gmra.mrb[0].mxu1 %v4086_v3 }
 0x346   : > { %v2613_v30 = vld [vmem:[#allocation2] sm:$0xf] }
 0x418   : > { %v4745_v63 = vpop.f32.mrb[0].mxu0  ;;  %v5313_v56 = vpop.f32.mrb[0].mxu1 }
 0x419   : > { %v4747_v22 = vpop.f32.mrb[1].mxu0  ;;  %v5315_v29 = vpop.f32.mrb[1].mxu1 }
 0x41a   : > { %v5322_v55 = vcombine.low %v4745_v63, %v4747_v22  ;;  %v5323_v60 = vcombine.low %v5313_v56, %v5315_v29 }
 0x41c   : > { %v5330_v9 = vrot.slane %v5322_v55, %v5329_v10  ;;  %v5337_v5 = vrot.slane %v5323_v60, %v5329_v10 }
 0x41e   : > { %v5338_v13 = vcombine.low %v5330_v9, %v5337_v5 }
 0x420   : > { %v5345_v48 = vrot.slane %v5338_v13, %v5329_v10 }
 0x422   : > { %v5347_v27 = vadd.f32 %v5345_v48, %v2613_v30 }
 0x424   : > { %5352 = vst.msk [vmem:[#allocation2] sm:$0xf] %vm10998_vm0, %v5347_v27 }
 0x42b   : > { %v5356_v59 = vld [vmem:[#allocation2] sm:$0xf] }
 0x42c   : > { %v5358_v6 = vadd.f32 %v5357_v0, %v5356_v59 }
 0x42e   : > { %v5359_v8 = vmax.f32 %v5358_v6, 0.0 }
 0x430   : > { %v5361_v18 = vmul.f32 %v5360_v35, %v5359_v8 }
 0x432   : > { %v5366_v37 = vrot.slane %v5361_v18, %v5365_v54  ;;  %v5370_v19 = vrot.slane %v5361_v18, %v5369_v23  ;;  %v5374_v31 = vrot.slane %v5361_v18, %v5373_v28  ;;  %v5378_v45 = vrot.slane %v5361_v18, %v5377_v46 }
 0x434   : > { %v5384_v12 = vsel %vm5383_vm1, %v5366_v37, 0.0  ;;  %v5385_v26 = vsel %vm5383_vm1, %v5370_v19, 0.0  ;;  %v5387_v47 = vsel %vm5383_vm1, %v5374_v31, 0.0  ;;  %v5389_v24 = vsel %vm5383_vm1, %v5378_v45, 0.0 }
 0x435   : > { %v5386_v1 = vadd.f32 %v5385_v26, %v5384_v12 }
 0x437   : > { %v5388_v40 = vadd.f32 %v5387_v47, %v5386_v1 }
 0x439   : > { %v5390_v32 = vadd.f32 %v5389_v24, %v5388_v40 }
 0x43b   : > { %5391 = vadd.xlane.f32.xlu0 %v5390_v32 }
 0x4c8   : > { %v5392_v53 = vpop.xlane.xlu0 %5391 }
 0x4c9   : > { %v5394_v61 = vadd.f32 %v5393_v2, %v5392_v53 }
 0x4cb   : > { %v5537_v7 = vmul.f32 -1.442695, %v5394_v61 }
 0x4cd   : > { %6685 = vpow2.f32 %v5537_v7 }
 0x4d7   : > { %v6686_v42 = vpop.eup %6685 }
 0x4d8   : > { %v5398_v50 = vadd.f32 1.0, %v6686_v42 }
 0x4da   : > { %6687 = vrcp.f32 %v5398_v50 }
 0x4e4   : > { %v6688_v4 = vpop.eup %6687 }
 0x4e5   : > { %5402 = vst.msk [vmem:[%s282_s16] sm:$0x1] %vm5401_vm2, %v6688_v4 }
 0x4e6   : > { %6786 = shalt.err (!%p6783_p6)
}
 0x4e7   : > { %s6787_s10 = scalar_lea.hbm %s11016_s26, 128  ;;  %s6791_s12 = scalar_lea.hbm %s11068_s5, 256 }
 0x4e8   : > { %p6788_p7 = scmp.ne.s32.totalorder %s11016_s26, %s6787_s10  ;;  %p6792_p0 = scmp.lt.u32.totalorder %s11016_s26, %s11068_s5 }
 0x4e9   : > { %p6793_p2 = scmp.lt.u32.totalorder %s6791_s12, %s6787_s10  ;;  %p6795_p13 = scmp.lt.u32.totalorder %s6787_s10, %s11016_s26 }
 0x4ea   : > { %p6789_p9 = pnand %p6788_p7, %p12086_p4 }
 0x4eb   : > { %p6794_p1 = por %p6793_p2, %p6792_p0 }
 0x4ec   : > { %p6790_p12 = pneg %p6789_p9 }
 0x4ed   : > { %p6796_p8 = por %p6795_p13, %p6794_p1 }
 0x4ef   : > { %p6797_p10 = pnand %p6796_p8, %p6790_p12 }
 0x4f1   : > { %6800 = shalt.err (!%p6797_p10)
}
 0x4f2   : > { %6607 = dma.vmem_to_hbm [thread:$0]  (%p12086_p4), %s11018_s17, 128, %s11016_s26, %s5404_s28  }
 0x4f3 PF: > { %p6629_p11 = scmp.ge.s32.totalorder %s6859_s25, 2  ;;  %s5429_s9 = sand.u32 1, %s6839_s20  }
 0x4f4   : > { %p12087_p3 = scmp.ne.s32.totalorder %s11329_s6, 0  ;;  %s5430_s13 = scalar_lea.sflag [#allocation6], %s5429_s9 }
 0x4f6   : > { %p6620_p5 = pnand %p6629_p11, %p12087_p3 }
 0x4f8   : > { %6834 = dma.done.wait (!%p6620_p5), %s5430_s13, 128  }
 0x4f9   : > { %6836 = vsyncadd (!%p6620_p5), %s5430_s13, 4294967168  ;;  %s22_s25 = sadd.s32 1, %s6859_s25   ;;  %s12088_s29 = sld [smem:[#allocation14_spill]] }
 0x4fa   : > { %p19_p6 = scmp.ge.s32.totalorder %s22_s25, 4   ;;  %s12089_s20 = smov %s6843_s21 }
 0x4fb   : > { %s12090_s21 = smov %s6847_s22  ;;  %s12091_s22 = smov %s6955_s7 }
 0x4fc   : > { %s12092_s23 = smov %s6855_s24  ;;  %21 = sbr.rel (!%p19_p6) target bundleno = 9 (0x9), region = 97 }
 0x4ff   : > { %s12093_s24 = smov %s12088_s29 }
 0x503   :  { %5435 = vsyncpa [#allocation5], 1 }
 0x504   :  { %5437 = vsyncpa [#allocation5 + $0x1], 1 }
 0x505   :  { %5438 = vsyncpa [#allocation8], 1 }
 0x506   :  { %5439 = vsyncpa [#allocation6], 1 }
 0x507   :  { %5441 = vsyncpa [#allocation6 + $0x1], 1 }

</bundles_post_ra>
